<compile_context>
chip_gen: v6e
topology: v6e:2x2x1
jax: 0.10.0
libtpu: 0.0.40
codegen_flags: <defaults>
</compile_context>

<pallas_src>
import functools

import jax
import jax.numpy as jnp
from jax.experimental import pallas as pl
from jax.experimental.pallas import tpu as pltpu


_COMPILER_PARAMS = pltpu.CompilerParams(
    dimension_semantics=("parallel",),
    vmem_limit_bytes=48 * 1024 * 1024,
)


def _round_up(x, m):
    return (x + m - 1) // m * m


# ---------------------- fused conv3x3 + ReLU + maxpool ----------------------

def _conv_pool_kernel(x_ref, w_ref, b_ref, o_ref, *, ws):
    """Fused 3x3 'same' conv + bias + ReLU + 2x2 max-pool (floor).

    x_ref : (BT*Ss, 4*Cin) bf16  space-to-depth'ed, zero-padded input rows
    w_ref : (4, 4, 4*Cin, Cout) bf16  (pool parity, 2x2 tap) weights, resident
    b_ref : (1, Cout) f32
    o_ref : (BT*Ss, Cout) bf16  pooled output on the half-res (Hs, Ws) grid;
            rows with hu >= Hp or wu >= Wp are garbage and dropped by caller.
    """
    n_rows, cout = o_ref.shape
    tail = ws + 1                       # largest tap offset
    L = n_rows - tail                   # rows whose taps stay inside the block

    pooled = None
    for par in range(4):                # 4 pooling parities (dh, dw)
        acc = jnp.zeros((L, cout), jnp.float32)
        for t in range(4):              # 2x2 taps on the half-res grid
            off = (t // 2) * ws + (t % 2)
            acc = acc + jnp.dot(x_ref[pl.ds(off, L), :], w_ref[par, t],
                                preferred_element_type=jnp.float32)
        pooled = acc if pooled is None else jnp.maximum(pooled, acc)

    # max-pool commutes with (monotone) bias+ReLU since all parities share b.
    y = jnp.maximum(pooled + b_ref[...], 0.0)
    o_ref[pl.ds(0, L), :] = y.astype(o_ref.dtype)
    o_ref[pl.ds(L, tail), :] = jnp.zeros((tail, cout), o_ref.dtype)


def _s2d_conv_weights(w_hwio):
    """(3,3,Cin,Cout) HWIO -> (4 parities, 4 taps, 4*Cin, Cout) bf16 weights
    matching the 2x2 space-to-depth input layout (channel order ph, pw, cin)."""
    cin, cout = w_hwio.shape[2], w_hwio.shape[3]
    w = w_hwio.astype(jnp.float32)
    # axes: (dh, dw, Dh, Dw, ph, pw, cin, cout)
    wq = jnp.zeros((2, 2, 2, 2, 2, 2, cin, cout), jnp.float32)
    for dh in range(2):
        for dw in range(2):
            for kh in range(3):
                Dh, ph = divmod(dh + kh, 2)
                for kw in range(3):
                    Dw, pw = divmod(dw + kw, 2)
                    wq = wq.at[dh, dw, Dh, Dw, ph, pw].set(w[kh, kw])
    return wq.reshape(4, 4, 4 * cin, cout).astype(jnp.bfloat16)


def conv3x3_relu_pool(x_nhwc, w_hwio, b):
    """'same' 3x3 conv (stride 1, pad 1) + ReLU + 2x2 max-pool. NHWC in/out."""
    B, H, W, Cin = x_nhwc.shape
    Cout = w_hwio.shape[-1]
    Hp, Wp = H // 2, W // 2

    # pad by 1 for the 'same' conv; one extra row/col on the bottom/right when
    # the dim is odd so the padded size is even and 2x2 space-to-depth-able.
    pad_b = 1 + (H % 2)
    pad_r = 1 + (W % 2)
    xp = jnp.pad(x_nhwc.astype(jnp.bfloat16),
                 ((0, 0), (1, pad_b), (1, pad_r), (0, 0)))
    Hs, Ws = (H + 1 + pad_b) // 2, (W + 1 + pad_r) // 2
    Ss = Hs * Ws

    # space-to-depth 2x2: (B, Hs, Ws, 4*Cin), channel order (ph, pw, cin).
    xs = xp.reshape(B, Hs, 2, Ws, 2, Cin).transpose(0, 1, 3, 2, 4, 5)
    xs = xs.reshape(B * Ss, 4 * Cin)

    wq = _s2d_conv_weights(w_hwio)
    bq = b.reshape(1, Cout).astype(jnp.float32)

    # batch tile: whole batch if small, else 8 images per grid step (keeps the
    # sublane dim of every block a multiple of 8 and VMEM use < 2 MiB).
    bt = B if B <= 8 else 8
    assert B % bt == 0, "batch must be <= 8 or a multiple of 8"

    out_flat = pl.pallas_call(
        functools.partial(_conv_pool_kernel, ws=Ws),
        out_shape=jax.ShapeDtypeStruct((B * Ss, Cout), jnp.bfloat16),
        grid=(B // bt,),
        in_specs=[
            pl.BlockSpec((bt * Ss, 4 * Cin), lambda i: (i, 0)),
            pl.BlockSpec((4, 4, 4 * Cin, Cout), lambda i: (0, 0, 0, 0)),
            pl.BlockSpec((1, Cout), lambda i: (0, 0)),
        ],
        out_specs=pl.BlockSpec((bt * Ss, Cout), lambda i: (i, 0)),
        compiler_params=_COMPILER_PARAMS,
    )(xs, wq, bq)

    # drop the garbage right column / bottom row of the half-res grid.
    return out_flat.reshape(B, Hs, Ws, Cout)[:, :Hp, :Wp, :]


# ------------------------- fused fc1 + ReLU + fc2 ---------------------------

def _mlp_kernel(x_ref, w1_ref, b1_ref, w2_ref, b2_ref, o_ref):
    h = jnp.dot(x_ref[...], w1_ref[...], preferred_element_type=jnp.float32)
    h = jnp.maximum(h + b1_ref[...], 0.0)
    o = jnp.dot(h.astype(w2_ref.dtype), w2_ref[...],
                preferred_element_type=jnp.float32)
    o_ref[...] = (o + b2_ref[...]).astype(o_ref.dtype)


def mlp_head(x, w1, b1, w2, b2):
    """Fused Linear(144,512)+ReLU+Linear(512,classes), M-tiled over batch."""
    B, K = x.shape
    Hdim = w1.shape[1]
    classes = w2.shape[1]
    Np = _round_up(classes, 128)        # lane-dense final store, sliced after

    if B <= 256:
        tm = _round_up(B, 8)
        Bp = tm
    else:
        tm = 256
        Bp = _round_up(B, tm)

    xq = jnp.pad(x.astype(jnp.bfloat16), ((0, Bp - B), (0, 0)))
    w1q = w1.astype(jnp.bfloat16)
    b1q = b1.reshape(1, Hdim).astype(jnp.float32)
    w2q = jnp.pad(w2.astype(jnp.bfloat16), ((0, 0), (0, Np - classes)))
    b2q = jnp.pad(b2.reshape(1, classes).astype(jnp.float32),
                  ((0, 0), (0, Np - classes)))

    out = pl.pallas_call(
        _mlp_kernel,
        out_shape=jax.ShapeDtypeStruct((Bp, Np), jnp.float32),
        grid=(Bp // tm,),
        in_specs=[
            pl.BlockSpec((tm, K), lambda i: (i, 0)),
            pl.BlockSpec((K, Hdim), lambda i: (0, 0)),
            pl.BlockSpec((1, Hdim), lambda i: (0, 0)),
            pl.BlockSpec((Hdim, Np), lambda i: (0, 0)),
            pl.BlockSpec((1, Np), lambda i: (0, 0)),
        ],
        out_specs=pl.BlockSpec((tm, Np), lambda i: (i, 0)),
        compiler_params=_COMPILER_PARAMS,
    )(xq, w1q, b1q, w2q, b2q)
    return out[:B, :classes]


# ------------------------------ model forward -------------------------------

def init_params(key, classes):
    """Deterministic synthetic params (PyTorch-like uniform fan-in init).
    NOTE: conv weights are HWIO; a real PyTorch checkpoint (OIHW) must be
    permuted with w.transpose(2, 3, 1, 0) before use."""
    ks = jax.random.split(key, 10)

    def u(k, shape, fan_in):
        bound = 1.0 / jnp.sqrt(jnp.float32(fan_in))
        return jax.random.uniform(k, shape, jnp.float32, -bound, bound)

    return {
        "conv1_w": u(ks[0], (3, 3, 1, 32), 9 * 1),
        "conv1_b": u(ks[1], (32,), 9 * 1),
        "conv2_w": u(ks[2], (3, 3, 32, 32), 9 * 32),
        "conv2_b": u(ks[3], (32,), 9 * 32),
        "conv3_w": u(ks[4], (3, 3, 32, 16), 9 * 32),
        "conv3_b": u(ks[5], (16,), 9 * 32),
        "fc1_w":   u(ks[6], (16 * 3 * 3, 512), 16 * 3 * 3),
        "fc1_b":   u(ks[7], (512,), 16 * 3 * 3),
        "fc2_w":   u(ks[8], (512, classes), 512),
        "fc2_b":   u(ks[9], (classes,), 512),
    }


@jax.jit
def attacker_forward(x_nchw, params):
    """Replicates AttackerNetworkSmall_MNIST_L.forward (NCHW input)."""
    x = jnp.transpose(x_nchw, (0, 2, 3, 1))                       # -> NHWC
    x = conv3x3_relu_pool(x, params["conv1_w"], params["conv1_b"])  # (B,14,14,32)
    x = conv3x3_relu_pool(x, params["conv2_w"], params["conv2_b"])  # (B, 7, 7,32)
    x = conv3x3_relu_pool(x, params["conv3_w"], params["conv3_b"])  # (B, 3, 3,16)
    B = x.shape[0]
    # nn.Flatten on NCHW flattens (c, h, w): transpose back before reshape.
    x = jnp.transpose(x, (0, 3, 1, 2)).reshape(B, -1)               # (B, 144)
    return mlp_head(x, params["fc1_w"], params["fc1_b"],
                    params["fc2_w"], params["fc2_b"])               # (B, classes)


@jax.jit
def reference_forward(x_nchw, params):
    """Pure-XLA f32 reference for validation."""
    hp = jax.lax.Precision.HIGHEST
    x = jnp.transpose(x_nchw, (0, 2, 3, 1)).astype(jnp.float32)

    def conv(x, w, b):
        y = jax.lax.conv_general_dilated(
            x, w, (1, 1), "SAME",
            dimension_numbers=("NHWC", "HWIO", "NHWC"), precision=hp)
        return jax.nn.relu(y + b)

    def pool(x):
        return jax.lax.reduce_window(x, -jnp.inf, jax.lax.max,
                                     (1, 2, 2, 1), (1, 2, 2, 1), "VALID")

    x = pool(conv(x, params["conv1_w"], params["conv1_b"]))
    x = pool(conv(x, params["conv2_w"], params["conv2_b"]))
    x = pool(conv(x, params["conv3_w"], params["conv3_b"]))
    B = x.shape[0]
    x = jnp.transpose(x, (0, 3, 1, 2)).reshape(B, -1)
    x = jax.nn.relu(jnp.dot(x, params["fc1_w"], precision=hp) + params["fc1_b"])
    return jnp.dot(x, params["fc2_w"], precision=hp) + params["fc2_b"]


if __name__ == "__main__":
    classes = 10
    batch = 2
    key = jax.random.PRNGKey(0)
    k_x, k_p = jax.random.split(key)

    # MNIST-sized input is required by the Linear(16*3*3, 512) layer.
    x = jax.random.normal(k_x, (batch, 1, 28, 28), dtype=jnp.float32)
    params = init_params(k_p, classes)

    out = jax.block_until_ready(attacker_forward(x, params))
    assert out.shape == (batch, classes), out.shape
    assert out.dtype == jnp.float32

    # numerical sanity check vs. a pure-XLA f32 reference (kernels use bf16
    # activations/weights with f32 accumulation -> loose tolerance).
    ref = jax.block_until_ready(reference_forward(x, params))
    err = float(jnp.max(jnp.abs(out - ref)))
    assert err < 8e-2, f"kernel/reference mismatch: max abs err {err}"

    print("KERNEL_OK")
</pallas_src>

<mosaic_0001>
module attributes {stable_mosaic.version = 11 : i64} {
  func.func @_conv_pool_kernel(%arg0: i32, %arg1: memref<450x4xbf16, #tpu.memory_space<vmem>>, %arg2: memref<4x4x4x32xbf16, #tpu.memory_space<vmem>>, %arg3: memref<1x32xf32, #tpu.memory_space<vmem>>, %arg4: memref<450x32xbf16, #tpu.memory_space<vmem>>) attributes {dimension_semantics = [#tpu.dimension_semantics<parallel>], iteration_bounds = array<i64: 1>, scalar_prefetch = 0 : i64, scratch_operands = 0 : i64, tpu.core_type = #tpu.core_type<tc>, window_params = [{transform_indices = @transform_0, window_bounds = array<i64: 450, 4>}, {pipeline_mode = #tpu.pipeline_mode<synchronous>, transform_indices = @transform_1, window_bounds = array<i64: 4, 4, 4, 32>}, {pipeline_mode = #tpu.pipeline_mode<synchronous>, transform_indices = @transform_2, window_bounds = array<i64: 1, 32>}, {transform_indices = @transform_3, window_bounds = array<i64: 450, 32>}]} {
    %cst = arith.constant 0.000000e+00 : f32
    %0 = vector.broadcast %cst : f32 to vector<434x32xf32>
    %c0 = arith.constant 0 : index
    %c0_0 = arith.constant 0 : index
    %1 = vector.load %arg1[%c0, %c0_0] : memref<450x4xbf16, #tpu.memory_space<vmem>>, vector<434x4xbf16>
    %c0_1 = arith.constant 0 : index
    %c0_2 = arith.constant 0 : index
    %c0_3 = arith.constant 0 : index
    %c0_4 = arith.constant 0 : index
    %2 = vector.load %arg2[%c0_1, %c0_2, %c0_3, %c0_4] : memref<4x4x4x32xbf16, #tpu.memory_space<vmem>>, vector<1x1x4x32xbf16>
    %3 = vector.shape_cast %2 : vector<1x1x4x32xbf16> to vector<4x32xbf16>
    %cst_5 = arith.constant dense<0.000000e+00> : vector<434x32xf32>
    %4 = tpu.matmul %1, %3, %cst_5 {dimension_numbers = #tpu.dot_dimension_numbers<[1], [0], [0], [1], [0, 0, 1, 1], [], []>} : vector<434x4xbf16>, vector<4x32xbf16>, vector<434x32xf32> -> vector<434x32xf32>
    %5 = arith.addf %0, %4 : vector<434x32xf32>
    %c1 = arith.constant 1 : index
    %c0_6 = arith.constant 0 : index
    %6 = vector.load %arg1[%c1, %c0_6] : memref<450x4xbf16, #tpu.memory_space<vmem>>, vector<434x4xbf16>
    %c0_7 = arith.constant 0 : index
    %c1_8 = arith.constant 1 : index
    %c0_9 = arith.constant 0 : index
    %c0_10 = arith.constant 0 : index
    %7 = vector.load %arg2[%c0_7, %c1_8, %c0_9, %c0_10] : memref<4x4x4x32xbf16, #tpu.memory_space<vmem>>, vector<1x1x4x32xbf16>
    %8 = vector.shape_cast %7 : vector<1x1x4x32xbf16> to vector<4x32xbf16>
    %cst_11 = arith.constant dense<0.000000e+00> : vector<434x32xf32>
    %9 = tpu.matmul %6, %8, %cst_11 {dimension_numbers = #tpu.dot_dimension_numbers<[1], [0], [0], [1], [0, 0, 1, 1], [], []>} : vector<434x4xbf16>, vector<4x32xbf16>, vector<434x32xf32> -> vector<434x32xf32>
    %10 = arith.addf %5, %9 : vector<434x32xf32>
    %c15 = arith.constant 15 : index
    %c0_12 = arith.constant 0 : index
    %11 = vector.load %arg1[%c15, %c0_12] : memref<450x4xbf16, #tpu.memory_space<vmem>>, vector<434x4xbf16>
    %c0_13 = arith.constant 0 : index
    %c2 = arith.constant 2 : index
    %c0_14 = arith.constant 0 : index
    %c0_15 = arith.constant 0 : index
    %12 = vector.load %arg2[%c0_13, %c2, %c0_14, %c0_15] : memref<4x4x4x32xbf16, #tpu.memory_space<vmem>>, vector<1x1x4x32xbf16>
    %13 = vector.shape_cast %12 : vector<1x1x4x32xbf16> to vector<4x32xbf16>
    %cst_16 = arith.constant dense<0.000000e+00> : vector<434x32xf32>
    %14 = tpu.matmul %11, %13, %cst_16 {dimension_numbers = #tpu.dot_dimension_numbers<[1], [0], [0], [1], [0, 0, 1, 1], [], []>} : vector<434x4xbf16>, vector<4x32xbf16>, vector<434x32xf32> -> vector<434x32xf32>
    %15 = arith.addf %10, %14 : vector<434x32xf32>
    %c16 = arith.constant 16 : index
    %c0_17 = arith.constant 0 : index
    %16 = vector.load %arg1[%c16, %c0_17] : memref<450x4xbf16, #tpu.memory_space<vmem>>, vector<434x4xbf16>
    %c0_18 = arith.constant 0 : index
    %c3 = arith.constant 3 : index
    %c0_19 = arith.constant 0 : index
    %c0_20 = arith.constant 0 : index
    %17 = vector.load %arg2[%c0_18, %c3, %c0_19, %c0_20] : memref<4x4x4x32xbf16, #tpu.memory_space<vmem>>, vector<1x1x4x32xbf16>
    %18 = vector.shape_cast %17 : vector<1x1x4x32xbf16> to vector<4x32xbf16>
    %cst_21 = arith.constant dense<0.000000e+00> : vector<434x32xf32>
    %19 = tpu.matmul %16, %18, %cst_21 {dimension_numbers = #tpu.dot_dimension_numbers<[1], [0], [0], [1], [0, 0, 1, 1], [], []>} : vector<434x4xbf16>, vector<4x32xbf16>, vector<434x32xf32> -> vector<434x32xf32>
    %20 = arith.addf %15, %19 : vector<434x32xf32>
    %cst_22 = arith.constant 0.000000e+00 : f32
    %21 = vector.broadcast %cst_22 : f32 to vector<434x32xf32>
    %c0_23 = arith.constant 0 : index
    %c0_24 = arith.constant 0 : index
    %22 = vector.load %arg1[%c0_23, %c0_24] : memref<450x4xbf16, #tpu.memory_space<vmem>>, vector<434x4xbf16>
    %c1_25 = arith.constant 1 : index
    %c0_26 = arith.constant 0 : index
    %c0_27 = arith.constant 0 : index
    %c0_28 = arith.constant 0 : index
    %23 = vector.load %arg2[%c1_25, %c0_26, %c0_27, %c0_28] : memref<4x4x4x32xbf16, #tpu.memory_space<vmem>>, vector<1x1x4x32xbf16>
    %24 = vector.shape_cast %23 : vector<1x1x4x32xbf16> to vector<4x32xbf16>
    %cst_29 = arith.constant dense<0.000000e+00> : vector<434x32xf32>
    %25 = tpu.matmul %22, %24, %cst_29 {dimension_numbers = #tpu.dot_dimension_numbers<[1], [0], [0], [1], [0, 0, 1, 1], [], []>} : vector<434x4xbf16>, vector<4x32xbf16>, vector<434x32xf32> -> vector<434x32xf32>
    %26 = arith.addf %21, %25 : vector<434x32xf32>
    %c1_30 = arith.constant 1 : index
    %c0_31 = arith.constant 0 : index
    %27 = vector.load %arg1[%c1_30, %c0_31] : memref<450x4xbf16, #tpu.memory_space<vmem>>, vector<434x4xbf16>
    %c1_32 = arith.constant 1 : index
    %c1_33 = arith.constant 1 : index
    %c0_34 = arith.constant 0 : index
    %c0_35 = arith.constant 0 : index
    %28 = vector.load %arg2[%c1_32, %c1_33, %c0_34, %c0_35] : memref<4x4x4x32xbf16, #tpu.memory_space<vmem>>, vector<1x1x4x32xbf16>
    %29 = vector.shape_cast %28 : vector<1x1x4x32xbf16> to vector<4x32xbf16>
    %cst_36 = arith.constant dense<0.000000e+00> : vector<434x32xf32>
    %30 = tpu.matmul %27, %29, %cst_36 {dimension_numbers = #tpu.dot_dimension_numbers<[1], [0], [0], [1], [0, 0, 1, 1], [], []>} : vector<434x4xbf16>, vector<4x32xbf16>, vector<434x32xf32> -> vector<434x32xf32>
    %31 = arith.addf %26, %30 : vector<434x32xf32>
    %c15_37 = arith.constant 15 : index
    %c0_38 = arith.constant 0 : index
    %32 = vector.load %arg1[%c15_37, %c0_38] : memref<450x4xbf16, #tpu.memory_space<vmem>>, vector<434x4xbf16>
    %c1_39 = arith.constant 1 : index
    %c2_40 = arith.constant 2 : index
    %c0_41 = arith.constant 0 : index
    %c0_42 = arith.constant 0 : index
    %33 = vector.load %arg2[%c1_39, %c2_40, %c0_41, %c0_42] : memref<4x4x4x32xbf16, #tpu.memory_space<vmem>>, vector<1x1x4x32xbf16>
    %34 = vector.shape_cast %33 : vector<1x1x4x32xbf16> to vector<4x32xbf16>
    %cst_43 = arith.constant dense<0.000000e+00> : vector<434x32xf32>
    %35 = tpu.matmul %32, %34, %cst_43 {dimension_numbers = #tpu.dot_dimension_numbers<[1], [0], [0], [1], [0, 0, 1, 1], [], []>} : vector<434x4xbf16>, vector<4x32xbf16>, vector<434x32xf32> -> vector<434x32xf32>
    %36 = arith.addf %31, %35 : vector<434x32xf32>
    %c16_44 = arith.constant 16 : index
    %c0_45 = arith.constant 0 : index
    %37 = vector.load %arg1[%c16_44, %c0_45] : memref<450x4xbf16, #tpu.memory_space<vmem>>, vector<434x4xbf16>
    %c1_46 = arith.constant 1 : index
    %c3_47 = arith.constant 3 : index
    %c0_48 = arith.constant 0 : index
    %c0_49 = arith.constant 0 : index
    %38 = vector.load %arg2[%c1_46, %c3_47, %c0_48, %c0_49] : memref<4x4x4x32xbf16, #tpu.memory_space<vmem>>, vector<1x1x4x32xbf16>
    %39 = vector.shape_cast %38 : vector<1x1x4x32xbf16> to vector<4x32xbf16>
    %cst_50 = arith.constant dense<0.000000e+00> : vector<434x32xf32>
    %40 = tpu.matmul %37, %39, %cst_50 {dimension_numbers = #tpu.dot_dimension_numbers<[1], [0], [0], [1], [0, 0, 1, 1], [], []>} : vector<434x4xbf16>, vector<4x32xbf16>, vector<434x32xf32> -> vector<434x32xf32>
    %41 = arith.addf %36, %40 : vector<434x32xf32>
    %42 = arith.maximumf %20, %41 : vector<434x32xf32>
    %cst_51 = arith.constant 0.000000e+00 : f32
    %43 = vector.broadcast %cst_51 : f32 to vector<434x32xf32>
    %c0_52 = arith.constant 0 : index
    %c0_53 = arith.constant 0 : index
    %44 = vector.load %arg1[%c0_52, %c0_53] : memref<450x4xbf16, #tpu.memory_space<vmem>>, vector<434x4xbf16>
    %c2_54 = arith.constant 2 : index
    %c0_55 = arith.constant 0 : index
    %c0_56 = arith.constant 0 : index
    %c0_57 = arith.constant 0 : index
    %45 = vector.load %arg2[%c2_54, %c0_55, %c0_56, %c0_57] : memref<4x4x4x32xbf16, #tpu.memory_space<vmem>>, vector<1x1x4x32xbf16>
    %46 = vector.shape_cast %45 : vector<1x1x4x32xbf16> to vector<4x32xbf16>
    %cst_58 = arith.constant dense<0.000000e+00> : vector<434x32xf32>
    %47 = tpu.matmul %44, %46, %cst_58 {dimension_numbers = #tpu.dot_dimension_numbers<[1], [0], [0], [1], [0, 0, 1, 1], [], []>} : vector<434x4xbf16>, vector<4x32xbf16>, vector<434x32xf32> -> vector<434x32xf32>
    %48 = arith.addf %43, %47 : vector<434x32xf32>
    %c1_59 = arith.constant 1 : index
    %c0_60 = arith.constant 0 : index
    %49 = vector.load %arg1[%c1_59, %c0_60] : memref<450x4xbf16, #tpu.memory_space<vmem>>, vector<434x4xbf16>
    %c2_61 = arith.constant 2 : index
    %c1_62 = arith.constant 1 : index
    %c0_63 = arith.constant 0 : index
    %c0_64 = arith.constant 0 : index
    %50 = vector.load %arg2[%c2_61, %c1_62, %c0_63, %c0_64] : memref<4x4x4x32xbf16, #tpu.memory_space<vmem>>, vector<1x1x4x32xbf16>
    %51 = vector.shape_cast %50 : vector<1x1x4x32xbf16> to vector<4x32xbf16>
    %cst_65 = arith.constant dense<0.000000e+00> : vector<434x32xf32>
    %52 = tpu.matmul %49, %51, %cst_65 {dimension_numbers = #tpu.dot_dimension_numbers<[1], [0], [0], [1], [0, 0, 1, 1], [], []>} : vector<434x4xbf16>, vector<4x32xbf16>, vector<434x32xf32> -> vector<434x32xf32>
    %53 = arith.addf %48, %52 : vector<434x32xf32>
    %c15_66 = arith.constant 15 : index
    %c0_67 = arith.constant 0 : index
    %54 = vector.load %arg1[%c15_66, %c0_67] : memref<450x4xbf16, #tpu.memory_space<vmem>>, vector<434x4xbf16>
    %c2_68 = arith.constant 2 : index
    %c2_69 = arith.constant 2 : index
    %c0_70 = arith.constant 0 : index
    %c0_71 = arith.constant 0 : index
    %55 = vector.load %arg2[%c2_68, %c2_69, %c0_70, %c0_71] : memref<4x4x4x32xbf16, #tpu.memory_space<vmem>>, vector<1x1x4x32xbf16>
    %56 = vector.shape_cast %55 : vector<1x1x4x32xbf16> to vector<4x32xbf16>
    %cst_72 = arith.constant dense<0.000000e+00> : vector<434x32xf32>
    %57 = tpu.matmul %54, %56, %cst_72 {dimension_numbers = #tpu.dot_dimension_numbers<[1], [0], [0], [1], [0, 0, 1, 1], [], []>} : vector<434x4xbf16>, vector<4x32xbf16>, vector<434x32xf32> -> vector<434x32xf32>
    %58 = arith.addf %53, %57 : vector<434x32xf32>
    %c16_73 = arith.constant 16 : index
    %c0_74 = arith.constant 0 : index
    %59 = vector.load %arg1[%c16_73, %c0_74] : memref<450x4xbf16, #tpu.memory_space<vmem>>, vector<434x4xbf16>
    %c2_75 = arith.constant 2 : index
    %c3_76 = arith.constant 3 : index
    %c0_77 = arith.constant 0 : index
    %c0_78 = arith.constant 0 : index
    %60 = vector.load %arg2[%c2_75, %c3_76, %c0_77, %c0_78] : memref<4x4x4x32xbf16, #tpu.memory_space<vmem>>, vector<1x1x4x32xbf16>
    %61 = vector.shape_cast %60 : vector<1x1x4x32xbf16> to vector<4x32xbf16>
    %cst_79 = arith.constant dense<0.000000e+00> : vector<434x32xf32>
    %62 = tpu.matmul %59, %61, %cst_79 {dimension_numbers = #tpu.dot_dimension_numbers<[1], [0], [0], [1], [0, 0, 1, 1], [], []>} : vector<434x4xbf16>, vector<4x32xbf16>, vector<434x32xf32> -> vector<434x32xf32>
    %63 = arith.addf %58, %62 : vector<434x32xf32>
    %64 = arith.maximumf %42, %63 : vector<434x32xf32>
    %cst_80 = arith.constant 0.000000e+00 : f32
    %65 = vector.broadcast %cst_80 : f32 to vector<434x32xf32>
    %c0_81 = arith.constant 0 : index
    %c0_82 = arith.constant 0 : index
    %66 = vector.load %arg1[%c0_81, %c0_82] : memref<450x4xbf16, #tpu.memory_space<vmem>>, vector<434x4xbf16>
    %c3_83 = arith.constant 3 : index
    %c0_84 = arith.constant 0 : index
    %c0_85 = arith.constant 0 : index
    %c0_86 = arith.constant 0 : index
    %67 = vector.load %arg2[%c3_83, %c0_84, %c0_85, %c0_86] : memref<4x4x4x32xbf16, #tpu.memory_space<vmem>>, vector<1x1x4x32xbf16>
    %68 = vector.shape_cast %67 : vector<1x1x4x32xbf16> to vector<4x32xbf16>
    %cst_87 = arith.constant dense<0.000000e+00> : vector<434x32xf32>
    %69 = tpu.matmul %66, %68, %cst_87 {dimension_numbers = #tpu.dot_dimension_numbers<[1], [0], [0], [1], [0, 0, 1, 1], [], []>} : vector<434x4xbf16>, vector<4x32xbf16>, vector<434x32xf32> -> vector<434x32xf32>
    %70 = arith.addf %65, %69 : vector<434x32xf32>
    %c1_88 = arith.constant 1 : index
    %c0_89 = arith.constant 0 : index
    %71 = vector.load %arg1[%c1_88, %c0_89] : memref<450x4xbf16, #tpu.memory_space<vmem>>, vector<434x4xbf16>
    %c3_90 = arith.constant 3 : index
    %c1_91 = arith.constant 1 : index
    %c0_92 = arith.constant 0 : index
    %c0_93 = arith.constant 0 : index
    %72 = vector.load %arg2[%c3_90, %c1_91, %c0_92, %c0_93] : memref<4x4x4x32xbf16, #tpu.memory_space<vmem>>, vector<1x1x4x32xbf16>
    %73 = vector.shape_cast %72 : vector<1x1x4x32xbf16> to vector<4x32xbf16>
    %cst_94 = arith.constant dense<0.000000e+00> : vector<434x32xf32>
    %74 = tpu.matmul %71, %73, %cst_94 {dimension_numbers = #tpu.dot_dimension_numbers<[1], [0], [0], [1], [0, 0, 1, 1], [], []>} : vector<434x4xbf16>, vector<4x32xbf16>, vector<434x32xf32> -> vector<434x32xf32>
    %75 = arith.addf %70, %74 : vector<434x32xf32>
    %c15_95 = arith.constant 15 : index
    %c0_96 = arith.constant 0 : index
    %76 = vector.load %arg1[%c15_95, %c0_96] : memref<450x4xbf16, #tpu.memory_space<vmem>>, vector<434x4xbf16>
    %c3_97 = arith.constant 3 : index
    %c2_98 = arith.constant 2 : index
    %c0_99 = arith.constant 0 : index
    %c0_100 = arith.constant 0 : index
    %77 = vector.load %arg2[%c3_97, %c2_98, %c0_99, %c0_100] : memref<4x4x4x32xbf16, #tpu.memory_space<vmem>>, vector<1x1x4x32xbf16>
    %78 = vector.shape_cast %77 : vector<1x1x4x32xbf16> to vector<4x32xbf16>
    %cst_101 = arith.constant dense<0.000000e+00> : vector<434x32xf32>
    %79 = tpu.matmul %76, %78, %cst_101 {dimension_numbers = #tpu.dot_dimension_numbers<[1], [0], [0], [1], [0, 0, 1, 1], [], []>} : vector<434x4xbf16>, vector<4x32xbf16>, vector<434x32xf32> -> vector<434x32xf32>
    %80 = arith.addf %75, %79 : vector<434x32xf32>
    %c16_102 = arith.constant 16 : index
    %c0_103 = arith.constant 0 : index
    %81 = vector.load %arg1[%c16_102, %c0_103] : memref<450x4xbf16, #tpu.memory_space<vmem>>, vector<434x4xbf16>
    %c3_104 = arith.constant 3 : index
    %c3_105 = arith.constant 3 : index
    %c0_106 = arith.constant 0 : index
    %c0_107 = arith.constant 0 : index
    %82 = vector.load %arg2[%c3_104, %c3_105, %c0_106, %c0_107] : memref<4x4x4x32xbf16, #tpu.memory_space<vmem>>, vector<1x1x4x32xbf16>
    %83 = vector.shape_cast %82 : vector<1x1x4x32xbf16> to vector<4x32xbf16>
    %cst_108 = arith.constant dense<0.000000e+00> : vector<434x32xf32>
    %84 = tpu.matmul %81, %83, %cst_108 {dimension_numbers = #tpu.dot_dimension_numbers<[1], [0], [0], [1], [0, 0, 1, 1], [], []>} : vector<434x4xbf16>, vector<4x32xbf16>, vector<434x32xf32> -> vector<434x32xf32>
    %85 = arith.addf %80, %84 : vector<434x32xf32>
    %86 = arith.maximumf %64, %85 : vector<434x32xf32>
    %c0_109 = arith.constant 0 : index
    %c0_110 = arith.constant 0 : index
    %87 = vector.load %arg3[%c0_109, %c0_110] : memref<1x32xf32, #tpu.memory_space<vmem>>, vector<1x32xf32>
    %88 = vector.broadcast %87 : vector<1x32xf32> to vector<434x32xf32>
    %89 = arith.addf %86, %88 : vector<434x32xf32>
    %cst_111 = arith.constant 0.000000e+00 : f32
    %90 = vector.broadcast %cst_111 : f32 to vector<434x32xf32>
    %91 = arith.maximumf %89, %90 : vector<434x32xf32>
    %92 = arith.truncf %91 : vector<434x32xf32> to vector<434x32xbf16>
    %c0_112 = arith.constant 0 : index
    %c0_113 = arith.constant 0 : index
    %93 = vector.load %arg4[%c0_112, %c0_113] : memref<450x32xbf16, #tpu.memory_space<vmem>>, vector<434x32xbf16>
    tpu.vector_store %arg4[%c0_112, %c0_113], %92 {strides = array<i32>} : memref<450x32xbf16, #tpu.memory_space<vmem>>, vector<434x32xbf16>,
    %cst_114 = arith.constant 0.000000e+00 : bf16
    %94 = vector.broadcast %cst_114 : bf16 to vector<16x32xbf16>
    %c434 = arith.constant 434 : index
    %c0_115 = arith.constant 0 : index
    %95 = vector.load %arg4[%c434, %c0_115] : memref<450x32xbf16, #tpu.memory_space<vmem>>, vector<16x32xbf16>
    tpu.vector_store %arg4[%c434, %c0_115], %94 {strides = array<i32>} : memref<450x32xbf16, #tpu.memory_space<vmem>>, vector<16x32xbf16>,
    return
  }
  func.func @transform_0(%arg0: i32) -> (i32, i32) {
    %c0_i32 = arith.constant 0 : i32
    %c0_i32_0 = arith.constant 0 : i32
    return %arg0, %c0_i32 : i32, i32
  }
  func.func @transform_1(%arg0: i32) -> (i32, i32, i32, i32) {
    %c0_i32 = arith.constant 0 : i32
    %c0_i32_0 = arith.constant 0 : i32
    %c0_i32_1 = arith.constant 0 : i32
    %c0_i32_2 = arith.constant 0 : i32
    %c0_i32_3 = arith.constant 0 : i32
    return %c0_i32, %c0_i32_0, %c0_i32_1, %c0_i32_2 : i32, i32, i32, i32
  }
  func.func @transform_2(%arg0: i32) -> (i32, i32) {
    %c0_i32 = arith.constant 0 : i32
    %c0_i32_0 = arith.constant 0 : i32
    %c0_i32_1 = arith.constant 0 : i32
    return %c0_i32, %c0_i32_0 : i32, i32
  }
  func.func @transform_3(%arg0: i32) -> (i32, i32) {
    %c0_i32 = arith.constant 0 : i32
    %c0_i32_0 = arith.constant 0 : i32
    return %arg0, %c0_i32 : i32, i32
  }
}

module attributes {stable_mosaic.version = 11 : i64} {
  func.func @_conv_pool_kernel(%arg0: i32, %arg1: memref<128x128xbf16, #tpu.memory_space<vmem>>, %arg2: memref<4x4x128x32xbf16, #tpu.memory_space<vmem>>, %arg3: memref<1x32xf32, #tpu.memory_space<vmem>>, %arg4: memref<128x32xbf16, #tpu.memory_space<vmem>>) attributes {dimension_semantics = [#tpu.dimension_semantics<parallel>], iteration_bounds = array<i64: 1>, scalar_prefetch = 0 : i64, scratch_operands = 0 : i64, tpu.core_type = #tpu.core_type<tc>, window_params = [{transform_indices = @transform_0, window_bounds = array<i64: 128, 128>}, {pipeline_mode = #tpu.pipeline_mode<synchronous>, transform_indices = @transform_1, window_bounds = array<i64: 4, 4, 128, 32>}, {pipeline_mode = #tpu.pipeline_mode<synchronous>, transform_indices = @transform_2, window_bounds = array<i64: 1, 32>}, {transform_indices = @transform_3, window_bounds = array<i64: 128, 32>}]} {
    %cst = arith.constant 0.000000e+00 : f32
    %0 = vector.broadcast %cst : f32 to vector<119x32xf32>
    %c0 = arith.constant 0 : index
    %c0_0 = arith.constant 0 : index
    %1 = vector.load %arg1[%c0, %c0_0] : memref<128x128xbf16, #tpu.memory_space<vmem>>, vector<119x128xbf16>
    %c0_1 = arith.constant 0 : index
    %c0_2 = arith.constant 0 : index
    %c0_3 = arith.constant 0 : index
    %c0_4 = arith.constant 0 : index
    %2 = vector.load %arg2[%c0_1, %c0_2, %c0_3, %c0_4] : memref<4x4x128x32xbf16, #tpu.memory_space<vmem>>, vector<1x1x128x32xbf16>
    %3 = vector.shape_cast %2 : vector<1x1x128x32xbf16> to vector<128x32xbf16>
    %cst_5 = arith.constant dense<0.000000e+00> : vector<119x32xf32>
    %4 = tpu.matmul %1, %3, %cst_5 {dimension_numbers = #tpu.dot_dimension_numbers<[1], [0], [0], [1], [0, 0, 1, 1], [], []>} : vector<119x128xbf16>, vector<128x32xbf16>, vector<119x32xf32> -> vector<119x32xf32>
    %5 = arith.addf %0, %4 : vector<119x32xf32>
    %c1 = arith.constant 1 : index
    %c0_6 = arith.constant 0 : index
    %6 = vector.load %arg1[%c1, %c0_6] : memref<128x128xbf16, #tpu.memory_space<vmem>>, vector<119x128xbf16>
    %c0_7 = arith.constant 0 : index
    %c1_8 = arith.constant 1 : index
    %c0_9 = arith.constant 0 : index
    %c0_10 = arith.constant 0 : index
    %7 = vector.load %arg2[%c0_7, %c1_8, %c0_9, %c0_10] : memref<4x4x128x32xbf16, #tpu.memory_space<vmem>>, vector<1x1x128x32xbf16>
    %8 = vector.shape_cast %7 : vector<1x1x128x32xbf16> to vector<128x32xbf16>
    %cst_11 = arith.constant dense<0.000000e+00> : vector<119x32xf32>
    %9 = tpu.matmul %6, %8, %cst_11 {dimension_numbers = #tpu.dot_dimension_numbers<[1], [0], [0], [1], [0, 0, 1, 1], [], []>} : vector<119x128xbf16>, vector<128x32xbf16>, vector<119x32xf32> -> vector<119x32xf32>
    %10 = arith.addf %5, %9 : vector<119x32xf32>
    %c8 = arith.constant 8 : index
    %c0_12 = arith.constant 0 : index
    %11 = vector.load %arg1[%c8, %c0_12] : memref<128x128xbf16, #tpu.memory_space<vmem>>, vector<119x128xbf16>
    %c0_13 = arith.constant 0 : index
    %c2 = arith.constant 2 : index
    %c0_14 = arith.constant 0 : index
    %c0_15 = arith.constant 0 : index
    %12 = vector.load %arg2[%c0_13, %c2, %c0_14, %c0_15] : memref<4x4x128x32xbf16, #tpu.memory_space<vmem>>, vector<1x1x128x32xbf16>
    %13 = vector.shape_cast %12 : vector<1x1x128x32xbf16> to vector<128x32xbf16>
    %cst_16 = arith.constant dense<0.000000e+00> : vector<119x32xf32>
    %14 = tpu.matmul %11, %13, %cst_16 {dimension_numbers = #tpu.dot_dimension_numbers<[1], [0], [0], [1], [0, 0, 1, 1], [], []>} : vector<119x128xbf16>, vector<128x32xbf16>, vector<119x32xf32> -> vector<119x32xf32>
    %15 = arith.addf %10, %14 : vector<119x32xf32>
    %c9 = arith.constant 9 : index
    %c0_17 = arith.constant 0 : index
    %16 = vector.load %arg1[%c9, %c0_17] : memref<128x128xbf16, #tpu.memory_space<vmem>>, vector<119x128xbf16>
    %c0_18 = arith.constant 0 : index
    %c3 = arith.constant 3 : index
    %c0_19 = arith.constant 0 : index
    %c0_20 = arith.constant 0 : index
    %17 = vector.load %arg2[%c0_18, %c3, %c0_19, %c0_20] : memref<4x4x128x32xbf16, #tpu.memory_space<vmem>>, vector<1x1x128x32xbf16>
    %18 = vector.shape_cast %17 : vector<1x1x128x32xbf16> to vector<128x32xbf16>
    %cst_21 = arith.constant dense<0.000000e+00> : vector<119x32xf32>
    %19 = tpu.matmul %16, %18, %cst_21 {dimension_numbers = #tpu.dot_dimension_numbers<[1], [0], [0], [1], [0, 0, 1, 1], [], []>} : vector<119x128xbf16>, vector<128x32xbf16>, vector<119x32xf32> -> vector<119x32xf32>
    %20 = arith.addf %15, %19 : vector<119x32xf32>
    %cst_22 = arith.constant 0.000000e+00 : f32
    %21 = vector.broadcast %cst_22 : f32 to vector<119x32xf32>
    %c0_23 = arith.constant 0 : index
    %c0_24 = arith.constant 0 : index
    %22 = vector.load %arg1[%c0_23, %c0_24] : memref<128x128xbf16, #tpu.memory_space<vmem>>, vector<119x128xbf16>
    %c1_25 = arith.constant 1 : index
    %c0_26 = arith.constant 0 : index
    %c0_27 = arith.constant 0 : index
    %c0_28 = arith.constant 0 : index
    %23 = vector.load %arg2[%c1_25, %c0_26, %c0_27, %c0_28] : memref<4x4x128x32xbf16, #tpu.memory_space<vmem>>, vector<1x1x128x32xbf16>
    %24 = vector.shape_cast %23 : vector<1x1x128x32xbf16> to vector<128x32xbf16>
    %cst_29 = arith.constant dense<0.000000e+00> : vector<119x32xf32>
    %25 = tpu.matmul %22, %24, %cst_29 {dimension_numbers = #tpu.dot_dimension_numbers<[1], [0], [0], [1], [0, 0, 1, 1], [], []>} : vector<119x128xbf16>, vector<128x32xbf16>, vector<119x32xf32> -> vector<119x32xf32>
    %26 = arith.addf %21, %25 : vector<119x32xf32>
    %c1_30 = arith.constant 1 : index
    %c0_31 = arith.constant 0 : index
    %27 = vector.load %arg1[%c1_30, %c0_31] : memref<128x128xbf16, #tpu.memory_space<vmem>>, vector<119x128xbf16>
    %c1_32 = arith.constant 1 : index
    %c1_33 = arith.constant 1 : index
    %c0_34 = arith.constant 0 : index
    %c0_35 = arith.constant 0 : index
    %28 = vector.load %arg2[%c1_32, %c1_33, %c0_34, %c0_35] : memref<4x4x128x32xbf16, #tpu.memory_space<vmem>>, vector<1x1x128x32xbf16>
    %29 = vector.shape_cast %28 : vector<1x1x128x32xbf16> to vector<128x32xbf16>
    %cst_36 = arith.constant dense<0.000000e+00> : vector<119x32xf32>
    %30 = tpu.matmul %27, %29, %cst_36 {dimension_numbers = #tpu.dot_dimension_numbers<[1], [0], [0], [1], [0, 0, 1, 1], [], []>} : vector<119x128xbf16>, vector<128x32xbf16>, vector<119x32xf32> -> vector<119x32xf32>
    %31 = arith.addf %26, %30 : vector<119x32xf32>
    %c8_37 = arith.constant 8 : index
    %c0_38 = arith.constant 0 : index
    %32 = vector.load %arg1[%c8_37, %c0_38] : memref<128x128xbf16, #tpu.memory_space<vmem>>, vector<119x128xbf16>
    %c1_39 = arith.constant 1 : index
    %c2_40 = arith.constant 2 : index
    %c0_41 = arith.constant 0 : index
    %c0_42 = arith.constant 0 : index
    %33 = vector.load %arg2[%c1_39, %c2_40, %c0_41, %c0_42] : memref<4x4x128x32xbf16, #tpu.memory_space<vmem>>, vector<1x1x128x32xbf16>
    %34 = vector.shape_cast %33 : vector<1x1x128x32xbf16> to vector<128x32xbf16>
    %cst_43 = arith.constant dense<0.000000e+00> : vector<119x32xf32>
    %35 = tpu.matmul %32, %34, %cst_43 {dimension_numbers = #tpu.dot_dimension_numbers<[1], [0], [0], [1], [0, 0, 1, 1], [], []>} : vector<119x128xbf16>, vector<128x32xbf16>, vector<119x32xf32> -> vector<119x32xf32>
    %36 = arith.addf %31, %35 : vector<119x32xf32>
    %c9_44 = arith.constant 9 : index
    %c0_45 = arith.constant 0 : index
    %37 = vector.load %arg1[%c9_44, %c0_45] : memref<128x128xbf16, #tpu.memory_space<vmem>>, vector<119x128xbf16>
    %c1_46 = arith.constant 1 : index
    %c3_47 = arith.constant 3 : index
    %c0_48 = arith.constant 0 : index
    %c0_49 = arith.constant 0 : index
    %38 = vector.load %arg2[%c1_46, %c3_47, %c0_48, %c0_49] : memref<4x4x128x32xbf16, #tpu.memory_space<vmem>>, vector<1x1x128x32xbf16>
    %39 = vector.shape_cast %38 : vector<1x1x128x32xbf16> to vector<128x32xbf16>
    %cst_50 = arith.constant dense<0.000000e+00> : vector<119x32xf32>
    %40 = tpu.matmul %37, %39, %cst_50 {dimension_numbers = #tpu.dot_dimension_numbers<[1], [0], [0], [1], [0, 0, 1, 1], [], []>} : vector<119x128xbf16>, vector<128x32xbf16>, vector<119x32xf32> -> vector<119x32xf32>
    %41 = arith.addf %36, %40 : vector<119x32xf32>
    %42 = arith.maximumf %20, %41 : vector<119x32xf32>
    %cst_51 = arith.constant 0.000000e+00 : f32
    %43 = vector.broadcast %cst_51 : f32 to vector<119x32xf32>
    %c0_52 = arith.constant 0 : index
    %c0_53 = arith.constant 0 : index
    %44 = vector.load %arg1[%c0_52, %c0_53] : memref<128x128xbf16, #tpu.memory_space<vmem>>, vector<119x128xbf16>
    %c2_54 = arith.constant 2 : index
    %c0_55 = arith.constant 0 : index
    %c0_56 = arith.constant 0 : index
    %c0_57 = arith.constant 0 : index
    %45 = vector.load %arg2[%c2_54, %c0_55, %c0_56, %c0_57] : memref<4x4x128x32xbf16, #tpu.memory_space<vmem>>, vector<1x1x128x32xbf16>
    %46 = vector.shape_cast %45 : vector<1x1x128x32xbf16> to vector<128x32xbf16>
    %cst_58 = arith.constant dense<0.000000e+00> : vector<119x32xf32>
    %47 = tpu.matmul %44, %46, %cst_58 {dimension_numbers = #tpu.dot_dimension_numbers<[1], [0], [0], [1], [0, 0, 1, 1], [], []>} : vector<119x128xbf16>, vector<128x32xbf16>, vector<119x32xf32> -> vector<119x32xf32>
    %48 = arith.addf %43, %47 : vector<119x32xf32>
    %c1_59 = arith.constant 1 : index
    %c0_60 = arith.constant 0 : index
    %49 = vector.load %arg1[%c1_59, %c0_60] : memref<128x128xbf16, #tpu.memory_space<vmem>>, vector<119x128xbf16>
    %c2_61 = arith.constant 2 : index
    %c1_62 = arith.constant 1 : index
    %c0_63 = arith.constant 0 : index
    %c0_64 = arith.constant 0 : index
    %50 = vector.load %arg2[%c2_61, %c1_62, %c0_63, %c0_64] : memref<4x4x128x32xbf16, #tpu.memory_space<vmem>>, vector<1x1x128x32xbf16>
    %51 = vector.shape_cast %50 : vector<1x1x128x32xbf16> to vector<128x32xbf16>
    %cst_65 = arith.constant dense<0.000000e+00> : vector<119x32xf32>
    %52 = tpu.matmul %49, %51, %cst_65 {dimension_numbers = #tpu.dot_dimension_numbers<[1], [0], [0], [1], [0, 0, 1, 1], [], []>} : vector<119x128xbf16>, vector<128x32xbf16>, vector<119x32xf32> -> vector<119x32xf32>
    %53 = arith.addf %48, %52 : vector<119x32xf32>
    %c8_66 = arith.constant 8 : index
    %c0_67 = arith.constant 0 : index
    %54 = vector.load %arg1[%c8_66, %c0_67] : memref<128x128xbf16, #tpu.memory_space<vmem>>, vector<119x128xbf16>
    %c2_68 = arith.constant 2 : index
    %c2_69 = arith.constant 2 : index
    %c0_70 = arith.constant 0 : index
    %c0_71 = arith.constant 0 : index
    %55 = vector.load %arg2[%c2_68, %c2_69, %c0_70, %c0_71] : memref<4x4x128x32xbf16, #tpu.memory_space<vmem>>, vector<1x1x128x32xbf16>
    %56 = vector.shape_cast %55 : vector<1x1x128x32xbf16> to vector<128x32xbf16>
    %cst_72 = arith.constant dense<0.000000e+00> : vector<119x32xf32>
    %57 = tpu.matmul %54, %56, %cst_72 {dimension_numbers = #tpu.dot_dimension_numbers<[1], [0], [0], [1], [0, 0, 1, 1], [], []>} : vector<119x128xbf16>, vector<128x32xbf16>, vector<119x32xf32> -> vector<119x32xf32>
    %58 = arith.addf %53, %57 : vector<119x32xf32>
    %c9_73 = arith.constant 9 : index
    %c0_74 = arith.constant 0 : index
    %59 = vector.load %arg1[%c9_73, %c0_74] : memref<128x128xbf16, #tpu.memory_space<vmem>>, vector<119x128xbf16>
    %c2_75 = arith.constant 2 : index
    %c3_76 = arith.constant 3 : index
    %c0_77 = arith.constant 0 : index
    %c0_78 = arith.constant 0 : index
    %60 = vector.load %arg2[%c2_75, %c3_76, %c0_77, %c0_78] : memref<4x4x128x32xbf16, #tpu.memory_space<vmem>>, vector<1x1x128x32xbf16>
    %61 = vector.shape_cast %60 : vector<1x1x128x32xbf16> to vector<128x32xbf16>
    %cst_79 = arith.constant dense<0.000000e+00> : vector<119x32xf32>
    %62 = tpu.matmul %59, %61, %cst_79 {dimension_numbers = #tpu.dot_dimension_numbers<[1], [0], [0], [1], [0, 0, 1, 1], [], []>} : vector<119x128xbf16>, vector<128x32xbf16>, vector<119x32xf32> -> vector<119x32xf32>
    %63 = arith.addf %58, %62 : vector<119x32xf32>
    %64 = arith.maximumf %42, %63 : vector<119x32xf32>
    %cst_80 = arith.constant 0.000000e+00 : f32
    %65 = vector.broadcast %cst_80 : f32 to vector<119x32xf32>
    %c0_81 = arith.constant 0 : index
    %c0_82 = arith.constant 0 : index
    %66 = vector.load %arg1[%c0_81, %c0_82] : memref<128x128xbf16, #tpu.memory_space<vmem>>, vector<119x128xbf16>
    %c3_83 = arith.constant 3 : index
    %c0_84 = arith.constant 0 : index
    %c0_85 = arith.constant 0 : index
    %c0_86 = arith.constant 0 : index
    %67 = vector.load %arg2[%c3_83, %c0_84, %c0_85, %c0_86] : memref<4x4x128x32xbf16, #tpu.memory_space<vmem>>, vector<1x1x128x32xbf16>
    %68 = vector.shape_cast %67 : vector<1x1x128x32xbf16> to vector<128x32xbf16>
    %cst_87 = arith.constant dense<0.000000e+00> : vector<119x32xf32>
    %69 = tpu.matmul %66, %68, %cst_87 {dimension_numbers = #tpu.dot_dimension_numbers<[1], [0], [0], [1], [0, 0, 1, 1], [], []>} : vector<119x128xbf16>, vector<128x32xbf16>, vector<119x32xf32> -> vector<119x32xf32>
    %70 = arith.addf %65, %69 : vector<119x32xf32>
    %c1_88 = arith.constant 1 : index
    %c0_89 = arith.constant 0 : index
    %71 = vector.load %arg1[%c1_88, %c0_89] : memref<128x128xbf16, #tpu.memory_space<vmem>>, vector<119x128xbf16>
    %c3_90 = arith.constant 3 : index
    %c1_91 = arith.constant 1 : index
    %c0_92 = arith.constant 0 : index
    %c0_93 = arith.constant 0 : index
    %72 = vector.load %arg2[%c3_90, %c1_91, %c0_92, %c0_93] : memref<4x4x128x32xbf16, #tpu.memory_space<vmem>>, vector<1x1x128x32xbf16>
    %73 = vector.shape_cast %72 : vector<1x1x128x32xbf16> to vector<128x32xbf16>
    %cst_94 = arith.constant dense<0.000000e+00> : vector<119x32xf32>
    %74 = tpu.matmul %71, %73, %cst_94 {dimension_numbers = #tpu.dot_dimension_numbers<[1], [0], [0], [1], [0, 0, 1, 1], [], []>} : vector<119x128xbf16>, vector<128x32xbf16>, vector<119x32xf32> -> vector<119x32xf32>
    %75 = arith.addf %70, %74 : vector<119x32xf32>
    %c8_95 = arith.constant 8 : index
    %c0_96 = arith.constant 0 : index
    %76 = vector.load %arg1[%c8_95, %c0_96] : memref<128x128xbf16, #tpu.memory_space<vmem>>, vector<119x128xbf16>
    %c3_97 = arith.constant 3 : index
    %c2_98 = arith.constant 2 : index
    %c0_99 = arith.constant 0 : index
    %c0_100 = arith.constant 0 : index
    %77 = vector.load %arg2[%c3_97, %c2_98, %c0_99, %c0_100] : memref<4x4x128x32xbf16, #tpu.memory_space<vmem>>, vector<1x1x128x32xbf16>
    %78 = vector.shape_cast %77 : vector<1x1x128x32xbf16> to vector<128x32xbf16>
    %cst_101 = arith.constant dense<0.000000e+00> : vector<119x32xf32>
    %79 = tpu.matmul %76, %78, %cst_101 {dimension_numbers = #tpu.dot_dimension_numbers<[1], [0], [0], [1], [0, 0, 1, 1], [], []>} : vector<119x128xbf16>, vector<128x32xbf16>, vector<119x32xf32> -> vector<119x32xf32>
    %80 = arith.addf %75, %79 : vector<119x32xf32>
    %c9_102 = arith.constant 9 : index
    %c0_103 = arith.constant 0 : index
    %81 = vector.load %arg1[%c9_102, %c0_103] : memref<128x128xbf16, #tpu.memory_space<vmem>>, vector<119x128xbf16>
    %c3_104 = arith.constant 3 : index
    %c3_105 = arith.constant 3 : index
    %c0_106 = arith.constant 0 : index
    %c0_107 = arith.constant 0 : index
    %82 = vector.load %arg2[%c3_104, %c3_105, %c0_106, %c0_107] : memref<4x4x128x32xbf16, #tpu.memory_space<vmem>>, vector<1x1x128x32xbf16>
    %83 = vector.shape_cast %82 : vector<1x1x128x32xbf16> to vector<128x32xbf16>
    %cst_108 = arith.constant dense<0.000000e+00> : vector<119x32xf32>
    %84 = tpu.matmul %81, %83, %cst_108 {dimension_numbers = #tpu.dot_dimension_numbers<[1], [0], [0], [1], [0, 0, 1, 1], [], []>} : vector<119x128xbf16>, vector<128x32xbf16>, vector<119x32xf32> -> vector<119x32xf32>
    %85 = arith.addf %80, %84 : vector<119x32xf32>
    %86 = arith.maximumf %64, %85 : vector<119x32xf32>
    %c0_109 = arith.constant 0 : index
    %c0_110 = arith.constant 0 : index
    %87 = vector.load %arg3[%c0_109, %c0_110] : memref<1x32xf32, #tpu.memory_space<vmem>>, vector<1x32xf32>
    %88 = vector.broadcast %87 : vector<1x32xf32> to vector<119x32xf32>
    %89 = arith.addf %86, %88 : vector<119x32xf32>
    %cst_111 = arith.constant 0.000000e+00 : f32
    %90 = vector.broadcast %cst_111 : f32 to vector<119x32xf32>
    %91 = arith.maximumf %89, %90 : vector<119x32xf32>
    %92 = arith.truncf %91 : vector<119x32xf32> to vector<119x32xbf16>
    %c0_112 = arith.constant 0 : index
    %c0_113 = arith.constant 0 : index
    %93 = vector.load %arg4[%c0_112, %c0_113] : memref<128x32xbf16, #tpu.memory_space<vmem>>, vector<119x32xbf16>
    tpu.vector_store %arg4[%c0_112, %c0_113], %92 {strides = array<i32>} : memref<128x32xbf16, #tpu.memory_space<vmem>>, vector<119x32xbf16>,
    %cst_114 = arith.constant 0.000000e+00 : bf16
    %94 = vector.broadcast %cst_114 : bf16 to vector<9x32xbf16>
    %c119 = arith.constant 119 : index
    %c0_115 = arith.constant 0 : index
    %95 = vector.load %arg4[%c119, %c0_115] : memref<128x32xbf16, #tpu.memory_space<vmem>>, vector<9x32xbf16>
    tpu.vector_store %arg4[%c119, %c0_115], %94 {strides = array<i32>} : memref<128x32xbf16, #tpu.memory_space<vmem>>, vector<9x32xbf16>,
    return
  }
  func.func @transform_0(%arg0: i32) -> (i32, i32) {
    %c0_i32 = arith.constant 0 : i32
    %c0_i32_0 = arith.constant 0 : i32
    return %arg0, %c0_i32 : i32, i32
  }
  func.func @transform_1(%arg0: i32) -> (i32, i32, i32, i32) {
    %c0_i32 = arith.constant 0 : i32
    %c0_i32_0 = arith.constant 0 : i32
    %c0_i32_1 = arith.constant 0 : i32
    %c0_i32_2 = arith.constant 0 : i32
    %c0_i32_3 = arith.constant 0 : i32
    return %c0_i32, %c0_i32_0, %c0_i32_1, %c0_i32_2 : i32, i32, i32, i32
  }
  func.func @transform_2(%arg0: i32) -> (i32, i32) {
    %c0_i32 = arith.constant 0 : i32
    %c0_i32_0 = arith.constant 0 : i32
    %c0_i32_1 = arith.constant 0 : i32
    return %c0_i32, %c0_i32_0 : i32, i32
  }
  func.func @transform_3(%arg0: i32) -> (i32, i32) {
    %c0_i32 = arith.constant 0 : i32
    %c0_i32_0 = arith.constant 0 : i32
    return %arg0, %c0_i32 : i32, i32
  }
}

module attributes {stable_mosaic.version = 11 : i64} {
  func.func @_conv_pool_kernel(%arg0: i32, %arg1: memref<50x128xbf16, #tpu.memory_space<vmem>>, %arg2: memref<4x4x128x16xbf16, #tpu.memory_space<vmem>>, %arg3: memref<1x16xf32, #tpu.memory_space<vmem>>, %arg4: memref<50x16xbf16, #tpu.memory_space<vmem>>) attributes {dimension_semantics = [#tpu.dimension_semantics<parallel>], iteration_bounds = array<i64: 1>, scalar_prefetch = 0 : i64, scratch_operands = 0 : i64, tpu.core_type = #tpu.core_type<tc>, window_params = [{transform_indices = @transform_0, window_bounds = array<i64: 50, 128>}, {pipeline_mode = #tpu.pipeline_mode<synchronous>, transform_indices = @transform_1, window_bounds = array<i64: 4, 4, 128, 16>}, {pipeline_mode = #tpu.pipeline_mode<synchronous>, transform_indices = @transform_2, window_bounds = array<i64: 1, 16>}, {transform_indices = @transform_3, window_bounds = array<i64: 50, 16>}]} {
    %cst = arith.constant 0.000000e+00 : f32
    %0 = vector.broadcast %cst : f32 to vector<44x16xf32>
    %c0 = arith.constant 0 : index
    %c0_0 = arith.constant 0 : index
    %1 = vector.load %arg1[%c0, %c0_0] : memref<50x128xbf16, #tpu.memory_space<vmem>>, vector<44x128xbf16>
    %c0_1 = arith.constant 0 : index
    %c0_2 = arith.constant 0 : index
    %c0_3 = arith.constant 0 : index
    %c0_4 = arith.constant 0 : index
    %2 = vector.load %arg2[%c0_1, %c0_2, %c0_3, %c0_4] : memref<4x4x128x16xbf16, #tpu.memory_space<vmem>>, vector<1x1x128x16xbf16>
    %3 = vector.shape_cast %2 : vector<1x1x128x16xbf16> to vector<128x16xbf16>
    %cst_5 = arith.constant dense<0.000000e+00> : vector<44x16xf32>
    %4 = tpu.matmul %1, %3, %cst_5 {dimension_numbers = #tpu.dot_dimension_numbers<[1], [0], [0], [1], [0, 0, 1, 1], [], []>} : vector<44x128xbf16>, vector<128x16xbf16>, vector<44x16xf32> -> vector<44x16xf32>
    %5 = arith.addf %0, %4 : vector<44x16xf32>
    %c1 = arith.constant 1 : index
    %c0_6 = arith.constant 0 : index
    %6 = vector.load %arg1[%c1, %c0_6] : memref<50x128xbf16, #tpu.memory_space<vmem>>, vector<44x128xbf16>
    %c0_7 = arith.constant 0 : index
    %c1_8 = arith.constant 1 : index
    %c0_9 = arith.constant 0 : index
    %c0_10 = arith.constant 0 : index
    %7 = vector.load %arg2[%c0_7, %c1_8, %c0_9, %c0_10] : memref<4x4x128x16xbf16, #tpu.memory_space<vmem>>, vector<1x1x128x16xbf16>
    %8 = vector.shape_cast %7 : vector<1x1x128x16xbf16> to vector<128x16xbf16>
    %cst_11 = arith.constant dense<0.000000e+00> : vector<44x16xf32>
    %9 = tpu.matmul %6, %8, %cst_11 {dimension_numbers = #tpu.dot_dimension_numbers<[1], [0], [0], [1], [0, 0, 1, 1], [], []>} : vector<44x128xbf16>, vector<128x16xbf16>, vector<44x16xf32> -> vector<44x16xf32>
    %10 = arith.addf %5, %9 : vector<44x16xf32>
    %c5 = arith.constant 5 : index
    %c0_12 = arith.constant 0 : index
    %11 = vector.load %arg1[%c5, %c0_12] : memref<50x128xbf16, #tpu.memory_space<vmem>>, vector<44x128xbf16>
    %c0_13 = arith.constant 0 : index
    %c2 = arith.constant 2 : index
    %c0_14 = arith.constant 0 : index
    %c0_15 = arith.constant 0 : index
    %12 = vector.load %arg2[%c0_13, %c2, %c0_14, %c0_15] : memref<4x4x128x16xbf16, #tpu.memory_space<vmem>>, vector<1x1x128x16xbf16>
    %13 = vector.shape_cast %12 : vector<1x1x128x16xbf16> to vector<128x16xbf16>
    %cst_16 = arith.constant dense<0.000000e+00> : vector<44x16xf32>
    %14 = tpu.matmul %11, %13, %cst_16 {dimension_numbers = #tpu.dot_dimension_numbers<[1], [0], [0], [1], [0, 0, 1, 1], [], []>} : vector<44x128xbf16>, vector<128x16xbf16>, vector<44x16xf32> -> vector<44x16xf32>
    %15 = arith.addf %10, %14 : vector<44x16xf32>
    %c6 = arith.constant 6 : index
    %c0_17 = arith.constant 0 : index
    %16 = vector.load %arg1[%c6, %c0_17] : memref<50x128xbf16, #tpu.memory_space<vmem>>, vector<44x128xbf16>
    %c0_18 = arith.constant 0 : index
    %c3 = arith.constant 3 : index
    %c0_19 = arith.constant 0 : index
    %c0_20 = arith.constant 0 : index
    %17 = vector.load %arg2[%c0_18, %c3, %c0_19, %c0_20] : memref<4x4x128x16xbf16, #tpu.memory_space<vmem>>, vector<1x1x128x16xbf16>
    %18 = vector.shape_cast %17 : vector<1x1x128x16xbf16> to vector<128x16xbf16>
    %cst_21 = arith.constant dense<0.000000e+00> : vector<44x16xf32>
    %19 = tpu.matmul %16, %18, %cst_21 {dimension_numbers = #tpu.dot_dimension_numbers<[1], [0], [0], [1], [0, 0, 1, 1], [], []>} : vector<44x128xbf16>, vector<128x16xbf16>, vector<44x16xf32> -> vector<44x16xf32>
    %20 = arith.addf %15, %19 : vector<44x16xf32>
    %cst_22 = arith.constant 0.000000e+00 : f32
    %21 = vector.broadcast %cst_22 : f32 to vector<44x16xf32>
    %c0_23 = arith.constant 0 : index
    %c0_24 = arith.constant 0 : index
    %22 = vector.load %arg1[%c0_23, %c0_24] : memref<50x128xbf16, #tpu.memory_space<vmem>>, vector<44x128xbf16>
    %c1_25 = arith.constant 1 : index
    %c0_26 = arith.constant 0 : index
    %c0_27 = arith.constant 0 : index
    %c0_28 = arith.constant 0 : index
    %23 = vector.load %arg2[%c1_25, %c0_26, %c0_27, %c0_28] : memref<4x4x128x16xbf16, #tpu.memory_space<vmem>>, vector<1x1x128x16xbf16>
    %24 = vector.shape_cast %23 : vector<1x1x128x16xbf16> to vector<128x16xbf16>
    %cst_29 = arith.constant dense<0.000000e+00> : vector<44x16xf32>
    %25 = tpu.matmul %22, %24, %cst_29 {dimension_numbers = #tpu.dot_dimension_numbers<[1], [0], [0], [1], [0, 0, 1, 1], [], []>} : vector<44x128xbf16>, vector<128x16xbf16>, vector<44x16xf32> -> vector<44x16xf32>
    %26 = arith.addf %21, %25 : vector<44x16xf32>
    %c1_30 = arith.constant 1 : index
    %c0_31 = arith.constant 0 : index
    %27 = vector.load %arg1[%c1_30, %c0_31] : memref<50x128xbf16, #tpu.memory_space<vmem>>, vector<44x128xbf16>
    %c1_32 = arith.constant 1 : index
    %c1_33 = arith.constant 1 : index
    %c0_34 = arith.constant 0 : index
    %c0_35 = arith.constant 0 : index
    %28 = vector.load %arg2[%c1_32, %c1_33, %c0_34, %c0_35] : memref<4x4x128x16xbf16, #tpu.memory_space<vmem>>, vector<1x1x128x16xbf16>
    %29 = vector.shape_cast %28 : vector<1x1x128x16xbf16> to vector<128x16xbf16>
    %cst_36 = arith.constant dense<0.000000e+00> : vector<44x16xf32>
    %30 = tpu.matmul %27, %29, %cst_36 {dimension_numbers = #tpu.dot_dimension_numbers<[1], [0], [0], [1], [0, 0, 1, 1], [], []>} : vector<44x128xbf16>, vector<128x16xbf16>, vector<44x16xf32> -> vector<44x16xf32>
    %31 = arith.addf %26, %30 : vector<44x16xf32>
    %c5_37 = arith.constant 5 : index
    %c0_38 = arith.constant 0 : index
    %32 = vector.load %arg1[%c5_37, %c0_38] : memref<50x128xbf16, #tpu.memory_space<vmem>>, vector<44x128xbf16>
    %c1_39 = arith.constant 1 : index
    %c2_40 = arith.constant 2 : index
    %c0_41 = arith.constant 0 : index
    %c0_42 = arith.constant 0 : index
    %33 = vector.load %arg2[%c1_39, %c2_40, %c0_41, %c0_42] : memref<4x4x128x16xbf16, #tpu.memory_space<vmem>>, vector<1x1x128x16xbf16>
    %34 = vector.shape_cast %33 : vector<1x1x128x16xbf16> to vector<128x16xbf16>
    %cst_43 = arith.constant dense<0.000000e+00> : vector<44x16xf32>
    %35 = tpu.matmul %32, %34, %cst_43 {dimension_numbers = #tpu.dot_dimension_numbers<[1], [0], [0], [1], [0, 0, 1, 1], [], []>} : vector<44x128xbf16>, vector<128x16xbf16>, vector<44x16xf32> -> vector<44x16xf32>
    %36 = arith.addf %31, %35 : vector<44x16xf32>
    %c6_44 = arith.constant 6 : index
    %c0_45 = arith.constant 0 : index
    %37 = vector.load %arg1[%c6_44, %c0_45] : memref<50x128xbf16, #tpu.memory_space<vmem>>, vector<44x128xbf16>
    %c1_46 = arith.constant 1 : index
    %c3_47 = arith.constant 3 : index
    %c0_48 = arith.constant 0 : index
    %c0_49 = arith.constant 0 : index
    %38 = vector.load %arg2[%c1_46, %c3_47, %c0_48, %c0_49] : memref<4x4x128x16xbf16, #tpu.memory_space<vmem>>, vector<1x1x128x16xbf16>
    %39 = vector.shape_cast %38 : vector<1x1x128x16xbf16> to vector<128x16xbf16>
    %cst_50 = arith.constant dense<0.000000e+00> : vector<44x16xf32>
    %40 = tpu.matmul %37, %39, %cst_50 {dimension_numbers = #tpu.dot_dimension_numbers<[1], [0], [0], [1], [0, 0, 1, 1], [], []>} : vector<44x128xbf16>, vector<128x16xbf16>, vector<44x16xf32> -> vector<44x16xf32>
    %41 = arith.addf %36, %40 : vector<44x16xf32>
    %42 = arith.maximumf %20, %41 : vector<44x16xf32>
    %cst_51 = arith.constant 0.000000e+00 : f32
    %43 = vector.broadcast %cst_51 : f32 to vector<44x16xf32>
    %c0_52 = arith.constant 0 : index
    %c0_53 = arith.constant 0 : index
    %44 = vector.load %arg1[%c0_52, %c0_53] : memref<50x128xbf16, #tpu.memory_space<vmem>>, vector<44x128xbf16>
    %c2_54 = arith.constant 2 : index
    %c0_55 = arith.constant 0 : index
    %c0_56 = arith.constant 0 : index
    %c0_57 = arith.constant 0 : index
    %45 = vector.load %arg2[%c2_54, %c0_55, %c0_56, %c0_57] : memref<4x4x128x16xbf16, #tpu.memory_space<vmem>>, vector<1x1x128x16xbf16>
    %46 = vector.shape_cast %45 : vector<1x1x128x16xbf16> to vector<128x16xbf16>
    %cst_58 = arith.constant dense<0.000000e+00> : vector<44x16xf32>
    %47 = tpu.matmul %44, %46, %cst_58 {dimension_numbers = #tpu.dot_dimension_numbers<[1], [0], [0], [1], [0, 0, 1, 1], [], []>} : vector<44x128xbf16>, vector<128x16xbf16>, vector<44x16xf32> -> vector<44x16xf32>
    %48 = arith.addf %43, %47 : vector<44x16xf32>
    %c1_59 = arith.constant 1 : index
    %c0_60 = arith.constant 0 : index
    %49 = vector.load %arg1[%c1_59, %c0_60] : memref<50x128xbf16, #tpu.memory_space<vmem>>, vector<44x128xbf16>
    %c2_61 = arith.constant 2 : index
    %c1_62 = arith.constant 1 : index
    %c0_63 = arith.constant 0 : index
    %c0_64 = arith.constant 0 : index
    %50 = vector.load %arg2[%c2_61, %c1_62, %c0_63, %c0_64] : memref<4x4x128x16xbf16, #tpu.memory_space<vmem>>, vector<1x1x128x16xbf16>
    %51 = vector.shape_cast %50 : vector<1x1x128x16xbf16> to vector<128x16xbf16>
    %cst_65 = arith.constant dense<0.000000e+00> : vector<44x16xf32>
    %52 = tpu.matmul %49, %51, %cst_65 {dimension_numbers = #tpu.dot_dimension_numbers<[1], [0], [0], [1], [0, 0, 1, 1], [], []>} : vector<44x128xbf16>, vector<128x16xbf16>, vector<44x16xf32> -> vector<44x16xf32>
    %53 = arith.addf %48, %52 : vector<44x16xf32>
    %c5_66 = arith.constant 5 : index
    %c0_67 = arith.constant 0 : index
    %54 = vector.load %arg1[%c5_66, %c0_67] : memref<50x128xbf16, #tpu.memory_space<vmem>>, vector<44x128xbf16>
    %c2_68 = arith.constant 2 : index
    %c2_69 = arith.constant 2 : index
    %c0_70 = arith.constant 0 : index
    %c0_71 = arith.constant 0 : index
    %55 = vector.load %arg2[%c2_68, %c2_69, %c0_70, %c0_71] : memref<4x4x128x16xbf16, #tpu.memory_space<vmem>>, vector<1x1x128x16xbf16>
    %56 = vector.shape_cast %55 : vector<1x1x128x16xbf16> to vector<128x16xbf16>
    %cst_72 = arith.constant dense<0.000000e+00> : vector<44x16xf32>
    %57 = tpu.matmul %54, %56, %cst_72 {dimension_numbers = #tpu.dot_dimension_numbers<[1], [0], [0], [1], [0, 0, 1, 1], [], []>} : vector<44x128xbf16>, vector<128x16xbf16>, vector<44x16xf32> -> vector<44x16xf32>
    %58 = arith.addf %53, %57 : vector<44x16xf32>
    %c6_73 = arith.constant 6 : index
    %c0_74 = arith.constant 0 : index
    %59 = vector.load %arg1[%c6_73, %c0_74] : memref<50x128xbf16, #tpu.memory_space<vmem>>, vector<44x128xbf16>
    %c2_75 = arith.constant 2 : index
    %c3_76 = arith.constant 3 : index
    %c0_77 = arith.constant 0 : index
    %c0_78 = arith.constant 0 : index
    %60 = vector.load %arg2[%c2_75, %c3_76, %c0_77, %c0_78] : memref<4x4x128x16xbf16, #tpu.memory_space<vmem>>, vector<1x1x128x16xbf16>
    %61 = vector.shape_cast %60 : vector<1x1x128x16xbf16> to vector<128x16xbf16>
    %cst_79 = arith.constant dense<0.000000e+00> : vector<44x16xf32>
    %62 = tpu.matmul %59, %61, %cst_79 {dimension_numbers = #tpu.dot_dimension_numbers<[1], [0], [0], [1], [0, 0, 1, 1], [], []>} : vector<44x128xbf16>, vector<128x16xbf16>, vector<44x16xf32> -> vector<44x16xf32>
    %63 = arith.addf %58, %62 : vector<44x16xf32>
    %64 = arith.maximumf %42, %63 : vector<44x16xf32>
    %cst_80 = arith.constant 0.000000e+00 : f32
    %65 = vector.broadcast %cst_80 : f32 to vector<44x16xf32>
    %c0_81 = arith.constant 0 : index
    %c0_82 = arith.constant 0 : index
    %66 = vector.load %arg1[%c0_81, %c0_82] : memref<50x128xbf16, #tpu.memory_space<vmem>>, vector<44x128xbf16>
    %c3_83 = arith.constant 3 : index
    %c0_84 = arith.constant 0 : index
    %c0_85 = arith.constant 0 : index
    %c0_86 = arith.constant 0 : index
    %67 = vector.load %arg2[%c3_83, %c0_84, %c0_85, %c0_86] : memref<4x4x128x16xbf16, #tpu.memory_space<vmem>>, vector<1x1x128x16xbf16>
    %68 = vector.shape_cast %67 : vector<1x1x128x16xbf16> to vector<128x16xbf16>
    %cst_87 = arith.constant dense<0.000000e+00> : vector<44x16xf32>
    %69 = tpu.matmul %66, %68, %cst_87 {dimension_numbers = #tpu.dot_dimension_numbers<[1], [0], [0], [1], [0, 0, 1, 1], [], []>} : vector<44x128xbf16>, vector<128x16xbf16>, vector<44x16xf32> -> vector<44x16xf32>
    %70 = arith.addf %65, %69 : vector<44x16xf32>
    %c1_88 = arith.constant 1 : index
    %c0_89 = arith.constant 0 : index
    %71 = vector.load %arg1[%c1_88, %c0_89] : memref<50x128xbf16, #tpu.memory_space<vmem>>, vector<44x128xbf16>
    %c3_90 = arith.constant 3 : index
    %c1_91 = arith.constant 1 : index
    %c0_92 = arith.constant 0 : index
    %c0_93 = arith.constant 0 : index
    %72 = vector.load %arg2[%c3_90, %c1_91, %c0_92, %c0_93] : memref<4x4x128x16xbf16, #tpu.memory_space<vmem>>, vector<1x1x128x16xbf16>
    %73 = vector.shape_cast %72 : vector<1x1x128x16xbf16> to vector<128x16xbf16>
    %cst_94 = arith.constant dense<0.000000e+00> : vector<44x16xf32>
    %74 = tpu.matmul %71, %73, %cst_94 {dimension_numbers = #tpu.dot_dimension_numbers<[1], [0], [0], [1], [0, 0, 1, 1], [], []>} : vector<44x128xbf16>, vector<128x16xbf16>, vector<44x16xf32> -> vector<44x16xf32>
    %75 = arith.addf %70, %74 : vector<44x16xf32>
    %c5_95 = arith.constant 5 : index
    %c0_96 = arith.constant 0 : index
    %76 = vector.load %arg1[%c5_95, %c0_96] : memref<50x128xbf16, #tpu.memory_space<vmem>>, vector<44x128xbf16>
    %c3_97 = arith.constant 3 : index
    %c2_98 = arith.constant 2 : index
    %c0_99 = arith.constant 0 : index
    %c0_100 = arith.constant 0 : index
    %77 = vector.load %arg2[%c3_97, %c2_98, %c0_99, %c0_100] : memref<4x4x128x16xbf16, #tpu.memory_space<vmem>>, vector<1x1x128x16xbf16>
    %78 = vector.shape_cast %77 : vector<1x1x128x16xbf16> to vector<128x16xbf16>
    %cst_101 = arith.constant dense<0.000000e+00> : vector<44x16xf32>
    %79 = tpu.matmul %76, %78, %cst_101 {dimension_numbers = #tpu.dot_dimension_numbers<[1], [0], [0], [1], [0, 0, 1, 1], [], []>} : vector<44x128xbf16>, vector<128x16xbf16>, vector<44x16xf32> -> vector<44x16xf32>
    %80 = arith.addf %75, %79 : vector<44x16xf32>
    %c6_102 = arith.constant 6 : index
    %c0_103 = arith.constant 0 : index
    %81 = vector.load %arg1[%c6_102, %c0_103] : memref<50x128xbf16, #tpu.memory_space<vmem>>, vector<44x128xbf16>
    %c3_104 = arith.constant 3 : index
    %c3_105 = arith.constant 3 : index
    %c0_106 = arith.constant 0 : index
    %c0_107 = arith.constant 0 : index
    %82 = vector.load %arg2[%c3_104, %c3_105, %c0_106, %c0_107] : memref<4x4x128x16xbf16, #tpu.memory_space<vmem>>, vector<1x1x128x16xbf16>
    %83 = vector.shape_cast %82 : vector<1x1x128x16xbf16> to vector<128x16xbf16>
    %cst_108 = arith.constant dense<0.000000e+00> : vector<44x16xf32>
    %84 = tpu.matmul %81, %83, %cst_108 {dimension_numbers = #tpu.dot_dimension_numbers<[1], [0], [0], [1], [0, 0, 1, 1], [], []>} : vector<44x128xbf16>, vector<128x16xbf16>, vector<44x16xf32> -> vector<44x16xf32>
    %85 = arith.addf %80, %84 : vector<44x16xf32>
    %86 = arith.maximumf %64, %85 : vector<44x16xf32>
    %c0_109 = arith.constant 0 : index
    %c0_110 = arith.constant 0 : index
    %87 = vector.load %arg3[%c0_109, %c0_110] : memref<1x16xf32, #tpu.memory_space<vmem>>, vector<1x16xf32>
    %88 = vector.broadcast %87 : vector<1x16xf32> to vector<44x16xf32>
    %89 = arith.addf %86, %88 : vector<44x16xf32>
    %cst_111 = arith.constant 0.000000e+00 : f32
    %90 = vector.broadcast %cst_111 : f32 to vector<44x16xf32>
    %91 = arith.maximumf %89, %90 : vector<44x16xf32>
    %92 = arith.truncf %91 : vector<44x16xf32> to vector<44x16xbf16>
    %c0_112 = arith.constant 0 : index
    %c0_113 = arith.constant 0 : index
    %93 = vector.load %arg4[%c0_112, %c0_113] : memref<50x16xbf16, #tpu.memory_space<vmem>>, vector<44x16xbf16>
    tpu.vector_store %arg4[%c0_112, %c0_113], %92 {strides = array<i32>} : memref<50x16xbf16, #tpu.memory_space<vmem>>, vector<44x16xbf16>,
    %cst_114 = arith.constant 0.000000e+00 : bf16
    %94 = vector.broadcast %cst_114 : bf16 to vector<6x16xbf16>
    %c44 = arith.constant 44 : index
    %c0_115 = arith.constant 0 : index
    %95 = vector.load %arg4[%c44, %c0_115] : memref<50x16xbf16, #tpu.memory_space<vmem>>, vector<6x16xbf16>
    tpu.vector_store %arg4[%c44, %c0_115], %94 {strides = array<i32>} : memref<50x16xbf16, #tpu.memory_space<vmem>>, vector<6x16xbf16>,
    return
  }
  func.func @transform_0(%arg0: i32) -> (i32, i32) {
    %c0_i32 = arith.constant 0 : i32
    %c0_i32_0 = arith.constant 0 : i32
    return %arg0, %c0_i32 : i32, i32
  }
  func.func @transform_1(%arg0: i32) -> (i32, i32, i32, i32) {
    %c0_i32 = arith.constant 0 : i32
    %c0_i32_0 = arith.constant 0 : i32
    %c0_i32_1 = arith.constant 0 : i32
    %c0_i32_2 = arith.constant 0 : i32
    %c0_i32_3 = arith.constant 0 : i32
    return %c0_i32, %c0_i32_0, %c0_i32_1, %c0_i32_2 : i32, i32, i32, i32
  }
  func.func @transform_2(%arg0: i32) -> (i32, i32) {
    %c0_i32 = arith.constant 0 : i32
    %c0_i32_0 = arith.constant 0 : i32
    %c0_i32_1 = arith.constant 0 : i32
    return %c0_i32, %c0_i32_0 : i32, i32
  }
  func.func @transform_3(%arg0: i32) -> (i32, i32) {
    %c0_i32 = arith.constant 0 : i32
    %c0_i32_0 = arith.constant 0 : i32
    return %arg0, %c0_i32 : i32, i32
  }
}

module attributes {stable_mosaic.version = 11 : i64} {
  func.func @_mlp_kernel(%arg0: i32, %arg1: memref<8x144xbf16, #tpu.memory_space<vmem>>, %arg2: memref<144x512xbf16, #tpu.memory_space<vmem>>, %arg3: memref<1x512xf32, #tpu.memory_space<vmem>>, %arg4: memref<512x128xbf16, #tpu.memory_space<vmem>>, %arg5: memref<1x128xf32, #tpu.memory_space<vmem>>, %arg6: memref<8x128xf32, #tpu.memory_space<vmem>>) attributes {dimension_semantics = [#tpu.dimension_semantics<parallel>], iteration_bounds = array<i64: 1>, scalar_prefetch = 0 : i64, scratch_operands = 0 : i64, tpu.core_type = #tpu.core_type<tc>, window_params = [{transform_indices = @transform_0, window_bounds = array<i64: 8, 144>}, {pipeline_mode = #tpu.pipeline_mode<synchronous>, transform_indices = @transform_1, window_bounds = array<i64: 144, 512>}, {pipeline_mode = #tpu.pipeline_mode<synchronous>, transform_indices = @transform_2, window_bounds = array<i64: 1, 512>}, {pipeline_mode = #tpu.pipeline_mode<synchronous>, transform_indices = @transform_3, window_bounds = array<i64: 512, 128>}, {pipeline_mode = #tpu.pipeline_mode<synchronous>, transform_indices = @transform_4, window_bounds = array<i64: 1, 128>}, {transform_indices = @transform_5, window_bounds = array<i64: 8, 128>}]} {
    %c0 = arith.constant 0 : index
    %c0_0 = arith.constant 0 : index
    %0 = vector.load %arg1[%c0, %c0_0] : memref<8x144xbf16, #tpu.memory_space<vmem>>, vector<8x144xbf16>
    %c0_1 = arith.constant 0 : index
    %c0_2 = arith.constant 0 : index
    %1 = vector.load %arg2[%c0_1, %c0_2] : memref<144x512xbf16, #tpu.memory_space<vmem>>, vector<144x512xbf16>
    %cst = arith.constant dense<0.000000e+00> : vector<8x512xf32>
    %2 = tpu.matmul %0, %1, %cst {dimension_numbers = #tpu.dot_dimension_numbers<[1], [0], [0], [1], [0, 0, 1, 1], [], []>} : vector<8x144xbf16>, vector<144x512xbf16>, vector<8x512xf32> -> vector<8x512xf32>
    %c0_3 = arith.constant 0 : index
    %c0_4 = arith.constant 0 : index
    %3 = vector.load %arg3[%c0_3, %c0_4] : memref<1x512xf32, #tpu.memory_space<vmem>>, vector<1x512xf32>
    %4 = vector.broadcast %3 : vector<1x512xf32> to vector<8x512xf32>
    %5 = arith.addf %2, %4 : vector<8x512xf32>
    %cst_5 = arith.constant 0.000000e+00 : f32
    %6 = vector.broadcast %cst_5 : f32 to vector<8x512xf32>
    %7 = arith.maximumf %5, %6 : vector<8x512xf32>
    %8 = arith.truncf %7 : vector<8x512xf32> to vector<8x512xbf16>
    %c0_6 = arith.constant 0 : index
    %c0_7 = arith.constant 0 : index
    %9 = vector.load %arg4[%c0_6, %c0_7] : memref<512x128xbf16, #tpu.memory_space<vmem>>, vector<512x128xbf16>
    %cst_8 = arith.constant dense<0.000000e+00> : vector<8x128xf32>
    %10 = tpu.matmul %8, %9, %cst_8 {dimension_numbers = #tpu.dot_dimension_numbers<[1], [0], [0], [1], [0, 0, 1, 1], [], []>} : vector<8x512xbf16>, vector<512x128xbf16>, vector<8x128xf32> -> vector<8x128xf32>
    %c0_9 = arith.constant 0 : index
    %c0_10 = arith.constant 0 : index
    %11 = vector.load %arg5[%c0_9, %c0_10] : memref<1x128xf32, #tpu.memory_space<vmem>>, vector<1x128xf32>
    %12 = vector.broadcast %11 : vector<1x128xf32> to vector<8x128xf32>
    %13 = arith.addf %10, %12 : vector<8x128xf32>
    %c0_11 = arith.constant 0 : index
    %c0_12 = arith.constant 0 : index
    %14 = vector.load %arg6[%c0_11, %c0_12] : memref<8x128xf32, #tpu.memory_space<vmem>>, vector<8x128xf32>
    tpu.vector_store %arg6[%c0_11, %c0_12], %13 {strides = array<i32>} : memref<8x128xf32, #tpu.memory_space<vmem>>, vector<8x128xf32>,
    return
  }
  func.func @transform_0(%arg0: i32) -> (i32, i32) {
    %c0_i32 = arith.constant 0 : i32
    %c0_i32_0 = arith.constant 0 : i32
    return %arg0, %c0_i32 : i32, i32
  }
  func.func @transform_1(%arg0: i32) -> (i32, i32) {
    %c0_i32 = arith.constant 0 : i32
    %c0_i32_0 = arith.constant 0 : i32
    %c0_i32_1 = arith.constant 0 : i32
    return %c0_i32, %c0_i32_0 : i32, i32
  }
  func.func @transform_2(%arg0: i32) -> (i32, i32) {
    %c0_i32 = arith.constant 0 : i32
    %c0_i32_0 = arith.constant 0 : i32
    %c0_i32_1 = arith.constant 0 : i32
    return %c0_i32, %c0_i32_0 : i32, i32
  }
  func.func @transform_3(%arg0: i32) -> (i32, i32) {
    %c0_i32 = arith.constant 0 : i32
    %c0_i32_0 = arith.constant 0 : i32
    %c0_i32_1 = arith.constant 0 : i32
    return %c0_i32, %c0_i32_0 : i32, i32
  }
  func.func @transform_4(%arg0: i32) -> (i32, i32) {
    %c0_i32 = arith.constant 0 : i32
    %c0_i32_0 = arith.constant 0 : i32
    %c0_i32_1 = arith.constant 0 : i32
    return %c0_i32, %c0_i32_0 : i32, i32
  }
  func.func @transform_5(%arg0: i32) -> (i32, i32) {
    %c0_i32 = arith.constant 0 : i32
    %c0_i32_0 = arith.constant 0 : i32
    return %arg0, %c0_i32 : i32, i32
  }
}

</mosaic_0001>

<bundles_post_ra>
// kernel: attacker_forward.5
= control target key start
LH: loop header
LB: loop body
LE: loop exit
PB: predicated region body
PF: predicated region fallthrough
CT: control target
= control target key end

     0   :  { %vm101_vm0 = vsmask.f32 7424  ;;  %vm3118_vm1 = vcmask 257024   ;;  %vm3134_vm2 = vsmask.f32 3328  ;;  %vm3139_vm4 = vcmask 257027   ;;  %s5652_s1 = inlined_call_operand.vmem [shape: bf16[4,4,128,32], index: 1, kind: input, shape index: {}]   ;;  %s5653_s0 = inlined_call_operand.vmem [shape: bf16[128,128], index: 0, kind: input, shape index: {}]   ;;  %s5654_s3 = inlined_call_operand.vmem [shape: bf16[128,32], index: 3, kind: output, shape index: {}]   ;;  %s5655_s2 = inlined_call_operand.vmem [shape: f32[1,32], index: 2, kind: input, shape index: {}]  }
   0x1   :  { %v4334_v0 = vld [vmem:[%s5652_s1 + $0x78] sm:$0xff]   ;;  %v4336_v2 = vld [vmem:[%s5652_s1 + $0x70] sm:$0xff]   ;;  %v4338_v4 = vld [vmem:[%s5652_s1 + $0x68] sm:$0xff]   ;;  %vm3140_vm5 = vsmask.f32 7950 }
   0x2   :  { %v4335_v1 = vld [vmem:[%s5652_s1 + $0x38] sm:$0xff]   ;;  %3821 = vmatprep.subr.bf16.mxu0 %v4334_v0  ;;  %v4337_v3 = vld [vmem:[%s5652_s1 + $0x30] sm:$0xff]   ;;  %v4339_v5 = vld [vmem:[%s5652_s1 + $0x28] sm:$0xff]  }
   0x3   :  { %3853 = vmatprep.subr.bf16.mxu1 %v4335_v1  ;;  %3822 = vmatpush3.bf16.msra.mxu0 %v4334_v0  ;;  %v4340_v6 = vld [vmem:[%s5652_s1 + $0x60] sm:$0xff]   ;;  %v4342_v8 = vld [vmem:[%s5652_s1 + $0x58] sm:$0xff]   ;;  %v4344_v10 = vld [vmem:[%s5652_s1 + $0x50] sm:$0xff]  }
   0x4   :  { %3854 = vmatpush3.bf16.msra.mxu1 %v4335_v1  ;;  %3823 = vmatprep.subr.bf16.mxu0 %v4336_v2  ;;  %v4341_v7 = vld [vmem:[%s5652_s1 + $0x20] sm:$0xff]   ;;  %v4343_v9 = vld [vmem:[%s5652_s1 + $0x18] sm:$0xff]   ;;  %v4345_v11 = vld [vmem:[%s5652_s1 + $0x10] sm:$0xff]  }
   0x5   :  { %3855 = vmatprep.subr.bf16.mxu1 %v4337_v3  ;;  %v4554_v12 = vld [vmem:[%s5653_s0] sm:$0xff]   ;;  %v4559_v13 = vld [vmem:[%s5653_s0 + $0x8] sm:$0xff]   ;;  %v4564_v14 = vld [vmem:[%s5653_s0 + $0x10] sm:$0xff]  }
   0x6   :  { %v103_v15 = vshrl.u32 %v4554_v12, 16  ;;  %v105_v16 = vshll.u32 %v4554_v12, 16  ;;  %v110_v17 = vshll.u32 %v4559_v13, 16  ;;  %3869 = vmatprep.mubr.bf16.mxu1 %v4554_v12  ;;  %v4346_v18 = vld [vmem:[%s5652_s1 + $0x48] sm:$0xff]   ;;  %v4348_v22 = vld [vmem:[%s5652_s1 + $0x40] sm:$0xff]   ;;  %v114_v23 = vshrl.u32 %v4559_v13, 16  ;;  %vm3135_vm3 = vmand %vm3118_vm1, %vm3134_vm2 }
   0x7   :  { %3824 = vmatpush3.bf16.msra.mxu0 %v4336_v2  ;;  %v4347_v19 = vld [vmem:[%s5652_s1 + $0x8] sm:$0xff]   ;;  %v118_v24 = vshll.u32 %v4564_v14, 16  ;;  %v4584_v26 = vld [vmem:[%s5653_s0 + $0x18] sm:$0xff]   ;;  %v4349_v27 = vld [vmem:[%s5652_s1] sm:$0xff]   ;;  %v122_v29 = vshrl.u32 %v4564_v14, 16 }
   0x8   :  { %3856 = vmatpush3.bf16.msra.mxu1 %v4337_v3  ;;  %3825 = vmatprep.subr.bf16.mxu0 %v4338_v4  ;;  %v107_v20 = vrot.slane %v105_v16, 1  ;;  %v112_v21 = vrot.slane %v110_v17, 1  ;;  %v126_v30 = vshll.u32 %v4584_v26, 16  ;;  %v4598_v33 = vld [vmem:[%s5653_s0 + $0x20] sm:$0xff]   ;;  %v4353_v34 = vld [vmem:[%s5652_s1 + $0xb8] sm:$0xff]   ;;  %v4609_v38 = vld [vmem:[%s5653_s0 + $0x28] sm:$0xff]  }
   0x9   :  { %3857 = vmatprep.subr.bf16.mxu1 %v4339_v5  ;;  %v120_v32 = vrot.slane %v118_v24, 1  ;;  %v4354_v35 = vld [vmem:[%s5652_s1 + $0xf8] sm:$0xff]   ;;  %v130_v40 = vshrl.u32 %v4584_v26, 16  ;;  %v134_v41 = vshll.u32 %v4598_v33, 16  ;;  %v4355_v42 = vld [vmem:[%s5652_s1 + $0xb0] sm:$0xff]   ;;  %v138_v44 = vshrl.u32 %v4598_v33, 16  ;;  %vm3141_vm6 = vmand %vm3139_vm4, %vm3140_vm5 }
   0xa   :  { %v108_v25 = vor.u32 %v107_v20, %v103_v15  ;;  %v116_v31 = vor.u32 %v114_v23, %v112_v21  ;;  %v128_v37 = vrot.slane %v126_v30, 1  ;;  %v4356_v43 = vld [vmem:[%s5652_s1 + $0xf0] sm:$0xff]   ;;  %v142_v46 = vshll.u32 %v4609_v38, 16  ;;  %v4359_v50 = vld [vmem:[%s5652_s1 + $0xa8] sm:$0xff]   ;;  %v4647_v56 = vld [vmem:[%s5653_s0 + $0x38] ss:$0 sps:$4 sm:$0xff]  }
   0xb   :  { %3826 = vmatpush3.bf16.msra.mxu0 %v4338_v4  ;;  %v124_v36 = vor.u32 %v122_v29, %v120_v32  ;;  %v4631_v47 = vld [vmem:[%s5653_s0 + $0x30] sm:$0xff]   ;;  %v136_v49 = vrot.slane %v134_v41, 1  ;;  %v4360_v51 = vld [vmem:[%s5652_s1 + $0xe8] sm:$0xff]   ;;  %v146_v52 = vshrl.u32 %v4609_v38, 16  ;;  %v4361_v58 = vld [vmem:[%s5652_s1 + $0xa0] sm:$0xff]   ;;  %v158_v62 = vshll.u32 %v4647_v56, 16 }
   0xc   :  { %3858 = vmatpush3.bf16.msra.mxu1 %v4339_v5  ;;  %3827 = vmatprep.subr.bf16.mxu0 %v4340_v6  ;;  %v4590_v28 = vsel %vm101_vm0, %v108_v25, %v112_v21  ;;  %v4612_v39 = vsel %vm101_vm0, %v116_v31, %v120_v32  ;;  %v132_v48 = vor.u32 %v130_v40, %v128_v37  ;;  %v144_v54 = vrot.slane %v142_v46, 1  ;;  %v4362_v59 = vld [vmem:[%s5652_s1 + $0xe0] sm:$0xff]   ;;  %v4365_v2 = vld [vmem:[%s5652_s1 + $0x98] sm:$0xff]   ;;  %v4370_v16 = vld [vmem:[%s5652_s1 + $0x88] sm:$0xff]  }
   0xd   :  { %3859 = vmatprep.subr.bf16.mxu1 %v4341_v7  ;;  %3837 = vmatprep.mubr.bf16.mxu0 %v4590_v28  ;;  %v4625_v45 = vsel %vm101_vm0, %v124_v36, %v128_v37  ;;  %v140_v53 = vor.u32 %v138_v44, %v136_v49  ;;  %v150_v55 = vshll.u32 %v4631_v47, 16  ;;  %v154_v61 = vshrl.u32 %v4631_v47, 16  ;;  %v4668_v1 = vld [vmem:[%s5653_s0 + $0x4] sm:$0xff]   ;;  %v4366_v3 = vld [vmem:[%s5652_s1 + $0xd8] sm:$0xff]   ;;  %v4379_v44 = vld [vmem:[%s5652_s1 + $0x170] sm:$0xff]  }
   0xe   :  { %v4650_v57 = vsel %vm101_vm0, %v132_v48, %v136_v49  ;;  %v148_v63 = vor.u32 %v146_v52, %v144_v54  ;;  %v160_v5 = vrot.slane %v158_v62, 1  ;;  %v162_v15 = vshrl.u32 %v4647_v56, 16  ;;  %v4707_v20 = vld [vmem:[%s5653_s0 + $0x14] sm:$0xff]   ;;  %v4371_v21 = vld [vmem:[%s5652_s1 + $0xc8] sm:$0xff]   ;;  %v4372_v23 = vld [vmem:[%s5652_s1 + $0x80] sm:$0xff]  }
   0xf   :  { %3828 = vmatpush3.bf16.msra.mxu0 %v4340_v6  ;;  %v4660_v60 = vsel %vm101_vm0, %v140_v53, %v144_v54  ;;  %v152_v0 = vrot.slane %v150_v55, 1  ;;  %v724_v17 = vshrl.u32 %v4668_v1, 16  ;;  %v739_v30 = vshll.u32 %v4707_v20, 16  ;;  %v4373_v31 = vld [vmem:[%s5652_s1 + $0xc0] sm:$0xff]   ;;  %v4377_v41 = vld [vmem:[%s5652_s1 + $0x178] sm:$0xff]   ;;  %v4380_v52 = vld [vmem:[%s5652_s1 + $0x130] sm:$0xff]  }
  0x10   :  { %3860 = vmatpush3.bf16.msra.mxu1 %v4341_v7  ;;  %3829 = vmatprep.subr.bf16.mxu0 %v4342_v8  ;;  %v4684_v7 = vld [vmem:[%s5653_s0 + $0xc] sm:$0xff]   ;;  %v743_v32 = vshrl.u32 %v4707_v20, 16  ;;  %v4739_v36 = vld [vmem:[%s5653_s0 + $0x24] sm:$0xff]   ;;  %v4778_v62 = vld [vmem:[%s5653_s0 + $0x34] sm:$0xff]  }
  0x11   :  { %3861 = vmatprep.subr.bf16.mxu1 %v4343_v9  ;;  %v156_v4 = vor.u32 %v154_v61, %v152_v0  ;;  %v4679_v6 = vsel %vm101_vm0, %v148_v63, %v152_v0  ;;  %v735_v29 = vshrl.u32 %v4684_v7, 16  ;;  %v741_v40 = vrot.slane %v739_v30, 1  ;;  %v4383_v55 = vld [vmem:[%s5652_s1 + $0x168] sm:$0xff]   ;;  %v4385_v0 = vld [vmem:[%s5652_s1 + $0x160] sm:$0xff]   ;;  %v4391_v30 = vld [vmem:[%s5652_s1 + $0x150] sm:$0xff]  }
  0x12   :  { %v4384_v63 = vld [vmem:[%s5652_s1 + $0x128] sm:$0xff]  }
  0x13   :  { %3830 = vmatpush3.bf16.msra.mxu0 %v4342_v8  ;;  %v726_v8 = vshll.u32 %v4668_v1, 16  ;;  %v745_v46 = vor.u32 %v743_v32, %v741_v40 }
  0x14   :  { %3862 = vmatpush3.bf16.msra.mxu1 %v4343_v9  ;;  %3831 = vmatprep.subr.bf16.mxu0 %v4344_v10  ;;  %v4367_v9 = vld [vmem:[%s5652_s1 + $0x90] sm:$0xff]  }
  0x15   :  { %3863 = vmatprep.subr.bf16.mxu1 %v4345_v11 }
  0x17   :  { %3832 = vmatpush3.bf16.msra.mxu0 %v4344_v10  ;;  %v4368_v10 = vld [vmem:[%s5652_s1 + $0xd0] sm:$0xff]  }
  0x18   :  { %3864 = vmatpush3.bf16.msra.mxu1 %v4345_v11  ;;  %3833 = vmatprep.subr.bf16.mxu0 %v4346_v18  ;;  %v4695_v11 = vsel %vm101_vm0, %v156_v4, %v160_v5  ;;  %v4791_v4 = vld [vmem:[%s5653_s0 + $0x3c] ss:$0 sps:$4 sm:$0xff]  }
  0x19   :  { %3865 = vmatprep.subr.bf16.mxu1 %v4347_v19 }
  0x1b   :  { %3834 = vmatpush3.bf16.msra.mxu0 %v4346_v18  ;;  %v728_v18 = vrot.slane %v726_v8, 1 }
  0x1c   :  { %3866 = vmatpush3.bf16.msra.mxu1 %v4347_v19  ;;  %3835 = vmatprep.subr.bf16.mxu0 %v4348_v22  ;;  %v731_v19 = vshll.u32 %v4684_v7, 16 }
  0x1d   :  { %3867 = vmatprep.subr.bf16.mxu1 %v4349_v27  ;;  %v729_v24 = vor.u32 %v728_v18, %v724_v17  ;;  %v779_v17 = vshll.u32 %v4791_v4, 16 }
  0x1e   :  { %v733_v25 = vrot.slane %v731_v19, 1 }
  0x1f   :  { %3836 = vmatpush3.bf16.msra.mxu0 %v4348_v22  ;;  %v4714_v22 = vor.u32 %v162_v15, %v160_v5 }
  0x20   :  { %3868 = vmatpush3.bf16.msra.mxu1 %v4349_v27  ;;  %3885 = vmatprep.subr.bf16.mxu0 %v4353_v34  ;;  %v4722_v27 = vld [vmem:[%s5653_s0 + $0x1c] sm:$0xff]   ;;  %v737_v37 = vor.u32 %v735_v29, %v733_v25 }
  0x21   :  { %3917 = vmatprep.subr.bf16.mxu1 %v4354_v35  ;;  %v751_v49 = vshrl.u32 %v4722_v27, 16 }
  0x22   :  { %3838 = vmatmul.mubr.bf16.vlgmr.msra.gmra.mxu0 %v4612_v39 }
  0x23   :  { %3870 = vmatmul.mubr.bf16.vlgmr.msra.gmra.mxu1 %v4559_v13  ;;  %3886 = vmatpush3.bf16.msra.mxu0 %v4353_v34  ;;  %v4733_v34 = vsel %vm101_vm0, %v729_v24, %v733_v25  ;;  %v781_v25 = vrot.slane %v779_v17, 1  ;;  %v4427_v17 = vld [vmem:[%s5652_s1 + $0x208] sm:$0xff]  }
  0x24   :  { %3918 = vmatpush3.bf16.msra.mxu1 %v4354_v35  ;;  %3887 = vmatprep.subr.bf16.mxu0 %v4355_v42  ;;  %v747_v35 = vshll.u32 %v4722_v27, 16 }
  0x25   :  { %3919 = vmatprep.subr.bf16.mxu1 %v4356_v43  ;;  %3841 = vmatprep.mubr.bf16.mxu0 %v4625_v45 }
  0x26   :  { %3873 = vmatprep.mubr.bf16.mxu1 %v4564_v14  ;;  %v749_v48 = vrot.slane %v747_v35, 1  ;;  %v783_v35 = vshrl.u32 %v4791_v4, 16 }
  0x27   :  { %3888 = vmatpush3.bf16.msra.mxu0 %v4355_v42  ;;  %v4378_v42 = vld [vmem:[%s5652_s1 + $0x138] sm:$0xff]  }
  0x28   :  { %3920 = vmatpush3.bf16.msra.mxu1 %v4356_v43  ;;  %3889 = vmatprep.subr.bf16.mxu0 %v4359_v50  ;;  %v4752_v43 = vld [vmem:[%s5653_s0 + $0x2c] sm:$0xff]   ;;  %v4769_v54 = vsel %vm101_vm0, %v745_v46, %v749_v48  ;;  %v4398_v46 = vld [vmem:[%s5652_s1 + $0x1b8] sm:$0xff]  }
  0x29   :  { %3921 = vmatprep.subr.bf16.mxu1 %v4360_v51  ;;  %v763_v53 = vshll.u32 %v4752_v43, 16  ;;  %v767_v8 = vshrl.u32 %v4752_v43, 16 }
  0x2a   :  { %3842 = vmatmul.mubr.bf16.gmra.mxu0 %v4650_v57 }
  0x2b   :  { %3874 = vmatmul.mubr.bf16.gmra.mxu1 %v4584_v26  ;;  %3890 = vmatpush3.bf16.msra.mxu0 %v4359_v50  ;;  %v755_v50 = vshll.u32 %v4739_v36, 16 }
  0x2c   :  { %3922 = vmatpush3.bf16.msra.mxu1 %v4360_v51  ;;  %3891 = vmatprep.subr.bf16.mxu0 %v4361_v58  ;;  %v4760_v51 = vsel %vm101_vm0, %v737_v37, %v741_v40  ;;  %v4394_v37 = vld [vmem:[%s5652_s1 + $0x148] sm:$0xff]  }
  0x2d   :  { %3923 = vmatprep.subr.bf16.mxu1 %v4362_v59  ;;  %3845 = vmatprep.mubr.bf16.mxu0 %v4660_v60  ;;  %v757_v61 = vrot.slane %v755_v50, 1  ;;  %v4395_v40 = vld [vmem:[%s5652_s1 + $0x108] sm:$0xff]   ;;  %v4401_v50 = vld [vmem:[%s5652_s1 + $0x1f0] sm:$0xff]  }
  0x2e   :  { %3877 = vmatprep.mubr.bf16.mxu1 %v4598_v33 }
  0x2f   :  { %3892 = vmatpush3.bf16.msra.mxu0 %v4361_v58  ;;  %v759_v58 = vshrl.u32 %v4739_v36, 16 }
  0x30   :  { %3924 = vmatpush3.bf16.msra.mxu1 %v4362_v59  ;;  %3893 = vmatprep.subr.bf16.mxu0 %v4365_v2  ;;  %v753_v59 = vor.u32 %v751_v49, %v749_v48  ;;  %v4399_v48 = vld [vmem:[%s5652_s1 + $0x1f8] sm:$0xff]   ;;  %v4400_v49 = vld [vmem:[%s5652_s1 + $0x1b0] sm:$0xff]  }
  0x31   :  { %3925 = vmatprep.subr.bf16.mxu1 %v4366_v3 }
  0x32   :  { %3846 = vmatmul.mubr.bf16.gmra.mxu0 %v4679_v6  ;;  %v4794_v5 = vsel %vm101_vm0, %v753_v59, %v757_v61  ;;  %v4411_v59 = vld [vmem:[%s5652_s1 + $0x1c8] sm:$0xff]  }
  0x33   :  { %3878 = vmatmul.mubr.bf16.gmra.mxu1 %v4609_v38  ;;  %3894 = vmatpush3.bf16.msra.mxu0 %v4365_v2  ;;  %v765_v2 = vrot.slane %v763_v53, 1  ;;  %v4405_v53 = vld [vmem:[%s5652_s1 + $0x1e0] sm:$0xff]  }
  0x34   :  { %3926 = vmatpush3.bf16.msra.mxu1 %v4366_v3  ;;  %3895 = vmatprep.subr.bf16.mxu0 %v4367_v9  ;;  %v761_v3 = vor.u32 %v759_v58, %v757_v61  ;;  %v4409_v58 = vld [vmem:[%s5652_s1 + $0x1d0] sm:$0xff]   ;;  %v4413_v61 = vld [vmem:[%s5652_s1 + $0x1c0] sm:$0xff]  }
  0x35   :  { %3927 = vmatprep.subr.bf16.mxu1 %v4368_v10  ;;  %3849 = vmatprep.mubr.bf16.mxu0 %v4695_v11  ;;  %v769_v18 = vor.u32 %v767_v8, %v765_v2  ;;  %v4423_v8 = vld [vmem:[%s5652_s1 + $0x218] sm:$0xff]  }
  0x36   :  { %3881 = vmatprep.mubr.bf16.mxu1 %v4631_v47  ;;  %v4804_v15 = vsel %vm101_vm0, %v761_v3, %v765_v2  ;;  %v4419_v2 = vld [vmem:[%s5652_s1 + $0x228] sm:$0xff]   ;;  %v4421_v3 = vld [vmem:[%s5652_s1 + $0x220] sm:$0xff]  }
  0x37   :  { %3896 = vmatpush3.bf16.msra.mxu0 %v4367_v9  ;;  %v771_v9 = vshll.u32 %v4778_v62, 16 }
  0x38   :  { %3928 = vmatpush3.bf16.msra.mxu1 %v4368_v10  ;;  %3897 = vmatprep.subr.bf16.mxu0 %v4370_v16  ;;  %v4386_v10 = vld [vmem:[%s5652_s1 + $0x120] sm:$0xff]  }
  0x39   :  { %3929 = vmatprep.subr.bf16.mxu1 %v4371_v21  ;;  %v773_v19 = vrot.slane %v771_v9, 1  ;;  %v4424_v9 = vld [vmem:[%s5652_s1 + $0x250] sm:$0xff]  }
  0x3a   :  { %3850 = vmatmul.mubr.bf16.gmra.mxu0 %v4714_v22 }
  0x3b   :  { %3882 = vmatmul.mubr.bf16.gmra.mxu1 %v4647_v56  ;;  %3898 = vmatpush3.bf16.msra.mxu0 %v4370_v16  ;;  %v775_v16 = vshrl.u32 %v4778_v62, 16  ;;  %v4817_v29 = vsel %vm101_vm0, %v769_v18, %v773_v19  ;;  %v4428_v18 = vld [vmem:[%s5652_s1 + $0x240] sm:$0xff]  }
  0x3c   :  { %3930 = vmatpush3.bf16.msra.mxu1 %v4371_v21  ;;  %3899 = vmatprep.subr.bf16.mxu0 %v4372_v23  ;;  %v4389_v21 = vld [vmem:[%s5652_s1 + $0x158] sm:$0xff]  }
  0x3d   :  { %3931 = vmatprep.subr.bf16.mxu1 %v4373_v31  ;;  %3901 = vmatprep.mubr.bf16.mxu0 %v4668_v1  ;;  %v777_v24 = vor.u32 %v775_v16, %v773_v19  ;;  %v4426_v16 = vld [vmem:[%s5652_s1 + $0x248] sm:$0xff]   ;;  %v4429_v19 = vld [vmem:[%s5652_s1 + $0x200] sm:$0xff]  }
  0x3e   :  { %3933 = vmatprep.mubr.bf16.mxu1 %v4733_v34 }
  0x3f   :  { %3900 = vmatpush3.bf16.msra.mxu0 %v4372_v23  ;;  %v4390_v23 = vld [vmem:[%s5652_s1 + $0x118] sm:$0xff]   ;;  %v4828_v32 = vsel %vm101_vm0, %v777_v24, %v781_v25  ;;  %v4987_v24 = vld [vmem:[%s5653_s0] sm:$0xff]  }
  0x40   :  { %3932 = vmatpush3.bf16.msra.mxu1 %v4373_v31  ;;  %3949 = vmatprep.subr.bf16.mxu0 %v4377_v41  ;;  %v4392_v31 = vld [vmem:[%s5652_s1 + $0x110] sm:$0xff]  }
  0x41   :  { %3981 = vmatprep.subr.bf16.mxu1 %v4378_v42 }
  0x42   :  { %3902 = vmatmul.mubr.bf16.vlgmr.msra.gmra.mxu0 %v4684_v7 }
  0x43   :  { %3934 = vmatmul.mubr.bf16.vlgmr.msra.gmra.mxu1 %v4760_v51  ;;  %3950 = vmatpush3.bf16.msra.mxu0 %v4377_v41  ;;  %v4839_v41 = vor.u32 %v783_v35, %v781_v25  ;;  %v4432_v25 = vld [vmem:[%s5652_s1 + $0x2b0] sm:$0xff]   ;;  %v4434_v35 = vld [vmem:[%s5652_s1 + $0x2a8] sm:$0xff]  }
  0x44   :  { %3982 = vmatpush3.bf16.msra.mxu1 %v4378_v42  ;;  %3951 = vmatprep.subr.bf16.mxu0 %v4379_v44  ;;  %v4396_v42 = vld [vmem:[%s5652_s1 + $0x140] sm:$0xff]  }
  0x45   :  { %3983 = vmatprep.subr.bf16.mxu1 %v4380_v52  ;;  %3905 = vmatprep.mubr.bf16.mxu0 %v4707_v20 }
  0x46   :  { %3937 = vmatprep.mubr.bf16.mxu1 %v4769_v54 }
  0x47   :  { %3952 = vmatpush3.bf16.msra.mxu0 %v4379_v44  ;;  %v4397_v44 = vld [vmem:[%s5652_s1 + $0x100] sm:$0xff]  }
  0x48   :  { %3984 = vmatpush3.bf16.msra.mxu1 %v4380_v52  ;;  %3953 = vmatprep.subr.bf16.mxu0 %v4383_v55  ;;  %v4403_v52 = vld [vmem:[%s5652_s1 + $0x1e8] sm:$0xff]  }
  0x49   :  { %3985 = vmatprep.subr.bf16.mxu1 %v4384_v63 }
  0x4a   :  { %3906 = vmatmul.mubr.bf16.gmra.mxu0 %v4722_v27 }
  0x4b   :  { %3938 = vmatmul.mubr.bf16.gmra.mxu1 %v4794_v5  ;;  %3954 = vmatpush3.bf16.msra.mxu0 %v4383_v55  ;;  %v4407_v55 = vld [vmem:[%s5652_s1 + $0x1d8] sm:$0xff]  }
  0x4c   :  { %3986 = vmatpush3.bf16.msra.mxu1 %v4384_v63  ;;  %3955 = vmatprep.subr.bf16.mxu0 %v4385_v0  ;;  %v4415_v63 = vld [vmem:[%s5652_s1 + $0x238] sm:$0xff]  }
  0x4d   :  { %3987 = vmatprep.subr.bf16.mxu1 %v4386_v10  ;;  %3909 = vmatprep.mubr.bf16.mxu0 %v4739_v36 }
  0x4e   :  { %3941 = vmatprep.mubr.bf16.mxu1 %v4804_v15 }
  0x4f   :  { %3956 = vmatpush3.bf16.msra.mxu0 %v4385_v0  ;;  %v4417_v0 = vld [vmem:[%s5652_s1 + $0x230] sm:$0xff]  }
  0x50   :  { %3988 = vmatpush3.bf16.msra.mxu1 %v4386_v10  ;;  %3957 = vmatprep.subr.bf16.mxu0 %v4389_v21  ;;  %v4425_v10 = vld [vmem:[%s5652_s1 + $0x210] sm:$0xff]  }
  0x51   :  { %3989 = vmatprep.subr.bf16.mxu1 %v4390_v23 }
  0x52   :  { %3910 = vmatmul.mubr.bf16.gmra.mxu0 %v4752_v43 }
  0x53   :  { %3942 = vmatmul.mubr.bf16.gmra.mxu1 %v4817_v29  ;;  %3958 = vmatpush3.bf16.msra.mxu0 %v4389_v21  ;;  %v4430_v21 = vld [vmem:[%s5652_s1 + $0x2b8] sm:$0xff]  }
  0x54   :  { %3990 = vmatpush3.bf16.msra.mxu1 %v4390_v23  ;;  %3959 = vmatprep.subr.bf16.mxu0 %v4391_v30  ;;  %v4431_v23 = vld [vmem:[%s5652_s1 + $0x2f8] sm:$0xff]  }
  0x55   :  { %3991 = vmatprep.subr.bf16.mxu1 %v4392_v31  ;;  %3913 = vmatprep.mubr.bf16.mxu0 %v4778_v62 }
  0x56   :  { %3945 = vmatprep.mubr.bf16.mxu1 %v4828_v32 }
  0x57   :  { %3960 = vmatpush3.bf16.msra.mxu0 %v4391_v30  ;;  %v4433_v30 = vld [vmem:[%s5652_s1 + $0x2f0] sm:$0xff]  }
  0x58   :  { %3992 = vmatpush3.bf16.msra.mxu1 %v4392_v31  ;;  %3961 = vmatprep.subr.bf16.mxu0 %v4394_v37  ;;  %v5000_v31 = vld [vmem:[%s5653_s0 + $0x8] sm:$0xff]  }
  0x59   :  { %3993 = vmatprep.subr.bf16.mxu1 %v4395_v40 }
  0x5a   :  { %3914 = vmatmul.mubr.bf16.gmra.mxu0 %v4791_v4 }
  0x5b   :  { %3946 = vmatmul.mubr.bf16.gmra.mxu1 %v4839_v41  ;;  %3962 = vmatpush3.bf16.msra.mxu0 %v4394_v37  ;;  %v4435_v37 = vld [vmem:[%s5652_s1 + $0x2e8] sm:$0xff]  }
  0x5c   :  { %3994 = vmatpush3.bf16.msra.mxu1 %v4395_v40  ;;  %3963 = vmatprep.subr.bf16.mxu0 %v4396_v42  ;;  %v5013_v40 = vld [vmem:[%s5653_s0 + $0x10] sm:$0xff]  }
  0x5d   :  { %3995 = vmatprep.subr.bf16.mxu1 %v4397_v44  ;;  %3965 = vmatprep.mubr.bf16.mxu0 %v4590_v28 }
  0x5e   :  { %3997 = vmatprep.mubr.bf16.mxu1 %v4554_v12  ;;  %v4402_v12 = vld [vmem:[%s5652_s1 + $0x1a8] sm:$0xff]  }
  0x5f   :  { %3964 = vmatpush3.bf16.msra.mxu0 %v4396_v42  ;;  %v4436_v42 = vld [vmem:[%s5652_s1 + $0x2a0] sm:$0xff]  }
  0x60   :  { %3996 = vmatpush3.bf16.msra.mxu1 %v4397_v44  ;;  %4013 = vmatprep.subr.bf16.mxu0 %v4398_v46  ;;  %v4437_v44 = vld [vmem:[%s5652_s1 + $0x2e0] sm:$0xff]  }
  0x61   :  { %4045 = vmatprep.subr.bf16.mxu1 %v4399_v48 }
  0x62   :  { %3966 = vmatmul.mubr.bf16.vlgmr.msra.gmra.mxu0 %v4612_v39 }
  0x63   :  { %3998 = vmatmul.mubr.bf16.vlgmr.msra.gmra.mxu1 %v4559_v13  ;;  %4014 = vmatpush3.bf16.msra.mxu0 %v4398_v46  ;;  %v4404_v13 = vld [vmem:[%s5652_s1 + $0x1a0] sm:$0xff]   ;;  %v5026_v46 = vld [vmem:[%s5653_s0 + $0x18] sm:$0xff]  }
  0x64   :  { %4046 = vmatpush3.bf16.msra.mxu1 %v4399_v48  ;;  %4015 = vmatprep.subr.bf16.mxu0 %v4400_v49  ;;  %v4438_v48 = vld [vmem:[%s5652_s1 + $0x298] sm:$0xff]  }
  0x65   :  { %4047 = vmatprep.subr.bf16.mxu1 %v4401_v50  ;;  %3969 = vmatprep.mubr.bf16.mxu0 %v4625_v45 }
  0x66   :  { %4001 = vmatprep.mubr.bf16.mxu1 %v4564_v14  ;;  %v4406_v14 = vld [vmem:[%s5652_s1 + $0x198] sm:$0xff]  }
  0x67   :  { %4016 = vmatpush3.bf16.msra.mxu0 %v4400_v49  ;;  %v4439_v49 = vld [vmem:[%s5652_s1 + $0x2d8] sm:$0xff]  }
  0x68   :  { %4048 = vmatpush3.bf16.msra.mxu1 %v4401_v50  ;;  %4017 = vmatprep.subr.bf16.mxu0 %v4402_v12  ;;  %v5039_v50 = vld [vmem:[%s5653_s0 + $0x20] sm:$0xff]  }
  0x69   :  { %4049 = vmatprep.subr.bf16.mxu1 %v4403_v52 }
  0x6a   :  { %3970 = vmatmul.mubr.bf16.gmra.mxu0 %v4650_v57 }
  0x6b   :  { %4002 = vmatmul.mubr.bf16.gmra.mxu1 %v4584_v26  ;;  %4018 = vmatpush3.bf16.msra.mxu0 %v4402_v12  ;;  %v4408_v26 = vld [vmem:[%s5652_s1 + $0x190] sm:$0xff]  }
  0x6c   :  { %4050 = vmatpush3.bf16.msra.mxu1 %v4403_v52  ;;  %4019 = vmatprep.subr.bf16.mxu0 %v4404_v13  ;;  %v4440_v12 = vld [vmem:[%s5652_s1 + $0x290] sm:$0xff]  }
  0x6d   :  { %4051 = vmatprep.subr.bf16.mxu1 %v4405_v53  ;;  %3973 = vmatprep.mubr.bf16.mxu0 %v4660_v60  ;;  %v4441_v52 = vld [vmem:[%s5652_s1 + $0x2d0] sm:$0xff]  }
  0x6e   :  { %4005 = vmatprep.mubr.bf16.mxu1 %v4598_v33  ;;  %v4410_v33 = vld [vmem:[%s5652_s1 + $0x188] sm:$0xff]  }
  0x6f   :  { %4020 = vmatpush3.bf16.msra.mxu0 %v4404_v13  ;;  %v5052_v13 = vld [vmem:[%s5653_s0 + $0x28] sm:$0xff]  }
  0x70   :  { %4052 = vmatpush3.bf16.msra.mxu1 %v4405_v53  ;;  %4021 = vmatprep.subr.bf16.mxu0 %v4406_v14  ;;  %v4442_v53 = vld [vmem:[%s5652_s1 + $0x288] sm:$0xff]  }
  0x71   :  { %4053 = vmatprep.subr.bf16.mxu1 %v4407_v55 }
  0x72   :  { %3974 = vmatmul.mubr.bf16.gmra.mxu0 %v4679_v6 }
  0x73   :  { %4006 = vmatmul.mubr.bf16.gmra.mxu1 %v4609_v38  ;;  %4022 = vmatpush3.bf16.msra.mxu0 %v4406_v14  ;;  %v4412_v38 = vld [vmem:[%s5652_s1 + $0x180] sm:$0xff]   ;;  %v4443_v14 = vld [vmem:[%s5652_s1 + $0x2c8] sm:$0xff]  }
  0x74   :  { %4054 = vmatpush3.bf16.msra.mxu1 %v4407_v55  ;;  %4023 = vmatprep.subr.bf16.mxu0 %v4408_v26  ;;  %v5065_v55 = vld [vmem:[%s5653_s0 + $0x30] sm:$0xff]  }
  0x75   :  { %4055 = vmatprep.subr.bf16.mxu1 %v4409_v58  ;;  %3977 = vmatprep.mubr.bf16.mxu0 %v4695_v11 }
  0x76   :  { %4009 = vmatprep.mubr.bf16.mxu1 %v4631_v47  ;;  %v4414_v47 = vld [vmem:[%s5652_s1 + $0x278] sm:$0xff]  }
  0x77   :  { %4024 = vmatpush3.bf16.msra.mxu0 %v4408_v26  ;;  %v4444_v26 = vld [vmem:[%s5652_s1 + $0x280] sm:$0xff]  }
  0x78   :  { %4056 = vmatpush3.bf16.msra.mxu1 %v4409_v58  ;;  %4025 = vmatprep.subr.bf16.mxu0 %v4410_v33  ;;  %v4445_v58 = vld [vmem:[%s5652_s1 + $0x2c0] sm:$0xff]  }
  0x79   :  { %4057 = vmatprep.subr.bf16.mxu1 %v4411_v59 }
  0x7a   :  { %3978 = vmatmul.mubr.bf16.gmra.mxu0 %v4714_v22 }
  0x7b   :  { %4010 = vmatmul.mubr.bf16.gmra.mxu1 %v4647_v56  ;;  %4026 = vmatpush3.bf16.msra.mxu0 %v4410_v33  ;;  %v4416_v56 = vld [vmem:[%s5652_s1 + $0x270] sm:$0xff]   ;;  %v5078_v33 = vld [vmem:[%s5653_s0 + $0x38] ss:$0 sps:$4 sm:$0xff]  }
  0x7c   :  { %4058 = vmatpush3.bf16.msra.mxu1 %v4411_v59  ;;  %4027 = vmatprep.subr.bf16.mxu0 %v4412_v38  ;;  %v4446_v59 = vld [vmem:[%s5652_s1 + $0x378] sm:$0xff]  }
  0x7d   :  { %4059 = vmatprep.subr.bf16.mxu1 %v4413_v61  ;;  %4029 = vmatprep.mubr.bf16.mxu0 %v4668_v1  ;;  %v4418_v1 = vld [vmem:[%s5652_s1 + $0x268] sm:$0xff]  }
  0x7e   :  { %4061 = vmatprep.mubr.bf16.mxu1 %v4733_v34 }
  0x7f   :  { %4028 = vmatpush3.bf16.msra.mxu0 %v4412_v38  ;;  %v5087_v38 = vld [vmem:[%s5653_s0 + $0x4] sm:$0xff]  }
  0x80   :  { %4060 = vmatpush3.bf16.msra.mxu1 %v4413_v61  ;;  %4077 = vmatprep.subr.bf16.mxu0 %v4414_v47  ;;  %v4447_v61 = vld [vmem:[%s5652_s1 + $0x338] sm:$0xff]  }
  0x81   :  { %4109 = vmatprep.subr.bf16.mxu1 %v4415_v63 }
  0x82   :  { %4030 = vmatmul.mubr.bf16.vlgmr.msra.gmra.mxu0 %v4684_v7  ;;  %v4420_v7 = vld [vmem:[%s5652_s1 + $0x260] sm:$0xff]  }
  0x83   :  { %4062 = vmatmul.mubr.bf16.vlgmr.msra.gmra.mxu1 %v4760_v51  ;;  %4078 = vmatpush3.bf16.msra.mxu0 %v4414_v47  ;;  %v4448_v47 = vld [vmem:[%s5652_s1 + $0x370] sm:$0xff]  }
  0x84   :  { %4110 = vmatpush3.bf16.msra.mxu1 %v4415_v63  ;;  %4079 = vmatprep.subr.bf16.mxu0 %v4416_v56  ;;  %v4449_v63 = vld [vmem:[%s5652_s1 + $0x330] sm:$0xff]  }
  0x85   :  { %4111 = vmatprep.subr.bf16.mxu1 %v4417_v0  ;;  %4033 = vmatprep.mubr.bf16.mxu0 %v4707_v20  ;;  %v4422_v20 = vld [vmem:[%s5652_s1 + $0x258] sm:$0xff]  }
  0x86   :  { %4065 = vmatprep.mubr.bf16.mxu1 %v4769_v54 }
  0x87   :  { %4080 = vmatpush3.bf16.msra.mxu0 %v4416_v56  ;;  %v5103_v56 = vld [vmem:[%s5653_s0 + $0xc] sm:$0xff]  }
  0x88   :  { %4112 = vmatpush3.bf16.msra.mxu1 %v4417_v0  ;;  %4081 = vmatprep.subr.bf16.mxu0 %v4418_v1  ;;  %v4450_v0 = vld [vmem:[%s5652_s1 + $0x368] sm:$0xff]  }
  0x89   :  { %4113 = vmatprep.subr.bf16.mxu1 %v4419_v2 }
  0x8a   :  { %4034 = vmatmul.mubr.bf16.gmra.mxu0 %v4722_v27 }
  0x8b   :  { %4066 = vmatmul.mubr.bf16.gmra.mxu1 %v4794_v5  ;;  %4082 = vmatpush3.bf16.msra.mxu0 %v4418_v1  ;;  %v5113_v1 = vld [vmem:[%s5653_s0 + $0x14] sm:$0xff]  }
  0x8c   :  { %4114 = vmatpush3.bf16.msra.mxu1 %v4419_v2  ;;  %4083 = vmatprep.subr.bf16.mxu0 %v4420_v7  ;;  %v4451_v2 = vld [vmem:[%s5652_s1 + $0x328] sm:$0xff]  }
  0x8d   :  { %4115 = vmatprep.subr.bf16.mxu1 %v4421_v3  ;;  %4037 = vmatprep.mubr.bf16.mxu0 %v4739_v36 }
  0x8e   :  { %4069 = vmatprep.mubr.bf16.mxu1 %v4804_v15 }
  0x8f   :  { %4084 = vmatpush3.bf16.msra.mxu0 %v4420_v7  ;;  %v4452_v7 = vld [vmem:[%s5652_s1 + $0x360] sm:$0xff]  }
  0x90   :  { %4116 = vmatpush3.bf16.msra.mxu1 %v4421_v3  ;;  %4085 = vmatprep.subr.bf16.mxu0 %v4422_v20  ;;  %v4453_v3 = vld [vmem:[%s5652_s1 + $0x320] sm:$0xff]  }
  0x91   :  { %4117 = vmatprep.subr.bf16.mxu1 %v4423_v8 }
  0x92   :  { %4038 = vmatmul.mubr.bf16.gmra.mxu0 %v4752_v43 }
  0x93   :  { %4070 = vmatmul.mubr.bf16.gmra.mxu1 %v4817_v29  ;;  %4086 = vmatpush3.bf16.msra.mxu0 %v4422_v20  ;;  %v4454_v20 = vld [vmem:[%s5652_s1 + $0x358] sm:$0xff]  }
  0x94   :  { %4118 = vmatpush3.bf16.msra.mxu1 %v4423_v8  ;;  %4087 = vmatprep.subr.bf16.mxu0 %v4424_v9  ;;  %v4455_v8 = vld [vmem:[%s5652_s1 + $0x318] sm:$0xff]  }
  0x95   :  { %4119 = vmatprep.subr.bf16.mxu1 %v4425_v10  ;;  %4041 = vmatprep.mubr.bf16.mxu0 %v4778_v62 }
  0x96   :  { %4073 = vmatprep.mubr.bf16.mxu1 %v4828_v32 }
  0x97   :  { %4088 = vmatpush3.bf16.msra.mxu0 %v4424_v9  ;;  %v4457_v9 = vld [vmem:[%s5652_s1 + $0x310] sm:$0xff]  }
  0x98   :  { %4120 = vmatpush3.bf16.msra.mxu1 %v4425_v10  ;;  %4089 = vmatprep.subr.bf16.mxu0 %v4426_v16  ;;  %v4459_v10 = vld [vmem:[%s5652_s1 + $0x308] sm:$0xff]  }
  0x99   :  { %4121 = vmatprep.subr.bf16.mxu1 %v4427_v17 }
  0x9a   :  { %4042 = vmatmul.mubr.bf16.gmra.mxu0 %v4791_v4 }
  0x9b   :  { %4074 = vmatmul.mubr.bf16.gmra.mxu1 %v4839_v41  ;;  %4090 = vmatpush3.bf16.msra.mxu0 %v4426_v16  ;;  %v4461_v16 = vld [vmem:[%s5652_s1 + $0x300] sm:$0xff]  }
  0x9c   :  { %4122 = vmatpush3.bf16.msra.mxu1 %v4427_v17  ;;  %4091 = vmatprep.subr.bf16.mxu0 %v4428_v18  ;;  %v4463_v17 = vld [vmem:[%s5652_s1 + $0x3f8] sm:$0xff]  }
  0x9d   :  { %4123 = vmatprep.subr.bf16.mxu1 %v4429_v19  ;;  %4093 = vmatprep.mubr.bf16.mxu0 %v4590_v28 }
  0x9e   :  { %4125 = vmatprep.mubr.bf16.mxu1 %v4987_v24 }
  0x9f   :  { %4092 = vmatpush3.bf16.msra.mxu0 %v4428_v18  ;;  %v4465_v18 = vld [vmem:[%s5652_s1 + $0x3f0] sm:$0xff]  }
  0xa0   :  { %4124 = vmatpush3.bf16.msra.mxu1 %v4429_v19  ;;  %4141 = vmatprep.subr.bf16.mxu0 %v4430_v21 }
  0xa1   :  { %4173 = vmatprep.subr.bf16.mxu1 %v4431_v23 }
  0xa2   :  { %4094 = vmatmul.mubr.bf16.vlgmr.msra.gmra.mxu0 %v4612_v39 }
  0xa3   :  { %4126 = vmatmul.mubr.bf16.vlgmr.msra.gmra.mxu1 %v5000_v31  ;;  %4142 = vmatpush3.bf16.msra.mxu0 %v4430_v21 }
  0xa4   :  { %4174 = vmatpush3.bf16.msra.mxu1 %v4431_v23  ;;  %4143 = vmatprep.subr.bf16.mxu0 %v4432_v25 }
  0xa5   :  { %4175 = vmatprep.subr.bf16.mxu1 %v4433_v30  ;;  %4097 = vmatprep.mubr.bf16.mxu0 %v4625_v45 }
  0xa6   :  { %4129 = vmatprep.mubr.bf16.mxu1 %v5013_v40 }
  0xa7   :  { %4144 = vmatpush3.bf16.msra.mxu0 %v4432_v25 }
  0xa8   :  { %4176 = vmatpush3.bf16.msra.mxu1 %v4433_v30  ;;  %4145 = vmatprep.subr.bf16.mxu0 %v4434_v35 }
  0xa9   :  { %4177 = vmatprep.subr.bf16.mxu1 %v4435_v37 }
  0xaa   :  { %4098 = vmatmul.mubr.bf16.gmra.mxu0 %v4650_v57 }
  0xab   :  { %4130 = vmatmul.mubr.bf16.gmra.mxu1 %v5026_v46  ;;  %4146 = vmatpush3.bf16.msra.mxu0 %v4434_v35 }
  0xac   :  { %4178 = vmatpush3.bf16.msra.mxu1 %v4435_v37  ;;  %4147 = vmatprep.subr.bf16.mxu0 %v4436_v42 }
  0xad   :  { %4179 = vmatprep.subr.bf16.mxu1 %v4437_v44  ;;  %4101 = vmatprep.mubr.bf16.mxu0 %v4660_v60 }
  0xae   :  { %4133 = vmatprep.mubr.bf16.mxu1 %v5039_v50 }
  0xaf   :  { %4148 = vmatpush3.bf16.msra.mxu0 %v4436_v42 }
  0xb0   :  { %4180 = vmatpush3.bf16.msra.mxu1 %v4437_v44  ;;  %4149 = vmatprep.subr.bf16.mxu0 %v4438_v48 }
  0xb1   :  { %4181 = vmatprep.subr.bf16.mxu1 %v4439_v49 }
  0xb2   :  { %4102 = vmatmul.mubr.bf16.gmra.mxu0 %v4679_v6 }
  0xb3   :  { %4134 = vmatmul.mubr.bf16.gmra.mxu1 %v5052_v13  ;;  %4150 = vmatpush3.bf16.msra.mxu0 %v4438_v48  ;;  %v4469_v48 = vld [vmem:[%s5652_s1 + $0x3e0] sm:$0xff]  }
  0xb4   :  { %4182 = vmatpush3.bf16.msra.mxu1 %v4439_v49  ;;  %4151 = vmatprep.subr.bf16.mxu0 %v4440_v12 }
  0xb5   :  { %4183 = vmatprep.subr.bf16.mxu1 %v4441_v52  ;;  %4105 = vmatprep.mubr.bf16.mxu0 %v4695_v11 }
  0xb6   :  { %4137 = vmatprep.mubr.bf16.mxu1 %v5065_v55 }
  0xb7   :  { %4152 = vmatpush3.bf16.msra.mxu0 %v4440_v12 }
  0xb8   :  { %4184 = vmatpush3.bf16.msra.mxu1 %v4441_v52  ;;  %4153 = vmatprep.subr.bf16.mxu0 %v4442_v53 }
  0xb9   :  { %4185 = vmatprep.subr.bf16.mxu1 %v4443_v14 }
  0xba   :  { %4106 = vmatmul.mubr.bf16.gmra.mxu0 %v4714_v22 }
  0xbb   :  { %4138 = vmatmul.mubr.bf16.gmra.mxu1 %v5078_v33  ;;  %4154 = vmatpush3.bf16.msra.mxu0 %v4442_v53 }
  0xbc   :  { %4186 = vmatpush3.bf16.msra.mxu1 %v4443_v14  ;;  %4155 = vmatprep.subr.bf16.mxu0 %v4444_v26  ;;  %v4470_v14 = vld [vmem:[%s5652_s1 + $0x398] sm:$0xff]  }
  0xbd   :  { %4187 = vmatprep.subr.bf16.mxu1 %v4445_v58  ;;  %4157 = vmatprep.mubr.bf16.mxu0 %v5087_v38 }
  0xbe   :  { %4189 = vmatprep.mubr.bf16.mxu1 %v4733_v34 }
  0xbf   :  { %4156 = vmatpush3.bf16.msra.mxu0 %v4444_v26 }
  0xc0   :  { %4188 = vmatpush3.bf16.msra.mxu1 %v4445_v58  ;;  %4205 = vmatprep.subr.bf16.mxu0 %v4446_v59 }
  0xc1   :  { %4237 = vmatprep.subr.bf16.mxu1 %v4447_v61 }
  0xc2   :  { %4158 = vmatmul.mubr.bf16.vlgmr.msra.gmra.mxu0 %v5103_v56 }
  0xc3   :  { %4190 = vmatmul.mubr.bf16.vlgmr.msra.gmra.mxu1 %v4760_v51  ;;  %4206 = vmatpush3.bf16.msra.mxu0 %v4446_v59 }
  0xc4   :  { %4238 = vmatpush3.bf16.msra.mxu1 %v4447_v61  ;;  %4207 = vmatprep.subr.bf16.mxu0 %v4448_v47 }
  0xc5   :  { %4239 = vmatprep.subr.bf16.mxu1 %v4449_v63  ;;  %4161 = vmatprep.mubr.bf16.mxu0 %v5113_v1 }
  0xc6   :  { %4193 = vmatprep.mubr.bf16.mxu1 %v4769_v54 }
  0xc7   :  { %4208 = vmatpush3.bf16.msra.mxu0 %v4448_v47 }
  0xc8   :  { %4240 = vmatpush3.bf16.msra.mxu1 %v4449_v63  ;;  %4209 = vmatprep.subr.bf16.mxu0 %v4450_v0 }
  0xc9   :  { %4241 = vmatprep.subr.bf16.mxu1 %v4451_v2 }
  0xca   :  { %4162 = vmatmul.mubr.bf16.gmra.mxu0 %v4722_v27  ;;  %v4456_v27 = vld [vmem:[%s5652_s1 + $0x350] sm:$0xff]  }
  0xcb   :  { %4194 = vmatmul.mubr.bf16.gmra.mxu1 %v4794_v5  ;;  %4210 = vmatpush3.bf16.msra.mxu0 %v4450_v0  ;;  %v4473_v0 = vld [vmem:[%s5652_s1 + $0x3d0] sm:$0xff]  }
  0xcc   :  { %4242 = vmatpush3.bf16.msra.mxu1 %v4451_v2  ;;  %4211 = vmatprep.subr.bf16.mxu0 %v4452_v7 }
  0xcd   :  { %4243 = vmatprep.subr.bf16.mxu1 %v4453_v3  ;;  %4165 = vmatprep.mubr.bf16.mxu0 %v4739_v36  ;;  %v4458_v36 = vld [vmem:[%s5652_s1 + $0x348] sm:$0xff]  }
  0xce   :  { %4197 = vmatprep.mubr.bf16.mxu1 %v4804_v15 }
  0xcf   :  { %4212 = vmatpush3.bf16.msra.mxu0 %v4452_v7 }
  0xd0   :  { %4244 = vmatpush3.bf16.msra.mxu1 %v4453_v3  ;;  %4213 = vmatprep.subr.bf16.mxu0 %v4454_v20 }
  0xd1   :  { %4245 = vmatprep.subr.bf16.mxu1 %v4455_v8 }
  0xd2   :  { %4166 = vmatmul.mubr.bf16.gmra.mxu0 %v4752_v43  ;;  %v4460_v43 = vld [vmem:[%s5652_s1 + $0x340] sm:$0xff]  }
  0xd3   :  { %4198 = vmatmul.mubr.bf16.gmra.mxu1 %v4817_v29  ;;  %4214 = vmatpush3.bf16.msra.mxu0 %v4454_v20 }
  0xd4   :  { %4246 = vmatpush3.bf16.msra.mxu1 %v4455_v8  ;;  %4215 = vmatprep.subr.bf16.mxu0 %v4456_v27  ;;  %v4474_v8 = vld [vmem:[%s5652_s1 + $0x388] sm:$0xff]  }
  0xd5   :  { %4247 = vmatprep.subr.bf16.mxu1 %v4457_v9  ;;  %4169 = vmatprep.mubr.bf16.mxu0 %v4778_v62  ;;  %v4462_v62 = vld [vmem:[%s5652_s1 + $0x3b8] sm:$0xff]  }
  0xd6   :  { %4201 = vmatprep.mubr.bf16.mxu1 %v4828_v32 }
  0xd7   :  { %4216 = vmatpush3.bf16.msra.mxu0 %v4456_v27 }
  0xd8   :  { %4248 = vmatpush3.bf16.msra.mxu1 %v4457_v9  ;;  %4217 = vmatprep.subr.bf16.mxu0 %v4458_v36 }
  0xd9   :  { %4249 = vmatprep.subr.bf16.mxu1 %v4459_v10 }
  0xda   :  { %4170 = vmatmul.mubr.bf16.gmra.mxu0 %v4791_v4  ;;  %v4464_v4 = vld [vmem:[%s5652_s1 + $0x3b0] sm:$0xff]  }
  0xdb   :  { %4202 = vmatmul.mubr.bf16.gmra.mxu1 %v4839_v41  ;;  %4218 = vmatpush3.bf16.msra.mxu0 %v4458_v36 }
  0xdc   :  { %4250 = vmatpush3.bf16.msra.mxu1 %v4459_v10  ;;  %4219 = vmatprep.subr.bf16.mxu0 %v4460_v43 }
  0xdd   :  { %4251 = vmatprep.subr.bf16.mxu1 %v4461_v16  ;;  %4221 = vmatprep.mubr.bf16.mxu0 %v4590_v28 }
  0xde   :  { %4253 = vmatprep.mubr.bf16.mxu1 %v4987_v24  ;;  %v4466_v24 = vld [vmem:[%s5652_s1 + $0x3a8] sm:$0xff]  }
  0xdf   :  { %4220 = vmatpush3.bf16.msra.mxu0 %v4460_v43 }
  0xe0   :  { %4252 = vmatpush3.bf16.msra.mxu1 %v4461_v16  ;;  %4269 = vmatprep.subr.bf16.mxu0 %v4462_v62 }
  0xe1   :  { %4301 = vmatprep.subr.bf16.mxu1 %v4463_v17 }
  0xe2   :  { %v3839_v19 = vpop.f32.mrf.mxu0  ;;  %4222 = vmatmul.mubr.bf16.vlgmr.msra.gmra.mxu0 %v4612_v39  ;;  %v4467_v39 = vld [vmem:[%s5652_s1 + $0x3e8] sm:$0xff]  }
  0xe3   :  { %v3871_v28 = vpop.f32.mrf.mxu1  ;;  %4254 = vmatmul.mubr.bf16.vlgmr.msra.gmra.mxu1 %v5000_v31  ;;  %4270 = vmatpush3.bf16.msra.mxu0 %v4462_v62  ;;  %v4477_v62 = vld [vmem:[%s5652_s1 + $0x3c0] sm:$0xff]  }
  0xe4   :  { %v5176_v21 = vadd.f32 %v3871_v28, %v3839_v19  ;;  %4302 = vmatpush3.bf16.msra.mxu1 %v4463_v17  ;;  %v255_v23 = vpop.f32.mrf.mxu0  ;;  %4271 = vmatprep.subr.bf16.mxu0 %v4464_v4 }
  0xe5   :  { %v407_v25 = vpop.f32.mrf.mxu1  ;;  %4303 = vmatprep.subr.bf16.mxu1 %v4465_v18  ;;  %4225 = vmatprep.mubr.bf16.mxu0 %v4625_v45  ;;  %v4468_v45 = vld [vmem:[%s5652_s1 + $0x3a0] sm:$0xff]  }
  0xe6   :  { %v5185_v30 = vadd.f32 %v407_v25, %v255_v23  ;;  %v3840_v31 = vpop.f32.mrf.mxu0  ;;  %4257 = vmatprep.mubr.bf16.mxu1 %v5013_v40 }
  0xe7   :  { %v3872_v35 = vpop.f32.mrf.mxu1  ;;  %4272 = vmatpush3.bf16.msra.mxu0 %v4464_v4 }
  0xe8   :  { %v5188_v37 = vadd.f32 %v3872_v35, %v3840_v31  ;;  %4304 = vmatpush3.bf16.msra.mxu1 %v4465_v18  ;;  %v258_v42 = vpop.f32.mrf.mxu0  ;;  %4273 = vmatprep.subr.bf16.mxu0 %v4466_v24 }
  0xe9   :  { %v410_v44 = vpop.f32.mrf.mxu1  ;;  %4305 = vmatprep.subr.bf16.mxu1 %v4467_v39 }
  0xea   :  { %v5196_v49 = vadd.f32 %v410_v44, %v258_v42  ;;  %v3843_v40 = vpop.f32.mrf.mxu0  ;;  %4226 = vmatmul.mubr.bf16.gmra.mxu0 %v4650_v57  ;;  %v4471_v57 = vld [vmem:[%s5652_s1 + $0x3d8] sm:$0xff]  }
  0xeb   :  { %v3875_v12 = vpop.f32.mrf.mxu1  ;;  %4258 = vmatmul.mubr.bf16.gmra.mxu1 %v5026_v46  ;;  %4274 = vmatpush3.bf16.msra.mxu0 %v4466_v24 }
  0xec   :  { %v5200_v52 = vadd.f32 %v3875_v12, %v3843_v40  ;;  %4306 = vmatpush3.bf16.msra.mxu1 %v4467_v39  ;;  %v271_v53 = vpop.f32.mrf.mxu0  ;;  %4275 = vmatprep.subr.bf16.mxu0 %v4468_v45 }
  0xed   :  { %v423_v26 = vpop.f32.mrf.mxu1  ;;  %4307 = vmatprep.subr.bf16.mxu1 %v4469_v48  ;;  %4229 = vmatprep.mubr.bf16.mxu0 %v4660_v60  ;;  %v4472_v60 = vld [vmem:[%s5652_s1 + $0x390] sm:$0xff]  }
  0xee   :  { %v5209_v58 = vadd.f32 %v423_v26, %v271_v53  ;;  %v3844_v46 = vpop.f32.mrf.mxu0  ;;  %4261 = vmatprep.mubr.bf16.mxu1 %v5039_v50 }
  0xef   :  { %v3876_v59 = vpop.f32.mrf.mxu1  ;;  %4276 = vmatpush3.bf16.msra.mxu0 %v4468_v45 }
  0xf0   :  { %v5212_v61 = vadd.f32 %v3876_v59, %v3844_v46  ;;  %4308 = vmatpush3.bf16.msra.mxu1 %v4469_v48  ;;  %v274_v47 = vpop.f32.mrf.mxu0  ;;  %4277 = vmatprep.subr.bf16.mxu0 %v4470_v14 }
  0xf1   :  { %v426_v63 = vpop.f32.mrf.mxu1  ;;  %4309 = vmatprep.subr.bf16.mxu1 %v4471_v57 }
  0xf2   :  { %v5220_v2 = vadd.f32 %v426_v63, %v274_v47  ;;  %v3847_v50 = vpop.f32.mrf.mxu0  ;;  %4230 = vmatmul.mubr.bf16.gmra.mxu0 %v4679_v6  ;;  %v4475_v6 = vld [vmem:[%s5652_s1 + $0x3c8] sm:$0xff]  }
  0xf3   :  { %v3879_v7 = vpop.f32.mrf.mxu1  ;;  %4262 = vmatmul.mubr.bf16.gmra.mxu1 %v5052_v13  ;;  %4278 = vmatpush3.bf16.msra.mxu0 %v4470_v14 }
  0xf4   :  { %v5224_v3 = vadd.f32 %v3879_v7, %v3847_v50  ;;  %4310 = vmatpush3.bf16.msra.mxu1 %v4471_v57  ;;  %v287_v20 = vpop.f32.mrf.mxu0  ;;  %4279 = vmatprep.subr.bf16.mxu0 %v4472_v60 }
  0xf5   :  { %v439_v27 = vpop.f32.mrf.mxu1  ;;  %4311 = vmatprep.subr.bf16.mxu1 %v4473_v0  ;;  %4233 = vmatprep.mubr.bf16.mxu0 %v4695_v11  ;;  %v4476_v11 = vld [vmem:[%s5652_s1 + $0x380] sm:$0xff]  }
  0xf6   :  { %v5233_v9 = vadd.f32 %v439_v27, %v287_v20  ;;  %v3848_v13 = vpop.f32.mrf.mxu0  ;;  %4265 = vmatprep.mubr.bf16.mxu1 %v5065_v55 }
  0xf7   :  { %v3880_v36 = vpop.f32.mrf.mxu1  ;;  %4280 = vmatpush3.bf16.msra.mxu0 %v4472_v60 }
  0xf8   :  { %v5236_v10 = vadd.f32 %v3880_v36, %v3848_v13  ;;  %4312 = vmatpush3.bf16.msra.mxu1 %v4473_v0  ;;  %v290_v43 = vpop.f32.mrf.mxu0  ;;  %4281 = vmatprep.subr.bf16.mxu0 %v4474_v8 }
  0xf9   :  { %v442_v16 = vpop.f32.mrf.mxu1  ;;  %4313 = vmatprep.subr.bf16.mxu1 %v4475_v6 }
  0xfa   :  { %v5244_v17 = vadd.f32 %v442_v16, %v290_v43  ;;  %v3851_v55 = vpop.f32.mrf.mxu0  ;;  %4234 = vmatmul.mubr.bf16.gmra.mxu0 %v4714_v22 }
  0xfb   :  { %v3883_v4 = vpop.f32.mrf.mxu1  ;;  %4266 = vmatmul.mubr.bf16.gmra.mxu1 %v5078_v33  ;;  %4282 = vmatpush3.bf16.msra.mxu0 %v4474_v8 }
  0xfc   :  { %v5248_v18 = vadd.f32 %v3883_v4, %v3851_v55  ;;  %4314 = vmatpush3.bf16.msra.mxu1 %v4475_v6  ;;  %v303_v19 = vpop.f32.mrf.mxu0  ;;  %4283 = vmatprep.subr.bf16.mxu0 %v4476_v11 }
  0xfd   :  { %v455_v28 = vpop.f32.mrf.mxu1  ;;  %4315 = vmatprep.subr.bf16.mxu1 %v4477_v62  ;;  %4285 = vmatprep.mubr.bf16.mxu0 %v5087_v38 }
  0xfe   :  { %v5251_v23 = vadd.f32 %v455_v28, %v303_v19  ;;  %v3852_v24 = vpop.f32.mrf.mxu0  ;;  %4317 = vmatprep.mubr.bf16.mxu1 %v4733_v34 }
  0xff   :  { %v3884_v25 = vpop.f32.mrf.mxu1  ;;  %4284 = vmatpush3.bf16.msra.mxu0 %v4476_v11 }
 0x100   :  { %4316 = vmatpush3.bf16.msra.mxu1 %v4477_v62  ;;  %v306_v22 = vpop.f32.mrf.mxu0 }
 0x101   :  { %v458_v33 = vpop.f32.mrf.mxu1 }
 0x102   :  { %v5254_v39 = vadd.f32 %v458_v33, %v306_v22  ;;  %v3903_v31 = vpop.f32.mrf.mxu0  ;;  %4286 = vmatmul.mubr.bf16.vlgmr.msra.gmra.mxu0 %v5103_v56 }
 0x103   :  { %v693_v35 = vadd.f32 %v3903_v31, %v5176_v21  ;;  %v3935_v42 = vpop.f32.mrf.mxu1  ;;  %4318 = vmatmul.mubr.bf16.vlgmr.msra.gmra.mxu1 %v4760_v51  ;;  %4289 = vmatprep.mubr.bf16.mxu0 %v5113_v1 }
 0x104   :  { %v629_v38 = vpop.f32.mrf.mxu0  ;;  %4321 = vmatprep.mubr.bf16.mxu1 %v4769_v54  ;;  %v4489_v54 = vld [vmem:[%s5653_s0 + $0x1c] sm:$0xff]  }
 0x105   :  { %v5261_v34 = vadd.f32 %v3935_v42, %v693_v35  ;;  %v691_v45 = vadd.f32 %v629_v38, %v5185_v30  ;;  %v876_v44 = vpop.f32.mrf.mxu1 }
 0x106   :  { %v3904_v48 = vpop.f32.mrf.mxu0 }
 0x107   :  { %v5264_v40 = vadd.f32 %v876_v44, %v691_v45  ;;  %v694_v56 = vadd.f32 %v3904_v48, %v5188_v37  ;;  %v3936_v12 = vpop.f32.mrf.mxu1  ;;  %v4490_v37 = vld [vmem:[%s5653_s0 + $0x24] sm:$0xff]  }
 0x108   :  { %v632_v21 = vpop.f32.mrf.mxu0 }
 0x109   :  { %v5267_v53 = vadd.f32 %v3936_v12, %v694_v56  ;;  %v692_v51 = vadd.f32 %v632_v21, %v5196_v49  ;;  %v879_v1 = vpop.f32.mrf.mxu1 }
 0x10a   :  { %v3907_v14 = vpop.f32.mrf.mxu0  ;;  %4290 = vmatmul.mubr.bf16.gmra.mxu0 %v4489_v54 }
 0x10b   :  { %v5273_v30 = vadd.f32 %v879_v1, %v692_v51  ;;  %v697_v26 = vadd.f32 %v3907_v14, %v5200_v52  ;;  %v3939_v57 = vpop.f32.mrf.mxu1  ;;  %4322 = vmatmul.mubr.bf16.gmra.mxu1 %v4794_v5  ;;  %4293 = vmatprep.mubr.bf16.mxu0 %v4490_v37 }
 0x10c   :  { %v645_v49 = vpop.f32.mrf.mxu0  ;;  %4325 = vmatprep.mubr.bf16.mxu1 %v4804_v15  ;;  %v4491_v15 = vld [vmem:[%s5653_s0 + $0x2c] sm:$0xff]  }
 0x10d   :  { %v5281_v46 = vadd.f32 %v3939_v57, %v697_v26  ;;  %v695_v59 = vadd.f32 %v645_v49, %v5209_v58  ;;  %v892_v47 = vpop.f32.mrf.mxu1 }
 0x10e   :  { %v3908_v60 = vpop.f32.mrf.mxu0 }
 0x10f   :  { %v5284_v63 = vadd.f32 %v892_v47, %v695_v59  ;;  %v698_v52 = vadd.f32 %v3908_v60, %v5212_v61  ;;  %v3940_v0 = vpop.f32.mrf.mxu1  ;;  %v4492_v61 = vld [vmem:[%s5653_s0 + $0x34] sm:$0xff]  }
 0x110   :  { %v648_v5 = vpop.f32.mrf.mxu0 }
 0x111   :  { %v5287_v50 = vadd.f32 %v3940_v0, %v698_v52  ;;  %v696_v7 = vadd.f32 %v648_v5, %v5220_v2  ;;  %v895_v20 = vpop.f32.mrf.mxu1 }
 0x112   :  { %v3911_v8 = vpop.f32.mrf.mxu0  ;;  %4294 = vmatmul.mubr.bf16.gmra.mxu0 %v4491_v15 }
 0x113   :  { %v5293_v58 = vadd.f32 %v895_v20, %v696_v7  ;;  %v701_v27 = vadd.f32 %v3911_v8, %v5224_v3  ;;  %v3943_v6 = vpop.f32.mrf.mxu1  ;;  %4326 = vmatmul.mubr.bf16.gmra.mxu1 %v4817_v29  ;;  %4297 = vmatprep.mubr.bf16.mxu0 %v4492_v61 }
 0x114   :  { %v661_v2 = vpop.f32.mrf.mxu0  ;;  %4329 = vmatprep.mubr.bf16.mxu1 %v4828_v32  ;;  %v4493_v32 = vld [vmem:[%s5653_s0 + $0x3c] ss:$0 sps:$4 sm:$0xff]  }
 0x115   :  { %v5301_v13 = vadd.f32 %v3943_v6, %v701_v27  ;;  %v699_v36 = vadd.f32 %v661_v2, %v5233_v9  ;;  %v908_v43 = vpop.f32.mrf.mxu1 }
 0x116   :  { %v3912_v11 = vpop.f32.mrf.mxu0 }
 0x117   :  { %v5304_v16 = vadd.f32 %v908_v43, %v699_v36  ;;  %v702_v3 = vadd.f32 %v3912_v11, %v5236_v10  ;;  %v3944_v62 = vpop.f32.mrf.mxu1 }
 0x118   :  { %v664_v29 = vpop.f32.mrf.mxu0 }
 0x119   :  { %v5307_v55 = vadd.f32 %v3944_v62, %v702_v3  ;;  %v700_v4 = vadd.f32 %v664_v29, %v5244_v17  ;;  %v911_v19 = vpop.f32.mrf.mxu1 }
 0x11a   :  { %v3915_v28 = vpop.f32.mrf.mxu0  ;;  %4298 = vmatmul.mubr.bf16.gmra.mxu0 %v4493_v32 }
 0x11b   :  { %v5313_v9 = vadd.f32 %v911_v19, %v700_v4  ;;  %v705_v24 = vadd.f32 %v3915_v28, %v5248_v18  ;;  %v3947_v25 = vpop.f32.mrf.mxu1  ;;  %4330 = vmatmul.mubr.bf16.gmra.mxu1 %v4839_v41 }
 0x11c   :  { %v677_v10 = vpop.f32.mrf.mxu0 }
 0x11d   :  { %v5317_v22 = vadd.f32 %v3947_v25, %v705_v24  ;;  %v703_v33 = vadd.f32 %v677_v10, %v5251_v23  ;;  %v924_v17 = vpop.f32.mrf.mxu1 }
 0x11e   :  { %v3916_v31 = vpop.f32.mrf.mxu0 }
 0x11f   :  { %v5320_v35 = vadd.f32 %v924_v17, %v703_v33  ;;  %v3948_v42 = vpop.f32.mrf.mxu1 }
 0x120   :  { %v680_v38 = vpop.f32.mrf.mxu0 }
 0x121   :  { %v704_v45 = vadd.f32 %v680_v38, %v5254_v39  ;;  %v927_v44 = vpop.f32.mrf.mxu1 }
 0x122   :  { %v3967_v48 = vpop.f32.mrf.mxu0 }
 0x123   :  { %v5323_v56 = vadd.f32 %v927_v44, %v704_v45  ;;  %v3999_v18 = vpop.f32.mrf.mxu1 }
 0x124   :  { %v1222_v12 = vadd.f32 %v3999_v18, %v3967_v48  ;;  %v1069_v41 = vpop.f32.mrf.mxu0 }
 0x125   :  { %v1213_v21 = vpop.f32.mrf.mxu1 }
 0x126   :  { %v1214_v51 = vadd.f32 %v1213_v21, %v1069_v41  ;;  %v3968_v1 = vpop.f32.mrf.mxu0 }
 0x127   :  { %v4000_v14 = vpop.f32.mrf.mxu1 }
 0x128   :  { %v1225_v23 = vadd.f32 %v4000_v14, %v3968_v1  ;;  %v1072_v54 = vpop.f32.mrf.mxu0 }
 0x129   :  { %v1216_v26 = vpop.f32.mrf.mxu1 }
 0x12a   :  { %v1217_v57 = vadd.f32 %v1216_v26, %v1072_v54  ;;  %v3971_v37 = vpop.f32.mrf.mxu0 }
 0x12b   :  { %v4003_v49 = vpop.f32.mrf.mxu1 }
 0x12c   :  { %v1238_v59 = vadd.f32 %v4003_v49, %v3971_v37  ;;  %v1085_v47 = vpop.f32.mrf.mxu0 }
 0x12d   :  { %v1229_v39 = vpop.f32.mrf.mxu1 }
 0x12e   :  { %v1230_v60 = vadd.f32 %v1229_v39, %v1085_v47  ;;  %v3972_v52 = vpop.f32.mrf.mxu0 }
 0x12f   :  { %v4004_v0 = vpop.f32.mrf.mxu1 }
 0x130   :  { %v1241_v5 = vadd.f32 %v4004_v0, %v3972_v52  ;;  %v1088_v7 = vpop.f32.mrf.mxu0 }
 0x131   :  { %v1232_v20 = vpop.f32.mrf.mxu1 }
 0x132   :  { %v5325_v8 = vadd.f32 %v1232_v20, %v1088_v7  ;;  %v3975_v15 = vpop.f32.mrf.mxu0 }
 0x133   :  { %v4007_v27 = vpop.f32.mrf.mxu1 }
 0x134   :  { %v5327_v6 = vadd.f32 %v4007_v27, %v3975_v15  ;;  %v1101_v61 = vpop.f32.mrf.mxu0 }
 0x135   :  { %v1245_v2 = vpop.f32.mrf.mxu1 }
 0x136   :  { %v5329_v36 = vadd.f32 %v1245_v2, %v1101_v61  ;;  %v3976_v43 = vpop.f32.mrf.mxu0 }
 0x137   :  { %v4008_v11 = vpop.f32.mrf.mxu1 }
 0x138   :  { %v5331_v3 = vadd.f32 %v4008_v11, %v3976_v43  ;;  %v1104_v62 = vpop.f32.mrf.mxu0 }
 0x139   :  { %v1248_v29 = vpop.f32.mrf.mxu1 }
 0x13a   :  { %v5333_v4 = vadd.f32 %v1248_v29, %v1104_v62  ;;  %v3979_v19 = vpop.f32.mrf.mxu0 }
 0x13b   :  { %v4011_v28 = vpop.f32.mrf.mxu1 }
 0x13c   :  { %v5335_v32 = vadd.f32 %v4011_v28, %v3979_v19  ;;  %v1117_v24 = vpop.f32.mrf.mxu0 }
 0x13d   :  { %v1261_v25 = vpop.f32.mrf.mxu1 }
 0x13e   :  { %v5337_v10 = vadd.f32 %v1261_v25, %v1117_v24  ;;  %v3980_v33 = vpop.f32.mrf.mxu0 }
 0x13f   :  { %v4012_v17 = vpop.f32.mrf.mxu1 }
 0x140   :  { %v1120_v31 = vpop.f32.mrf.mxu0 }
 0x141   :  { %v1264_v42 = vpop.f32.mrf.mxu1 }
 0x142   :  { %v5339_v38 = vadd.f32 %v1264_v42, %v1120_v31  ;;  %v4031_v45 = vpop.f32.mrf.mxu0 }
 0x143   :  { %v1438_v44 = vadd.f32 %v4031_v45, %v1222_v12  ;;  %v4063_v48 = vpop.f32.mrf.mxu1 }
 0x144   :  { %v1374_v18 = vpop.f32.mrf.mxu0 }
 0x145   :  { %v5341_v41 = vadd.f32 %v4063_v48, %v1438_v44  ;;  %v1436_v21 = vadd.f32 %v1374_v18, %v1214_v51  ;;  %v1550_v1 = vpop.f32.mrf.mxu1 }
 0x146   :  { %v4032_v14 = vpop.f32.mrf.mxu0 }
 0x147   :  { %v1629_v54 = vmax.f32 %v5261_v34, %v5341_v41  ;;  %v5345_v26 = vadd.f32 %v1550_v1, %v1436_v21  ;;  %v1439_v37 = vadd.f32 %v4032_v14, %v1225_v23  ;;  %v4064_v49 = vpop.f32.mrf.mxu1 }
 0x148   :  { %v1377_v47 = vpop.f32.mrf.mxu0 }
 0x149   :  { %v1627_v39 = vmax.f32 %v5264_v40, %v5345_v26  ;;  %v5349_v52 = vadd.f32 %v4064_v49, %v1439_v37  ;;  %v1437_v12 = vadd.f32 %v1377_v47, %v1217_v57  ;;  %v1553_v0 = vpop.f32.mrf.mxu1 }
 0x14a   :  { %v4035_v7 = vpop.f32.mrf.mxu0 }
 0x14b   :  { %v1630_v51 = vmax.f32 %v5267_v53, %v5349_v52  ;;  %v5353_v20 = vadd.f32 %v1553_v0, %v1437_v12  ;;  %v1442_v15 = vadd.f32 %v4035_v7, %v1238_v59  ;;  %v4067_v27 = vpop.f32.mrf.mxu1  ;;  %v4494_v59 = vmov 0  }
 0x14c   :  { %v1390_v61 = vpop.f32.mrf.mxu0  ;;  %3145 = vst.msk [vmem:[%s5654_s3 + $0x3c] sm:$0xf] %vm3118_vm1, %v4494_v59 }
 0x14d   :  { %v5357_v2 = vadd.f32 %v4067_v27, %v1442_v15  ;;  %v1440_v43 = vadd.f32 %v1390_v61, %v1230_v60  ;;  %v1566_v11 = vpop.f32.mrf.mxu1 }
 0x14e   :  { %v4036_v62 = vpop.f32.mrf.mxu0 }
 0x14f   :  { %v5361_v29 = vadd.f32 %v1566_v11, %v1440_v43  ;;  %v1443_v19 = vadd.f32 %v4036_v62, %v1241_v5  ;;  %v4068_v28 = vpop.f32.mrf.mxu1 }
 0x150   :  { %v1393_v24 = vpop.f32.mrf.mxu0 }
 0x151   :  { %v5369_v25 = vadd.f32 %v4068_v28, %v1443_v19  ;;  %v1441_v33 = vadd.f32 %v1393_v24, %v5325_v8  ;;  %v1569_v17 = vpop.f32.mrf.mxu1 }
 0x152   :  { %v4039_v31 = vpop.f32.mrf.mxu0 }
 0x153   :  { %v5374_v42 = vadd.f32 %v1569_v17, %v1441_v33  ;;  %v1446_v45 = vadd.f32 %v4039_v31, %v5327_v6  ;;  %v4071_v44 = vpop.f32.mrf.mxu1 }
 0x154   :  { %v1406_v48 = vpop.f32.mrf.mxu0 }
 0x155   :  { %v5379_v21 = vadd.f32 %v4071_v44, %v1446_v45  ;;  %v1444_v1 = vadd.f32 %v1406_v48, %v5329_v36  ;;  %v1582_v14 = vpop.f32.mrf.mxu1 }
 0x156   :  { %v4040_v8 = vpop.f32.mrf.mxu0 }
 0x157   :  { %v5384_v49 = vadd.f32 %v1582_v14, %v1444_v1  ;;  %v1447_v47 = vadd.f32 %v4040_v8, %v5331_v3  ;;  %v4072_v12 = vpop.f32.mrf.mxu1 }
 0x158   :  { %v1409_v6 = vpop.f32.mrf.mxu0 }
 0x159   :  { %v5389_v7 = vadd.f32 %v4072_v12, %v1447_v47  ;;  %v1445_v15 = vadd.f32 %v1409_v6, %v5333_v4  ;;  %v1585_v27 = vpop.f32.mrf.mxu1 }
 0x15a   :  { %v4043_v36 = vpop.f32.mrf.mxu0 }
 0x15b   :  { %v5394_v43 = vadd.f32 %v1585_v27, %v1445_v15  ;;  %v1450_v11 = vadd.f32 %v4043_v36, %v5335_v32  ;;  %v4075_v62 = vpop.f32.mrf.mxu1 }
 0x15c   :  { %v1422_v3 = vpop.f32.mrf.mxu0 }
 0x15d   :  { %v5399_v28 = vadd.f32 %v4075_v62, %v1450_v11  ;;  %v1448_v24 = vadd.f32 %v1422_v3, %v5337_v10  ;;  %v1598_v59 = vpop.f32.mrf.mxu1 }
 0x15e   :  { %v4044_v4 = vpop.f32.mrf.mxu0 }
 0x15f   :  { %v5404_v17 = vadd.f32 %v1598_v59, %v1448_v24  ;;  %v4076_v31 = vpop.f32.mrf.mxu1 }
 0x160   :  { %v1425_v45 = vpop.f32.mrf.mxu0 }
 0x161   :  { %v1449_v44 = vadd.f32 %v1425_v45, %v5339_v38  ;;  %v1601_v48 = vpop.f32.mrf.mxu1 }
 0x162   :  { %v4095_v1 = vpop.f32.mrf.mxu0 }
 0x163   :  { %v5409_v14 = vadd.f32 %v1601_v48, %v1449_v44  ;;  %v4127_v8 = vpop.f32.mrf.mxu1 }
 0x164   :  { %v1911_v10 = vadd.f32 %v4127_v8, %v4095_v1  ;;  %v1758_v47 = vpop.f32.mrf.mxu0 }
 0x165   :  { %v1902_v6 = vpop.f32.mrf.mxu1 }
 0x166   :  { %v1903_v15 = vadd.f32 %v1902_v6, %v1758_v47  ;;  %v4096_v27 = vpop.f32.mrf.mxu0 }
 0x167   :  { %v4128_v36 = vpop.f32.mrf.mxu1 }
 0x168   :  { %v1914_v11 = vadd.f32 %v4128_v36, %v4096_v27  ;;  %v1761_v62 = vpop.f32.mrf.mxu0 }
 0x169   :  { %v1905_v3 = vpop.f32.mrf.mxu1 }
 0x16a   :  { %v1906_v24 = vadd.f32 %v1905_v3, %v1761_v62  ;;  %v4099_v59 = vpop.f32.mrf.mxu0 }
 0x16b   :  { %v4131_v38 = vpop.f32.mrf.mxu1 }
 0x16c   :  { %v1927_v4 = vadd.f32 %v4131_v38, %v4099_v59  ;;  %v1774_v31 = vpop.f32.mrf.mxu0 }
 0x16d   :  { %v1918_v45 = vpop.f32.mrf.mxu1 }
 0x16e   :  { %v1919_v44 = vadd.f32 %v1918_v45, %v1774_v31  ;;  %v4100_v48 = vpop.f32.mrf.mxu0 }
 0x16f   :  { %v4132_v1 = vpop.f32.mrf.mxu1 }
 0x170   :  { %v1930_v8 = vadd.f32 %v4132_v1, %v4100_v48  ;;  %v1777_v32 = vpop.f32.mrf.mxu0 }
 0x171   :  { %v1921_v33 = vpop.f32.mrf.mxu1 }
 0x172   :  { %v1922_v12 = vadd.f32 %v1921_v33, %v1777_v32  ;;  %v4103_v19 = vpop.f32.mrf.mxu0 }
 0x173   :  { %v4135_v47 = vpop.f32.mrf.mxu1 }
 0x174   :  { %v1943_v6 = vadd.f32 %v4135_v47, %v4103_v19  ;;  %v1790_v61 = vpop.f32.mrf.mxu0 }
 0x175   :  { %v1934_v27 = vpop.f32.mrf.mxu1 }
 0x176   :  { %v5413_v36 = vadd.f32 %v1934_v27, %v1790_v61  ;;  %v4104_v62 = vpop.f32.mrf.mxu0 }
 0x177   :  { %v4136_v3 = vpop.f32.mrf.mxu1 }
 0x178   :  { %v5415_v0 = vadd.f32 %v4136_v3, %v4104_v62  ;;  %v1793_v59 = vpop.f32.mrf.mxu0 }
 0x179   :  { %v1937_v38 = vpop.f32.mrf.mxu1 }
 0x17a   :  { %v5417_v31 = vadd.f32 %v1937_v38, %v1793_v59  ;;  %v4107_v45 = vpop.f32.mrf.mxu0 }
 0x17b   :  { %v4139_v48 = vpop.f32.mrf.mxu1 }
 0x17c   :  { %v5419_v1 = vadd.f32 %v4139_v48, %v4107_v45  ;;  %v1806_v33 = vpop.f32.mrf.mxu0 }
 0x17d   :  { %v1950_v32 = vpop.f32.mrf.mxu1 }
 0x17e   :  { %v5421_v37 = vadd.f32 %v1950_v32, %v1806_v33  ;;  %v4108_v19 = vpop.f32.mrf.mxu0 }
 0x17f   :  { %v4140_v47 = vpop.f32.mrf.mxu1 }
 0x180   :  { %v1809_v61 = vpop.f32.mrf.mxu0 }
 0x181   :  { %v1953_v27 = vpop.f32.mrf.mxu1 }
 0x182   :  { %v5423_v18 = vadd.f32 %v1953_v27, %v1809_v61  ;;  %v4159_v62 = vpop.f32.mrf.mxu0  ;;  %v5657_v27 = vmax.f32 %v5281_v46, %v5357_v2 }
 0x183   :  { %v2127_v3 = vadd.f32 %v4159_v62, %v1911_v10  ;;  %v4191_v5 = vpop.f32.mrf.mxu1 }
 0x184   :  { %v2063_v60 = vpop.f32.mrf.mxu0 }
 0x185   :  { %v2303_v59 = vadd.f32 %v4191_v5, %v2127_v3  ;;  %v2125_v38 = vadd.f32 %v2063_v60, %v1903_v15  ;;  %v2239_v57 = vpop.f32.mrf.mxu1  ;;  %v5658_v3 = vmax.f32 %v5284_v63, %v5361_v29 }
 0x186   :  { %v4160_v23 = vpop.f32.mrf.mxu0 }
 0x187   :  { %v5428_v45 = vmax.f32 %v1629_v54, %v2303_v59  ;;  %v2301_v48 = vadd.f32 %v2239_v57, %v2125_v38  ;;  %v2128_v33 = vadd.f32 %v4160_v23, %v1914_v11  ;;  %v4192_v32 = vpop.f32.mrf.mxu1  ;;  %v5656_v57 = vmax.f32 %v5273_v30, %v5353_v20 }
 0x188   :  { %v2066_v19 = vpop.f32.mrf.mxu0 }
 0x189   :  { %v5433_v47 = vmax.f32 %v1627_v39, %v2301_v48  ;;  %v2304_v10 = vadd.f32 %v4192_v32, %v2128_v33  ;;  %v2126_v61 = vadd.f32 %v2066_v19, %v1906_v24  ;;  %v2242_v5 = vpop.f32.mrf.mxu1  ;;  %v5659_v48 = vmax.f32 %v5287_v50, %v5369_v25 }
 0x18a   :  { %v4163_v60 = vpop.f32.mrf.mxu0  ;;  %v5660_v19 = vmax.f32 %v5293_v58, %v5374_v42  ;;  %v5662_v58 = vmax.f32 %v5304_v16, %v5384_v49  ;;  %v5664_v16 = vmax.f32 %v5313_v9, %v5394_v43 }
 0x18b   :  { %v5438_v15 = vmax.f32 %v1630_v51, %v2304_v10  ;;  %v2302_v34 = vadd.f32 %v2242_v5, %v2126_v61  ;;  %v2131_v41 = vadd.f32 %v4163_v60, %v1927_v4  ;;  %v4195_v54 = vpop.f32.mrf.mxu1  ;;  %v5661_v5 = vmax.f32 %v5301_v13, %v5379_v21 }
 0x18c   :  { %v2079_v23 = vpop.f32.mrf.mxu0  ;;  %v5663_v13 = vmax.f32 %v5307_v55, %v5389_v7  ;;  %v5665_v55 = vmax.f32 %v5317_v22, %v5399_v28  ;;  %v5667_v22 = vmax.f32 %v5323_v56, %v5409_v14 }
 0x18d   :  { %v5443_v11 = vmax.f32 %v5656_v57, %v2302_v34  ;;  %v2307_v40 = vadd.f32 %v4195_v54, %v2131_v41  ;;  %v2129_v26 = vadd.f32 %v2079_v23, %v1919_v44  ;;  %v2255_v39 = vpop.f32.mrf.mxu1 }
 0x18e   :  { %v4164_v24 = vpop.f32.mrf.mxu0 }
 0x18f   :  { %v5448_v62 = vmax.f32 %v5657_v27, %v2307_v40  ;;  %v2305_v53 = vadd.f32 %v2255_v39, %v2129_v26  ;;  %v2132_v52 = vadd.f32 %v4164_v24, %v1930_v8  ;;  %v4196_v51 = vpop.f32.mrf.mxu1 }
 0x190   :  { %v2082_v4 = vpop.f32.mrf.mxu0 }
 0x191   :  { %v5453_v59 = vmax.f32 %v5658_v3, %v2305_v53  ;;  %v2308_v30 = vadd.f32 %v4196_v51, %v2132_v52  ;;  %v2130_v20 = vadd.f32 %v2082_v4, %v1922_v12  ;;  %v2258_v38 = vpop.f32.mrf.mxu1  ;;  %v5666_v51 = vmax.f32 %v5320_v35, %v5404_v17 }
 0x192   :  { %v4167_v44 = vpop.f32.mrf.mxu0 }
 0x193   :  { %v5458_v33 = vmax.f32 %v5659_v48, %v2308_v30  ;;  %v2306_v46 = vadd.f32 %v2258_v38, %v2130_v20  ;;  %v2135_v2 = vadd.f32 %v4167_v44, %v1943_v6  ;;  %v4199_v32 = vpop.f32.mrf.mxu1 }
 0x194   :  { %v2095_v8 = vpop.f32.mrf.mxu0 }
 0x195   :  { %v5463_v10 = vmax.f32 %v5660_v19, %v2306_v46  ;;  %v2311_v63 = vadd.f32 %v4199_v32, %v2135_v2  ;;  %v2133_v29 = vadd.f32 %v2095_v8, %v5413_v36  ;;  %v2271_v12 = vpop.f32.mrf.mxu1 }
 0x196   :  { %v4168_v61 = vpop.f32.mrf.mxu0 }
 0x197   :  { %v5469_v50 = vmax.f32 %v5661_v5, %v2311_v63  ;;  %v2309_v25 = vadd.f32 %v2271_v12, %v2133_v29  ;;  %v2136_v6 = vadd.f32 %v4168_v61, %v5415_v0  ;;  %v4200_v60 = vpop.f32.mrf.mxu1 }
 0x198   :  { %v2098_v34 = vpop.f32.mrf.mxu0 }
 0x199   :  { %v5475_v42 = vmax.f32 %v5662_v58, %v2309_v25  ;;  %v2312_v41 = vadd.f32 %v4200_v60, %v2136_v6  ;;  %v2134_v36 = vadd.f32 %v2098_v34, %v5417_v31  ;;  %v2274_v54 = vpop.f32.mrf.mxu1 }
 0x19a   :  { %v4171_v23 = vpop.f32.mrf.mxu0 }
 0x19b   :  { %v5481_v21 = vmax.f32 %v5663_v13, %v2312_v41  ;;  %v2310_v57 = vadd.f32 %v2274_v54, %v2134_v36  ;;  %v2139_v0 = vadd.f32 %v4171_v23, %v5419_v1  ;;  %v4203_v40 = vpop.f32.mrf.mxu1 }
 0x19c   :  { %v2111_v26 = vpop.f32.mrf.mxu0 }
 0x19d   :  { %v5487_v49 = vmax.f32 %v5664_v16, %v2310_v57  ;;  %v2315_v39 = vadd.f32 %v4203_v40, %v2139_v0  ;;  %v2137_v31 = vadd.f32 %v2111_v26, %v5421_v37  ;;  %v2287_v24 = vpop.f32.mrf.mxu1 }
 0x19e   :  { %v4172_v27 = vpop.f32.mrf.mxu0 }
 0x19f   :  { %v5493_v7 = vmax.f32 %v5665_v55, %v2315_v39  ;;  %v2313_v53 = vadd.f32 %v2287_v24, %v2137_v31  ;;  %v4204_v52 = vpop.f32.mrf.mxu1 }
 0x1a0   :  { %v2114_v1 = vpop.f32.mrf.mxu0  ;;  %v5537_v52 = vld [vmem:[%s5655_s2] ss:$0 sm:$0xff] }
 0x1a1   :  { %v5498_v4 = vmax.f32 %v5666_v51, %v2313_v53  ;;  %v2138_v9 = vadd.f32 %v2114_v1, %v5423_v18  ;;  %v2290_v43 = vpop.f32.mrf.mxu1 }
 0x1a2   :  { %v4223_v3 = vpop.f32.mrf.mxu0 }
 0x1a3   :  { %v2314_v37 = vadd.f32 %v2290_v43, %v2138_v9  ;;  %v4255_v30 = vpop.f32.mrf.mxu1 }
 0x1a4   :  { %v2447_v20 = vpop.f32.mrf.mxu0  ;;  %v2600_v57 = vadd.f32 %v4255_v30, %v4223_v3 }
 0x1a5   :  { %v5504_v28 = vmax.f32 %v5667_v22, %v2314_v37  ;;  %v2591_v38 = vpop.f32.mrf.mxu1 }
 0x1a6   :  { %v4224_v44 = vpop.f32.mrf.mxu0  ;;  %v2592_v26 = vadd.f32 %v2591_v38, %v2447_v20 }
 0x1a7   :  { %v4256_v48 = vpop.f32.mrf.mxu1 }
 0x1a8   :  { %v2450_v46 = vpop.f32.mrf.mxu0  ;;  %v2603_v24 = vadd.f32 %v4256_v48, %v4224_v44 }
 0x1a9   :  { %v2594_v2 = vpop.f32.mrf.mxu1 }
 0x1aa   :  { %v4227_v35 = vpop.f32.mrf.mxu0  ;;  %v2595_v51 = vadd.f32 %v2594_v2, %v2450_v46 }
 0x1ab   :  { %v4259_v17 = vpop.f32.mrf.mxu1 }
 0x1ac   :  { %v2463_v32 = vpop.f32.mrf.mxu0 }
 0x1ad   :  { %v2607_v8 = vpop.f32.mrf.mxu1 }
 0x1ae   :  { %v4228_v18 = vpop.f32.mrf.mxu0 }
 0x1af   :  { %v4260_v19 = vpop.f32.mrf.mxu1 }
 0x1b0   :  { %v2466_v63 = vpop.f32.mrf.mxu0 }
 0x1b1   :  { %v2610_v29 = vpop.f32.mrf.mxu1 }
 0x1b2   :  { %v5506_v12 = vpop.f32.mrf.mxu0 }
 0x1b3   :  { %v5508_v61 = vpop.f32.mrf.mxu1 }
 0x1b4   :  { %v5510_v56 = vpop.f32.mrf.mxu0 }
 0x1b5   :  { %v5512_v14 = vpop.f32.mrf.mxu1 }
 0x1b6   :  { %v5514_v5 = vpop.f32.mrf.mxu0 }
 0x1b7   :  { %v5516_v25 = vpop.f32.mrf.mxu1 }
 0x1b8   :  { %v5518_v6 = vpop.f32.mrf.mxu0 }
 0x1b9   :  { %v5520_v60 = vpop.f32.mrf.mxu1 }
 0x1ba   :  { %v5522_v34 = vpop.f32.mrf.mxu0 }
 0x1bb   :  { %v5524_v58 = vpop.f32.mrf.mxu1 }
 0x1bc   :  { %v5526_v41 = vpop.f32.mrf.mxu0 }
 0x1bd   :  { %v5528_v36 = vpop.f32.mrf.mxu1 }
 0x1be   :  { %v4236_v54 = vpop.f32.mrf.mxu0 }
 0x1bf   :  { %v4268_v23 = vpop.f32.mrf.mxu1  ;;  %v2616_v54 = vadd.f32 %v4259_v17, %v4227_v35  ;;  %v2611_v35 = vadd.f32 %v2610_v29, %v2466_v63 }
 0x1c0   :  { %v5530_v13 = vpop.f32.mrf.mxu0 }
 0x1c1   :  { %v5532_v0 = vpop.f32.mrf.mxu1 }
 0x1c2   :  { %v4287_v40 = vpop.f32.mrf.mxu0 }
 0x1c3   :  { %v2816_v16 = vadd.f32 %v4287_v40, %v2600_v57  ;;  %v4319_v39 = vpop.f32.mrf.mxu1 }
 0x1c4   :  { %v2752_v31 = vpop.f32.mrf.mxu0 }
 0x1c5   :  { %v2992_v27 = vadd.f32 %v4319_v39, %v2816_v16  ;;  %v2814_v55 = vadd.f32 %v2752_v31, %v2592_v26  ;;  %v2928_v53 = vpop.f32.mrf.mxu1  ;;  %v2608_v26 = vadd.f32 %v2607_v8, %v2463_v32  ;;  %v2619_v16 = vadd.f32 %v4260_v19, %v4228_v18 }
 0x1c6   :  { %v4288_v1 = vpop.f32.mrf.mxu0 }
 0x1c7   :  { %v3007_v9 = vmax.f32 %v5428_v45, %v2992_v27  ;;  %v2990_v43 = vadd.f32 %v2928_v53, %v2814_v55  ;;  %v2817_v3 = vadd.f32 %v4288_v1, %v2603_v24  ;;  %v4320_v37 = vpop.f32.mrf.mxu1 }
 0x1c8   :  { %v2755_v30 = vpop.f32.mrf.mxu0 }
 0x1c9   :  { %v3029_v20 = vadd.f32 %v5537_v52, %v3007_v9  ;;  %v3005_v22 = vmax.f32 %v5433_v47, %v2990_v43  ;;  %v2993_v38 = vadd.f32 %v4320_v37, %v2817_v3  ;;  %v2815_v44 = vadd.f32 %v2755_v30, %v2595_v51  ;;  %v2931_v48 = vpop.f32.mrf.mxu1 }
 0x1ca   :  { %v4291_v23 = vpop.f32.mrf.mxu0  ;;  %v2632_v9 = vadd.f32 %v5508_v61, %v5506_v12 }
 0x1cb   :  { %v3044_v57 = vmax.f32 %v3029_v20, 0.0  ;;  %v3027_v40 = vadd.f32 %v5537_v52, %v3005_v22  ;;  %v3008_v46 = vmax.f32 %v5438_v15, %v2993_v38  ;;  %v2991_v2 = vadd.f32 %v2931_v48, %v2815_v44  ;;  %v4323_v45 = vpop.f32.mrf.mxu1 }
 0x1cc   :  { %v2820_v39 = vadd.f32 %v4291_v23, %v2616_v54  ;;  %v2768_v31 = vpop.f32.mrf.mxu0  ;;  %v2624_v22 = vadd.f32 %v5512_v14, %v5510_v56 }
 0x1cd   :  { %v3552_v24 = vpack.c.bf16 %v3044_v57, %v3044_v57  ;;  %v3042_v27 = vmax.f32 %v3027_v40, 0.0  ;;  %v3030_v47 = vadd.f32 %v5537_v52, %v3008_v46  ;;  %v3006_v55 = vmax.f32 %v5443_v11, %v2991_v2  ;;  %v2944_v53 = vpop.f32.mrf.mxu1 }
 0x1ce   :  { %v2996_v17 = vadd.f32 %v4323_v45, %v2820_v39  ;;  %v2818_v1 = vadd.f32 %v2768_v31, %v2608_v26  ;;  %v4292_v51 = vpop.f32.mrf.mxu0 }
 0x1cf   :  { %3121 = vst.msk [vmem:[%s5654_s3 + $0x8] sm:$0xf] %vm3118_vm1, %v3552_v24  ;;  %v3550_v15 = vpack.c.bf16 %v3042_v27, %v3042_v27  ;;  %v3045_v32 = vmax.f32 %v3030_v47, 0.0  ;;  %v3028_v8 = vadd.f32 %v5537_v52, %v3006_v55  ;;  %v2821_v18 = vadd.f32 %v4292_v51, %v2619_v16  ;;  %v4324_v19 = vpop.f32.mrf.mxu1 }
 0x1d0   :  { %v3011_v11 = vmax.f32 %v5448_v62, %v2996_v17  ;;  %v2994_v63 = vadd.f32 %v2944_v53, %v2818_v1  ;;  %v2771_v29 = vpop.f32.mrf.mxu0  ;;  %v2627_v53 = vadd.f32 %v5520_v60, %v5518_v6  ;;  %v2640_v6 = vadd.f32 %v5528_v36, %v5526_v41 }
 0x1d1   :  { %3119 = vst.msk [vmem:[%s5654_s3] sm:$0xf] %vm3118_vm1, %v3550_v15  ;;  %v3553_v43 = vpack.c.bf16 %v3045_v32, %v3045_v32  ;;  %v3043_v3 = vmax.f32 %v3028_v8, 0.0  ;;  %v2997_v37 = vadd.f32 %v4324_v19, %v2821_v18  ;;  %v2819_v30 = vadd.f32 %v2771_v29, %v2611_v35  ;;  %v2947_v20 = vpop.f32.mrf.mxu1 }
 0x1d2   :  { %v3033_v38 = vadd.f32 %v5537_v52, %v3011_v11  ;;  %v3009_v12 = vmax.f32 %v5453_v59, %v2994_v63  ;;  %v4295_v62 = vpop.f32.mrf.mxu0 }
 0x1d3   :  { %3122 = vst.msk [vmem:[%s5654_s3 + $0xc] sm:$0xf] %vm3118_vm1, %v3553_v43  ;;  %v3551_v61 = vpack.c.bf16 %v3043_v3, %v3043_v3  ;;  %v3012_v44 = vmax.f32 %v5458_v33, %v2997_v37  ;;  %v2995_v48 = vadd.f32 %v2947_v20, %v2819_v30  ;;  %v2824_v54 = vadd.f32 %v4295_v62, %v2632_v9  ;;  %v4327_v23 = vpop.f32.mrf.mxu1 }
 0x1d4   :  { %v3048_v57 = vmax.f32 %v3033_v38, 0.0  ;;  %v3031_v40 = vadd.f32 %v5537_v52, %v3009_v12  ;;  %v2784_v56 = vpop.f32.mrf.mxu0  ;;  %v2635_v33 = vadd.f32 %v5516_v25, %v5514_v5 }
 0x1d5   :  { %3120 = vst.msk [vmem:[%s5654_s3 + $0x4] sm:$0xf] %vm3118_vm1, %v3551_v61  ;;  %v3034_v59 = vadd.f32 %v5537_v52, %v3012_v44  ;;  %v3010_v14 = vmax.f32 %v5463_v10, %v2995_v48  ;;  %v3000_v46 = vadd.f32 %v4327_v23, %v2824_v54  ;;  %v2822_v2 = vadd.f32 %v2784_v56, %v2624_v22  ;;  %v2960_v45 = vpop.f32.mrf.mxu1 }
 0x1d6   :  { %v3556_v26 = vpack.c.bf16 %v3048_v57, %v3048_v57  ;;  %v3046_v16 = vmax.f32 %v3031_v40, 0.0  ;;  %v4296_v39 = vpop.f32.mrf.mxu0  ;;  %v2648_v10 = vadd.f32 %v5524_v58, %v5522_v34 }
 0x1d7   :  { %v3049_v31 = vmax.f32 %v3034_v59, 0.0  ;;  %v3032_v24 = vadd.f32 %v5537_v52, %v3010_v14  ;;  %v3015_v27 = vmax.f32 %v5469_v50, %v3000_v46  ;;  %v2998_v47 = vadd.f32 %v2960_v45, %v2822_v2  ;;  %v4328_v55 = vpop.f32.mrf.mxu1 }
 0x1d8   :  { %3125 = vst.msk [vmem:[%s5654_s3 + $0x18] sm:$0xf] %vm3118_vm1, %v3556_v26  ;;  %v3554_v5 = vpack.c.bf16 %v3046_v16, %v3046_v16  ;;  %v2825_v25 = vadd.f32 %v4296_v39, %v2635_v33  ;;  %v2787_v35 = vpop.f32.mrf.mxu0 }
 0x1d9   :  { %v3557_v17 = vpack.c.bf16 %v3049_v31, %v3049_v31  ;;  %v3047_v1 = vmax.f32 %v3032_v24, 0.0  ;;  %v3037_v50 = vadd.f32 %v5537_v52, %v3015_v27  ;;  %v3013_v51 = vmax.f32 %v5475_v42, %v2998_v47  ;;  %v2963_v15 = vpop.f32.mrf.mxu1 }
 0x1da   :  { %3123 = vst.msk [vmem:[%s5654_s3 + $0x10] sm:$0xf] %vm3118_vm1, %v3554_v5  ;;  %v3001_v60 = vadd.f32 %v4328_v55, %v2825_v25  ;;  %v2823_v34 = vadd.f32 %v2787_v35, %v2627_v53  ;;  %v4299_v58 = vpop.f32.mrf.mxu0 }
 0x1db   :  { %3126 = vst.msk [vmem:[%s5654_s3 + $0x1c] sm:$0xf] %vm3118_vm1, %v3557_v17  ;;  %v3555_v32 = vpack.c.bf16 %v3047_v1, %v3047_v1  ;;  %v3052_v8 = vmax.f32 %v3037_v50, 0.0  ;;  %v3035_v42 = vadd.f32 %v5537_v52, %v3013_v51  ;;  %v2828_v18 = vadd.f32 %v4299_v58, %v2648_v10  ;;  %v4331_v19 = vpop.f32.mrf.mxu1 }
 0x1dc   :  { %v3016_v41 = vmax.f32 %v5481_v21, %v3001_v60  ;;  %v2999_v36 = vadd.f32 %v2963_v15, %v2823_v34  ;;  %v2800_v9 = vpop.f32.mrf.mxu0  ;;  %v2643_v21 = vadd.f32 %v5532_v0, %v5530_v13 }
 0x1dd   :  { %3124 = vst.msk [vmem:[%s5654_s3 + $0x14] sm:$0xf] %vm3118_vm1, %v3555_v32  ;;  %v3560_v11 = vpack.c.bf16 %v3052_v8, %v3052_v8  ;;  %v3050_v63 = vmax.f32 %v3035_v42, 0.0  ;;  %v3004_v29 = vadd.f32 %v4331_v19, %v2828_v18  ;;  %v2826_v43 = vadd.f32 %v2800_v9, %v2640_v6  ;;  %v2976_v3 = vpop.f32.mrf.mxu1 }
 0x1de   :  { %v3038_v37 = vadd.f32 %v5537_v52, %v3016_v41  ;;  %v3014_v30 = vmax.f32 %v5487_v49, %v2999_v36  ;;  %v4300_v20 = vpop.f32.mrf.mxu0 }
 0x1df   :  { %3129 = vst.msk [vmem:[%s5654_s3 + $0x28] sm:$0xf] %vm3118_vm1, %v3560_v11  ;;  %v3558_v22 = vpack.c.bf16 %v3050_v63, %v3050_v63  ;;  %v3019_v38 = vmax.f32 %v5493_v7, %v3004_v29  ;;  %v3002_v12 = vadd.f32 %v2976_v3, %v2826_v43  ;;  %v4332_v62 = vpop.f32.mrf.mxu1 }
 0x1e0   :  { %v3053_v61 = vmax.f32 %v3038_v37, 0.0  ;;  %v3036_v44 = vadd.f32 %v5537_v52, %v3014_v30  ;;  %v2803_v48 = vpop.f32.mrf.mxu0 }
 0x1e1   :  { %3127 = vst.msk [vmem:[%s5654_s3 + $0x20] sm:$0xf] %vm3118_vm1, %v3558_v22  ;;  %v3041_v49 = vadd.f32 %v5537_v52, %v3019_v38  ;;  %v3017_v13 = vmax.f32 %v5498_v4, %v3002_v12  ;;  %v2827_v0 = vadd.f32 %v2803_v48, %v2643_v21  ;;  %v2979_v7 = vpop.f32.mrf.mxu1  ;;  %v3136_v4 = vld [vmem:[%s5654_s3 + $0x38] sm:$0xf] }
 0x1e2   :  { %v3561_v54 = vpack.c.bf16 %v3053_v61, %v3053_v61  ;;  %v3051_v23 = vmax.f32 %v3036_v44, 0.0 }
 0x1e3   :  { %v3056_v57 = vmax.f32 %v3041_v49, 0.0  ;;  %v3039_v40 = vadd.f32 %v5537_v52, %v3017_v13  ;;  %v3003_v56 = vadd.f32 %v2979_v7, %v2827_v0 }
 0x1e4   :  { %3130 = vst.msk [vmem:[%s5654_s3 + $0x2c] sm:$0xf] %vm3118_vm1, %v3561_v54  ;;  %v3559_v59 = vpack.c.bf16 %v3051_v23, %v3051_v23 }
 0x1e5   :  { %v3564_v14 = vpack.c.bf16 %v3056_v57, %v3056_v57  ;;  %v3054_v46 = vmax.f32 %v3039_v40, 0.0  ;;  %v3018_v2 = vmax.f32 %v5504_v28, %v3003_v56 }
 0x1e6   :  { %3128 = vst.msk [vmem:[%s5654_s3 + $0x24] sm:$0xf] %vm3118_vm1, %v3559_v59 }
 0x1e7   :  { %v3137_v45 = vsel %vm3135_vm3, %v3564_v14, %v3136_v4  ;;  %v3562_v33 = vpack.c.bf16 %v3054_v46, %v3054_v46  ;;  %v3040_v26 = vadd.f32 %v5537_v52, %v3018_v2 }
 0x1e8   :  { %3138 = vst [vmem:[%s5654_s3 + $0x38] sm:$0xf] %v3137_v45 }
 0x1e9   :  { %3131 = vst.msk [vmem:[%s5654_s3 + $0x30] sm:$0xf] %vm3118_vm1, %v3562_v33  ;;  %v3055_v16 = vmax.f32 %v3040_v26, 0.0 }
 0x1eb   :  { %v3563_v28 = vpack.c.bf16 %v3055_v16, %v3055_v16 }
 0x1ed   :  { %3132 = vst.msk [vmem:[%s5654_s3 + $0x34] sm:$0xf] %vm3118_vm1, %v3563_v28 }
 0x1ef   :  { %v3142_v52 = vld [vmem:[%s5654_s3 + $0x38] sm:$0x8] }
 0x1f0   :  { %v3143_v39 = vsel %vm3141_vm6, 0, %v3142_v52 }
 0x1f1   :  { %3144 = vst [vmem:[%s5654_s3 + $0x38] sm:$0x8] %v3143_v39 }

// kernel: attacker_forward.4
= control target key start
LH: loop header
LB: loop body
LE: loop exit
PB: predicated region body
PF: predicated region fallthrough
CT: control target
= control target key end

     0   :  { %vm521_vm0 = vcmask 1041408   ;;  %vm436_vm1 = vcmask 31744   ;;  %vm212_vm2 = vsmask.f32 7424  ;;  %vm1298_vm3 = vsmask.f32 4352  ;;  %s11917_s1 = inlined_call_operand.vmem [shape: bf16[4,4,4,32], index: 1, kind: input, shape index: {}]   ;;  %s11918_s0 = inlined_call_operand.vmem [shape: bf16[450,4], index: 0, kind: input, shape index: {}]   ;;  %s11919_s3 = inlined_call_operand.vmem [shape: bf16[450,32], index: 3, kind: output, shape index: {}]   ;;  %s11920_s2 = inlined_call_operand.vmem [shape: f32[1,32], index: 2, kind: input, shape index: {}]  }
   0x1   :  { %v70_v0 = vld [vmem:[%s11917_s1] sm:$0x3]  ;;  %v6406_v1 = vld [vmem:[%s11917_s1 + $0x2] sm:$0x3]  ;;  %v8475_v5 = vld [vmem:[%s11918_s0 + $0x8] sm:$0xff]   ;;  %vm6341_vm4 = vcmask 257024  }
   0x2   :  { %8458 = vmatprep.subr.msk.bf16.mxu1 %vm521_vm0, %v70_v0  ;;  %v842_v2 = vsel %vm521_vm0, %v70_v0, 0  ;;  %8457 = vmatprep.subr.msk.bf16.mxu0 %vm521_vm0, %v6406_v1  ;;  %v8474_v3 = vld [vmem:[%s11918_s0] sm:$0xff]   ;;  %v523_v4 = vsel %vm521_vm0, %v6406_v1, 0  ;;  %v221_v9 = vshll.u32 %v8475_v5, 16  ;;  %v8476_v10 = vld [vmem:[%s11918_s0 + $0x10] sm:$0xff]   ;;  %v225_v11 = vshrl.u32 %v8475_v5, 16 }
   0x3   :  { %7588 = vmatpush3.bf16.msra.mxu1 %v842_v2  ;;  %7530 = vmatpush3.bf16.msra.mxu0 %v523_v4  ;;  %v6492_v6 = vld [vmem:[%s11917_s1 + $0x4] sm:$0x3]  ;;  %v214_v7 = vshrl.u32 %v8474_v3, 16  ;;  %v216_v8 = vshll.u32 %v8474_v3, 16  ;;  %v6549_v12 = vld [vmem:[%s11917_s1 + $0x6] sm:$0x3] }
   0x4   :  { %7589 = vmatprep.mubr.msk.bf16.mxu1 %vm436_vm1, %v8474_v3  ;;  %8459 = vmatprep.subr.msk.bf16.mxu0 %vm521_vm0, %v6492_v6  ;;  %v223_v14 = vrot.slane %v221_v9, 1  ;;  %v229_v15 = vshll.u32 %v8476_v10, 16  ;;  %v2063_v16 = vsel %vm521_vm0, %v6549_v12, 0  ;;  %v8477_v17 = vld [vmem:[%s11918_s0 + $0x18] sm:$0xff]   ;;  %v233_v18 = vshrl.u32 %v8476_v10, 16  ;;  %v8478_v22 = vld [vmem:[%s11918_s0 + $0x20] sm:$0xff]  }
   0x5   :  { %v218_v13 = vrot.slane %v216_v8, 1  ;;  %8460 = vmatprep.subr.msk.bf16.mxu1 %vm521_vm0, %v6549_v12  ;;  %v1635_v23 = vsel %vm521_vm0, %v6492_v6, 0  ;;  %v237_v24 = vshll.u32 %v8477_v17, 16  ;;  %v241_v25 = vshrl.u32 %v8477_v17, 16  ;;  %v8479_v26 = vld [vmem:[%s11918_s0 + $0x28] sm:$0xff]   ;;  %v8480_v35 = vld [vmem:[%s11918_s0 + $0x30] sm:$0xff]  }
   0x6   :  { %7590 = vmatmul.mubr.msk.bf16.vlgmr.msra.gmra.mxu1 %vm436_vm1, %v8475_v5  ;;  %v227_v20 = vor.u32 %v225_v11, %v223_v14  ;;  %v231_v21 = vrot.slane %v229_v15, 1  ;;  %v245_v30 = vshll.u32 %v8478_v22, 16  ;;  %v249_v32 = vshrl.u32 %v8478_v22, 16  ;;  %v8481_v40 = vld [vmem:[%s11918_s0 + $0x38] sm:$0xff]   ;;  %v8482_v48 = vld [vmem:[%s11918_s0 + $0x40] sm:$0xff]   ;;  %v8483_v52 = vld [vmem:[%s11918_s0 + $0x48] sm:$0xff]  }
   0x7   :  { %7704 = vmatpush3.bf16.msra.mxu1 %v2063_v16  ;;  %7593 = vmatprep.mubr.msk.bf16.mxu1 %vm436_vm1, %v8476_v10  ;;  %v219_v19 = vor.u32 %v218_v13, %v214_v7  ;;  %v239_v31 = vrot.slane %v237_v24, 1  ;;  %v253_v33 = vshll.u32 %v8479_v26, 16  ;;  %v261_v41 = vshll.u32 %v8480_v35, 16  ;;  %v8484_v60 = vld [vmem:[%s11918_s0 + $0x50] sm:$0xff]   ;;  %v8485_v0 = vld [vmem:[%s11918_s0 + $0x58] sm:$0xff]   ;;  %v8486_v8 = vld [vmem:[%s11918_s0 + $0x60] sm:$0xff]  }
   0x8   :  { %v8709_v28 = vsel %vm212_vm2, %v227_v20, %v231_v21  ;;  %v235_v29 = vor.u32 %v233_v18, %v231_v21  ;;  %v247_v34 = vrot.slane %v245_v30, 1  ;;  %v257_v43 = vshrl.u32 %v8479_v26, 16  ;;  %v8487_v12 = vld [vmem:[%s11918_s0 + $0x68] sm:$0xff]   ;;  %v8488_v21 = vld [vmem:[%s11918_s0 + $0x70] sm:$0xff]  }
   0x9   :  { %v8706_v27 = vsel %vm212_vm2, %v219_v19, %v223_v14  ;;  %12164 = vst [vmem:[#allocation3_spill] sm:$0xff] %v8709_v28  ;;  %v243_v37 = vor.u32 %v241_v25, %v239_v31  ;;  %v255_v39 = vrot.slane %v253_v33, 1  ;;  %v265_v45 = vshrl.u32 %v8480_v35, 16  ;;  %v8791_v19 = vld [vmem:[%s11917_s1 + $0xa] sm:$0x3] }
   0xa   :  { %12163 = vst [vmem:[#allocation2_spill] sm:$0xff] %v8706_v27  ;;  %7531 = vmatprep.mubr.msk.bf16.mxu0 %vm436_vm1, %v8706_v27  ;;  %v8719_v36 = vsel %vm212_vm2, %v235_v29, %v239_v31  ;;  %v251_v38 = vor.u32 %v249_v32, %v247_v34  ;;  %v269_v46 = vshll.u32 %v8481_v40, 16  ;;  %v263_v47 = vrot.slane %v261_v41, 1  ;;  %v8491_v41 = vld [vmem:[%s11918_s0 + $0x88] sm:$0xff]  }
   0xb   :  { %7532 = vmatmul.mubr.msk.bf16.vlgmr.msra.gmra.mxu0 %vm436_vm1, %v8709_v28  ;;  %12165 = vst [vmem:[#allocation4_spill] sm:$0xff] %v8719_v36  ;;  %v8729_v42 = vsel %vm212_vm2, %v243_v37, %v247_v34  ;;  %v259_v49 = vor.u32 %v257_v43, %v255_v39  ;;  %v277_v53 = vshll.u32 %v8482_v48, 16  ;;  %v273_v55 = vshrl.u32 %v8481_v40, 16  ;;  %v8490_v37 = vld [vmem:[%s11918_s0 + $0x80] sm:$0xff]  }
   0xc   :  { %7646 = vmatpush3.bf16.msra.mxu0 %v1635_v23  ;;  %7535 = vmatprep.mubr.msk.bf16.mxu0 %vm436_vm1, %v8719_v36  ;;  %12166 = vst [vmem:[#allocation5_spill] sm:$0xff] %v8729_v42  ;;  %v8732_v44 = vsel %vm212_vm2, %v251_v38, %v255_v39  ;;  %v267_v50 = vor.u32 %v265_v45, %v263_v47  ;;  %v271_v51 = vrot.slane %v269_v46, 1  ;;  %v281_v57 = vshrl.u32 %v8482_v48, 16 }
   0xd   :  { %12167 = vst [vmem:[#allocation6_spill] sm:$0xff] %v8732_v44  ;;  %v8747_v54 = vsel %vm212_vm2, %v259_v49, %v263_v47  ;;  %v285_v58 = vshll.u32 %v8483_v52, 16  ;;  %v279_v59 = vrot.slane %v277_v53, 1  ;;  %v293_v1 = vshll.u32 %v8484_v60, 16  ;;  %8461 = vmatprep.subr.msk.bf16.mxu0 %vm521_vm0, %v8791_v19 }
   0xe   :  { %7594 = vmatmul.mubr.msk.bf16.gmra.mxu1 %vm436_vm1, %v8477_v17  ;;  %12168 = vst [vmem:[#allocation7_spill] sm:$0xff] %v8747_v54  ;;  %v8750_v56 = vsel %vm212_vm2, %v267_v50, %v271_v51  ;;  %v275_v61 = vor.u32 %v273_v55, %v271_v51  ;;  %v289_v3 = vshrl.u32 %v8483_v52, 16  ;;  %v297_v5 = vshrl.u32 %v8484_v60, 16  ;;  %v8492_v51 = vld [vmem:[%s11918_s0 + $0x90] sm:$0xff]  }
   0xf   :  { %7597 = vmatprep.mubr.msk.bf16.mxu1 %vm436_vm1, %v8478_v22  ;;  %12169 = vst [vmem:[#allocation8_spill] sm:$0xff] %v8750_v56  ;;  %v283_v62 = vor.u32 %v281_v57, %v279_v59  ;;  %v287_v63 = vrot.slane %v285_v58, 1  ;;  %v301_v6 = vshll.u32 %v8485_v0, 16  ;;  %v295_v7 = vrot.slane %v293_v1, 1  ;;  %v8803_v22 = vld [vmem:[%s11917_s1 + $0x8] sm:$0x3] }
  0x10   :  { %v8765_v2 = vsel %vm212_vm2, %v275_v61, %v279_v59  ;;  %v309_v13 = vshll.u32 %v8486_v8, 16  ;;  %v305_v15 = vshrl.u32 %v8485_v0, 16  ;;  %v313_v17 = vshrl.u32 %v8486_v8, 16  ;;  %8462 = vmatprep.subr.msk.bf16.mxu1 %vm521_vm0, %v8803_v22  ;;  %v8493_v57 = vld [vmem:[%s11918_s0 + $0x98] sm:$0xff]   ;;  %v8494_v1 = vld [vmem:[%s11918_s0 + $0xa0] sm:$0xff]  }
  0x11   :  { %12170 = vst [vmem:[#allocation9_spill] sm:$0xff] %v8765_v2  ;;  %v8768_v4 = vsel %vm212_vm2, %v283_v62, %v287_v63  ;;  %v291_v9 = vor.u32 %v289_v3, %v287_v63  ;;  %v299_v10 = vor.u32 %v297_v5, %v295_v7  ;;  %v303_v11 = vrot.slane %v301_v6, 1 }
  0x12   :  { %12171 = vst [vmem:[#allocation10_spill] sm:$0xff] %v8768_v4  ;;  %v317_v18 = vshll.u32 %v8487_v12, 16  ;;  %v311_v20 = vrot.slane %v309_v13, 1  ;;  %v325_v29 = vshll.u32 %v8488_v21, 16  ;;  %v321_v31 = vshrl.u32 %v8487_v12, 16 }
  0x13   :  { %7536 = vmatmul.mubr.msk.bf16.gmra.mxu0 %vm436_vm1, %v8729_v42  ;;  %v8783_v14 = vsel %vm212_vm2, %v291_v9, %v295_v7  ;;  %v8786_v16 = vsel %vm212_vm2, %v299_v10, %v303_v11  ;;  %v307_v23 = vor.u32 %v305_v15, %v303_v11  ;;  %v329_v33 = vshrl.u32 %v8488_v21, 16  ;;  %v8495_v7 = vld [vmem:[%s11918_s0 + $0xa8] sm:$0xff]  }
  0x14   :  { %7539 = vmatprep.mubr.msk.bf16.mxu0 %vm436_vm1, %v8732_v44  ;;  %12172 = vst [vmem:[#allocation11_spill] sm:$0xff] %v8783_v14  ;;  %12173 = vst [vmem:[#allocation12_spill] sm:$0xff] %v8786_v16  ;;  %v315_v24 = vor.u32 %v313_v17, %v311_v20  ;;  %v319_v25 = vrot.slane %v317_v18, 1  ;;  %v341_v43 = vshll.u32 %v8490_v37, 16  ;;  %v349_v49 = vshll.u32 %v8491_v41, 16  ;;  %v8496_v17 = vld [vmem:[%s11918_s0 + $0xb0] sm:$0xff]  }
  0x15   :  { %v8815_v30 = vsel %vm212_vm2, %v307_v23, %v311_v20  ;;  %v357_v58 = vshll.u32 %v8492_v51, 16  ;;  %v361_v62 = vshrl.u32 %v8492_v51, 16  ;;  %v365_v63 = vshll.u32 %v8493_v57, 16  ;;  %v8497_v23 = vld [vmem:[%s11918_s0 + $0xb8] sm:$0xff]  }
  0x16   :  { %7598 = vmatmul.mubr.msk.bf16.gmra.mxu1 %vm436_vm1, %v8479_v26  ;;  %v8489_v26 = vld [vmem:[%s11918_s0 + $0x78] sm:$0xff]   ;;  %12174 = vst [vmem:[#allocation13_spill] sm:$0xff] %v8815_v30  ;;  %v8818_v32 = vsel %vm212_vm2, %v315_v24, %v319_v25  ;;  %v323_v38 = vor.u32 %v321_v31, %v319_v25  ;;  %v343_v50 = vrot.slane %v341_v43, 1  ;;  %v351_v55 = vrot.slane %v349_v49, 1 }
  0x17   :  { %7601 = vmatprep.mubr.msk.bf16.mxu1 %vm436_vm1, %v8480_v35  ;;  %12175 = vst [vmem:[#allocation14_spill] sm:$0xff] %v8818_v32  ;;  %v333_v34 = vshll.u32 %v8489_v26, 16  ;;  %v327_v35 = vrot.slane %v325_v29, 1  ;;  %v337_v46 = vshrl.u32 %v8489_v26, 16  ;;  %v367_v6 = vrot.slane %v365_v63, 1 }
  0x18   :  { %v369_v10 = vshrl.u32 %v8493_v57, 16  ;;  %v381_v13 = vshll.u32 %v8495_v7, 16  ;;  %v389_v24 = vshll.u32 %v8496_v17, 16  ;;  %v393_v31 = vshrl.u32 %v8496_v17, 16 }
  0x19   :  { %v331_v39 = vor.u32 %v329_v33, %v327_v35  ;;  %v8833_v45 = vsel %vm212_vm2, %v323_v38, %v327_v35  ;;  %v397_v33 = vshll.u32 %v8497_v23, 16  ;;  %v8498_v35 = vld [vmem:[%s11918_s0 + $0xc0] sm:$0xff]   ;;  %vm6396_vm5 = vcmask 253952  }
  0x1a   :  { %12176 = vst [vmem:[#allocation15_spill] sm:$0xff] %v8833_v45  ;;  %v371_v18 = vor.u32 %v369_v10, %v367_v6  ;;  %v409_v49 = vshrl.u32 %v8498_v35, 16  ;;  %vm6398_vm6 = vcmask 257025  }
  0x1b   :  { %7540 = vmatmul.mubr.msk.bf16.gmra.mxu0 %vm436_vm1, %v8747_v54 }
  0x1c   :  { %7543 = vmatprep.mubr.msk.bf16.mxu0 %vm436_vm1, %v8750_v56 }
  0x1e   :  { %7602 = vmatmul.mubr.msk.bf16.gmra.mxu1 %vm436_vm1, %v8481_v40  ;;  %v335_v40 = vrot.slane %v333_v34, 1  ;;  %v391_v34 = vrot.slane %v389_v24, 1 }
  0x1f   :  { %7605 = vmatprep.mubr.msk.bf16.mxu1 %vm436_vm1, %v8482_v48  ;;  %v345_v48 = vshrl.u32 %v8490_v37, 16 }
  0x20   :  { %v8836_v47 = vsel %vm212_vm2, %v331_v39, %v335_v40  ;;  %v395_v38 = vor.u32 %v393_v31, %v391_v34  ;;  %v399_v39 = vrot.slane %v397_v33, 1  ;;  %v1106_v33 = vld [vmem:[%s11918_s0 + $0x1c] sm:$0xf] }
  0x21   :  { %12177 = vst [vmem:[#allocation16_spill] sm:$0xff] %v8836_v47  ;;  %v347_v53 = vor.u32 %v345_v48, %v343_v50 }
  0x22   :  { %v8908_v48 = vsel %vm212_vm2, %v395_v38, %v399_v39 }
  0x23   :  { %7544 = vmatmul.mubr.msk.bf16.gmra.mxu0 %vm436_vm1, %v8765_v2  ;;  %v8854_v61 = vsel %vm212_vm2, %v347_v53, %v351_v55  ;;  %12185 = vst [vmem:[#allocation24_spill] sm:$0xff] %v8908_v48 }
  0x24   :  { %7547 = vmatprep.mubr.msk.bf16.mxu0 %vm436_vm1, %v8768_v4  ;;  %12179 = vst [vmem:[#allocation18_spill] sm:$0xff] %v8854_v61 }
  0x26   :  { %7606 = vmatmul.mubr.msk.bf16.gmra.mxu1 %vm436_vm1, %v8483_v52  ;;  %v339_v52 = vor.u32 %v337_v46, %v335_v40  ;;  %v8499_v40 = vld [vmem:[%s11918_s0 + $0xc8] sm:$0xff]   ;;  %v401_v46 = vshrl.u32 %v8497_v23, 16 }
  0x27   :  { %7609 = vmatprep.mubr.msk.bf16.mxu1 %vm436_vm1, %v8484_v60  ;;  %v353_v60 = vshrl.u32 %v8491_v41, 16 }
  0x28   :  { %v8851_v59 = vsel %vm212_vm2, %v339_v52, %v343_v50  ;;  %v413_v50 = vshll.u32 %v8499_v40, 16  ;;  %v403_v53 = vor.u32 %v401_v46, %v399_v39 }
  0x29   :  { %12178 = vst [vmem:[#allocation17_spill] sm:$0xff] %v8851_v59  ;;  %v355_v3 = vor.u32 %v353_v60, %v351_v55  ;;  %v8502_v55 = vld [vmem:[%s11918_s0 + $0xd8] ss:$0 sps:$4 sm:$0x33]   ;;  %v1100_v60 = vld [vmem:[%s11918_s0 + $0x4] sm:$0x8] }
  0x2b   :  { %7548 = vmatmul.mubr.msk.bf16.gmra.mxu0 %vm436_vm1, %v8783_v14 }
  0x2c   :  { %7551 = vmatprep.mubr.msk.bf16.mxu0 %vm436_vm1, %v8786_v16 }
  0x2e   :  { %7610 = vmatmul.mubr.msk.bf16.gmra.mxu1 %vm436_vm1, %v8485_v0  ;;  %v359_v0 = vrot.slane %v357_v58, 1  ;;  %v415_v58 = vrot.slane %v413_v50, 1 }
  0x2f   :  { %7613 = vmatprep.mubr.msk.bf16.mxu1 %vm436_vm1, %v8486_v8  ;;  %v373_v8 = vshll.u32 %v8494_v1, 16 }
  0x30   :  { %v363_v5 = vor.u32 %v361_v62, %v359_v0  ;;  %v8869_v9 = vsel %vm212_vm2, %v355_v3, %v359_v0  ;;  %v1101_v62 = vld [vmem:[%s11918_s0 + $0x8] sm:$0xf]  ;;  %v1102_v0 = vld [vmem:[%s11918_s0 + $0xc] sm:$0xf]  ;;  %v417_v3 = vshrl.u32 %v8499_v40, 16 }
  0x31   :  { %12180 = vst [vmem:[#allocation19_spill] sm:$0xff] %v8869_v9  ;;  %v375_v15 = vrot.slane %v373_v8, 1  ;;  %v6493_v8 = vcombine.low %v1100_v60, %v1101_v62 }
  0x32   :  { %v8872_v11 = vsel %vm212_vm2, %v363_v5, %v367_v6 }
  0x33   :  { %7552 = vmatmul.mubr.msk.bf16.gmra.mxu0 %vm436_vm1, %v8815_v30  ;;  %12181 = vst [vmem:[#allocation20_spill] sm:$0xff] %v8872_v11  ;;  %v8887_v25 = vsel %vm212_vm2, %v371_v18, %v375_v15  ;;  %v1303_v24 = vshll.u32 %v6493_v8, 16 }
  0x34   :  { %7555 = vmatprep.mubr.msk.bf16.mxu0 %vm436_vm1, %v8818_v32  ;;  %12182 = vst [vmem:[#allocation21_spill] sm:$0xff] %v8887_v25 }
  0x36   :  { %7614 = vmatmul.mubr.msk.bf16.gmra.mxu1 %vm436_vm1, %v8487_v12  ;;  %v377_v12 = vshrl.u32 %v8494_v1, 16 }
  0x37   :  { %7617 = vmatprep.mubr.msk.bf16.mxu1 %vm436_vm1, %v8488_v21  ;;  %v383_v21 = vrot.slane %v381_v13, 1 }
  0x38   :  { %v379_v20 = vor.u32 %v377_v12, %v375_v15  ;;  %v419_v15 = vor.u32 %v417_v3, %v415_v58 }
  0x3a   :  { %v8890_v29 = vsel %vm212_vm2, %v379_v20, %v383_v21  ;;  %v1104_v20 = vld [vmem:[%s11918_s0 + $0x14] sm:$0xf] }
  0x3b   :  { %7556 = vmatmul.mubr.msk.bf16.gmra.mxu0 %vm436_vm1, %v8833_v45  ;;  %12183 = vst [vmem:[#allocation22_spill] sm:$0xff] %v8890_v29 }
  0x3c   :  { %7559 = vmatprep.mubr.msk.bf16.mxu0 %vm436_vm1, %v8836_v47 }
  0x3e   :  { %7618 = vmatmul.mubr.msk.bf16.gmra.mxu1 %vm436_vm1, %v8489_v26  ;;  %v385_v26 = vshrl.u32 %v8495_v7, 16 }
  0x3f   :  { %7621 = vmatprep.mubr.msk.bf16.mxu1 %vm436_vm1, %v8490_v37 }
  0x40   :  { %v387_v37 = vor.u32 %v385_v26, %v383_v21  ;;  %v1300_v21 = vshrl.u32 %v6493_v8, 16 }
  0x42   :  { %v8905_v43 = vsel %vm212_vm2, %v387_v37, %v391_v34  ;;  %v1107_v34 = vld [vmem:[%s11918_s0 + $0x20] sm:$0xf]  ;;  %v1302_v39 = vrot.slane %v1300_v21, 3 }
  0x43   :  { %7560 = vmatmul.mubr.msk.bf16.gmra.mxu0 %vm436_vm1, %v8851_v59  ;;  %12184 = vst [vmem:[#allocation23_spill] sm:$0xff] %v8905_v43  ;;  %v6496_v50 = vcombine.low %v1106_v33, %v1107_v34 }
  0x44   :  { %7563 = vmatprep.mubr.msk.bf16.mxu0 %vm436_vm1, %v8854_v61 }
  0x45   :  { %v1329_v3 = vshll.u32 %v6496_v50, 16 }
  0x46   :  { %7622 = vmatmul.mubr.msk.bf16.gmra.mxu1 %vm436_vm1, %v8491_v41  ;;  %v405_v41 = vshll.u32 %v8498_v35, 16 }
  0x47   :  { %7625 = vmatprep.mubr.msk.bf16.mxu1 %vm436_vm1, %v8492_v51  ;;  %v8500_v51 = vld [vmem:[%s11918_s0 + $0xd0] sm:$0xff]  }
  0x48   :  { %v407_v52 = vrot.slane %v405_v41, 1  ;;  %v421_v63 = vshll.u32 %v8500_v51, 16  ;;  %v425_v6 = vshrl.u32 %v8500_v51, 16  ;;  %v1305_v41 = vrot.slane %v1303_v24, 4 }
  0x49   :  { %v1331_v24 = vrot.slane %v1329_v3, 4 }
  0x4a   :  { %v8935_v5 = vsel %vm212_vm2, %v403_v53, %v407_v52  ;;  %v423_v13 = vrot.slane %v421_v63, 1  ;;  %v1108_v63 = vld [vmem:[%s11918_s0 + $0x24] sm:$0xf] }
  0x4b   :  { %7564 = vmatmul.mubr.msk.bf16.gmra.mxu0 %vm436_vm1, %v8869_v9 }
  0x4c   :  { %7567 = vmatprep.mubr.msk.bf16.mxu0 %vm436_vm1, %v8872_v11 }
  0x4e   :  { %7626 = vmatmul.mubr.msk.bf16.gmra.mxu1 %vm436_vm1, %v8493_v57  ;;  %v411_v57 = vor.u32 %v409_v49, %v407_v52  ;;  %v433_v52 = vshrl.u32 %v8502_v55, 16 }
  0x4f   :  { %7629 = vmatprep.mubr.msk.bf16.mxu1 %vm436_vm1, %v8494_v1  ;;  %v1103_v1 = vld [vmem:[%s11918_s0 + $0x10] sm:$0xf] }
  0x50   :  { %v8938_v10 = vsel %vm212_vm2, %v411_v57, %v415_v58  ;;  %v6494_v12 = vcombine.low %v1102_v0, %v1103_v1  ;;  %v1306_v58 = vor.u32 %v1305_v41, %v1302_v39  ;;  %v8990_v8 = vcombine.low %v1103_v1, %v1104_v20  ;;  %v9006_v39 = vld [vmem:[%s11917_s1 + $0xe] sm:$0x3] }
  0x52   :  { %v1308_v26 = vshrl.u32 %v6494_v12, 16  ;;  %v1311_v31 = vshll.u32 %v6494_v12, 16  ;;  %12186 = vst [vmem:[#allocation25_spill] sm:$0xff] %v8990_v8 }
  0x53   :  { %7568 = vmatmul.mubr.msk.bf16.gmra.mxu0 %vm436_vm1, %v8887_v25 }
  0x54   :  { %7571 = vmatprep.mubr.msk.bf16.mxu0 %vm436_vm1, %v8890_v29  ;;  %v1310_v46 = vrot.slane %v1308_v26, 3  ;;  %v1313_v49 = vrot.slane %v1311_v31, 4 }
  0x56   :  { %7630 = vmatmul.mubr.msk.bf16.gmra.mxu1 %vm436_vm1, %v8495_v7  ;;  %v429_v7 = vshll.u32 %v8502_v55, 16  ;;  %v1314_v60 = vor.u32 %v1313_v49, %v1310_v46  ;;  %v1110_v55 = vld [vmem:[%s11918_s0 + $0x2c] sm:$0xf]  ;;  %v1114_v46 = vld [vmem:[%s11918_s0 + $0x3c] sm:$0xf] }
  0x57   :  { %7633 = vmatprep.mubr.msk.bf16.mxu1 %vm436_vm1, %v8496_v17  ;;  %v427_v17 = vor.u32 %v425_v6, %v423_v13  ;;  %v1111_v6 = vld [vmem:[%s11918_s0 + $0x30] sm:$0xf]  ;;  %v1115_v49 = vld [vmem:[%s11918_s0 + $0x40] sm:$0xf] }
  0x58   :  { %v431_v18 = vrot.slane %v429_v7, 1  ;;  %v6498_v26 = vcombine.low %v1110_v55, %v1111_v6 }
  0x5a   :  { %v8962_v37 = vsel %vm212_vm2, %v427_v17, %v431_v18  ;;  %v8988_v7 = vor.u32 %v433_v52, %v431_v18  ;;  %v8993_v17 = vsel %vm1298_vm3, %v1306_v58, %v1314_v60  ;;  %v2640_v18 = vsel %vm521_vm0, %v8803_v22, 0  ;;  %v1113_v22 = vld [vmem:[%s11918_s0 + $0x38] sm:$0xf] }
  0x5b   :  { %7572 = vmatmul.mubr.msk.bf16.gmra.mxu0 %vm436_vm1, %v8905_v43  ;;  %v1347_v41 = vshll.u32 %v6498_v26, 16  ;;  %v9026_v52 = vcombine.low %v1107_v34, %v1108_v63 }
  0x5c   :  { %7575 = vmatprep.mubr.msk.bf16.mxu0 %vm436_vm1, %v8908_v48 }
  0x5d   :  { %12188 = vst [vmem:[#allocation27_spill] sm:$0xff] %v9026_v52 }
  0x5e   :  { %7634 = vmatmul.mubr.msk.bf16.gmra.mxu1 %vm436_vm1, %v8497_v23  ;;  %v1105_v23 = vld [vmem:[%s11918_s0 + $0x18] sm:$0xf] }
  0x5f   :  { %7637 = vmatprep.mubr.msk.bf16.mxu1 %vm436_vm1, %v8498_v35  ;;  %v8959_v35 = vsel %vm212_vm2, %v419_v15, %v423_v13  ;;  %v6495_v38 = vcombine.low %v1104_v20, %v1105_v23  ;;  %v8995_v31 = vcombine.low %v1105_v23, %v1106_v33  ;;  %v1112_v33 = vld [vmem:[%s11918_s0 + $0x34] sm:$0xf] }
  0x61   :  { %v1317_v53 = vshrl.u32 %v6495_v38, 16  ;;  %v1320_v57 = vshll.u32 %v6495_v38, 16  ;;  %12187 = vst [vmem:[#allocation26_spill] sm:$0xff] %v8995_v31 }
  0x63   :  { %7576 = vmatmul.mubr.msk.bf16.gmra.mxu0 %vm436_vm1, %v8935_v5  ;;  %v1319_v12 = vrot.slane %v1317_v53, 3  ;;  %v1322_v13 = vrot.slane %v1320_v57, 4 }
  0x64   :  { %7579 = vmatprep.mubr.msk.bf16.mxu0 %vm436_vm1, %v8938_v10 }
  0x65   :  { %v1323_v1 = vor.u32 %v1322_v13, %v1319_v12  ;;  %v1349_v13 = vrot.slane %v1347_v41, 4 }
  0x66   :  { %7638 = vmatmul.mubr.msk.bf16.gmra.mxu1 %vm436_vm1, %v8499_v40  ;;  %v8501_v40 = vld [vmem:[%s11918_s0 + $0xd8] ss:$0 sps:$4 sm:$0x11]  }
  0x67   :  { %7641 = vmatprep.mubr.msk.bf16.mxu1 %vm436_vm1, %v8500_v51  ;;  %v8967_v51 = vcombine.low %v1101_v62, %v1102_v0  ;;  %v1109_v62 = vld [vmem:[%s11918_s0 + $0x28] sm:$0xf]  ;;  %v1326_v0 = vshrl.u32 %v6496_v50, 16  ;;  %v2381_v50 = vsel %vm521_vm0, %v8791_v19, 0  ;;  %v9031_v53 = vsel %vm1298_vm3, %v1314_v60, %v1323_v1  ;;  %v9041_v19 = vld [vmem:[%s11917_s1 + $0xc] sm:$0x3] }
  0x68   :  { %v6497_v15 = vcombine.low %v1108_v63, %v1109_v62  ;;  %12189 = vst [vmem:[#allocation28_spill] sm:$0xff] %v9031_v53 }
  0x69   :  { %v1328_v21 = vrot.slane %v1326_v0, 3  ;;  %v6499_v0 = vcombine.low %v1112_v33, %v1113_v22 }
  0x6a   :  { %v1335_v20 = vshrl.u32 %v6497_v15, 16  ;;  %v1338_v38 = vshll.u32 %v6497_v15, 16  ;;  %v6500_v15 = vcombine.low %v1114_v46, %v1115_v49 }
  0x6b   :  { %7580 = vmatmul.mubr.msk.bf16.gmra.mxu0 %vm436_vm1, %v8959_v35  ;;  %v1332_v23 = vor.u32 %v1331_v24, %v1328_v21  ;;  %v9036_v21 = vcombine.low %v1109_v62, %v1110_v55  ;;  %v1353_v60 = vshrl.u32 %v6499_v0, 16  ;;  %v1356_v63 = vshll.u32 %v6499_v0, 16  ;;  %v1116_v55 = vld [vmem:[%s11918_s0 + $0x44] sm:$0xf]  ;;  %v1117_v24 = vld [vmem:[%s11918_s0 + $0x48] sm:$0xf] }
  0x6c   :  { %7583 = vmatprep.mubr.msk.bf16.mxu0 %vm436_vm1, %v8962_v37  ;;  %v1337_v57 = vrot.slane %v1335_v20, 3  ;;  %v1340_v58 = vrot.slane %v1338_v38, 4  ;;  %v1119_v20 = vld [vmem:[%s11918_s0 + $0x50] sm:$0xf]  ;;  %v9065_v38 = vcombine.low %v1111_v6, %v1112_v33 }
  0x6d   :  { %v9034_v3 = vsel %vm1298_vm3, %v1323_v1, %v1332_v23  ;;  %12191 = vst [vmem:[#allocation30_spill] sm:$0xff] %v9036_v21  ;;  %v1118_v1 = vld [vmem:[%s11918_s0 + $0x4c] sm:$0xf]  ;;  %v1355_v41 = vrot.slane %v1353_v60, 3 }
  0x6e   :  { %7642 = vmatmul.mubr.msk.bf16.gmra.mxu1 %vm436_vm1, %v8501_v40  ;;  %v1344_v40 = vshrl.u32 %v6498_v26, 16  ;;  %12190 = vst [vmem:[#allocation29_spill] sm:$0xff] %v9034_v3  ;;  %v1341_v34 = vor.u32 %v1340_v58, %v1337_v57  ;;  %v1362_v26 = vshrl.u32 %v6500_v15, 16  ;;  %12192 = vst [vmem:[#allocation31_spill] sm:$0xff] %v9065_v38  ;;  %v6501_v57 = vcombine.low %v1116_v55, %v1117_v24 }
  0x6f   :  { %7705 = vmatprep.mubr.msk.bf16.mxu1 %vm436_vm1, %v8967_v51 }
  0x70   :  { %v1346_v12 = vrot.slane %v1344_v40, 3  ;;  %v9068_v40 = vsel %vm1298_vm3, %v1332_v23, %v1341_v34  ;;  %v1364_v0 = vrot.slane %v1362_v26, 3  ;;  %v1371_v23 = vshrl.u32 %v6501_v57, 16  ;;  %v1122_v26 = vld [vmem:[%s11918_s0 + $0x5c] sm:$0xf] }
  0x71   :  { %12193 = vst [vmem:[#allocation32_spill] sm:$0xff] %v9068_v40  ;;  %v1374_v33 = vshll.u32 %v6501_v57, 16 }
  0x72   :  { %v1350_v62 = vor.u32 %v1349_v13, %v1346_v12  ;;  %v6502_v13 = vcombine.low %v1118_v1, %v1119_v20  ;;  %v1373_v57 = vrot.slane %v1371_v23, 3 }
  0x73   :  { %7584 = vmatmul.mubr.msk.bf16.gmra.mxu0 %vm436_vm1, %v8988_v7 }
  0x74   :  { %7647 = vmatprep.mubr.msk.bf16.mxu0 %vm436_vm1, %v8993_v17  ;;  %v9071_v58 = vsel %vm1298_vm3, %v1341_v34, %v1350_v62  ;;  %v1120_v34 = vld [vmem:[%s11918_s0 + $0x54] sm:$0xf] }
  0x75   :  { %12194 = vst [vmem:[#allocation33_spill] sm:$0xff] %v9071_v58 }
  0x76   :  { %7706 = vmatmul.mubr.msk.bf16.vlgmr.msra.gmra.mxu1 %vm436_vm1, %v8990_v8 }
  0x77   :  { %7820 = vmatpush3.bf16.msra.mxu1 %v2640_v18  ;;  %7709 = vmatprep.mubr.msk.bf16.mxu1 %vm436_vm1, %v8995_v31  ;;  %v1365_v18 = vshll.u32 %v6500_v15, 16  ;;  %v9073_v15 = vcombine.low %v1113_v22, %v1114_v46  ;;  %v1121_v22 = vld [vmem:[%s11918_s0 + $0x58] sm:$0xf]  ;;  %v1380_v46 = vshrl.u32 %v6502_v13, 16 }
  0x78   :  { %8464 = vmatprep.subr.msk.bf16.mxu1 %vm521_vm0, %v9006_v39 }
  0x79   :  { %v1367_v12 = vrot.slane %v1365_v18, 4  ;;  %12195 = vst [vmem:[#allocation34_spill] sm:$0xff] %v9073_v15  ;;  %v1123_v18 = vld [vmem:[%s11918_s0 + $0x60] sm:$0xf] }
  0x7b   :  { %7648 = vmatmul.mubr.msk.bf16.vlgmr.msra.gmra.mxu0 %vm436_vm1, %v9031_v53  ;;  %v1368_v60 = vor.u32 %v1367_v12, %v1364_v0  ;;  %v1376_v0 = vrot.slane %v1374_v33, 4  ;;  %v6503_v12 = vcombine.low %v1120_v34, %v1121_v22 }
  0x7c   :  { %7762 = vmatpush3.bf16.msra.mxu0 %v2381_v50  ;;  %7651 = vmatprep.mubr.msk.bf16.mxu0 %vm436_vm1, %v9034_v3  ;;  %v1358_v50 = vrot.slane %v1356_v63, 4  ;;  %v1383_v63 = vshll.u32 %v6502_v13, 16 }
  0x7d   :  { %8463 = vmatprep.subr.msk.bf16.mxu0 %vm521_vm0, %v9041_v19 }
  0x7e   :  { %7710 = vmatmul.mubr.msk.bf16.gmra.mxu1 %vm436_vm1, %v9026_v52  ;;  %v1359_v6 = vor.u32 %v1358_v50, %v1355_v41  ;;  %v9095_v41 = vcombine.low %v1115_v49, %v1116_v55  ;;  %v1377_v49 = vor.u32 %v1376_v0, %v1373_v57  ;;  %v1392_v55 = vshll.u32 %v6503_v12, 16 }
  0x7f   :  { %7713 = vmatprep.mubr.msk.bf16.mxu1 %vm436_vm1, %v9036_v21 }
  0x80   :  { %12196 = vst [vmem:[#allocation35_spill] sm:$0xff] %v9095_v41  ;;  %v9098_v50 = vsel %vm1298_vm3, %v1350_v62, %v1359_v6  ;;  %v9101_v13 = vsel %vm1298_vm3, %v1359_v6, %v1368_v60  ;;  %v1389_v62 = vshrl.u32 %v6503_v12, 16  ;;  %v1124_v6 = vld [vmem:[%s11918_s0 + $0x64] sm:$0xf]  ;;  %v1394_v0 = vrot.slane %v1392_v55, 4 }
  0x81   :  { %12197 = vst [vmem:[#allocation36_spill] sm:$0xff] %v9098_v50  ;;  %12198 = vst [vmem:[#allocation37_spill] sm:$0xff] %v9101_v13 }
  0x82   :  { %v1391_v57 = vrot.slane %v1389_v62, 3 }
  0x83   :  { %7652 = vmatmul.mubr.msk.bf16.gmra.mxu0 %vm436_vm1, %v9068_v40  ;;  %v9103_v40 = vcombine.low %v1117_v24, %v1118_v1  ;;  %v1125_v24 = vld [vmem:[%s11918_s0 + $0x68] sm:$0xf] }
  0x84   :  { %7655 = vmatprep.mubr.msk.bf16.mxu0 %vm436_vm1, %v9071_v58  ;;  %v6504_v58 = vcombine.low %v1122_v26, %v1123_v18  ;;  %v6505_v12 = vcombine.low %v1124_v6, %v1125_v24 }
  0x85   :  { %12199 = vst [vmem:[#allocation38_spill] sm:$0xff] %v9103_v40 }
  0x86   :  { %7714 = vmatmul.mubr.msk.bf16.gmra.mxu1 %vm436_vm1, %v9065_v38  ;;  %v1385_v38 = vrot.slane %v1383_v63, 4  ;;  %v1398_v1 = vshrl.u32 %v6504_v58, 16  ;;  %v1401_v33 = vshll.u32 %v6504_v58, 16  ;;  %v9128_v63 = vsel %vm1298_vm3, %v1368_v60, %v1377_v49 }
  0x87   :  { %7717 = vmatprep.mubr.msk.bf16.mxu1 %vm436_vm1, %v9073_v15  ;;  %v1382_v15 = vrot.slane %v1380_v46, 3  ;;  %v1126_v46 = vld [vmem:[%s11918_s0 + $0x6c] sm:$0xf]  ;;  %12201 = vst [vmem:[#allocation40_spill] sm:$0xff] %v9128_v63  ;;  %v1407_v60 = vshrl.u32 %v6505_v12, 16 }
  0x89   :  { %v1386_v23 = vor.u32 %v1385_v38, %v1382_v15  ;;  %v1127_v38 = vld [vmem:[%s11918_s0 + $0x70] sm:$0xf]  ;;  %v9125_v15 = vcombine.low %v1119_v20, %v1120_v34  ;;  %v1395_v20 = vor.u32 %v1394_v0, %v1391_v57  ;;  %v1410_v34 = vshll.u32 %v6505_v12, 16 }
  0x8a   :  { %v1409_v57 = vrot.slane %v1407_v60, 3 }
  0x8b   :  { %7656 = vmatmul.mubr.msk.bf16.gmra.mxu0 %vm436_vm1, %v9098_v50  ;;  %12200 = vst [vmem:[#allocation39_spill] sm:$0xff] %v9125_v15  ;;  %v9131_v58 = vsel %vm1298_vm3, %v1377_v49, %v1386_v23  ;;  %v9133_v50 = vcombine.low %v1121_v22, %v1122_v26  ;;  %v1128_v49 = vld [vmem:[%s11918_s0 + $0x74] sm:$0xf]  ;;  %v1129_v22 = vld [vmem:[%s11918_s0 + $0x78] sm:$0xf]  ;;  %v1412_v0 = vrot.slane %v1410_v34, 4 }
  0x8c   :  { %7659 = vmatprep.mubr.msk.bf16.mxu0 %vm436_vm1, %v9101_v13  ;;  %12202 = vst [vmem:[#allocation41_spill] sm:$0xff] %v9131_v58  ;;  %v6506_v13 = vcombine.low %v1126_v46, %v1127_v38  ;;  %v6507_v12 = vcombine.low %v1128_v49, %v1129_v22 }
  0x8d   :  { %12203 = vst [vmem:[#allocation42_spill] sm:$0xff] %v9133_v50 }
  0x8e   :  { %7718 = vmatmul.mubr.msk.bf16.gmra.mxu1 %vm436_vm1, %v9095_v41  ;;  %v1403_v41 = vrot.slane %v1401_v33, 4  ;;  %v1416_v26 = vshrl.u32 %v6506_v13, 16  ;;  %v1419_v55 = vshll.u32 %v6506_v13, 16  ;;  %v9158_v33 = vsel %vm1298_vm3, %v1386_v23, %v1395_v20 }
  0x8f   :  { %7721 = vmatprep.mubr.msk.bf16.mxu1 %vm436_vm1, %v9103_v40  ;;  %v1400_v40 = vrot.slane %v1398_v1, 3  ;;  %v1130_v1 = vld [vmem:[%s11918_s0 + $0x7c] sm:$0xf]  ;;  %12205 = vst [vmem:[#allocation44_spill] sm:$0xff] %v9158_v33  ;;  %v1425_v23 = vshrl.u32 %v6507_v12, 16 }
  0x91   :  { %v1404_v62 = vor.u32 %v1403_v41, %v1400_v40  ;;  %v1131_v40 = vld [vmem:[%s11918_s0 + $0x80] sm:$0xf]  ;;  %v9155_v41 = vcombine.low %v1123_v18, %v1124_v6  ;;  %v1413_v18 = vor.u32 %v1412_v0, %v1409_v57  ;;  %v1428_v6 = vshll.u32 %v6507_v12, 16 }
  0x92   :  { %v1427_v57 = vrot.slane %v1425_v23, 3 }
  0x93   :  { %7660 = vmatmul.mubr.msk.bf16.gmra.mxu0 %vm436_vm1, %v9128_v63  ;;  %12204 = vst [vmem:[#allocation43_spill] sm:$0xff] %v9155_v41  ;;  %v9161_v13 = vsel %vm1298_vm3, %v1395_v20, %v1404_v62  ;;  %v9163_v63 = vcombine.low %v1125_v24, %v1126_v46  ;;  %v1132_v20 = vld [vmem:[%s11918_s0 + $0x84] sm:$0xf]  ;;  %v1133_v24 = vld [vmem:[%s11918_s0 + $0x88] sm:$0xf]  ;;  %v1430_v0 = vrot.slane %v1428_v6, 4 }
  0x94   :  { %7663 = vmatprep.mubr.msk.bf16.mxu0 %vm436_vm1, %v9131_v58  ;;  %12206 = vst [vmem:[#allocation45_spill] sm:$0xff] %v9161_v13  ;;  %v6508_v58 = vcombine.low %v1130_v1, %v1131_v40  ;;  %v6509_v12 = vcombine.low %v1132_v20, %v1133_v24 }
  0x95   :  { %12207 = vst [vmem:[#allocation46_spill] sm:$0xff] %v9163_v63 }
  0x96   :  { %7722 = vmatmul.mubr.msk.bf16.gmra.mxu1 %vm436_vm1, %v9125_v15  ;;  %v1421_v15 = vrot.slane %v1419_v55, 4  ;;  %v1434_v46 = vshrl.u32 %v6508_v58, 16  ;;  %v1437_v34 = vshll.u32 %v6508_v58, 16  ;;  %v9188_v55 = vsel %vm1298_vm3, %v1404_v62, %v1413_v18 }
  0x97   :  { %7725 = vmatprep.mubr.msk.bf16.mxu1 %vm436_vm1, %v9133_v50  ;;  %v1418_v50 = vrot.slane %v1416_v26, 3  ;;  %v1134_v26 = vld [vmem:[%s11918_s0 + $0x8c] sm:$0xf]  ;;  %12209 = vst [vmem:[#allocation48_spill] sm:$0xff] %v9188_v55  ;;  %v1443_v62 = vshrl.u32 %v6509_v12, 16 }
  0x99   :  { %v1422_v60 = vor.u32 %v1421_v15, %v1418_v50  ;;  %v1135_v50 = vld [vmem:[%s11918_s0 + $0x90] sm:$0xf]  ;;  %v9185_v15 = vcombine.low %v1127_v38, %v1128_v49  ;;  %v1431_v38 = vor.u32 %v1430_v0, %v1427_v57  ;;  %v1446_v49 = vshll.u32 %v6509_v12, 16 }
  0x9a   :  { %v1445_v57 = vrot.slane %v1443_v62, 3 }
  0x9b   :  { %7664 = vmatmul.mubr.msk.bf16.gmra.mxu0 %vm436_vm1, %v9158_v33  ;;  %12208 = vst [vmem:[#allocation47_spill] sm:$0xff] %v9185_v15  ;;  %v9191_v58 = vsel %vm1298_vm3, %v1413_v18, %v1422_v60  ;;  %v9193_v33 = vcombine.low %v1129_v22, %v1130_v1  ;;  %v1136_v18 = vld [vmem:[%s11918_s0 + $0x94] sm:$0xf]  ;;  %v1137_v22 = vld [vmem:[%s11918_s0 + $0x98] sm:$0xf]  ;;  %v1448_v0 = vrot.slane %v1446_v49, 4 }
  0x9c   :  { %7667 = vmatprep.mubr.msk.bf16.mxu0 %vm436_vm1, %v9161_v13  ;;  %12210 = vst [vmem:[#allocation49_spill] sm:$0xff] %v9191_v58  ;;  %v6510_v13 = vcombine.low %v1134_v26, %v1135_v50  ;;  %v6511_v12 = vcombine.low %v1136_v18, %v1137_v22 }
  0x9d   :  { %12211 = vst [vmem:[#allocation50_spill] sm:$0xff] %v9193_v33 }
  0x9e   :  { %7726 = vmatmul.mubr.msk.bf16.gmra.mxu1 %vm436_vm1, %v9155_v41  ;;  %v1439_v41 = vrot.slane %v1437_v34, 4  ;;  %v1452_v1 = vshrl.u32 %v6510_v13, 16  ;;  %v1455_v6 = vshll.u32 %v6510_v13, 16  ;;  %v9218_v34 = vsel %vm1298_vm3, %v1422_v60, %v1431_v38 }
  0x9f   :  { %7729 = vmatprep.mubr.msk.bf16.mxu1 %vm436_vm1, %v9163_v63  ;;  %v1436_v63 = vrot.slane %v1434_v46, 3  ;;  %v1138_v46 = vld [vmem:[%s11918_s0 + $0x9c] sm:$0xf]  ;;  %12213 = vst [vmem:[#allocation52_spill] sm:$0xff] %v9218_v34  ;;  %v1461_v60 = vshrl.u32 %v6511_v12, 16 }
  0xa1   :  { %v1440_v23 = vor.u32 %v1439_v41, %v1436_v63  ;;  %v1139_v63 = vld [vmem:[%s11918_s0 + $0xa0] sm:$0xf]  ;;  %v9215_v41 = vcombine.low %v1131_v40, %v1132_v20  ;;  %v1449_v40 = vor.u32 %v1448_v0, %v1445_v57  ;;  %v1464_v20 = vshll.u32 %v6511_v12, 16 }
  0xa2   :  { %v1463_v57 = vrot.slane %v1461_v60, 3 }
  0xa3   :  { %7668 = vmatmul.mubr.msk.bf16.gmra.mxu0 %vm436_vm1, %v9188_v55  ;;  %12212 = vst [vmem:[#allocation51_spill] sm:$0xff] %v9215_v41  ;;  %v9221_v13 = vsel %vm1298_vm3, %v1431_v38, %v1440_v23  ;;  %v9223_v55 = vcombine.low %v1133_v24, %v1134_v26  ;;  %v1140_v38 = vld [vmem:[%s11918_s0 + $0xa4] sm:$0xf]  ;;  %v1141_v24 = vld [vmem:[%s11918_s0 + $0xa8] sm:$0xf]  ;;  %v1466_v0 = vrot.slane %v1464_v20, 4 }
  0xa4   :  { %7671 = vmatprep.mubr.msk.bf16.mxu0 %vm436_vm1, %v9191_v58  ;;  %12214 = vst [vmem:[#allocation53_spill] sm:$0xff] %v9221_v13  ;;  %v6512_v58 = vcombine.low %v1138_v46, %v1139_v63  ;;  %v6513_v12 = vcombine.low %v1140_v38, %v1141_v24 }
  0xa5   :  { %12215 = vst [vmem:[#allocation54_spill] sm:$0xff] %v9223_v55 }
  0xa6   :  { %7730 = vmatmul.mubr.msk.bf16.gmra.mxu1 %vm436_vm1, %v9185_v15  ;;  %v1457_v15 = vrot.slane %v1455_v6, 4  ;;  %v1470_v26 = vshrl.u32 %v6512_v58, 16  ;;  %v1473_v49 = vshll.u32 %v6512_v58, 16  ;;  %v9248_v6 = vsel %vm1298_vm3, %v1440_v23, %v1449_v40 }
  0xa7   :  { %7733 = vmatprep.mubr.msk.bf16.mxu1 %vm436_vm1, %v9193_v33  ;;  %v1454_v33 = vrot.slane %v1452_v1, 3  ;;  %v1142_v1 = vld [vmem:[%s11918_s0 + $0xac] sm:$0xf]  ;;  %12217 = vst [vmem:[#allocation56_spill] sm:$0xff] %v9248_v6  ;;  %v1479_v23 = vshrl.u32 %v6513_v12, 16 }
  0xa9   :  { %v1458_v62 = vor.u32 %v1457_v15, %v1454_v33  ;;  %v1143_v33 = vld [vmem:[%s11918_s0 + $0xb0] sm:$0xf]  ;;  %v9245_v15 = vcombine.low %v1135_v50, %v1136_v18  ;;  %v1467_v50 = vor.u32 %v1466_v0, %v1463_v57  ;;  %v1482_v18 = vshll.u32 %v6513_v12, 16 }
  0xaa   :  { %v1481_v57 = vrot.slane %v1479_v23, 3 }
  0xab   :  { %7672 = vmatmul.mubr.msk.bf16.gmra.mxu0 %vm436_vm1, %v9218_v34  ;;  %12216 = vst [vmem:[#allocation55_spill] sm:$0xff] %v9245_v15  ;;  %v9251_v58 = vsel %vm1298_vm3, %v1449_v40, %v1458_v62  ;;  %v9253_v34 = vcombine.low %v1137_v22, %v1138_v46  ;;  %v1144_v40 = vld [vmem:[%s11918_s0 + $0xb4] sm:$0xf]  ;;  %v1145_v22 = vld [vmem:[%s11918_s0 + $0xb8] sm:$0xf]  ;;  %v1484_v0 = vrot.slane %v1482_v18, 4 }
  0xac   :  { %7675 = vmatprep.mubr.msk.bf16.mxu0 %vm436_vm1, %v9221_v13  ;;  %12218 = vst [vmem:[#allocation57_spill] sm:$0xff] %v9251_v58  ;;  %v6514_v13 = vcombine.low %v1142_v1, %v1143_v33  ;;  %v6515_v12 = vcombine.low %v1144_v40, %v1145_v22 }
  0xad   :  { %12219 = vst [vmem:[#allocation58_spill] sm:$0xff] %v9253_v34 }
  0xae   :  { %7734 = vmatmul.mubr.msk.bf16.gmra.mxu1 %vm436_vm1, %v9215_v41  ;;  %v1475_v41 = vrot.slane %v1473_v49, 4  ;;  %v1488_v46 = vshrl.u32 %v6514_v13, 16  ;;  %v1491_v20 = vshll.u32 %v6514_v13, 16  ;;  %v9278_v49 = vsel %vm1298_vm3, %v1458_v62, %v1467_v50 }
  0xaf   :  { %7737 = vmatprep.mubr.msk.bf16.mxu1 %vm436_vm1, %v9223_v55  ;;  %v1472_v55 = vrot.slane %v1470_v26, 3  ;;  %v1146_v26 = vld [vmem:[%s11918_s0 + $0xbc] sm:$0xf]  ;;  %12221 = vst [vmem:[#allocation60_spill] sm:$0xff] %v9278_v49  ;;  %v1497_v62 = vshrl.u32 %v6515_v12, 16 }
  0xb1   :  { %v1476_v60 = vor.u32 %v1475_v41, %v1472_v55  ;;  %v1147_v55 = vld [vmem:[%s11918_s0 + $0xc0] sm:$0xf]  ;;  %v9275_v41 = vcombine.low %v1139_v63, %v1140_v38  ;;  %v1485_v63 = vor.u32 %v1484_v0, %v1481_v57  ;;  %v1500_v38 = vshll.u32 %v6515_v12, 16 }
  0xb2   :  { %v1499_v57 = vrot.slane %v1497_v62, 3 }
  0xb3   :  { %7676 = vmatmul.mubr.msk.bf16.gmra.mxu0 %vm436_vm1, %v9248_v6  ;;  %12220 = vst [vmem:[#allocation59_spill] sm:$0xff] %v9275_v41  ;;  %v9281_v13 = vsel %vm1298_vm3, %v1467_v50, %v1476_v60  ;;  %v9283_v6 = vcombine.low %v1141_v24, %v1142_v1  ;;  %v1148_v50 = vld [vmem:[%s11918_s0 + $0xc4] sm:$0xf]  ;;  %v1149_v24 = vld [vmem:[%s11918_s0 + $0xc8] sm:$0xf]  ;;  %v1502_v0 = vrot.slane %v1500_v38, 4 }
  0xb4   :  { %7679 = vmatprep.mubr.msk.bf16.mxu0 %vm436_vm1, %v9251_v58  ;;  %12222 = vst [vmem:[#allocation61_spill] sm:$0xff] %v9281_v13  ;;  %v6516_v58 = vcombine.low %v1146_v26, %v1147_v55  ;;  %v6517_v12 = vcombine.low %v1148_v50, %v1149_v24  ;;  %v1152_v38 = vld [vmem:[%s11918_s0 + $0xd4] sm:$0xf] }
  0xb5   :  { %12223 = vst [vmem:[#allocation62_spill] sm:$0xff] %v9283_v6 }
  0xb6   :  { %7738 = vmatmul.mubr.msk.bf16.gmra.mxu1 %vm436_vm1, %v9245_v15  ;;  %v1493_v15 = vrot.slane %v1491_v20, 4  ;;  %v1506_v1 = vshrl.u32 %v6516_v58, 16  ;;  %v1509_v18 = vshll.u32 %v6516_v58, 16  ;;  %v9308_v20 = vsel %vm1298_vm3, %v1476_v60, %v1485_v63 }
  0xb7   :  { %7741 = vmatprep.mubr.msk.bf16.mxu1 %vm436_vm1, %v9253_v34  ;;  %v1490_v34 = vrot.slane %v1488_v46, 3  ;;  %v1150_v46 = vld [vmem:[%s11918_s0 + $0xcc] sm:$0xf]  ;;  %12225 = vst [vmem:[#allocation64_spill] sm:$0xff] %v9308_v20  ;;  %v1515_v60 = vshrl.u32 %v6517_v12, 16 }
  0xb8   :  { %v9343_v3 = vcombine.low %v1149_v24, %v1150_v46 }
  0xb9   :  { %v1494_v23 = vor.u32 %v1493_v15, %v1490_v34  ;;  %v1151_v34 = vld [vmem:[%s11918_s0 + $0xd0] sm:$0xf]  ;;  %v9305_v15 = vcombine.low %v1143_v33, %v1144_v40  ;;  %v1503_v33 = vor.u32 %v1502_v0, %v1499_v57  ;;  %v1518_v40 = vshll.u32 %v6517_v12, 16 }
  0xba   :  { %v9335_v57 = vcombine.low %v1147_v55, %v1148_v50  ;;  %v1517_v12 = vrot.slane %v1515_v60, 3  ;;  %12231 = vst [vmem:[#allocation70_spill] sm:$0xff] %v9343_v3 }
  0xbb   :  { %7680 = vmatmul.mubr.msk.bf16.gmra.mxu0 %vm436_vm1, %v9278_v49  ;;  %12224 = vst [vmem:[#allocation63_spill] sm:$0xff] %v9305_v15  ;;  %v9311_v58 = vsel %vm1298_vm3, %v1485_v63, %v1494_v23  ;;  %v9313_v49 = vcombine.low %v1145_v22, %v1146_v26  ;;  %v1153_v22 = vld [vmem:[%s11918_s0 + $0xd8] sm:$0xf]  ;;  %v9338_v0 = vsel %vm1298_vm3, %v1494_v23, %v1503_v33 }
  0xbc   :  { %7683 = vmatprep.mubr.msk.bf16.mxu0 %vm436_vm1, %v9281_v13  ;;  %12226 = vst [vmem:[#allocation65_spill] sm:$0xff] %v9311_v58  ;;  %v6518_v13 = vcombine.low %v1150_v46, %v1151_v34  ;;  %12228 = vst [vmem:[#allocation67_spill] sm:$0xff] %v9335_v57 }
  0xbd   :  { %12227 = vst [vmem:[#allocation66_spill] sm:$0xff] %v9313_v49  ;;  %12229 = vst [vmem:[#allocation68_spill] sm:$0xff] %v9338_v0 }
  0xbe   :  { %7742 = vmatmul.mubr.msk.bf16.gmra.mxu1 %vm436_vm1, %v9275_v41  ;;  %v1511_v41 = vrot.slane %v1509_v18, 4  ;;  %v1524_v26 = vshrl.u32 %v6518_v13, 16  ;;  %v1154_v18 = vld [vmem:[%s11918_s0 + $0xdc] sm:$0xf] }
  0xbf   :  { %7745 = vmatprep.mubr.msk.bf16.mxu1 %vm436_vm1, %v9283_v6  ;;  %v1508_v6 = vrot.slane %v1506_v1, 3  ;;  %v1527_v1 = vshll.u32 %v6518_v13, 16  ;;  %v6519_v13 = vcombine.low %v1152_v38, %v1153_v22 }
  0xc1   :  { %v1512_v63 = vor.u32 %v1511_v41, %v1508_v6  ;;  %v1155_v6 = vld [vmem:[%s11918_s0 + $0xe0] sm:$0x1]  ;;  %v1529_v21 = vrot.slane %v1527_v1, 4  ;;  %v1533_v60 = vshrl.u32 %v6519_v13, 16 }
  0xc2   :  { %v6520_v52 = vcombine.low %v1154_v18, %v1155_v6 }
  0xc3   :  { %7684 = vmatmul.mubr.msk.bf16.gmra.mxu0 %vm436_vm1, %v9308_v20  ;;  %v1526_v20 = vrot.slane %v1524_v26, 3 }
  0xc4   :  { %7687 = vmatprep.mubr.msk.bf16.mxu0 %vm436_vm1, %v9311_v58  ;;  %v1542_v46 = vshrl.u32 %v6520_v52, 16  ;;  %v1545_v26 = vshll.u32 %v6520_v52, 16 }
  0xc5   :  { %v1530_v24 = vor.u32 %v1529_v21, %v1526_v20 }
  0xc6   :  { %v7591_v62 = vpop.f32.mrf.mxu1  ;;  %7746 = vmatmul.mubr.msk.bf16.gmra.mxu1 %vm436_vm1, %v9305_v15  ;;  %v1520_v15 = vrot.slane %v1518_v40, 4  ;;  %v1536_v40 = vshll.u32 %v6519_v13, 16  ;;  %v1544_v21 = vrot.slane %v1542_v46, 3  ;;  %v1547_v20 = vrot.slane %v1545_v26, 4 }
  0xc7   :  { %7749 = vmatprep.mubr.msk.bf16.mxu1 %vm436_vm1, %v9313_v49  ;;  %v9341_v49 = vsel %vm1298_vm3, %v1503_v33, %v1512_v63 }
  0xc8   :  { %v878_v41 = vpop.f32.mrf.mxu1  ;;  %12230 = vst [vmem:[#allocation69_spill] sm:$0xff] %v9341_v49  ;;  %v1521_v23 = vor.u32 %v1520_v15, %v1517_v12  ;;  %v1535_v12 = vrot.slane %v1533_v60, 3  ;;  %v1538_v13 = vrot.slane %v1536_v40, 4 }
  0xca   :  { %v7592_v58 = vpop.f32.mrf.mxu1  ;;  %v9360_v15 = vsel %vm1298_vm3, %v1512_v63, %v1521_v23  ;;  %v9365_v52 = vsel %vm1298_vm3, %v1521_v23, %v1530_v24 }
  0xcb   :  { %v7533_v53 = vpop.f32.mrf.mxu0  ;;  %7688 = vmatmul.mubr.msk.bf16.gmra.mxu0 %vm436_vm1, %v9338_v0  ;;  %12232 = vst [vmem:[#allocation71_spill] sm:$0xff] %v9360_v15  ;;  %12234 = vst [vmem:[#allocation73_spill] sm:$0xff] %v9365_v52 }
  0xcc   :  { %v881_v55 = vpop.f32.mrf.mxu1  ;;  %v9347_v50 = vadd.f32 %v7591_v62, %v7533_v53  ;;  %7691 = vmatprep.mubr.msk.bf16.mxu0 %vm436_vm1, %v9341_v49 }
  0xcd   :  { %v559_v33 = vpop.f32.mrf.mxu0 }
  0xce   :  { %v7595_v31 = vpop.f32.mrf.mxu1  ;;  %7750 = vmatmul.mubr.msk.bf16.gmra.mxu1 %vm436_vm1, %v9335_v57  ;;  %v9353_v1 = vadd.f32 %v878_v41, %v559_v33  ;;  %v9362_v57 = vcombine.low %v1151_v34, %v1152_v38  ;;  %v9369_v33 = vcombine.low %v1153_v22, %v1154_v18  ;;  %v1539_v34 = vor.u32 %v1538_v13, %v1535_v12 }
  0xcf   :  { %7753 = vmatprep.mubr.msk.bf16.mxu1 %vm436_vm1, %v9343_v3  ;;  %v7534_v53 = vpop.f32.mrf.mxu0 }
  0xd0   :  { %v894_v62 = vpop.f32.mrf.mxu1  ;;  %v9357_v0 = vadd.f32 %v7592_v58, %v7534_v53  ;;  %12233 = vst [vmem:[#allocation72_spill] sm:$0xff] %v9362_v57  ;;  %12235 = vst [vmem:[#allocation74_spill] sm:$0xff] %v9369_v33  ;;  %v9388_v40 = vsel %vm1298_vm3, %v1530_v24, %v1539_v34  ;;  %v9390_v53 = vcombine.low %v1155_v6, %v1155_v6 }
  0xd1   :  { %v562_v49 = vpop.f32.mrf.mxu0  ;;  %12237 = vst [vmem:[#allocation76_spill] sm:$0xff] %v9388_v40 }
  0xd2   :  { %v7596_v8 = vpop.f32.mrf.mxu1  ;;  %v9367_v41 = vadd.f32 %v881_v55, %v562_v49  ;;  %v9379_v49 = vor.u32 %v1547_v20, %v1544_v21  ;;  %12238 = vst [vmem:[#allocation77_spill] sm:$0xff] %v9390_v53 }
  0xd3   :  { %v7537_v58 = vpop.f32.mrf.mxu0  ;;  %7692 = vmatmul.mubr.msk.bf16.gmra.mxu0 %vm436_vm1, %v9360_v15 }
  0xd4   :  { %v897_v63 = vpop.f32.mrf.mxu1  ;;  %v9373_v60 = vadd.f32 %v7595_v31, %v7537_v58  ;;  %7695 = vmatprep.mubr.msk.bf16.mxu0 %vm436_vm1, %v9365_v52  ;;  %12236 = vst [vmem:[#allocation75_spill] sm:$0xff] %v9379_v49  ;;  %v9394_v12 = vsel %vm1298_vm3, %v1539_v34, %v9379_v49  ;;  %v8559_v58 = vld [vmem:[%s11918_s0] sm:$0xff]  }
  0xd5   :  { %v575_v38 = vpop.f32.mrf.mxu0  ;;  %12239 = vst [vmem:[#allocation78_spill] sm:$0xff] %v9394_v12 }
  0xd6   :  { %v7599_v23 = vpop.f32.mrf.mxu1  ;;  %7754 = vmatmul.mubr.msk.bf16.gmra.mxu1 %vm436_vm1, %v9362_v57  ;;  %v9381_v22 = vadd.f32 %v894_v62, %v575_v38 }
  0xd7   :  { %7757 = vmatprep.mubr.msk.bf16.mxu1 %vm436_vm1, %v9369_v33  ;;  %v7538_v18 = vpop.f32.mrf.mxu0 }
  0xd8   :  { %v910_v55 = vpop.f32.mrf.mxu1  ;;  %v9385_v31 = vadd.f32 %v7596_v8, %v7538_v18 }
  0xd9   :  { %v578_v46 = vpop.f32.mrf.mxu0 }
  0xda   :  { %v7600_v26 = vpop.f32.mrf.mxu1  ;;  %v9396_v62 = vadd.f32 %v897_v63, %v578_v46 }
  0xdb   :  { %v7541_v13 = vpop.f32.mrf.mxu0  ;;  %7696 = vmatmul.mubr.msk.bf16.gmra.mxu0 %vm436_vm1, %v9388_v40 }
  0xdc   :  { %v913_v21 = vpop.f32.mrf.mxu1  ;;  %v9400_v8 = vadd.f32 %v7599_v23, %v7541_v13  ;;  %7699 = vmatprep.mubr.msk.bf16.mxu0 %vm436_vm1, %v9394_v12 }
  0xdd   :  { %v591_v24 = vpop.f32.mrf.mxu0 }
  0xde   :  { %v7603_v20 = vpop.f32.mrf.mxu1  ;;  %7758 = vmatmul.mubr.msk.bf16.gmra.mxu1 %vm436_vm1, %v9390_v53  ;;  %v9406_v6 = vadd.f32 %v910_v55, %v591_v24  ;;  %v3217_v24 = vsel %vm521_vm0, %v9006_v39, 0  ;;  %v8561_v39 = vld [vmem:[%s11918_s0 + $0x10] sm:$0xff]  }
  0xdf   :  { %7821 = vmatprep.mubr.msk.bf16.mxu1 %vm436_vm1, %v8559_v58  ;;  %v7542_v63 = vpop.f32.mrf.mxu0 }
  0xe0   :  { %v926_v34 = vpop.f32.mrf.mxu1  ;;  %v9412_v38 = vadd.f32 %v7600_v26, %v7542_v63  ;;  %v9427_v26 = vld [vmem:[%s11917_s1 + $0x10] sm:$0x3]  ;;  %v8560_v63 = vld [vmem:[%s11918_s0 + $0x8] sm:$0xff]  }
  0xe1   :  { %v594_v23 = vpop.f32.mrf.mxu0 }
  0xe2   :  { %v7604_v18 = vpop.f32.mrf.mxu1  ;;  %v9414_v46 = vadd.f32 %v913_v21, %v594_v23 }
  0xe3   :  { %v7545_v13 = vpop.f32.mrf.mxu0  ;;  %7700 = vmatmul.mubr.msk.bf16.gmra.mxu0 %vm436_vm1, %v9379_v49 }
  0xe4   :  { %v929_v55 = vpop.f32.mrf.mxu1  ;;  %v9420_v53 = vadd.f32 %v7603_v20, %v7545_v13  ;;  %7763 = vmatprep.mubr.msk.bf16.mxu0 %vm436_vm1, %v8706_v27 }
  0xe5   :  { %v607_v21 = vpop.f32.mrf.mxu0 }
  0xe6   :  { %v7607_v58 = vpop.f32.mrf.mxu1  ;;  %7822 = vmatmul.mubr.msk.bf16.vlgmr.msra.gmra.mxu1 %vm436_vm1, %v8560_v63  ;;  %v9433_v23 = vadd.f32 %v926_v34, %v607_v21  ;;  %v2901_v34 = vsel %vm521_vm0, %v9041_v19, 0 }
  0xe7   :  { %7936 = vmatpush3.bf16.msra.mxu1 %v3217_v24  ;;  %7825 = vmatprep.mubr.msk.bf16.mxu1 %vm436_vm1, %v8561_v39  ;;  %v7546_v20 = vpop.f32.mrf.mxu0  ;;  %v9450_v24 = vld [vmem:[%s11917_s1 + $0x12] sm:$0x3] }
  0xe8   :  { %v942_v13 = vpop.f32.mrf.mxu1  ;;  %8466 = vmatprep.subr.msk.bf16.mxu1 %vm521_vm0, %v9427_v26  ;;  %v9441_v27 = vadd.f32 %v7604_v18, %v7546_v20 }
  0xe9   :  { %v610_v49 = vpop.f32.mrf.mxu0 }
  0xea   :  { %v7608_v12 = vpop.f32.mrf.mxu1  ;;  %v9445_v21 = vadd.f32 %v929_v55, %v610_v49  ;;  %v8562_v49 = vld [vmem:[%s11918_s0 + $0x18] sm:$0xff]  }
  0xeb   :  { %v7549_v63 = vpop.f32.mrf.mxu0  ;;  %7764 = vmatmul.mubr.msk.bf16.vlgmr.msra.gmra.mxu0 %vm436_vm1, %v8709_v28 }
  0xec   :  { %v945_v39 = vpop.f32.mrf.mxu1  ;;  %v9454_v40 = vadd.f32 %v7607_v58, %v7549_v63  ;;  %7878 = vmatpush3.bf16.msra.mxu0 %v2901_v34  ;;  %7767 = vmatprep.mubr.msk.bf16.mxu0 %vm436_vm1, %v8719_v36  ;;  %v8563_v58 = vld [vmem:[%s11918_s0 + $0x20] sm:$0xff]  }
  0xed   :  { %v623_v18 = vpop.f32.mrf.mxu0  ;;  %8465 = vmatprep.subr.msk.bf16.mxu0 %vm521_vm0, %v9450_v24 }
  0xee   :  { %v7611_v19 = vpop.f32.mrf.mxu1  ;;  %7826 = vmatmul.mubr.msk.bf16.gmra.mxu1 %vm436_vm1, %v8562_v49  ;;  %v9464_v55 = vadd.f32 %v942_v13, %v623_v18 }
  0xef   :  { %7829 = vmatprep.mubr.msk.bf16.mxu1 %vm436_vm1, %v8563_v58  ;;  %v7550_v20 = vpop.f32.mrf.mxu0 }
  0xf0   :  { %v958_v34 = vpop.f32.mrf.mxu1  ;;  %v9470_v63 = vadd.f32 %v7608_v12, %v7550_v20  ;;  %v8564_v12 = vld [vmem:[%s11918_s0 + $0x28] sm:$0xff]  }
  0xf1   :  { %v626_v36 = vpop.f32.mrf.mxu0 }
  0xf2   :  { %v7612_v28 = vpop.f32.mrf.mxu1  ;;  %v9472_v33 = vadd.f32 %v945_v39, %v626_v36  ;;  %v8565_v39 = vld [vmem:[%s11918_s0 + $0x30] sm:$0xff]  }
  0xf3   :  { %v7553_v49 = vpop.f32.mrf.mxu0  ;;  %7768 = vmatmul.mubr.msk.bf16.gmra.mxu0 %vm436_vm1, %v8729_v42 }
  0xf4   :  { %v961_v13 = vpop.f32.mrf.mxu1  ;;  %v9476_v18 = vadd.f32 %v7611_v19, %v7553_v49  ;;  %7771 = vmatprep.mubr.msk.bf16.mxu0 %vm436_vm1, %v8732_v44 }
  0xf5   :  { %v639_v57 = vpop.f32.mrf.mxu0 }
  0xf6   :  { %v7615_v58 = vpop.f32.mrf.mxu1  ;;  %7830 = vmatmul.mubr.msk.bf16.gmra.mxu1 %vm436_vm1, %v8564_v12  ;;  %v9484_v36 = vadd.f32 %v958_v34, %v639_v57 }
  0xf7   :  { %7833 = vmatprep.mubr.msk.bf16.mxu1 %vm436_vm1, %v8565_v39  ;;  %v7554_v19 = vpop.f32.mrf.mxu0 }
  0xf8   :  { %v974_v20 = vpop.f32.mrf.mxu1  ;;  %v9490_v49 = vadd.f32 %v7612_v28, %v7554_v19  ;;  %v8566_v28 = vld [vmem:[%s11918_s0 + $0x38] sm:$0xff]  }
  0xf9   :  { %v642_v44 = vpop.f32.mrf.mxu0 }
  0xfa   :  { %v7616_v42 = vpop.f32.mrf.mxu1  ;;  %v9492_v52 = vadd.f32 %v961_v13, %v642_v44  ;;  %v8567_v13 = vld [vmem:[%s11918_s0 + $0x40] sm:$0xff]  }
  0xfb   :  { %v7557_v15 = vpop.f32.mrf.mxu0  ;;  %7772 = vmatmul.mubr.msk.bf16.gmra.mxu0 %vm436_vm1, %v8747_v54 }
  0xfc   :  { %v977_v57 = vpop.f32.mrf.mxu1  ;;  %v9496_v34 = vadd.f32 %v7615_v58, %v7557_v15  ;;  %7775 = vmatprep.mubr.msk.bf16.mxu0 %vm436_vm1, %v8750_v56 }
  0xfd   :  { %v655_v12 = vpop.f32.mrf.mxu0 }
  0xfe   :  { %12240 = vst [vmem:[#allocation79_spill] sm:$0xff] %v9496_v34  ;;  %v7619_v39 = vpop.f32.mrf.mxu1  ;;  %7834 = vmatmul.mubr.msk.bf16.gmra.mxu1 %vm436_vm1, %v8566_v28  ;;  %v9504_v44 = vadd.f32 %v974_v20, %v655_v12 }
  0xff   :  { %7837 = vmatprep.mubr.msk.bf16.mxu1 %vm436_vm1, %v8567_v13  ;;  %v7558_v15 = vpop.f32.mrf.mxu0 }
 0x100   :  { %v990_v58 = vpop.f32.mrf.mxu1  ;;  %v9510_v19 = vadd.f32 %v7616_v42, %v7558_v15  ;;  %v8568_v42 = vld [vmem:[%s11918_s0 + $0x48] sm:$0xff]  }
 0x101   :  { %v658_v56 = vpop.f32.mrf.mxu0 }
 0x102   :  { %v7620_v54 = vpop.f32.mrf.mxu1  ;;  %v9512_v3 = vadd.f32 %v977_v57, %v658_v56  ;;  %v8569_v57 = vld [vmem:[%s11918_s0 + $0x50] sm:$0xff]  }
 0x103   :  { %v7561_v34 = vpop.f32.mrf.mxu0  ;;  %7776 = vmatmul.mubr.msk.bf16.gmra.mxu0 %vm436_vm1, %v8765_v2 }
 0x104   :  { %12241 = vst [vmem:[#allocation80_spill] sm:$0xff] %v9512_v3  ;;  %v993_v20 = vpop.f32.mrf.mxu1  ;;  %v9516_v12 = vadd.f32 %v7619_v39, %v7561_v34  ;;  %7779 = vmatprep.mubr.msk.bf16.mxu0 %vm436_vm1, %v8768_v4 }
 0x105   :  { %v671_v28 = vpop.f32.mrf.mxu0 }
 0x106   :  { %12242 = vst [vmem:[#allocation81_spill] sm:$0xff] %v9516_v12  ;;  %v7623_v13 = vpop.f32.mrf.mxu1  ;;  %7838 = vmatmul.mubr.msk.bf16.gmra.mxu1 %vm436_vm1, %v8568_v42  ;;  %v9524_v56 = vadd.f32 %v990_v58, %v671_v28 }
 0x107   :  { %7841 = vmatprep.mubr.msk.bf16.mxu1 %vm436_vm1, %v8569_v57  ;;  %v7562_v34 = vpop.f32.mrf.mxu0 }
 0x108   :  { %v1006_v39 = vpop.f32.mrf.mxu1  ;;  %v9530_v15 = vadd.f32 %v7620_v54, %v7562_v34  ;;  %v8570_v54 = vld [vmem:[%s11918_s0 + $0x58] sm:$0xff]  }
 0x109   :  { %v674_v4 = vpop.f32.mrf.mxu0 }
 0x10a   :  { %v7624_v2 = vpop.f32.mrf.mxu1  ;;  %v9532_v12 = vadd.f32 %v993_v20, %v674_v4  ;;  %v8571_v20 = vld [vmem:[%s11918_s0 + $0x60] sm:$0xff]  }
 0x10b   :  { %v7565_v3 = vpop.f32.mrf.mxu0  ;;  %7780 = vmatmul.mubr.msk.bf16.gmra.mxu0 %vm436_vm1, %v8783_v14 }
 0x10c   :  { %12243 = vst [vmem:[#allocation82_spill] sm:$0xff] %v9532_v12  ;;  %v1009_v58 = vpop.f32.mrf.mxu1  ;;  %v9536_v28 = vadd.f32 %v7623_v13, %v7565_v3  ;;  %7783 = vmatprep.mubr.msk.bf16.mxu0 %vm436_vm1, %v8786_v16 }
 0x10d   :  { %v687_v42 = vpop.f32.mrf.mxu0 }
 0x10e   :  { %12244 = vst [vmem:[#allocation83_spill] sm:$0xff] %v9536_v28  ;;  %v7627_v57 = vpop.f32.mrf.mxu1  ;;  %7842 = vmatmul.mubr.msk.bf16.gmra.mxu1 %vm436_vm1, %v8570_v54  ;;  %v9544_v4 = vadd.f32 %v1006_v39, %v687_v42 }
 0x10f   :  { %7845 = vmatprep.mubr.msk.bf16.mxu1 %vm436_vm1, %v8571_v20  ;;  %v7566_v3 = vpop.f32.mrf.mxu0 }
 0x110   :  { %v1022_v13 = vpop.f32.mrf.mxu1  ;;  %v9550_v34 = vadd.f32 %v7624_v2, %v7566_v3  ;;  %v8572_v2 = vld [vmem:[%s11918_s0 + $0x68] sm:$0xff]  }
 0x111   :  { %v690_v16 = vpop.f32.mrf.mxu0 }
 0x112   :  { %v7628_v14 = vpop.f32.mrf.mxu1  ;;  %v9552_v28 = vadd.f32 %v1009_v58, %v690_v16  ;;  %v8573_v58 = vld [vmem:[%s11918_s0 + $0x70] sm:$0xff]  }
 0x113   :  { %v7569_v12 = vpop.f32.mrf.mxu0  ;;  %7784 = vmatmul.mubr.msk.bf16.gmra.mxu0 %vm436_vm1, %v8815_v30 }
 0x114   :  { %12245 = vst [vmem:[#allocation84_spill] sm:$0xff] %v9552_v28  ;;  %v1025_v39 = vpop.f32.mrf.mxu1  ;;  %v9556_v42 = vadd.f32 %v7627_v57, %v7569_v12  ;;  %7787 = vmatprep.mubr.msk.bf16.mxu0 %vm436_vm1, %v8818_v32 }
 0x115   :  { %v703_v54 = vpop.f32.mrf.mxu0 }
 0x116   :  { %12246 = vst [vmem:[#allocation85_spill] sm:$0xff] %v9556_v42  ;;  %v7631_v20 = vpop.f32.mrf.mxu1  ;;  %7846 = vmatmul.mubr.msk.bf16.gmra.mxu1 %vm436_vm1, %v8572_v2  ;;  %v9564_v16 = vadd.f32 %v1022_v13, %v703_v54 }
 0x117   :  { %7849 = vmatprep.mubr.msk.bf16.mxu1 %vm436_vm1, %v8573_v58  ;;  %v7570_v12 = vpop.f32.mrf.mxu0 }
 0x118   :  { %v1038_v57 = vpop.f32.mrf.mxu1  ;;  %v9570_v3 = vadd.f32 %v7628_v14, %v7570_v12  ;;  %v8574_v14 = vld [vmem:[%s11918_s0 + $0x78] sm:$0xff]  }
 0x119   :  { %v706_v32 = vpop.f32.mrf.mxu0 }
 0x11a   :  { %v7632_v30 = vpop.f32.mrf.mxu1  ;;  %v9572_v42 = vadd.f32 %v1025_v39, %v706_v32  ;;  %v8575_v39 = vld [vmem:[%s11918_s0 + $0x80] sm:$0xff]  }
 0x11b   :  { %v7573_v28 = vpop.f32.mrf.mxu0  ;;  %7788 = vmatmul.mubr.msk.bf16.gmra.mxu0 %vm436_vm1, %v8833_v45 }
 0x11c   :  { %12247 = vst [vmem:[#allocation86_spill] sm:$0xff] %v9572_v42  ;;  %v1041_v13 = vpop.f32.mrf.mxu1  ;;  %v9576_v54 = vadd.f32 %v7631_v20, %v7573_v28  ;;  %7791 = vmatprep.mubr.msk.bf16.mxu0 %vm436_vm1, %v8836_v47 }
 0x11d   :  { %v719_v2 = vpop.f32.mrf.mxu0 }
 0x11e   :  { %12248 = vst [vmem:[#allocation87_spill] sm:$0xff] %v9576_v54  ;;  %v7635_v58 = vpop.f32.mrf.mxu1  ;;  %7850 = vmatmul.mubr.msk.bf16.gmra.mxu1 %vm436_vm1, %v8574_v14  ;;  %v9584_v32 = vadd.f32 %v1038_v57, %v719_v2 }
 0x11f   :  { %7853 = vmatprep.mubr.msk.bf16.mxu1 %vm436_vm1, %v8575_v39  ;;  %v7574_v28 = vpop.f32.mrf.mxu0 }
 0x120   :  { %v1054_v20 = vpop.f32.mrf.mxu1  ;;  %v9590_v12 = vadd.f32 %v7632_v30, %v7574_v28  ;;  %v8576_v30 = vld [vmem:[%s11918_s0 + $0x88] sm:$0xff]  }
 0x121   :  { %v722_v47 = vpop.f32.mrf.mxu0 }
 0x122   :  { %v7636_v45 = vpop.f32.mrf.mxu1  ;;  %v9592_v54 = vadd.f32 %v1041_v13, %v722_v47  ;;  %v8577_v13 = vld [vmem:[%s11918_s0 + $0x90] sm:$0xff]  }
 0x123   :  { %v7577_v42 = vpop.f32.mrf.mxu0  ;;  %7792 = vmatmul.mubr.msk.bf16.gmra.mxu0 %vm436_vm1, %v8851_v59 }
 0x124   :  { %12249 = vst [vmem:[#allocation88_spill] sm:$0xff] %v9592_v54  ;;  %v1057_v57 = vpop.f32.mrf.mxu1  ;;  %v9596_v2 = vadd.f32 %v7635_v58, %v7577_v42  ;;  %7795 = vmatprep.mubr.msk.bf16.mxu0 %vm436_vm1, %v8854_v61 }
 0x125   :  { %v735_v14 = vpop.f32.mrf.mxu0 }
 0x126   :  { %12250 = vst [vmem:[#allocation89_spill] sm:$0xff] %v9596_v2  ;;  %v7639_v39 = vpop.f32.mrf.mxu1  ;;  %7854 = vmatmul.mubr.msk.bf16.gmra.mxu1 %vm436_vm1, %v8576_v30  ;;  %v9604_v47 = vadd.f32 %v1054_v20, %v735_v14 }
 0x127   :  { %7857 = vmatprep.mubr.msk.bf16.mxu1 %vm436_vm1, %v8577_v13  ;;  %v7578_v42 = vpop.f32.mrf.mxu0 }
 0x128   :  { %v1070_v58 = vpop.f32.mrf.mxu1  ;;  %v9610_v28 = vadd.f32 %v7636_v45, %v7578_v42  ;;  %v8578_v45 = vld [vmem:[%s11918_s0 + $0x98] sm:$0xff]  }
 0x129   :  { %v738_v61 = vpop.f32.mrf.mxu0 }
 0x12a   :  { %v7640_v59 = vpop.f32.mrf.mxu1  ;;  %v9612_v2 = vadd.f32 %v1057_v57, %v738_v61  ;;  %v8579_v57 = vld [vmem:[%s11918_s0 + $0xa0] sm:$0xff]  }
 0x12b   :  { %v7581_v54 = vpop.f32.mrf.mxu0  ;;  %7796 = vmatmul.mubr.msk.bf16.gmra.mxu0 %vm436_vm1, %v8869_v9 }
 0x12c   :  { %12251 = vst [vmem:[#allocation90_spill] sm:$0xff] %v9612_v2  ;;  %v1073_v20 = vpop.f32.mrf.mxu1  ;;  %v9616_v14 = vadd.f32 %v7639_v39, %v7581_v54  ;;  %7799 = vmatprep.mubr.msk.bf16.mxu0 %vm436_vm1, %v8872_v11 }
 0x12d   :  { %v751_v30 = vpop.f32.mrf.mxu0 }
 0x12e   :  { %12252 = vst [vmem:[#allocation91_spill] sm:$0xff] %v9616_v14  ;;  %v7643_v13 = vpop.f32.mrf.mxu1  ;;  %7858 = vmatmul.mubr.msk.bf16.gmra.mxu1 %vm436_vm1, %v8578_v45  ;;  %v9624_v61 = vadd.f32 %v1070_v58, %v751_v30 }
 0x12f   :  { %7861 = vmatprep.mubr.msk.bf16.mxu1 %vm436_vm1, %v8579_v57  ;;  %v7582_v54 = vpop.f32.mrf.mxu0 }
 0x130   :  { %v1086_v39 = vpop.f32.mrf.mxu1  ;;  %v9630_v42 = vadd.f32 %v7640_v59, %v7582_v54  ;;  %v8580_v59 = vld [vmem:[%s11918_s0 + $0xa8] sm:$0xff]  }
 0x131   :  { %v754_v11 = vpop.f32.mrf.mxu0 }
 0x132   :  { %v7644_v9 = vpop.f32.mrf.mxu1  ;;  %v9632_v14 = vadd.f32 %v1073_v20, %v754_v11  ;;  %v8581_v11 = vld [vmem:[%s11918_s0 + $0xb0] sm:$0xff]  }
 0x133   :  { %v7585_v2 = vpop.f32.mrf.mxu0  ;;  %7800 = vmatmul.mubr.msk.bf16.gmra.mxu0 %vm436_vm1, %v8887_v25 }
 0x134   :  { %12253 = vst [vmem:[#allocation92_spill] sm:$0xff] %v9632_v14  ;;  %v1089_v58 = vpop.f32.mrf.mxu1  ;;  %v9636_v30 = vadd.f32 %v7643_v13, %v7585_v2  ;;  %7803 = vmatprep.mubr.msk.bf16.mxu0 %vm436_vm1, %v8890_v29 }
 0x135   :  { %v767_v45 = vpop.f32.mrf.mxu0 }
 0x136   :  { %12254 = vst [vmem:[#allocation93_spill] sm:$0xff] %v9636_v30  ;;  %v7707_v57 = vpop.f32.mrf.mxu1  ;;  %7862 = vmatmul.mubr.msk.bf16.gmra.mxu1 %vm436_vm1, %v8580_v59  ;;  %v9644_v9 = vadd.f32 %v1086_v39, %v767_v45 }
 0x137   :  { %7865 = vmatprep.mubr.msk.bf16.mxu1 %vm436_vm1, %v8581_v11  ;;  %v7586_v2 = vpop.f32.mrf.mxu0  ;;  %v8582_v11 = vld [vmem:[%s11918_s0 + $0xb8] sm:$0xff]  }
 0x138   :  { %12255 = vst [vmem:[#allocation94_spill] sm:$0xff] %v9644_v9  ;;  %v2099_v20 = vpop.f32.mrf.mxu1 }
 0x139   :  { %v770_v13 = vpop.f32.mrf.mxu0 }
 0x13a   :  { %v7708_v54 = vpop.f32.mrf.mxu1  ;;  %v9650_v29 = vadd.f32 %v1089_v58, %v770_v13  ;;  %v8583_v13 = vld [vmem:[%s11918_s0 + $0xc0] sm:$0xff]  }
 0x13b   :  { %v7649_v25 = vpop.f32.mrf.mxu0  ;;  %7804 = vmatmul.mubr.msk.bf16.gmra.mxu0 %vm436_vm1, %v8905_v43 }
 0x13c   :  { %12256 = vst [vmem:[#allocation95_spill] sm:$0xff] %v9650_v29  ;;  %v2102_v30 = vpop.f32.mrf.mxu1  ;;  %v1895_v39 = vadd.f32 %v7649_v25, %v9347_v50  ;;  %7807 = vmatprep.mubr.msk.bf16.mxu0 %vm436_vm1, %v8908_v48 }
 0x13d   :  { %v1671_v45 = vpop.f32.mrf.mxu0 }
 0x13e   :  { %v7711_v59 = vpop.f32.mrf.mxu1  ;;  %7866 = vmatmul.mubr.msk.bf16.gmra.mxu1 %vm436_vm1, %v8582_v11  ;;  %v9661_v58 = vadd.f32 %v7707_v57, %v1895_v39  ;;  %v1893_v2 = vadd.f32 %v1671_v45, %v9353_v1 }
 0x13f   :  { %7869 = vmatprep.mubr.msk.bf16.mxu1 %vm436_vm1, %v8583_v13  ;;  %v7650_v25 = vpop.f32.mrf.mxu0 }
 0x140   :  { %v2115_v50 = vpop.f32.mrf.mxu1  ;;  %v9668_v48 = vadd.f32 %v2099_v20, %v1893_v2  ;;  %v1896_v43 = vadd.f32 %v7650_v25, %v9357_v0 }
 0x141   :  { %v1674_v29 = vpop.f32.mrf.mxu0 }
 0x142   :  { %v7712_v9 = vpop.f32.mrf.mxu1  ;;  %v9671_v14 = vadd.f32 %v7708_v54, %v1896_v43  ;;  %v1894_v57 = vadd.f32 %v1674_v29, %v9367_v41  ;;  %v8584_v43 = vld [vmem:[%s11918_s0 + $0xc8] sm:$0xff]  }
 0x143   :  { %v7653_v39 = vpop.f32.mrf.mxu0  ;;  %7808 = vmatmul.mubr.msk.bf16.gmra.mxu0 %vm436_vm1, %v8935_v5 }
 0x144   :  { %v2118_v1 = vpop.f32.mrf.mxu1  ;;  %v9676_v45 = vadd.f32 %v2102_v30, %v1894_v57  ;;  %v1899_v11 = vadd.f32 %v7653_v39, %v9373_v60  ;;  %7811 = vmatprep.mubr.msk.bf16.mxu0 %vm436_vm1, %v8938_v10  ;;  %v8585_v30 = vld [vmem:[%s11918_s0 + $0xd0] sm:$0xff]  }
 0x145   :  { %v1687_v20 = vpop.f32.mrf.mxu0 }
 0x146   :  { %v7715_v0 = vpop.f32.mrf.mxu1  ;;  %7870 = vmatmul.mubr.msk.bf16.gmra.mxu1 %vm436_vm1, %v8584_v43  ;;  %v9685_v29 = vadd.f32 %v7711_v59, %v1899_v11  ;;  %v1897_v41 = vadd.f32 %v1687_v20, %v9381_v22 }
 0x147   :  { %7873 = vmatprep.mubr.msk.bf16.mxu1 %vm436_vm1, %v8585_v30  ;;  %v7654_v60 = vpop.f32.mrf.mxu0 }
 0x148   :  { %v2131_v54 = vpop.f32.mrf.mxu1  ;;  %v9692_v2 = vadd.f32 %v2115_v50, %v1897_v41  ;;  %v1900_v13 = vadd.f32 %v7654_v60, %v9385_v31 }
 0x149   :  { %v1690_v25 = vpop.f32.mrf.mxu0 }
 0x14a   :  { %v7716_v57 = vpop.f32.mrf.mxu1  ;;  %v9695_v39 = vadd.f32 %v7712_v9, %v1900_v13  ;;  %v1898_v59 = vadd.f32 %v1690_v25, %v9396_v62  ;;  %v8586_v9 = vld [vmem:[%s11918_s0 + $0xd8] ss:$0 sps:$4 sm:$0x11]  }
 0x14b   :  { %v7657_v11 = vpop.f32.mrf.mxu0  ;;  %7812 = vmatmul.mubr.msk.bf16.gmra.mxu0 %vm436_vm1, %v8959_v35 }
 0x14c   :  { %v2134_v22 = vpop.f32.mrf.mxu1  ;;  %v9700_v20 = vadd.f32 %v2118_v1, %v1898_v59  ;;  %v1903_v43 = vadd.f32 %v7657_v11, %v9400_v8  ;;  %7815 = vmatprep.mubr.msk.bf16.mxu0 %vm436_vm1, %v8962_v37 }
 0x14d   :  { %v1703_v50 = vpop.f32.mrf.mxu0 }
 0x14e   :  { %v7719_v31 = vpop.f32.mrf.mxu1  ;;  %7874 = vmatmul.mubr.msk.bf16.gmra.mxu1 %vm436_vm1, %v8586_v9  ;;  %v9709_v62 = vadd.f32 %v7715_v0, %v1903_v43  ;;  %v1901_v41 = vadd.f32 %v1703_v50, %v9406_v6  ;;  %v3849_v0 = vsel %vm521_vm0, %v9427_v26, 0  ;;  %v12257_v50 = vld [vmem:[#allocation25_spill] sm:$0xff] }
 0x14f   :  { %7937 = vmatprep.mubr.msk.bf16.mxu1 %vm436_vm1, %v8967_v51  ;;  %v7658_v1 = vpop.f32.mrf.mxu0 }
 0x150   :  { %v2147_v8 = vpop.f32.mrf.mxu1  ;;  %v9714_v30 = vadd.f32 %v2131_v54, %v1901_v41  ;;  %v1904_v60 = vadd.f32 %v7658_v1, %v9412_v38  ;;  %v9732_v38 = vld [vmem:[%s11917_s1 + $0x16] sm:$0x3] }
 0x151   :  { %v1706_v13 = vpop.f32.mrf.mxu0 }
 0x152   :  { %v7720_v25 = vpop.f32.mrf.mxu1  ;;  %v9717_v59 = vadd.f32 %v7716_v57, %v1904_v60  ;;  %v1902_v11 = vadd.f32 %v1706_v13, %v9414_v46 }
 0x153   :  { %v7661_v9 = vpop.f32.mrf.mxu0  ;;  %7816 = vmatmul.mubr.msk.bf16.gmra.mxu0 %vm436_vm1, %v8988_v7 }
 0x154   :  { %v2150_v6 = vpop.f32.mrf.mxu1  ;;  %v9724_v43 = vadd.f32 %v2134_v22, %v1902_v11  ;;  %v1907_v54 = vadd.f32 %v7661_v9, %v9420_v53  ;;  %7879 = vmatprep.mubr.msk.bf16.mxu0 %vm436_vm1, %v8993_v17  ;;  %v12259_v22 = vld [vmem:[#allocation26_spill] sm:$0xff] }
 0x155   :  { %v1719_v46 = vpop.f32.mrf.mxu0 }
 0x156   :  { %v7723_v57 = vpop.f32.mrf.mxu1  ;;  %7938 = vmatmul.mubr.msk.bf16.vlgmr.msra.gmra.mxu1 %vm436_vm1, %v12257_v50  ;;  %v9736_v41 = vadd.f32 %v7719_v31, %v1907_v54  ;;  %v1905_v26 = vadd.f32 %v1719_v46, %v9433_v23  ;;  %v3590_v31 = vsel %vm521_vm0, %v9450_v24, 0  ;;  %v12264_v24 = vld [vmem:[#allocation29_spill] sm:$0xff] }
 0x157   :  { %8052 = vmatpush3.bf16.msra.mxu1 %v3849_v0  ;;  %7941 = vmatprep.mubr.msk.bf16.mxu1 %vm436_vm1, %v12259_v22  ;;  %v7662_v53 = vpop.f32.mrf.mxu0  ;;  %v9754_v0 = vld [vmem:[%s11917_s1 + $0x14] sm:$0x3] }
 0x158   :  { %12258 = vst [vmem:[#allocation25_spill] sm:$0xff] %v9736_v41  ;;  %v2163_v1 = vpop.f32.mrf.mxu1  ;;  %8468 = vmatprep.subr.msk.bf16.mxu1 %vm521_vm0, %v9732_v38  ;;  %v9743_v60 = vadd.f32 %v2147_v8, %v1905_v26  ;;  %v1908_v13 = vadd.f32 %v7662_v53, %v9441_v27  ;;  %v12262_v41 = vld [vmem:[#allocation28_spill] sm:$0xff]  ;;  %v12265_v53 = vld [vmem:[#allocation27_spill] sm:$0xff] }
 0x159   :  { %v1722_v11 = vpop.f32.mrf.mxu0 }
 0x15a   :  { %12260 = vst [vmem:[#allocation26_spill] sm:$0xff] %v9743_v60  ;;  %v7724_v9 = vpop.f32.mrf.mxu1  ;;  %v9748_v54 = vadd.f32 %v7720_v25, %v1908_v13  ;;  %v1906_v23 = vadd.f32 %v1722_v11, %v9445_v21 }
 0x15b   :  { %v7665_v46 = vpop.f32.mrf.mxu0  ;;  %7880 = vmatmul.mubr.msk.bf16.vlgmr.msra.gmra.mxu0 %vm436_vm1, %v12262_v41 }
 0x15c   :  { %12261 = vst [vmem:[#allocation96_spill] sm:$0xff] %v9748_v54  ;;  %v2166_v8 = vpop.f32.mrf.mxu1  ;;  %v9758_v27 = vadd.f32 %v2150_v6, %v1906_v23  ;;  %v1911_v26 = vadd.f32 %v7665_v46, %v9454_v40  ;;  %7994 = vmatpush3.bf16.msra.mxu0 %v3590_v31  ;;  %7883 = vmatprep.mubr.msk.bf16.mxu0 %vm436_vm1, %v12264_v24  ;;  %v12267_v6 = vld [vmem:[#allocation30_spill] sm:$0xff] }
 0x15d   :  { %v1735_v25 = vpop.f32.mrf.mxu0  ;;  %8467 = vmatprep.subr.msk.bf16.mxu0 %vm521_vm0, %v9754_v0 }
 0x15e   :  { %12263 = vst [vmem:[#allocation97_spill] sm:$0xff] %v9758_v27  ;;  %v7727_v21 = vpop.f32.mrf.mxu1  ;;  %7942 = vmatmul.mubr.msk.bf16.gmra.mxu1 %vm436_vm1, %v12265_v53  ;;  %v9767_v13 = vadd.f32 %v7723_v57, %v1911_v26  ;;  %v1909_v11 = vadd.f32 %v1735_v25, %v9464_v55  ;;  %v12270_v57 = vld [vmem:[#allocation32_spill] sm:$0xff] }
 0x15f   :  { %7945 = vmatprep.mubr.msk.bf16.mxu1 %vm436_vm1, %v12267_v6  ;;  %v7666_v40 = vpop.f32.mrf.mxu0 }
 0x160   :  { %12266 = vst [vmem:[#allocation98_spill] sm:$0xff] %v9767_v13  ;;  %v2179_v31 = vpop.f32.mrf.mxu1  ;;  %v9772_v23 = vadd.f32 %v2163_v1, %v1909_v11  ;;  %v1912_v46 = vadd.f32 %v7666_v40, %v9470_v63  ;;  %v12272_v13 = vld [vmem:[#allocation33_spill] sm:$0xff]  ;;  %v12273_v11 = vld [vmem:[#allocation31_spill] sm:$0xff] }
 0x161   :  { %v1738_v27 = vpop.f32.mrf.mxu0 }
 0x162   :  { %12268 = vst [vmem:[#allocation99_spill] sm:$0xff] %v9772_v23  ;;  %v7728_v24 = vpop.f32.mrf.mxu1  ;;  %v9775_v54 = vadd.f32 %v7724_v9, %v1912_v46  ;;  %v1910_v53 = vadd.f32 %v1738_v27, %v9472_v33  ;;  %v12275_v27 = vld [vmem:[#allocation34_spill] sm:$0xff] }
 0x163   :  { %v7669_v41 = vpop.f32.mrf.mxu0  ;;  %7884 = vmatmul.mubr.msk.bf16.gmra.mxu0 %vm436_vm1, %v12270_v57 }
 0x164   :  { %12269 = vst [vmem:[#allocation100_spill] sm:$0xff] %v9775_v54  ;;  %v2182_v55 = vpop.f32.mrf.mxu1  ;;  %v9780_v26 = vadd.f32 %v2166_v8, %v1910_v53  ;;  %v1915_v25 = vadd.f32 %v7669_v41, %v9476_v18  ;;  %7887 = vmatprep.mubr.msk.bf16.mxu0 %vm436_vm1, %v12272_v13 }
 0x165   :  { %v1751_v1 = vpop.f32.mrf.mxu0 }
 0x166   :  { %12271 = vst [vmem:[#allocation101_spill] sm:$0xff] %v9780_v26  ;;  %v7731_v63 = vpop.f32.mrf.mxu1  ;;  %7946 = vmatmul.mubr.msk.bf16.gmra.mxu1 %vm436_vm1, %v12273_v11  ;;  %v9787_v9 = vadd.f32 %v7727_v21, %v1915_v25  ;;  %v1913_v33 = vadd.f32 %v1751_v1, %v9484_v36  ;;  %v12278_v21 = vld [vmem:[#allocation36_spill] sm:$0xff]  ;;  %v12280_v1 = vld [vmem:[#allocation79_spill] sm:$0xff] }
 0x167   :  { %7949 = vmatprep.mubr.msk.bf16.mxu1 %vm436_vm1, %v12275_v27  ;;  %v7670_v40 = vpop.f32.mrf.mxu0  ;;  %v12281_v27 = vld [vmem:[#allocation37_spill] sm:$0xff] }
 0x168   :  { %12274 = vst [vmem:[#allocation102_spill] sm:$0xff] %v9787_v9  ;;  %v2195_v8 = vpop.f32.mrf.mxu1  ;;  %v9792_v53 = vadd.f32 %v2179_v31, %v1913_v33  ;;  %v1916_v18 = vadd.f32 %v7670_v40, %v9490_v49  ;;  %v12282_v33 = vld [vmem:[#allocation35_spill] sm:$0xff]  ;;  %v12284_v40 = vld [vmem:[#allocation38_spill] sm:$0xff] }
 0x169   :  { %v1754_v41 = vpop.f32.mrf.mxu0 }
 0x16a   :  { %12276 = vst [vmem:[#allocation103_spill] sm:$0xff] %v9792_v53  ;;  %v7732_v46 = vpop.f32.mrf.mxu1  ;;  %v9795_v26 = vadd.f32 %v7728_v24, %v1916_v18  ;;  %v1914_v13 = vadd.f32 %v1754_v41, %v9492_v52 }
 0x16b   :  { %v7673_v11 = vpop.f32.mrf.mxu0  ;;  %7888 = vmatmul.mubr.msk.bf16.gmra.mxu0 %vm436_vm1, %v12278_v21 }
 0x16c   :  { %12277 = vst [vmem:[#allocation104_spill] sm:$0xff] %v9795_v26  ;;  %v2198_v36 = vpop.f32.mrf.mxu1  ;;  %v9800_v25 = vadd.f32 %v2182_v55, %v1914_v13  ;;  %v1919_v9 = vadd.f32 %v7673_v11, %v12280_v1  ;;  %7891 = vmatprep.mubr.msk.bf16.mxu0 %vm436_vm1, %v12281_v27  ;;  %v12287_v27 = vld [vmem:[#allocation80_spill] sm:$0xff] }
 0x16d   :  { %v1767_v31 = vpop.f32.mrf.mxu0 }
 0x16e   :  { %12279 = vst [vmem:[#allocation105_spill] sm:$0xff] %v9800_v25  ;;  %v7735_v49 = vpop.f32.mrf.mxu1  ;;  %7950 = vmatmul.mubr.msk.bf16.gmra.mxu1 %vm436_vm1, %v12282_v33  ;;  %v9807_v24 = vadd.f32 %v7731_v63, %v1919_v9  ;;  %v1917_v52 = vadd.f32 %v1767_v31, %v9504_v44  ;;  %v12288_v63 = vld [vmem:[#allocation40_spill] sm:$0xff]  ;;  %v12290_v31 = vld [vmem:[#allocation81_spill] sm:$0xff] }
 0x16f   :  { %7953 = vmatprep.mubr.msk.bf16.mxu1 %vm436_vm1, %v12284_v40  ;;  %v7674_v18 = vpop.f32.mrf.mxu0  ;;  %v12291_v40 = vld [vmem:[#allocation41_spill] sm:$0xff] }
 0x170   :  { %12283 = vst [vmem:[#allocation79_spill] sm:$0xff] %v9807_v24  ;;  %v2211_v13 = vpop.f32.mrf.mxu1  ;;  %v9812_v55 = vadd.f32 %v2195_v8, %v1917_v52  ;;  %v1920_v11 = vadd.f32 %v7674_v18, %v9510_v19  ;;  %v12292_v52 = vld [vmem:[#allocation39_spill] sm:$0xff]  ;;  %v12294_v18 = vld [vmem:[#allocation42_spill] sm:$0xff] }
 0x171   :  { %v1770_v41 = vpop.f32.mrf.mxu0 }
 0x172   :  { %12285 = vst [vmem:[#allocation106_spill] sm:$0xff] %v9812_v55  ;;  %v7736_v1 = vpop.f32.mrf.mxu1  ;;  %v9815_v25 = vadd.f32 %v7732_v46, %v1920_v11  ;;  %v1918_v26 = vadd.f32 %v1770_v41, %v12287_v27 }
 0x173   :  { %v7677_v33 = vpop.f32.mrf.mxu0  ;;  %7892 = vmatmul.mubr.msk.bf16.gmra.mxu0 %vm436_vm1, %v12288_v63  ;;  %v12376_v63 = vld [vmem:[#allocation6_spill] sm:$0xff] }
 0x174   :  { %12286 = vst [vmem:[#allocation107_spill] sm:$0xff] %v9815_v25  ;;  %v2214_v44 = vpop.f32.mrf.mxu1  ;;  %v9820_v9 = vadd.f32 %v2198_v36, %v1918_v26  ;;  %v1923_v24 = vadd.f32 %v7677_v33, %v12290_v31  ;;  %7895 = vmatprep.mubr.msk.bf16.mxu0 %vm436_vm1, %v12291_v40  ;;  %v12297_v40 = vld [vmem:[#allocation82_spill] sm:$0xff] }
 0x175   :  { %v1783_v8 = vpop.f32.mrf.mxu0 }
 0x176   :  { %12289 = vst [vmem:[#allocation80_spill] sm:$0xff] %v9820_v9  ;;  %v7739_v19 = vpop.f32.mrf.mxu1  ;;  %7954 = vmatmul.mubr.msk.bf16.gmra.mxu1 %vm436_vm1, %v12292_v52  ;;  %v9827_v46 = vadd.f32 %v7735_v49, %v1923_v24  ;;  %v1921_v27 = vadd.f32 %v1783_v8, %v9524_v56  ;;  %v12298_v49 = vld [vmem:[#allocation44_spill] sm:$0xff]  ;;  %v12300_v8 = vld [vmem:[#allocation83_spill] sm:$0xff] }
 0x177   :  { %7957 = vmatprep.mubr.msk.bf16.mxu1 %vm436_vm1, %v12294_v18  ;;  %v7678_v11 = vpop.f32.mrf.mxu0  ;;  %v12301_v18 = vld [vmem:[#allocation45_spill] sm:$0xff] }
 0x178   :  { %12293 = vst [vmem:[#allocation81_spill] sm:$0xff] %v9827_v46  ;;  %v2227_v26 = vpop.f32.mrf.mxu1  ;;  %v9832_v36 = vadd.f32 %v2211_v13, %v1921_v27  ;;  %v1924_v33 = vadd.f32 %v7678_v11, %v9530_v15  ;;  %v12302_v27 = vld [vmem:[#allocation43_spill] sm:$0xff]  ;;  %v12304_v11 = vld [vmem:[#allocation46_spill] sm:$0xff] }
 0x179   :  { %v1786_v41 = vpop.f32.mrf.mxu0 }
 0x17a   :  { %12295 = vst [vmem:[#allocation108_spill] sm:$0xff] %v9832_v36  ;;  %v7740_v31 = vpop.f32.mrf.mxu1  ;;  %v9835_v9 = vadd.f32 %v7736_v1, %v1924_v33  ;;  %v1922_v25 = vadd.f32 %v1786_v41, %v12297_v40  ;;  %v12374_v36 = vld [vmem:[#allocation5_spill] sm:$0xff] }
 0x17b   :  { %v7681_v52 = vpop.f32.mrf.mxu0  ;;  %7896 = vmatmul.mubr.msk.bf16.gmra.mxu0 %vm436_vm1, %v12298_v49 }
 0x17c   :  { %12296 = vst [vmem:[#allocation109_spill] sm:$0xff] %v9835_v9  ;;  %v2230_v56 = vpop.f32.mrf.mxu1  ;;  %v9840_v24 = vadd.f32 %v2214_v44, %v1922_v25  ;;  %v1927_v46 = vadd.f32 %v7681_v52, %v12300_v8  ;;  %7899 = vmatprep.mubr.msk.bf16.mxu0 %vm436_vm1, %v12301_v18  ;;  %v12307_v18 = vld [vmem:[#allocation84_spill] sm:$0xff] }
 0x17d   :  { %v1799_v13 = vpop.f32.mrf.mxu0 }
 0x17e   :  { %12299 = vst [vmem:[#allocation82_spill] sm:$0xff] %v9840_v24  ;;  %v7743_v15 = vpop.f32.mrf.mxu1  ;;  %7958 = vmatmul.mubr.msk.bf16.gmra.mxu1 %vm436_vm1, %v12302_v27  ;;  %v9847_v1 = vadd.f32 %v7739_v19, %v1927_v46  ;;  %v1925_v40 = vadd.f32 %v1799_v13, %v9544_v4  ;;  %v12308_v19 = vld [vmem:[#allocation48_spill] sm:$0xff]  ;;  %v12310_v13 = vld [vmem:[#allocation85_spill] sm:$0xff] }
 0x17f   :  { %7961 = vmatprep.mubr.msk.bf16.mxu1 %vm436_vm1, %v12304_v11  ;;  %v7682_v33 = vpop.f32.mrf.mxu0  ;;  %v12311_v11 = vld [vmem:[#allocation49_spill] sm:$0xff] }
 0x180   :  { %12303 = vst [vmem:[#allocation83_spill] sm:$0xff] %v9847_v1  ;;  %v2243_v25 = vpop.f32.mrf.mxu1  ;;  %v9852_v44 = vadd.f32 %v2227_v26, %v1925_v40  ;;  %v1928_v52 = vadd.f32 %v7682_v33, %v9550_v34  ;;  %v12312_v40 = vld [vmem:[#allocation47_spill] sm:$0xff]  ;;  %v12314_v33 = vld [vmem:[#allocation50_spill] sm:$0xff] }
 0x181   :  { %v1802_v41 = vpop.f32.mrf.mxu0 }
 0x182   :  { %12305 = vst [vmem:[#allocation110_spill] sm:$0xff] %v9852_v44  ;;  %v7744_v8 = vpop.f32.mrf.mxu1  ;;  %v9855_v24 = vadd.f32 %v7740_v31, %v1928_v52  ;;  %v1926_v9 = vadd.f32 %v1802_v41, %v12307_v18 }
 0x183   :  { %v7685_v27 = vpop.f32.mrf.mxu0  ;;  %7900 = vmatmul.mubr.msk.bf16.gmra.mxu0 %vm436_vm1, %v12308_v19 }
 0x184   :  { %12306 = vst [vmem:[#allocation111_spill] sm:$0xff] %v9855_v24  ;;  %v2246_v4 = vpop.f32.mrf.mxu1  ;;  %v9860_v46 = vadd.f32 %v2230_v56, %v1926_v9  ;;  %v1931_v1 = vadd.f32 %v7685_v27, %v12310_v13  ;;  %7903 = vmatprep.mubr.msk.bf16.mxu0 %vm436_vm1, %v12311_v11  ;;  %v12317_v11 = vld [vmem:[#allocation86_spill] sm:$0xff] }
 0x185   :  { %v1815_v26 = vpop.f32.mrf.mxu0 }
 0x186   :  { %12309 = vst [vmem:[#allocation84_spill] sm:$0xff] %v9860_v46  ;;  %v7747_v34 = vpop.f32.mrf.mxu1  ;;  %7962 = vmatmul.mubr.msk.bf16.gmra.mxu1 %vm436_vm1, %v12312_v40  ;;  %v9867_v31 = vadd.f32 %v7743_v15, %v1931_v1  ;;  %v1929_v18 = vadd.f32 %v1815_v26, %v9564_v16  ;;  %v12318_v15 = vld [vmem:[#allocation52_spill] sm:$0xff]  ;;  %v12320_v26 = vld [vmem:[#allocation87_spill] sm:$0xff] }
 0x187   :  { %7965 = vmatprep.mubr.msk.bf16.mxu1 %vm436_vm1, %v12314_v33  ;;  %v7686_v52 = vpop.f32.mrf.mxu0  ;;  %v12321_v33 = vld [vmem:[#allocation53_spill] sm:$0xff] }
 0x188   :  { %12313 = vst [vmem:[#allocation85_spill] sm:$0xff] %v9867_v31  ;;  %v2259_v9 = vpop.f32.mrf.mxu1  ;;  %v9872_v56 = vadd.f32 %v2243_v25, %v1929_v18  ;;  %v1932_v27 = vadd.f32 %v7686_v52, %v9570_v3  ;;  %v12322_v18 = vld [vmem:[#allocation51_spill] sm:$0xff]  ;;  %v12324_v52 = vld [vmem:[#allocation54_spill] sm:$0xff] }
 0x189   :  { %v1818_v41 = vpop.f32.mrf.mxu0 }
 0x18a   :  { %12315 = vst [vmem:[#allocation112_spill] sm:$0xff] %v9872_v56  ;;  %v7748_v13 = vpop.f32.mrf.mxu1  ;;  %v9875_v46 = vadd.f32 %v7744_v8, %v1932_v27  ;;  %v1930_v24 = vadd.f32 %v1818_v41, %v12317_v11 }
 0x18b   :  { %v7689_v40 = vpop.f32.mrf.mxu0  ;;  %7904 = vmatmul.mubr.msk.bf16.gmra.mxu0 %vm436_vm1, %v12318_v15 }
 0x18c   :  { %12316 = vst [vmem:[#allocation113_spill] sm:$0xff] %v9875_v46  ;;  %v2262_v16 = vpop.f32.mrf.mxu1  ;;  %v9880_v1 = vadd.f32 %v2246_v4, %v1930_v24  ;;  %v1935_v31 = vadd.f32 %v7689_v40, %v12320_v26  ;;  %7907 = vmatprep.mubr.msk.bf16.mxu0 %vm436_vm1, %v12321_v33  ;;  %v12327_v33 = vld [vmem:[#allocation88_spill] sm:$0xff] }
 0x18d   :  { %v1831_v25 = vpop.f32.mrf.mxu0 }
 0x18e   :  { %12319 = vst [vmem:[#allocation86_spill] sm:$0xff] %v9880_v1  ;;  %v7751_v3 = vpop.f32.mrf.mxu1  ;;  %7966 = vmatmul.mubr.msk.bf16.gmra.mxu1 %vm436_vm1, %v12322_v18  ;;  %v9887_v8 = vadd.f32 %v7747_v34, %v1935_v31  ;;  %v1933_v11 = vadd.f32 %v1831_v25, %v9584_v32  ;;  %v12328_v34 = vld [vmem:[#allocation56_spill] sm:$0xff]  ;;  %v12330_v25 = vld [vmem:[#allocation89_spill] sm:$0xff] }
 0x18f   :  { %7969 = vmatprep.mubr.msk.bf16.mxu1 %vm436_vm1, %v12324_v52  ;;  %v7690_v27 = vpop.f32.mrf.mxu0  ;;  %v12331_v52 = vld [vmem:[#allocation57_spill] sm:$0xff] }
 0x190   :  { %12323 = vst [vmem:[#allocation87_spill] sm:$0xff] %v9887_v8  ;;  %v2275_v24 = vpop.f32.mrf.mxu1  ;;  %v9892_v4 = vadd.f32 %v2259_v9, %v1933_v11  ;;  %v1936_v40 = vadd.f32 %v7690_v27, %v9590_v12  ;;  %v12332_v11 = vld [vmem:[#allocation55_spill] sm:$0xff]  ;;  %v12334_v27 = vld [vmem:[#allocation58_spill] sm:$0xff] }
 0x191   :  { %v1834_v41 = vpop.f32.mrf.mxu0 }
 0x192   :  { %12325 = vst [vmem:[#allocation114_spill] sm:$0xff] %v9892_v4  ;;  %v7752_v26 = vpop.f32.mrf.mxu1  ;;  %v9895_v1 = vadd.f32 %v7748_v13, %v1936_v40  ;;  %v1934_v46 = vadd.f32 %v1834_v41, %v12327_v33  ;;  %v12371_v4 = vld [vmem:[#allocation2_spill] sm:$0xff] }
 0x193   :  { %v7693_v18 = vpop.f32.mrf.mxu0  ;;  %7908 = vmatmul.mubr.msk.bf16.gmra.mxu0 %vm436_vm1, %v12328_v34  ;;  %v12370_v34 = vld [vmem:[#allocation75_spill] sm:$0xff] }
 0x194   :  { %12326 = vst [vmem:[#allocation115_spill] sm:$0xff] %v9895_v1  ;;  %v2278_v32 = vpop.f32.mrf.mxu1  ;;  %v9900_v31 = vadd.f32 %v2262_v16, %v1934_v46  ;;  %v1939_v8 = vadd.f32 %v7693_v18, %v12330_v25  ;;  %7911 = vmatprep.mubr.msk.bf16.mxu0 %vm436_vm1, %v12331_v52  ;;  %v12337_v52 = vld [vmem:[#allocation90_spill] sm:$0xff] }
 0x195   :  { %v1847_v9 = vpop.f32.mrf.mxu0 }
 0x196   :  { %12329 = vst [vmem:[#allocation88_spill] sm:$0xff] %v9900_v31  ;;  %v7755_v12 = vpop.f32.mrf.mxu1  ;;  %7970 = vmatmul.mubr.msk.bf16.gmra.mxu1 %vm436_vm1, %v12332_v11  ;;  %v9907_v13 = vadd.f32 %v7751_v3, %v1939_v8  ;;  %v1937_v33 = vadd.f32 %v1847_v9, %v9604_v47  ;;  %v12338_v3 = vld [vmem:[#allocation60_spill] sm:$0xff]  ;;  %v12340_v9 = vld [vmem:[#allocation91_spill] sm:$0xff] }
 0x197   :  { %7973 = vmatprep.mubr.msk.bf16.mxu1 %vm436_vm1, %v12334_v27  ;;  %v7694_v40 = vpop.f32.mrf.mxu0  ;;  %v12341_v27 = vld [vmem:[#allocation61_spill] sm:$0xff] }
 0x198   :  { %12333 = vst [vmem:[#allocation89_spill] sm:$0xff] %v9907_v13  ;;  %v2291_v46 = vpop.f32.mrf.mxu1  ;;  %v9912_v16 = vadd.f32 %v2275_v24, %v1937_v33  ;;  %v1940_v18 = vadd.f32 %v7694_v40, %v9610_v28  ;;  %v12342_v33 = vld [vmem:[#allocation59_spill] sm:$0xff]  ;;  %v12344_v40 = vld [vmem:[#allocation62_spill] sm:$0xff] }
 0x199   :  { %v1850_v41 = vpop.f32.mrf.mxu0 }
 0x19a   :  { %12335 = vst [vmem:[#allocation116_spill] sm:$0xff] %v9912_v16  ;;  %v7756_v25 = vpop.f32.mrf.mxu1  ;;  %v9915_v31 = vadd.f32 %v7752_v26, %v1940_v18  ;;  %v1938_v1 = vadd.f32 %v1850_v41, %v12337_v52 }
 0x19b   :  { %v7697_v11 = vpop.f32.mrf.mxu0  ;;  %7912 = vmatmul.mubr.msk.bf16.gmra.mxu0 %vm436_vm1, %v12338_v3 }
 0x19c   :  { %12336 = vst [vmem:[#allocation117_spill] sm:$0xff] %v9915_v31  ;;  %v2294_v47 = vpop.f32.mrf.mxu1  ;;  %v9920_v8 = vadd.f32 %v2278_v32, %v1938_v1  ;;  %v1943_v13 = vadd.f32 %v7697_v11, %v12340_v9  ;;  %7915 = vmatprep.mubr.msk.bf16.mxu0 %vm436_vm1, %v12341_v27  ;;  %v12347_v27 = vld [vmem:[#allocation92_spill] sm:$0xff] }
 0x19d   :  { %v1863_v24 = vpop.f32.mrf.mxu0 }
 0x19e   :  { %12339 = vst [vmem:[#allocation90_spill] sm:$0xff] %v9920_v8  ;;  %v7759_v28 = vpop.f32.mrf.mxu1  ;;  %7974 = vmatmul.mubr.msk.bf16.gmra.mxu1 %vm436_vm1, %v12342_v33  ;;  %v9927_v26 = vadd.f32 %v7755_v12, %v1943_v13  ;;  %v1941_v52 = vadd.f32 %v1863_v24, %v9624_v61  ;;  %v12348_v12 = vld [vmem:[#allocation64_spill] sm:$0xff]  ;;  %v12350_v24 = vld [vmem:[#allocation93_spill] sm:$0xff] }
 0x19f   :  { %7977 = vmatprep.mubr.msk.bf16.mxu1 %vm436_vm1, %v12344_v40  ;;  %v7698_v18 = vpop.f32.mrf.mxu0  ;;  %v12351_v40 = vld [vmem:[#allocation65_spill] sm:$0xff] }
 0x1a0   :  { %12343 = vst [vmem:[#allocation91_spill] sm:$0xff] %v9927_v26  ;;  %v2307_v1 = vpop.f32.mrf.mxu1  ;;  %v9932_v32 = vadd.f32 %v2291_v46, %v1941_v52  ;;  %v1944_v11 = vadd.f32 %v7698_v18, %v9630_v42  ;;  %v12352_v52 = vld [vmem:[#allocation63_spill] sm:$0xff] }
 0x1a1   :  { %v1866_v41 = vpop.f32.mrf.mxu0 }
 0x1a2   :  { %12345 = vst [vmem:[#allocation118_spill] sm:$0xff] %v9932_v32  ;;  %v7760_v9 = vpop.f32.mrf.mxu1  ;;  %v9935_v8 = vadd.f32 %v7756_v25, %v1944_v11  ;;  %v1942_v31 = vadd.f32 %v1866_v41, %v12347_v27  ;;  %v12354_v27 = vld [vmem:[#allocation94_spill] sm:$0xff] }
 0x1a3   :  { %v7701_v33 = vpop.f32.mrf.mxu0  ;;  %7916 = vmatmul.mubr.msk.bf16.gmra.mxu0 %vm436_vm1, %v12348_v12  ;;  %v12355_v11 = vld [vmem:[#allocation66_spill] sm:$0xff] }
 0x1a4   :  { %12346 = vst [vmem:[#allocation119_spill] sm:$0xff] %v9935_v8  ;;  %v2310_v61 = vpop.f32.mrf.mxu1  ;;  %v9940_v13 = vadd.f32 %v2294_v47, %v1942_v31  ;;  %v1947_v26 = vadd.f32 %v7701_v33, %v12350_v24  ;;  %7919 = vmatprep.mubr.msk.bf16.mxu0 %vm436_vm1, %v12351_v40  ;;  %v12357_v24 = vld [vmem:[#allocation95_spill] sm:$0xff]  ;;  %v12358_v8 = vld [vmem:[#allocation68_spill] sm:$0xff] }
 0x1a5   :  { %v1879_v46 = vpop.f32.mrf.mxu0 }
 0x1a6   :  { %12349 = vst [vmem:[#allocation92_spill] sm:$0xff] %v9940_v13  ;;  %v7823_v42 = vpop.f32.mrf.mxu1  ;;  %7978 = vmatmul.mubr.msk.bf16.gmra.mxu1 %vm436_vm1, %v12352_v52  ;;  %v9947_v25 = vadd.f32 %v7759_v28, %v1947_v26  ;;  %v1945_v18 = vadd.f32 %v1879_v46, %v12354_v27  ;;  %v12360_v46 = vld [vmem:[#allocation69_spill] sm:$0xff] }
 0x1a7   :  { %7981 = vmatprep.mubr.msk.bf16.mxu1 %vm436_vm1, %v12355_v11  ;;  %v7702_v41 = vpop.f32.mrf.mxu0 }
 0x1a8   :  { %12353 = vst [vmem:[#allocation93_spill] sm:$0xff] %v9947_v25  ;;  %v2676_v31 = vpop.f32.mrf.mxu1  ;;  %v9952_v47 = vadd.f32 %v2307_v1, %v1945_v18  ;;  %v12361_v1 = vld [vmem:[#allocation67_spill] sm:$0xff] }
 0x1a9   :  { %v1882_v33 = vpop.f32.mrf.mxu0 }
 0x1aa   :  { %12356 = vst [vmem:[#allocation94_spill] sm:$0xff] %v9952_v47  ;;  %v7824_v9 = vpop.f32.mrf.mxu1  ;;  %v1946_v13 = vadd.f32 %v1882_v33, %v12357_v24  ;;  %v12362_v33 = vld [vmem:[#allocation70_spill] sm:$0xff] }
 0x1ab   :  { %v7765_v40 = vpop.f32.mrf.mxu0  ;;  %7920 = vmatmul.mubr.msk.bf16.gmra.mxu0 %vm436_vm1, %v12358_v8 }
 0x1ac   :  { %v2679_v52 = vpop.f32.mrf.mxu1  ;;  %v9957_v28 = vadd.f32 %v2310_v61, %v1946_v13  ;;  %v9959_v26 = vadd.f32 %v7823_v42, %v7765_v40  ;;  %7923 = vmatprep.mubr.msk.bf16.mxu0 %vm436_vm1, %v12360_v46 }
 0x1ad   :  { %v2417_v27 = vpop.f32.mrf.mxu0 }
 0x1ae   :  { %12359 = vst [vmem:[#allocation95_spill] sm:$0xff] %v9957_v28  ;;  %v7827_v41 = vpop.f32.mrf.mxu1  ;;  %7982 = vmatmul.mubr.msk.bf16.gmra.mxu1 %vm436_vm1, %v12361_v1  ;;  %v9965_v18 = vadd.f32 %v2676_v31, %v2417_v27  ;;  %v12363_v28 = vld [vmem:[#allocation71_spill] sm:$0xff]  ;;  %v12364_v31 = vld [vmem:[#allocation73_spill] sm:$0xff]  ;;  %v12365_v1 = vld [vmem:[#allocation72_spill] sm:$0xff] }
 0x1af   :  { %7985 = vmatprep.mubr.msk.bf16.mxu1 %vm436_vm1, %v12362_v33  ;;  %v7766_v24 = vpop.f32.mrf.mxu0 }
 0x1b0   :  { %v2692_v8 = vpop.f32.mrf.mxu1  ;;  %v9969_v47 = vadd.f32 %v7824_v9, %v7766_v24  ;;  %v12366_v24 = vld [vmem:[#allocation74_spill] sm:$0xff] }
 0x1b1   :  { %v2420_v61 = vpop.f32.mrf.mxu0 }
 0x1b2   :  { %v7828_v40 = vpop.f32.mrf.mxu1  ;;  %v9971_v13 = vadd.f32 %v2679_v52, %v2420_v61 }
 0x1b3   :  { %v7769_v42 = vpop.f32.mrf.mxu0  ;;  %7924 = vmatmul.mubr.msk.bf16.gmra.mxu0 %vm436_vm1, %v12363_v28 }
 0x1b4   :  { %v2695_v46 = vpop.f32.mrf.mxu1  ;;  %v9975_v25 = vadd.f32 %v7827_v41, %v7769_v42  ;;  %7927 = vmatprep.mubr.msk.bf16.mxu0 %vm436_vm1, %v12364_v31  ;;  %v12367_v31 = vld [vmem:[#allocation76_spill] sm:$0xff] }
 0x1b5   :  { %v2433_v27 = vpop.f32.mrf.mxu0 }
 0x1b6   :  { %v7831_v33 = vpop.f32.mrf.mxu1  ;;  %7986 = vmatmul.mubr.msk.bf16.gmra.mxu1 %vm436_vm1, %v12365_v1  ;;  %v9981_v9 = vadd.f32 %v2692_v8, %v2433_v27  ;;  %v12368_v8 = vld [vmem:[#allocation78_spill] sm:$0xff]  ;;  %v12369_v1 = vld [vmem:[#allocation77_spill] sm:$0xff] }
 0x1b7   :  { %7989 = vmatprep.mubr.msk.bf16.mxu1 %vm436_vm1, %v12366_v24  ;;  %v7770_v52 = vpop.f32.mrf.mxu0 }
 0x1b8   :  { %v2708_v61 = vpop.f32.mrf.mxu1  ;;  %v9985_v11 = vadd.f32 %v7828_v40, %v7770_v52 }
 0x1b9   :  { %v2436_v28 = vpop.f32.mrf.mxu0 }
 0x1ba   :  { %v7832_v41 = vpop.f32.mrf.mxu1  ;;  %v9987_v42 = vadd.f32 %v2695_v46, %v2436_v28  ;;  %v8587_v28 = vld [vmem:[%s11918_s0] sm:$0xff]  }
 0x1bb   :  { %v7773_v12 = vpop.f32.mrf.mxu0  ;;  %7928 = vmatmul.mubr.msk.bf16.gmra.mxu0 %vm436_vm1, %v12367_v31 }
 0x1bc   :  { %v2711_v32 = vpop.f32.mrf.mxu1  ;;  %v9991_v3 = vadd.f32 %v7831_v33, %v7773_v12  ;;  %7931 = vmatprep.mubr.msk.bf16.mxu0 %vm436_vm1, %v12368_v8 }
 0x1bd   :  { %v2449_v27 = vpop.f32.mrf.mxu0 }
 0x1be   :  { %v7835_v24 = vpop.f32.mrf.mxu1  ;;  %7990 = vmatmul.mubr.msk.bf16.gmra.mxu1 %vm436_vm1, %v12369_v1  ;;  %v9997_v40 = vadd.f32 %v2708_v61, %v2449_v27  ;;  %v4426_v27 = vsel %vm521_vm0, %v9732_v38, 0  ;;  %v8589_v38 = vld [vmem:[%s11918_s0 + $0x10] sm:$0xff]  }
 0x1bf   :  { %8053 = vmatprep.mubr.msk.bf16.mxu1 %vm436_vm1, %v8587_v28  ;;  %v7774_v46 = vpop.f32.mrf.mxu0 }
 0x1c0   :  { %v2724_v52 = vpop.f32.mrf.mxu1  ;;  %v10003_v12 = vadd.f32 %v7832_v41, %v7774_v46  ;;  %v10018_v41 = vld [vmem:[%s11917_s1 + $0x18] sm:$0x3]  ;;  %v8588_v46 = vld [vmem:[%s11918_s0 + $0x8] sm:$0xff]  }
 0x1c1   :  { %v2452_v33 = vpop.f32.mrf.mxu0 }
 0x1c2   :  { %v7836_v31 = vpop.f32.mrf.mxu1  ;;  %v10005_v8 = vadd.f32 %v2711_v32, %v2452_v33 }
 0x1c3   :  { %v7777_v16 = vpop.f32.mrf.mxu0  ;;  %7932 = vmatmul.mubr.msk.bf16.gmra.mxu0 %vm436_vm1, %v12370_v34 }
 0x1c4   :  { %v2727_v61 = vpop.f32.mrf.mxu1  ;;  %v10011_v1 = vadd.f32 %v7835_v24, %v7777_v16  ;;  %7995 = vmatprep.mubr.msk.bf16.mxu0 %vm436_vm1, %v12371_v4 }
 0x1c5   :  { %v2465_v32 = vpop.f32.mrf.mxu0 }
 0x1c6   :  { %v7839_v28 = vpop.f32.mrf.mxu1  ;;  %8054 = vmatmul.mubr.msk.bf16.vlgmr.msra.gmra.mxu1 %vm436_vm1, %v8588_v46  ;;  %v10024_v33 = vadd.f32 %v2724_v52, %v2465_v32  ;;  %v4110_v52 = vsel %vm521_vm0, %v9754_v0, 0 }
 0x1c7   :  { %8168 = vmatpush3.bf16.msra.mxu1 %v4426_v27  ;;  %8057 = vmatprep.mubr.msk.bf16.mxu1 %vm436_vm1, %v8589_v38  ;;  %v7778_v16 = vpop.f32.mrf.mxu0  ;;  %v10041_v27 = vld [vmem:[%s11917_s1 + $0x1a] sm:$0x3]  ;;  %v12372_v38 = vld [vmem:[#allocation3_spill] sm:$0xff] }
 0x1c8   :  { %v2740_v24 = vpop.f32.mrf.mxu1  ;;  %8470 = vmatprep.subr.msk.bf16.mxu1 %vm521_vm0, %v10018_v41  ;;  %v10032_v4 = vadd.f32 %v7836_v31, %v7778_v16  ;;  %v12373_v31 = vld [vmem:[#allocation4_spill] sm:$0xff] }
 0x1c9   :  { %v2468_v34 = vpop.f32.mrf.mxu0 }
 0x1ca   :  { %v7840_v15 = vpop.f32.mrf.mxu1  ;;  %v10036_v32 = vadd.f32 %v2727_v61, %v2468_v34  ;;  %v8590_v34 = vld [vmem:[%s11918_s0 + $0x18] sm:$0xff]  }
 0x1cb   :  { %v7781_v46 = vpop.f32.mrf.mxu0  ;;  %7996 = vmatmul.mubr.msk.bf16.vlgmr.msra.gmra.mxu0 %vm436_vm1, %v12372_v38 }
 0x1cc   :  { %v2743_v56 = vpop.f32.mrf.mxu1  ;;  %v10045_v19 = vadd.f32 %v7839_v28, %v7781_v46  ;;  %8110 = vmatpush3.bf16.msra.mxu0 %v4110_v52  ;;  %7999 = vmatprep.mubr.msk.bf16.mxu0 %vm436_vm1, %v12373_v31  ;;  %v8591_v28 = vld [vmem:[%s11918_s0 + $0x20] sm:$0xff]  }
 0x1cd   :  { %v2481_v16 = vpop.f32.mrf.mxu0  ;;  %8469 = vmatprep.subr.msk.bf16.mxu0 %vm521_vm0, %v10041_v27 }
 0x1ce   :  { %v7843_v0 = vpop.f32.mrf.mxu1  ;;  %8058 = vmatmul.mubr.msk.bf16.gmra.mxu1 %vm436_vm1, %v8590_v34  ;;  %v10055_v61 = vadd.f32 %v2740_v24, %v2481_v16 }
 0x1cf   :  { %8061 = vmatprep.mubr.msk.bf16.mxu1 %vm436_vm1, %v8591_v28  ;;  %v7782_v52 = vpop.f32.mrf.mxu0 }
 0x1d0   :  { %v2756_v46 = vpop.f32.mrf.mxu1  ;;  %v10061_v31 = vadd.f32 %v7840_v15, %v7782_v52  ;;  %v8592_v15 = vld [vmem:[%s11918_s0 + $0x28] sm:$0xff]  }
 0x1d1   :  { %v2484_v38 = vpop.f32.mrf.mxu0 }
 0x1d2   :  { %v7844_v44 = vpop.f32.mrf.mxu1  ;;  %v10063_v49 = vadd.f32 %v2743_v56, %v2484_v38  ;;  %v8593_v38 = vld [vmem:[%s11918_s0 + $0x30] sm:$0xff]  }
 0x1d3   :  { %v7785_v34 = vpop.f32.mrf.mxu0  ;;  %8000 = vmatmul.mubr.msk.bf16.gmra.mxu0 %vm436_vm1, %v12374_v36 }
 0x1d4   :  { %v2759_v24 = vpop.f32.mrf.mxu1  ;;  %v10067_v16 = vadd.f32 %v7843_v0, %v7785_v34  ;;  %8003 = vmatprep.mubr.msk.bf16.mxu0 %vm436_vm1, %v12376_v63 }
 0x1d5   :  { %v2497_v55 = vpop.f32.mrf.mxu0 }
 0x1d6   :  { %12375 = vst [vmem:[#allocation120_spill] sm:$0xff] %v10067_v16  ;;  %v7847_v28 = vpop.f32.mrf.mxu1  ;;  %8062 = vmatmul.mubr.msk.bf16.gmra.mxu1 %vm436_vm1, %v8592_v15  ;;  %v10075_v56 = vadd.f32 %v2756_v46, %v2497_v55  ;;  %v12380_v16 = vld [vmem:[#allocation7_spill] sm:$0xff]  ;;  %v12382_v15 = vld [vmem:[#allocation8_spill] sm:$0xff] }
 0x1d7   :  { %8065 = vmatprep.mubr.msk.bf16.mxu1 %vm436_vm1, %v8593_v38  ;;  %v7786_v0 = vpop.f32.mrf.mxu0 }
 0x1d8   :  { %12377 = vst [vmem:[#allocation121_spill] sm:$0xff] %v10075_v56  ;;  %v2772_v52 = vpop.f32.mrf.mxu1  ;;  %v10081_v34 = vadd.f32 %v7844_v44, %v7786_v0  ;;  %v8594_v44 = vld [vmem:[%s11918_s0 + $0x38] sm:$0xff]  }
 0x1d9   :  { %v2500_v63 = vpop.f32.mrf.mxu0 }
 0x1da   :  { %12378 = vst [vmem:[#allocation122_spill] sm:$0xff] %v10081_v34  ;;  %v7848_v36 = vpop.f32.mrf.mxu1  ;;  %v10083_v21 = vadd.f32 %v2759_v24, %v2500_v63  ;;  %v8595_v24 = vld [vmem:[%s11918_s0 + $0x40] sm:$0xff]   ;;  %v12386_v34 = vld [vmem:[#allocation9_spill] sm:$0xff] }
 0x1db   :  { %v7789_v53 = vpop.f32.mrf.mxu0  ;;  %8004 = vmatmul.mubr.msk.bf16.gmra.mxu0 %vm436_vm1, %v12380_v16 }
 0x1dc   :  { %12379 = vst [vmem:[#allocation123_spill] sm:$0xff] %v10083_v21  ;;  %v2775_v55 = vpop.f32.mrf.mxu1  ;;  %v10087_v46 = vadd.f32 %v7847_v28, %v7789_v53  ;;  %8007 = vmatprep.mubr.msk.bf16.mxu0 %vm436_vm1, %v12382_v15 }
 0x1dd   :  { %v2513_v56 = vpop.f32.mrf.mxu0 }
 0x1de   :  { %12381 = vst [vmem:[#allocation124_spill] sm:$0xff] %v10087_v46  ;;  %v7851_v38 = vpop.f32.mrf.mxu1  ;;  %8066 = vmatmul.mubr.msk.bf16.gmra.mxu1 %vm436_vm1, %v8594_v44  ;;  %v10095_v63 = vadd.f32 %v2772_v52, %v2513_v56  ;;  %v12388_v44 = vld [vmem:[#allocation10_spill] sm:$0xff] }
 0x1df   :  { %8069 = vmatprep.mubr.msk.bf16.mxu1 %vm436_vm1, %v8595_v24  ;;  %v7790_v53 = vpop.f32.mrf.mxu0 }
 0x1e0   :  { %12383 = vst [vmem:[#allocation125_spill] sm:$0xff] %v10095_v63  ;;  %v2788_v28 = vpop.f32.mrf.mxu1  ;;  %v10101_v0 = vadd.f32 %v7848_v36, %v7790_v53  ;;  %v8596_v36 = vld [vmem:[%s11918_s0 + $0x48] sm:$0xff]  }
 0x1e1   :  { %v2516_v15 = vpop.f32.mrf.mxu0 }
 0x1e2   :  { %12384 = vst [vmem:[#allocation126_spill] sm:$0xff] %v10101_v0  ;;  %v7852_v16 = vpop.f32.mrf.mxu1  ;;  %v10103_v46 = vadd.f32 %v2775_v55, %v2516_v15  ;;  %v8597_v15 = vld [vmem:[%s11918_s0 + $0x50] sm:$0xff]   ;;  %v12392_v0 = vld [vmem:[#allocation11_spill] sm:$0xff] }
 0x1e3   :  { %v7793_v21 = vpop.f32.mrf.mxu0  ;;  %8008 = vmatmul.mubr.msk.bf16.gmra.mxu0 %vm436_vm1, %v12386_v34 }
 0x1e4   :  { %12385 = vst [vmem:[#allocation127_spill] sm:$0xff] %v10103_v46  ;;  %v2791_v56 = vpop.f32.mrf.mxu1  ;;  %v10107_v52 = vadd.f32 %v7851_v38, %v7793_v21  ;;  %8011 = vmatprep.mubr.msk.bf16.mxu0 %vm436_vm1, %v12388_v44 }
 0x1e5   :  { %v2529_v63 = vpop.f32.mrf.mxu0 }
 0x1e6   :  { %12387 = vst [vmem:[#allocation128_spill] sm:$0xff] %v10107_v52  ;;  %v7855_v24 = vpop.f32.mrf.mxu1  ;;  %8070 = vmatmul.mubr.msk.bf16.gmra.mxu1 %vm436_vm1, %v8596_v36  ;;  %v10115_v55 = vadd.f32 %v2788_v28, %v2529_v63  ;;  %v12394_v36 = vld [vmem:[#allocation12_spill] sm:$0xff] }
 0x1e7   :  { %8073 = vmatprep.mubr.msk.bf16.mxu1 %vm436_vm1, %v8597_v15  ;;  %v7794_v21 = vpop.f32.mrf.mxu0 }
 0x1e8   :  { %12389 = vst [vmem:[#allocation129_spill] sm:$0xff] %v10115_v55  ;;  %v2804_v38 = vpop.f32.mrf.mxu1  ;;  %v10121_v53 = vadd.f32 %v7852_v16, %v7794_v21  ;;  %v8598_v16 = vld [vmem:[%s11918_s0 + $0x58] sm:$0xff]  }
 0x1e9   :  { %v2532_v44 = vpop.f32.mrf.mxu0 }
 0x1ea   :  { %12390 = vst [vmem:[#allocation130_spill] sm:$0xff] %v10121_v53  ;;  %v7856_v34 = vpop.f32.mrf.mxu1  ;;  %v10123_v52 = vadd.f32 %v2791_v56, %v2532_v44  ;;  %v8599_v44 = vld [vmem:[%s11918_s0 + $0x60] sm:$0xff]   ;;  %v12398_v53 = vld [vmem:[#allocation13_spill] sm:$0xff] }
 0x1eb   :  { %v7797_v46 = vpop.f32.mrf.mxu0  ;;  %8012 = vmatmul.mubr.msk.bf16.gmra.mxu0 %vm436_vm1, %v12392_v0 }
 0x1ec   :  { %12391 = vst [vmem:[#allocation131_spill] sm:$0xff] %v10123_v52  ;;  %v2807_v63 = vpop.f32.mrf.mxu1  ;;  %v10127_v28 = vadd.f32 %v7855_v24, %v7797_v46  ;;  %8015 = vmatprep.mubr.msk.bf16.mxu0 %vm436_vm1, %v12394_v36 }
 0x1ed   :  { %v2545_v55 = vpop.f32.mrf.mxu0 }
 0x1ee   :  { %12393 = vst [vmem:[#allocation132_spill] sm:$0xff] %v10127_v28  ;;  %v7859_v15 = vpop.f32.mrf.mxu1  ;;  %8074 = vmatmul.mubr.msk.bf16.gmra.mxu1 %vm436_vm1, %v8598_v16  ;;  %v10135_v56 = vadd.f32 %v2804_v38, %v2545_v55  ;;  %v12400_v16 = vld [vmem:[#allocation14_spill] sm:$0xff] }
 0x1ef   :  { %8077 = vmatprep.mubr.msk.bf16.mxu1 %vm436_vm1, %v8599_v44  ;;  %v7798_v46 = vpop.f32.mrf.mxu0 }
 0x1f0   :  { %12395 = vst [vmem:[#allocation133_spill] sm:$0xff] %v10135_v56  ;;  %v2820_v24 = vpop.f32.mrf.mxu1  ;;  %v10141_v21 = vadd.f32 %v7856_v34, %v7798_v46  ;;  %v8600_v34 = vld [vmem:[%s11918_s0 + $0x68] sm:$0xff]  }
 0x1f1   :  { %v2548_v36 = vpop.f32.mrf.mxu0 }
 0x1f2   :  { %12396 = vst [vmem:[#allocation134_spill] sm:$0xff] %v10141_v21  ;;  %v7860_v0 = vpop.f32.mrf.mxu1  ;;  %v10143_v28 = vadd.f32 %v2807_v63, %v2548_v36  ;;  %v8601_v36 = vld [vmem:[%s11918_s0 + $0x70] sm:$0xff]   ;;  %v12404_v21 = vld [vmem:[#allocation15_spill] sm:$0xff] }
 0x1f3   :  { %v7801_v52 = vpop.f32.mrf.mxu0  ;;  %8016 = vmatmul.mubr.msk.bf16.gmra.mxu0 %vm436_vm1, %v12398_v53 }
 0x1f4   :  { %12397 = vst [vmem:[#allocation135_spill] sm:$0xff] %v10143_v28  ;;  %v2823_v55 = vpop.f32.mrf.mxu1  ;;  %v10147_v38 = vadd.f32 %v7859_v15, %v7801_v52  ;;  %8019 = vmatprep.mubr.msk.bf16.mxu0 %vm436_vm1, %v12400_v16 }
 0x1f5   :  { %v2561_v56 = vpop.f32.mrf.mxu0 }
 0x1f6   :  { %12399 = vst [vmem:[#allocation136_spill] sm:$0xff] %v10147_v38  ;;  %v7863_v44 = vpop.f32.mrf.mxu1  ;;  %8078 = vmatmul.mubr.msk.bf16.gmra.mxu1 %vm436_vm1, %v8600_v34  ;;  %v10155_v63 = vadd.f32 %v2820_v24, %v2561_v56  ;;  %v12406_v34 = vld [vmem:[#allocation16_spill] sm:$0xff] }
 0x1f7   :  { %8081 = vmatprep.mubr.msk.bf16.mxu1 %vm436_vm1, %v8601_v36  ;;  %v7802_v52 = vpop.f32.mrf.mxu0 }
 0x1f8   :  { %12401 = vst [vmem:[#allocation137_spill] sm:$0xff] %v10155_v63  ;;  %v2836_v15 = vpop.f32.mrf.mxu1  ;;  %v10161_v46 = vadd.f32 %v7860_v0, %v7802_v52  ;;  %v8602_v0 = vld [vmem:[%s11918_s0 + $0x78] sm:$0xff]  }
 0x1f9   :  { %v2564_v16 = vpop.f32.mrf.mxu0 }
 0x1fa   :  { %12402 = vst [vmem:[#allocation138_spill] sm:$0xff] %v10161_v46  ;;  %v7864_v53 = vpop.f32.mrf.mxu1  ;;  %v10163_v38 = vadd.f32 %v2823_v55, %v2564_v16  ;;  %v8603_v16 = vld [vmem:[%s11918_s0 + $0x80] sm:$0xff]   ;;  %v12410_v46 = vld [vmem:[#allocation17_spill] sm:$0xff] }
 0x1fb   :  { %v7805_v28 = vpop.f32.mrf.mxu0  ;;  %8020 = vmatmul.mubr.msk.bf16.gmra.mxu0 %vm436_vm1, %v12404_v21 }
 0x1fc   :  { %12403 = vst [vmem:[#allocation139_spill] sm:$0xff] %v10163_v38  ;;  %v2839_v56 = vpop.f32.mrf.mxu1  ;;  %v10167_v24 = vadd.f32 %v7863_v44, %v7805_v28  ;;  %8023 = vmatprep.mubr.msk.bf16.mxu0 %vm436_vm1, %v12406_v34 }
 0x1fd   :  { %v2577_v63 = vpop.f32.mrf.mxu0 }
 0x1fe   :  { %12405 = vst [vmem:[#allocation140_spill] sm:$0xff] %v10167_v24  ;;  %v7867_v36 = vpop.f32.mrf.mxu1  ;;  %8082 = vmatmul.mubr.msk.bf16.gmra.mxu1 %vm436_vm1, %v8602_v0  ;;  %v10175_v55 = vadd.f32 %v2836_v15, %v2577_v63  ;;  %v12412_v0 = vld [vmem:[#allocation18_spill] sm:$0xff] }
 0x1ff   :  { %8085 = vmatprep.mubr.msk.bf16.mxu1 %vm436_vm1, %v8603_v16  ;;  %v7806_v28 = vpop.f32.mrf.mxu0 }
 0x200   :  { %12407 = vst [vmem:[#allocation141_spill] sm:$0xff] %v10175_v55  ;;  %v2852_v44 = vpop.f32.mrf.mxu1  ;;  %v10181_v52 = vadd.f32 %v7864_v53, %v7806_v28  ;;  %v8604_v53 = vld [vmem:[%s11918_s0 + $0x88] sm:$0xff]  }
 0x201   :  { %v2580_v34 = vpop.f32.mrf.mxu0 }
 0x202   :  { %12408 = vst [vmem:[#allocation142_spill] sm:$0xff] %v10181_v52  ;;  %v7868_v21 = vpop.f32.mrf.mxu1  ;;  %v10183_v24 = vadd.f32 %v2839_v56, %v2580_v34  ;;  %v8605_v34 = vld [vmem:[%s11918_s0 + $0x90] sm:$0xff]   ;;  %v12416_v52 = vld [vmem:[#allocation19_spill] sm:$0xff] }
 0x203   :  { %v7809_v38 = vpop.f32.mrf.mxu0  ;;  %8024 = vmatmul.mubr.msk.bf16.gmra.mxu0 %vm436_vm1, %v12410_v46 }
 0x204   :  { %12409 = vst [vmem:[#allocation143_spill] sm:$0xff] %v10183_v24  ;;  %v2855_v63 = vpop.f32.mrf.mxu1  ;;  %v10187_v15 = vadd.f32 %v7867_v36, %v7809_v38  ;;  %8027 = vmatprep.mubr.msk.bf16.mxu0 %vm436_vm1, %v12412_v0 }
 0x205   :  { %v2593_v55 = vpop.f32.mrf.mxu0 }
 0x206   :  { %12411 = vst [vmem:[#allocation144_spill] sm:$0xff] %v10187_v15  ;;  %v7871_v16 = vpop.f32.mrf.mxu1  ;;  %8086 = vmatmul.mubr.msk.bf16.gmra.mxu1 %vm436_vm1, %v8604_v53  ;;  %v10195_v56 = vadd.f32 %v2852_v44, %v2593_v55  ;;  %v12418_v53 = vld [vmem:[#allocation20_spill] sm:$0xff] }
 0x207   :  { %8089 = vmatprep.mubr.msk.bf16.mxu1 %vm436_vm1, %v8605_v34  ;;  %v7810_v38 = vpop.f32.mrf.mxu0 }
 0x208   :  { %12413 = vst [vmem:[#allocation145_spill] sm:$0xff] %v10195_v56  ;;  %v2868_v36 = vpop.f32.mrf.mxu1  ;;  %v10201_v28 = vadd.f32 %v7868_v21, %v7810_v38  ;;  %v8606_v21 = vld [vmem:[%s11918_s0 + $0x98] sm:$0xff]  }
 0x209   :  { %v2596_v0 = vpop.f32.mrf.mxu0 }
 0x20a   :  { %12414 = vst [vmem:[#allocation146_spill] sm:$0xff] %v10201_v28  ;;  %v7872_v46 = vpop.f32.mrf.mxu1  ;;  %v10203_v15 = vadd.f32 %v2855_v63, %v2596_v0  ;;  %v8607_v0 = vld [vmem:[%s11918_s0 + $0xa0] sm:$0xff]   ;;  %v12422_v28 = vld [vmem:[#allocation21_spill] sm:$0xff] }
 0x20b   :  { %v7813_v24 = vpop.f32.mrf.mxu0  ;;  %8028 = vmatmul.mubr.msk.bf16.gmra.mxu0 %vm436_vm1, %v12416_v52 }
 0x20c   :  { %12415 = vst [vmem:[#allocation147_spill] sm:$0xff] %v10203_v15  ;;  %v2871_v55 = vpop.f32.mrf.mxu1  ;;  %v10207_v44 = vadd.f32 %v7871_v16, %v7813_v24  ;;  %8031 = vmatprep.mubr.msk.bf16.mxu0 %vm436_vm1, %v12418_v53 }
 0x20d   :  { %v2609_v56 = vpop.f32.mrf.mxu0 }
 0x20e   :  { %12417 = vst [vmem:[#allocation148_spill] sm:$0xff] %v10207_v44  ;;  %v7875_v34 = vpop.f32.mrf.mxu1  ;;  %8090 = vmatmul.mubr.msk.bf16.gmra.mxu1 %vm436_vm1, %v8606_v21  ;;  %v10215_v63 = vadd.f32 %v2868_v36, %v2609_v56  ;;  %v12424_v21 = vld [vmem:[#allocation22_spill] sm:$0xff] }
 0x20f   :  { %8093 = vmatprep.mubr.msk.bf16.mxu1 %vm436_vm1, %v8607_v0  ;;  %v7814_v24 = vpop.f32.mrf.mxu0 }
 0x210   :  { %12419 = vst [vmem:[#allocation149_spill] sm:$0xff] %v10215_v63  ;;  %v2884_v16 = vpop.f32.mrf.mxu1  ;;  %v10221_v38 = vadd.f32 %v7872_v46, %v7814_v24  ;;  %v8608_v46 = vld [vmem:[%s11918_s0 + $0xa8] sm:$0xff]  }
 0x211   :  { %v2612_v53 = vpop.f32.mrf.mxu0 }
 0x212   :  { %12420 = vst [vmem:[#allocation150_spill] sm:$0xff] %v10221_v38  ;;  %v7876_v52 = vpop.f32.mrf.mxu1  ;;  %v10223_v44 = vadd.f32 %v2871_v55, %v2612_v53  ;;  %v8609_v55 = vld [vmem:[%s11918_s0 + $0xb0] sm:$0xff]  }
 0x213   :  { %v7817_v15 = vpop.f32.mrf.mxu0  ;;  %8032 = vmatmul.mubr.msk.bf16.gmra.mxu0 %vm436_vm1, %v12422_v28 }
 0x214   :  { %12421 = vst [vmem:[#allocation151_spill] sm:$0xff] %v10223_v44  ;;  %v2887_v56 = vpop.f32.mrf.mxu1  ;;  %v10227_v36 = vadd.f32 %v7875_v34, %v7817_v15  ;;  %8035 = vmatprep.mubr.msk.bf16.mxu0 %vm436_vm1, %v12424_v21 }
 0x215   :  { %v2625_v63 = vpop.f32.mrf.mxu0 }
 0x216   :  { %12423 = vst [vmem:[#allocation152_spill] sm:$0xff] %v10227_v36  ;;  %v7939_v0 = vpop.f32.mrf.mxu1  ;;  %8094 = vmatmul.mubr.msk.bf16.gmra.mxu1 %vm436_vm1, %v8608_v46  ;;  %v10235_v52 = vadd.f32 %v2884_v16, %v2625_v63  ;;  %v12427_v36 = vld [vmem:[#allocation23_spill] sm:$0xff]  ;;  %v12428_v16 = vld [vmem:[#allocation24_spill] sm:$0xff] }
 0x217   :  { %8097 = vmatprep.mubr.msk.bf16.mxu1 %vm436_vm1, %v8609_v55  ;;  %v7818_v15 = vpop.f32.mrf.mxu0  ;;  %v8610_v55 = vld [vmem:[%s11918_s0 + $0xb8] sm:$0xff]  }
 0x218   :  { %12425 = vst [vmem:[#allocation153_spill] sm:$0xff] %v10235_v52  ;;  %v3253_v53 = vpop.f32.mrf.mxu1 }
 0x219   :  { %v2628_v34 = vpop.f32.mrf.mxu0 }
 0x21a   :  { %v7940_v24 = vpop.f32.mrf.mxu1  ;;  %v10241_v21 = vadd.f32 %v2887_v56, %v2628_v34  ;;  %v8611_v34 = vld [vmem:[%s11918_s0 + $0xc0] sm:$0xff]  }
 0x21b   :  { %v7881_v28 = vpop.f32.mrf.mxu0  ;;  %8036 = vmatmul.mubr.msk.bf16.gmra.mxu0 %vm436_vm1, %v12427_v36 }
 0x21c   :  { %12426 = vst [vmem:[#allocation154_spill] sm:$0xff] %v10241_v21  ;;  %v3256_v44 = vpop.f32.mrf.mxu1  ;;  %v3161_v63 = vadd.f32 %v7881_v28, %v9959_v26  ;;  %8039 = vmatprep.mubr.msk.bf16.mxu0 %vm436_vm1, %v12428_v16 }
 0x21d   :  { %v2937_v46 = vpop.f32.mrf.mxu0 }
 0x21e   :  { %v7943_v52 = vpop.f32.mrf.mxu1  ;;  %8098 = vmatmul.mubr.msk.bf16.gmra.mxu1 %vm436_vm1, %v8610_v55  ;;  %v10252_v56 = vadd.f32 %v7939_v0, %v3161_v63  ;;  %v3159_v15 = vadd.f32 %v2937_v46, %v9965_v18 }
 0x21f   :  { %8101 = vmatprep.mubr.msk.bf16.mxu1 %vm436_vm1, %v8611_v34  ;;  %v7882_v26 = vpop.f32.mrf.mxu0 }
 0x220   :  { %v3269_v28 = vpop.f32.mrf.mxu1  ;;  %v10261_v36 = vadd.f32 %v3253_v53, %v3159_v15  ;;  %v3162_v21 = vadd.f32 %v7882_v26, %v9969_v47 }
 0x221   :  { %v2940_v55 = vpop.f32.mrf.mxu0 }
 0x222   :  { %v7944_v0 = vpop.f32.mrf.mxu1  ;;  %v10266_v63 = vadd.f32 %v7940_v24, %v3162_v21  ;;  %v3160_v46 = vadd.f32 %v2940_v55, %v9971_v13  ;;  %v8612_v13 = vld [vmem:[%s11918_s0 + $0xc8] sm:$0xff]  }
 0x223   :  { %v7885_v38 = vpop.f32.mrf.mxu0  ;;  %8040 = vmatmul.mubr.msk.bf16.gmra.mxu0 %vm436_vm1, %v8935_v5 }
 0x224   :  { %v3272_v34 = vpop.f32.mrf.mxu1  ;;  %v10273_v15 = vadd.f32 %v3256_v44, %v3160_v46  ;;  %v3165_v47 = vadd.f32 %v7885_v38, %v9975_v25  ;;  %8043 = vmatprep.mubr.msk.bf16.mxu0 %vm436_vm1, %v8938_v10  ;;  %v8613_v25 = vld [vmem:[%s11918_s0 + $0xd0] sm:$0xff]  }
 0x225   :  { %v2953_v26 = vpop.f32.mrf.mxu0 }
 0x226   :  { %v7947_v21 = vpop.f32.mrf.mxu1  ;;  %8102 = vmatmul.mubr.msk.bf16.gmra.mxu1 %vm436_vm1, %v8612_v13  ;;  %v10284_v55 = vadd.f32 %v7943_v52, %v3165_v47  ;;  %v3163_v44 = vadd.f32 %v2953_v26, %v9981_v9 }
 0x227   :  { %8105 = vmatprep.mubr.msk.bf16.mxu1 %vm436_vm1, %v8613_v25  ;;  %v7886_v38 = vpop.f32.mrf.mxu0 }
 0x228   :  { %v3285_v46 = vpop.f32.mrf.mxu1  ;;  %v10293_v18 = vadd.f32 %v3269_v28, %v3163_v44  ;;  %v3166_v13 = vadd.f32 %v7886_v38, %v9985_v11 }
 0x229   :  { %v2956_v24 = vpop.f32.mrf.mxu0 }
 0x22a   :  { %v7948_v52 = vpop.f32.mrf.mxu1  ;;  %v10298_v47 = vadd.f32 %v7944_v0, %v3166_v13  ;;  %v3164_v26 = vadd.f32 %v2956_v24, %v9987_v42  ;;  %v8614_v42 = vld [vmem:[%s11918_s0 + $0xd8] ss:$0 sps:$4 sm:$0x11]  }
 0x22b   :  { %v7889_v16 = vpop.f32.mrf.mxu0  ;;  %8044 = vmatmul.mubr.msk.bf16.gmra.mxu0 %vm436_vm1, %v8959_v35 }
 0x22c   :  { %v3288_v25 = vpop.f32.mrf.mxu1  ;;  %v10305_v44 = vadd.f32 %v3272_v34, %v3164_v26  ;;  %v3169_v11 = vadd.f32 %v7889_v16, %v9991_v3  ;;  %8047 = vmatprep.mubr.msk.bf16.mxu0 %vm436_vm1, %v8962_v37 }
 0x22d   :  { %v2969_v38 = vpop.f32.mrf.mxu0 }
 0x22e   :  { %v7951_v0 = vpop.f32.mrf.mxu1  ;;  %8106 = vmatmul.mubr.msk.bf16.gmra.mxu1 %vm436_vm1, %v8614_v42  ;;  %v10316_v13 = vadd.f32 %v7947_v21, %v3169_v11  ;;  %v3167_v34 = vadd.f32 %v2969_v38, %v9997_v40 }
 0x22f   :  { %8169 = vmatprep.mubr.msk.bf16.mxu1 %vm436_vm1, %v8967_v51  ;;  %v7890_v3 = vpop.f32.mrf.mxu0 }
 0x230   :  { %v3301_v16 = vpop.f32.mrf.mxu1  ;;  %v10323_v28 = vadd.f32 %v3285_v46, %v3167_v34  ;;  %v3170_v9 = vadd.f32 %v7890_v3, %v10003_v12  ;;  %v5058_v46 = vsel %vm521_vm0, %v10018_v41, 0  ;;  %v10373_v12 = vld [vmem:[%s11917_s1 + $0x1c] sm:$0x3] }
 0x231   :  { %v2972_v42 = vpop.f32.mrf.mxu0 }
 0x232   :  { %v7952_v53 = vpop.f32.mrf.mxu1  ;;  %v10328_v11 = vadd.f32 %v7948_v52, %v3170_v9  ;;  %v3168_v40 = vadd.f32 %v2972_v42, %v10005_v8  ;;  %v10345_v8 = vld [vmem:[%s11917_s1 + $0x1e] sm:$0x3] }
 0x233   :  { %v7893_v38 = vpop.f32.mrf.mxu0  ;;  %8048 = vmatmul.mubr.msk.bf16.gmra.mxu0 %vm436_vm1, %v8988_v7 }
 0x234   :  { %v3304_v24 = vpop.f32.mrf.mxu1  ;;  %v10337_v34 = vadd.f32 %v3288_v25, %v3168_v40  ;;  %v3173_v3 = vadd.f32 %v7893_v38, %v10011_v1  ;;  %8111 = vmatprep.mubr.msk.bf16.mxu0 %vm436_vm1, %v8993_v17 }
 0x235   :  { %v2985_v52 = vpop.f32.mrf.mxu0 }
 0x236   :  { %v7955_v9 = vpop.f32.mrf.mxu1  ;;  %8170 = vmatmul.mubr.msk.bf16.vlgmr.msra.gmra.mxu1 %vm436_vm1, %v12257_v50  ;;  %v10351_v25 = vadd.f32 %v7951_v0, %v3173_v3  ;;  %v3171_v1 = vadd.f32 %v2985_v52, %v10024_v33  ;;  %v4799_v33 = vsel %vm521_vm0, %v10041_v27, 0 }
 0x237   :  { %8284 = vmatpush3.bf16.msra.mxu1 %v5058_v46  ;;  %8173 = vmatprep.mubr.msk.bf16.mxu1 %vm436_vm1, %v12259_v22  ;;  %v7894_v42 = vpop.f32.mrf.mxu0  ;;  %v12437_v46 = vld [vmem:[#allocation27_spill] sm:$0xff] }
 0x238   :  { %12429 = vst [vmem:[#allocation155_spill] sm:$0xff] %v10351_v25  ;;  %v3317_v40 = vpop.f32.mrf.mxu1  ;;  %8472 = vmatprep.subr.msk.bf16.mxu1 %vm521_vm0, %v10345_v8  ;;  %v10360_v21 = vadd.f32 %v3301_v16, %v3171_v1  ;;  %v3174_v41 = vadd.f32 %v7894_v42, %v10032_v4  ;;  %v12433_v1 = vld [vmem:[#allocation28_spill] sm:$0xff] }
 0x239   :  { %v2988_v0 = vpop.f32.mrf.mxu0 }
 0x23a   :  { %12431 = vst [vmem:[#allocation156_spill] sm:$0xff] %v10360_v21  ;;  %v7956_v3 = vpop.f32.mrf.mxu1  ;;  %v10367_v52 = vadd.f32 %v7952_v53, %v3174_v41  ;;  %v3172_v26 = vadd.f32 %v2988_v0, %v10036_v32  ;;  %v12436_v41 = vld [vmem:[#allocation29_spill] sm:$0xff] }
 0x23b   :  { %v7897_v16 = vpop.f32.mrf.mxu0  ;;  %8112 = vmatmul.mubr.msk.bf16.vlgmr.msra.gmra.mxu0 %vm436_vm1, %v12433_v1  ;;  %v5319_v1 = vsel %vm521_vm0, %v10373_v12, 0 }
 0x23c   :  { %12432 = vst [vmem:[#allocation157_spill] sm:$0xff] %v10367_v52  ;;  %v3320_v4 = vpop.f32.mrf.mxu1  ;;  %v10379_v25 = vadd.f32 %v3304_v24, %v3172_v26  ;;  %v3177_v53 = vadd.f32 %v7897_v16, %v10045_v19  ;;  %8226 = vmatpush3.bf16.msra.mxu0 %v4799_v33  ;;  %8115 = vmatprep.mubr.msk.bf16.mxu0 %vm436_vm1, %v12436_v41  ;;  %v12445_v16 = vld [vmem:[#allocation33_spill] sm:$0xff] }
 0x23d   :  { %v3001_v32 = vpop.f32.mrf.mxu0  ;;  %8471 = vmatprep.subr.msk.bf16.mxu0 %vm521_vm0, %v10373_v12 }
 0x23e   :  { %12435 = vst [vmem:[#allocation158_spill] sm:$0xff] %v10379_v25  ;;  %v7959_v0 = vpop.f32.mrf.mxu1  ;;  %8174 = vmatmul.mubr.msk.bf16.gmra.mxu1 %vm436_vm1, %v12437_v46  ;;  %v10390_v27 = vadd.f32 %v7955_v9, %v3177_v53  ;;  %v3175_v24 = vadd.f32 %v3001_v32, %v10055_v61  ;;  %v12597_v25 = vld [vmem:[#allocation2_spill] sm:$0xff] }
 0x23f   :  { %8177 = vmatprep.mubr.msk.bf16.mxu1 %vm436_vm1, %v12267_v6  ;;  %v7898_v19 = vpop.f32.mrf.mxu0  ;;  %v12596_v6 = vld [vmem:[#allocation75_spill] sm:$0xff] }
 0x240   :  { %12439 = vst [vmem:[#allocation159_spill] sm:$0xff] %v10390_v27  ;;  %v3333_v26 = vpop.f32.mrf.mxu1  ;;  %v10397_v41 = vadd.f32 %v3317_v40, %v3175_v24  ;;  %v3178_v46 = vadd.f32 %v7898_v19, %v10061_v31  ;;  %v12444_v31 = vld [vmem:[#allocation120_spill] sm:$0xff]  ;;  %v12450_v40 = vld [vmem:[#allocation34_spill] sm:$0xff] }
 0x241   :  { %v3004_v52 = vpop.f32.mrf.mxu0 }
 0x242   :  { %12441 = vst [vmem:[#allocation160_spill] sm:$0xff] %v10397_v41  ;;  %v7960_v42 = vpop.f32.mrf.mxu1  ;;  %v10402_v53 = vadd.f32 %v7956_v3, %v3178_v46  ;;  %v3176_v61 = vadd.f32 %v3004_v52, %v10063_v49  ;;  %v12446_v46 = vld [vmem:[#allocation31_spill] sm:$0xff]  ;;  %v12449_v41 = vld [vmem:[#allocation121_spill] sm:$0xff] }
 0x243   :  { %v7901_v32 = vpop.f32.mrf.mxu0  ;;  %8116 = vmatmul.mubr.msk.bf16.gmra.mxu0 %vm436_vm1, %v12270_v57 }
 0x244   :  { %12442 = vst [vmem:[#allocation161_spill] sm:$0xff] %v10402_v53  ;;  %v3336_v21 = vpop.f32.mrf.mxu1  ;;  %v10409_v24 = vadd.f32 %v3320_v4, %v3176_v61  ;;  %v3181_v19 = vadd.f32 %v7901_v32, %v12444_v31  ;;  %8119 = vmatprep.mubr.msk.bf16.mxu0 %vm436_vm1, %v12445_v16  ;;  %v12453_v53 = vld [vmem:[#allocation122_spill] sm:$0xff] }
 0x245   :  { %v3017_v9 = vpop.f32.mrf.mxu0 }
 0x246   :  { %12443 = vst [vmem:[#allocation162_spill] sm:$0xff] %v10409_v24  ;;  %v7963_v3 = vpop.f32.mrf.mxu1  ;;  %8178 = vmatmul.mubr.msk.bf16.gmra.mxu1 %vm436_vm1, %v12446_v46  ;;  %v10418_v57 = vadd.f32 %v7959_v0, %v3181_v19  ;;  %v3179_v23 = vadd.f32 %v3017_v9, %v12449_v41  ;;  %v12456_v41 = vld [vmem:[#allocation123_spill] sm:$0xff] }
 0x247   :  { %8181 = vmatprep.mubr.msk.bf16.mxu1 %vm436_vm1, %v12450_v40  ;;  %v7902_v4 = vpop.f32.mrf.mxu0  ;;  %v12457_v40 = vld [vmem:[#allocation36_spill] sm:$0xff] }
 0x248   :  { %12448 = vst [vmem:[#allocation120_spill] sm:$0xff] %v10418_v57  ;;  %v3349_v61 = vpop.f32.mrf.mxu1  ;;  %v10425_v16 = vadd.f32 %v3333_v26, %v3179_v23  ;;  %v3182_v54 = vadd.f32 %v7902_v4, %v12453_v53  ;;  %v12460_v53 = vld [vmem:[#allocation124_spill] sm:$0xff]  ;;  %v12461_v57 = vld [vmem:[#allocation37_spill] sm:$0xff]  ;;  %v12466_v23 = vld [vmem:[#allocation38_spill] sm:$0xff] }
 0x249   :  { %v3020_v46 = vpop.f32.mrf.mxu0 }
 0x24a   :  { %12452 = vst [vmem:[#allocation121_spill] sm:$0xff] %v10425_v16  ;;  %v7964_v27 = vpop.f32.mrf.mxu1  ;;  %v10430_v19 = vadd.f32 %v7960_v42, %v3182_v54  ;;  %v3180_v9 = vadd.f32 %v3020_v46, %v12456_v41  ;;  %v12462_v42 = vld [vmem:[#allocation35_spill] sm:$0xff]  ;;  %v12465_v16 = vld [vmem:[#allocation125_spill] sm:$0xff] }
 0x24b   :  { %v7905_v24 = vpop.f32.mrf.mxu0  ;;  %8120 = vmatmul.mubr.msk.bf16.gmra.mxu0 %vm436_vm1, %v12457_v40 }
 0x24c   :  { %12455 = vst [vmem:[#allocation122_spill] sm:$0xff] %v10430_v19  ;;  %v3352_v49 = vpop.f32.mrf.mxu1  ;;  %v10437_v26 = vadd.f32 %v3336_v21, %v3180_v9  ;;  %v3185_v4 = vadd.f32 %v7905_v24, %v12460_v53  ;;  %8123 = vmatprep.mubr.msk.bf16.mxu0 %vm436_vm1, %v12461_v57  ;;  %v12469_v19 = vld [vmem:[#allocation126_spill] sm:$0xff] }
 0x24d   :  { %v3033_v0 = vpop.f32.mrf.mxu0 }
 0x24e   :  { %12459 = vst [vmem:[#allocation123_spill] sm:$0xff] %v10437_v26  ;;  %v7967_v54 = vpop.f32.mrf.mxu1  ;;  %8182 = vmatmul.mubr.msk.bf16.gmra.mxu1 %vm436_vm1, %v12462_v42  ;;  %v10446_v40 = vadd.f32 %v7963_v3, %v3185_v4  ;;  %v3183_v52 = vadd.f32 %v3033_v0, %v12465_v16  ;;  %v12472_v16 = vld [vmem:[#allocation127_spill] sm:$0xff] }
 0x24f   :  { %8185 = vmatprep.mubr.msk.bf16.mxu1 %vm436_vm1, %v12466_v23  ;;  %v7906_v21 = vpop.f32.mrf.mxu0  ;;  %v12473_v23 = vld [vmem:[#allocation40_spill] sm:$0xff] }
 0x250   :  { %12464 = vst [vmem:[#allocation124_spill] sm:$0xff] %v10446_v40  ;;  %v3365_v24 = vpop.f32.mrf.mxu1  ;;  %v10453_v57 = vadd.f32 %v3349_v61, %v3183_v52  ;;  %v3186_v31 = vadd.f32 %v7906_v21, %v12469_v19  ;;  %v12476_v19 = vld [vmem:[#allocation128_spill] sm:$0xff]  ;;  %v12477_v40 = vld [vmem:[#allocation41_spill] sm:$0xff]  ;;  %v12482_v52 = vld [vmem:[#allocation42_spill] sm:$0xff] }
 0x251   :  { %v3036_v42 = vpop.f32.mrf.mxu0 }
 0x252   :  { %12468 = vst [vmem:[#allocation125_spill] sm:$0xff] %v10453_v57  ;;  %v7968_v32 = vpop.f32.mrf.mxu1  ;;  %v10458_v4 = vadd.f32 %v7964_v27, %v3186_v31  ;;  %v3184_v0 = vadd.f32 %v3036_v42, %v12472_v16  ;;  %v12478_v31 = vld [vmem:[#allocation39_spill] sm:$0xff]  ;;  %v12481_v57 = vld [vmem:[#allocation129_spill] sm:$0xff] }
 0x253   :  { %v7909_v26 = vpop.f32.mrf.mxu0  ;;  %8124 = vmatmul.mubr.msk.bf16.gmra.mxu0 %vm436_vm1, %v12473_v23 }
 0x254   :  { %12471 = vst [vmem:[#allocation126_spill] sm:$0xff] %v10458_v4  ;;  %v3368_v46 = vpop.f32.mrf.mxu1  ;;  %v10465_v61 = vadd.f32 %v3352_v49, %v3184_v0  ;;  %v3189_v21 = vadd.f32 %v7909_v26, %v12476_v19  ;;  %8127 = vmatprep.mubr.msk.bf16.mxu0 %vm436_vm1, %v12477_v40  ;;  %v12485_v4 = vld [vmem:[#allocation130_spill] sm:$0xff] }
 0x255   :  { %v3049_v3 = vpop.f32.mrf.mxu0 }
 0x256   :  { %12475 = vst [vmem:[#allocation127_spill] sm:$0xff] %v10465_v61  ;;  %v7971_v27 = vpop.f32.mrf.mxu1  ;;  %8186 = vmatmul.mubr.msk.bf16.gmra.mxu1 %vm436_vm1, %v12478_v31  ;;  %v10474_v23 = vadd.f32 %v7967_v54, %v3189_v21  ;;  %v3187_v41 = vadd.f32 %v3049_v3, %v12481_v57  ;;  %v12488_v57 = vld [vmem:[#allocation131_spill] sm:$0xff] }
 0x257   :  { %8189 = vmatprep.mubr.msk.bf16.mxu1 %vm436_vm1, %v12482_v52  ;;  %v7910_v49 = vpop.f32.mrf.mxu0  ;;  %v12489_v52 = vld [vmem:[#allocation44_spill] sm:$0xff] }
 0x258   :  { %12480 = vst [vmem:[#allocation128_spill] sm:$0xff] %v10474_v23  ;;  %v3381_v26 = vpop.f32.mrf.mxu1  ;;  %v10481_v40 = vadd.f32 %v3365_v24, %v3187_v41  ;;  %v3190_v53 = vadd.f32 %v7910_v49, %v12485_v4  ;;  %v12492_v4 = vld [vmem:[#allocation132_spill] sm:$0xff]  ;;  %v12493_v23 = vld [vmem:[#allocation45_spill] sm:$0xff]  ;;  %v12498_v41 = vld [vmem:[#allocation46_spill] sm:$0xff] }
 0x259   :  { %v3052_v31 = vpop.f32.mrf.mxu0 }
 0x25a   :  { %12484 = vst [vmem:[#allocation129_spill] sm:$0xff] %v10481_v40  ;;  %v7972_v9 = vpop.f32.mrf.mxu1  ;;  %v10486_v21 = vadd.f32 %v7968_v32, %v3190_v53  ;;  %v3188_v3 = vadd.f32 %v3052_v31, %v12488_v57  ;;  %v12494_v53 = vld [vmem:[#allocation43_spill] sm:$0xff]  ;;  %v12497_v40 = vld [vmem:[#allocation133_spill] sm:$0xff] }
 0x25b   :  { %v7913_v61 = vpop.f32.mrf.mxu0  ;;  %8128 = vmatmul.mubr.msk.bf16.gmra.mxu0 %vm436_vm1, %v12489_v52 }
 0x25c   :  { %12487 = vst [vmem:[#allocation130_spill] sm:$0xff] %v10486_v21  ;;  %v3384_v42 = vpop.f32.mrf.mxu1  ;;  %v10493_v24 = vadd.f32 %v3368_v46, %v3188_v3  ;;  %v3193_v49 = vadd.f32 %v7913_v61, %v12492_v4  ;;  %8131 = vmatprep.mubr.msk.bf16.mxu0 %vm436_vm1, %v12493_v23  ;;  %v12501_v21 = vld [vmem:[#allocation134_spill] sm:$0xff] }
 0x25d   :  { %v3065_v54 = vpop.f32.mrf.mxu0 }
 0x25e   :  { %12491 = vst [vmem:[#allocation131_spill] sm:$0xff] %v10493_v24  ;;  %v7975_v32 = vpop.f32.mrf.mxu1  ;;  %8190 = vmatmul.mubr.msk.bf16.gmra.mxu1 %vm436_vm1, %v12494_v53  ;;  %v10502_v52 = vadd.f32 %v7971_v27, %v3193_v49  ;;  %v3191_v16 = vadd.f32 %v3065_v54, %v12497_v40  ;;  %v12504_v40 = vld [vmem:[#allocation135_spill] sm:$0xff] }
 0x25f   :  { %8193 = vmatprep.mubr.msk.bf16.mxu1 %vm436_vm1, %v12498_v41  ;;  %v7914_v46 = vpop.f32.mrf.mxu0  ;;  %v12505_v41 = vld [vmem:[#allocation48_spill] sm:$0xff] }
 0x260   :  { %12496 = vst [vmem:[#allocation132_spill] sm:$0xff] %v10502_v52  ;;  %v3397_v61 = vpop.f32.mrf.mxu1  ;;  %v10509_v23 = vadd.f32 %v3381_v26, %v3191_v16  ;;  %v3194_v19 = vadd.f32 %v7914_v46, %v12501_v21  ;;  %v12508_v21 = vld [vmem:[#allocation136_spill] sm:$0xff]  ;;  %v12509_v52 = vld [vmem:[#allocation49_spill] sm:$0xff]  ;;  %v12514_v16 = vld [vmem:[#allocation50_spill] sm:$0xff] }
 0x261   :  { %v3068_v53 = vpop.f32.mrf.mxu0 }
 0x262   :  { %12500 = vst [vmem:[#allocation133_spill] sm:$0xff] %v10509_v23  ;;  %v7976_v0 = vpop.f32.mrf.mxu1  ;;  %v10514_v49 = vadd.f32 %v7972_v9, %v3194_v19  ;;  %v3192_v54 = vadd.f32 %v3068_v53, %v12504_v40  ;;  %v12510_v19 = vld [vmem:[#allocation47_spill] sm:$0xff]  ;;  %v12513_v23 = vld [vmem:[#allocation137_spill] sm:$0xff] }
 0x263   :  { %v7917_v24 = vpop.f32.mrf.mxu0  ;;  %8132 = vmatmul.mubr.msk.bf16.gmra.mxu0 %vm436_vm1, %v12505_v41 }
 0x264   :  { %12503 = vst [vmem:[#allocation134_spill] sm:$0xff] %v10514_v49  ;;  %v3400_v31 = vpop.f32.mrf.mxu1  ;;  %v10521_v26 = vadd.f32 %v3384_v42, %v3192_v54  ;;  %v3197_v46 = vadd.f32 %v7917_v24, %v12508_v21  ;;  %8135 = vmatprep.mubr.msk.bf16.mxu0 %vm436_vm1, %v12509_v52  ;;  %v12517_v49 = vld [vmem:[#allocation138_spill] sm:$0xff] }
 0x265   :  { %v3081_v27 = vpop.f32.mrf.mxu0 }
 0x266   :  { %12507 = vst [vmem:[#allocation135_spill] sm:$0xff] %v10521_v26  ;;  %v7979_v9 = vpop.f32.mrf.mxu1  ;;  %8194 = vmatmul.mubr.msk.bf16.gmra.mxu1 %vm436_vm1, %v12510_v19  ;;  %v10530_v41 = vadd.f32 %v7975_v32, %v3197_v46  ;;  %v3195_v57 = vadd.f32 %v3081_v27, %v12513_v23  ;;  %v12520_v23 = vld [vmem:[#allocation139_spill] sm:$0xff] }
 0x267   :  { %8197 = vmatprep.mubr.msk.bf16.mxu1 %vm436_vm1, %v12514_v16  ;;  %v7918_v42 = vpop.f32.mrf.mxu0  ;;  %v12521_v16 = vld [vmem:[#allocation52_spill] sm:$0xff] }
 0x268   :  { %12512 = vst [vmem:[#allocation136_spill] sm:$0xff] %v10530_v41  ;;  %v3413_v24 = vpop.f32.mrf.mxu1  ;;  %v10537_v52 = vadd.f32 %v3397_v61, %v3195_v57  ;;  %v3198_v4 = vadd.f32 %v7918_v42, %v12517_v49  ;;  %v12524_v49 = vld [vmem:[#allocation140_spill] sm:$0xff]  ;;  %v12525_v41 = vld [vmem:[#allocation53_spill] sm:$0xff]  ;;  %v12530_v57 = vld [vmem:[#allocation54_spill] sm:$0xff] }
 0x269   :  { %v3084_v19 = vpop.f32.mrf.mxu0 }
 0x26a   :  { %12516 = vst [vmem:[#allocation137_spill] sm:$0xff] %v10537_v52  ;;  %v7980_v3 = vpop.f32.mrf.mxu1  ;;  %v10542_v46 = vadd.f32 %v7976_v0, %v3198_v4  ;;  %v3196_v27 = vadd.f32 %v3084_v19, %v12520_v23  ;;  %v12526_v4 = vld [vmem:[#allocation51_spill] sm:$0xff]  ;;  %v12529_v52 = vld [vmem:[#allocation141_spill] sm:$0xff] }
 0x26b   :  { %v7921_v26 = vpop.f32.mrf.mxu0  ;;  %8136 = vmatmul.mubr.msk.bf16.gmra.mxu0 %vm436_vm1, %v12521_v16 }
 0x26c   :  { %12519 = vst [vmem:[#allocation138_spill] sm:$0xff] %v10542_v46  ;;  %v3416_v53 = vpop.f32.mrf.mxu1  ;;  %v10549_v61 = vadd.f32 %v3400_v31, %v3196_v27  ;;  %v3201_v42 = vadd.f32 %v7921_v26, %v12524_v49  ;;  %8139 = vmatprep.mubr.msk.bf16.mxu0 %vm436_vm1, %v12525_v41  ;;  %v12533_v46 = vld [vmem:[#allocation142_spill] sm:$0xff] }
 0x26d   :  { %v3097_v32 = vpop.f32.mrf.mxu0 }
 0x26e   :  { %12523 = vst [vmem:[#allocation139_spill] sm:$0xff] %v10549_v61  ;;  %v7983_v0 = vpop.f32.mrf.mxu1  ;;  %8198 = vmatmul.mubr.msk.bf16.gmra.mxu1 %vm436_vm1, %v12526_v4  ;;  %v10558_v16 = vadd.f32 %v7979_v9, %v3201_v42  ;;  %v3199_v40 = vadd.f32 %v3097_v32, %v12529_v52  ;;  %v12536_v52 = vld [vmem:[#allocation143_spill] sm:$0xff] }
 0x26f   :  { %8201 = vmatprep.mubr.msk.bf16.mxu1 %vm436_vm1, %v12530_v57  ;;  %v7922_v31 = vpop.f32.mrf.mxu0  ;;  %v12537_v57 = vld [vmem:[#allocation56_spill] sm:$0xff] }
 0x270   :  { %12528 = vst [vmem:[#allocation140_spill] sm:$0xff] %v10558_v16  ;;  %v3429_v26 = vpop.f32.mrf.mxu1  ;;  %v10565_v41 = vadd.f32 %v3413_v24, %v3199_v40  ;;  %v3202_v21 = vadd.f32 %v7922_v31, %v12533_v46  ;;  %v12540_v46 = vld [vmem:[#allocation144_spill] sm:$0xff]  ;;  %v12541_v16 = vld [vmem:[#allocation57_spill] sm:$0xff]  ;;  %v12546_v40 = vld [vmem:[#allocation58_spill] sm:$0xff] }
 0x271   :  { %v3100_v4 = vpop.f32.mrf.mxu0 }
 0x272   :  { %12532 = vst [vmem:[#allocation141_spill] sm:$0xff] %v10565_v41  ;;  %v7984_v54 = vpop.f32.mrf.mxu1  ;;  %v10570_v42 = vadd.f32 %v7980_v3, %v3202_v21  ;;  %v3200_v32 = vadd.f32 %v3100_v4, %v12536_v52  ;;  %v12542_v21 = vld [vmem:[#allocation55_spill] sm:$0xff]  ;;  %v12545_v41 = vld [vmem:[#allocation145_spill] sm:$0xff] }
 0x273   :  { %v7925_v61 = vpop.f32.mrf.mxu0  ;;  %8140 = vmatmul.mubr.msk.bf16.gmra.mxu0 %vm436_vm1, %v12537_v57 }
 0x274   :  { %12535 = vst [vmem:[#allocation142_spill] sm:$0xff] %v10570_v42  ;;  %v3432_v19 = vpop.f32.mrf.mxu1  ;;  %v10577_v24 = vadd.f32 %v3416_v53, %v3200_v32  ;;  %v3205_v31 = vadd.f32 %v7925_v61, %v12540_v46  ;;  %8143 = vmatprep.mubr.msk.bf16.mxu0 %vm436_vm1, %v12541_v16  ;;  %v12549_v42 = vld [vmem:[#allocation146_spill] sm:$0xff] }
 0x275   :  { %v3113_v9 = vpop.f32.mrf.mxu0 }
 0x276   :  { %12539 = vst [vmem:[#allocation143_spill] sm:$0xff] %v10577_v24  ;;  %v7987_v3 = vpop.f32.mrf.mxu1  ;;  %8202 = vmatmul.mubr.msk.bf16.gmra.mxu1 %vm436_vm1, %v12542_v21  ;;  %v10586_v57 = vadd.f32 %v7983_v0, %v3205_v31  ;;  %v3203_v23 = vadd.f32 %v3113_v9, %v12545_v41  ;;  %v12552_v41 = vld [vmem:[#allocation147_spill] sm:$0xff] }
 0x277   :  { %8205 = vmatprep.mubr.msk.bf16.mxu1 %vm436_vm1, %v12546_v40  ;;  %v7926_v53 = vpop.f32.mrf.mxu0  ;;  %v12553_v40 = vld [vmem:[#allocation60_spill] sm:$0xff] }
 0x278   :  { %12544 = vst [vmem:[#allocation144_spill] sm:$0xff] %v10586_v57  ;;  %v3445_v61 = vpop.f32.mrf.mxu1  ;;  %v10593_v16 = vadd.f32 %v3429_v26, %v3203_v23  ;;  %v3206_v49 = vadd.f32 %v7926_v53, %v12549_v42  ;;  %v12556_v42 = vld [vmem:[#allocation148_spill] sm:$0xff]  ;;  %v12557_v57 = vld [vmem:[#allocation61_spill] sm:$0xff]  ;;  %v12562_v23 = vld [vmem:[#allocation62_spill] sm:$0xff] }
 0x279   :  { %v3116_v21 = vpop.f32.mrf.mxu0 }
 0x27a   :  { %12548 = vst [vmem:[#allocation145_spill] sm:$0xff] %v10593_v16  ;;  %v7988_v27 = vpop.f32.mrf.mxu1  ;;  %v10598_v31 = vadd.f32 %v7984_v54, %v3206_v49  ;;  %v3204_v9 = vadd.f32 %v3116_v21, %v12552_v41  ;;  %v12558_v49 = vld [vmem:[#allocation59_spill] sm:$0xff]  ;;  %v12561_v16 = vld [vmem:[#allocation149_spill] sm:$0xff] }
 0x27b   :  { %v7929_v24 = vpop.f32.mrf.mxu0  ;;  %8144 = vmatmul.mubr.msk.bf16.gmra.mxu0 %vm436_vm1, %v12553_v40 }
 0x27c   :  { %12551 = vst [vmem:[#allocation146_spill] sm:$0xff] %v10598_v31  ;;  %v3448_v4 = vpop.f32.mrf.mxu1  ;;  %v10605_v26 = vadd.f32 %v3432_v19, %v3204_v9  ;;  %v3209_v53 = vadd.f32 %v7929_v24, %v12556_v42  ;;  %8147 = vmatprep.mubr.msk.bf16.mxu0 %vm436_vm1, %v12557_v57  ;;  %v12565_v31 = vld [vmem:[#allocation150_spill] sm:$0xff] }
 0x27d   :  { %v3129_v0 = vpop.f32.mrf.mxu0 }
 0x27e   :  { %12555 = vst [vmem:[#allocation147_spill] sm:$0xff] %v10605_v26  ;;  %v7991_v54 = vpop.f32.mrf.mxu1  ;;  %8206 = vmatmul.mubr.msk.bf16.gmra.mxu1 %vm436_vm1, %v12558_v49  ;;  %v10614_v40 = vadd.f32 %v7987_v3, %v3209_v53  ;;  %v3207_v52 = vadd.f32 %v3129_v0, %v12561_v16  ;;  %v12568_v16 = vld [vmem:[#allocation151_spill] sm:$0xff] }
 0x27f   :  { %8209 = vmatprep.mubr.msk.bf16.mxu1 %vm436_vm1, %v12562_v23  ;;  %v7930_v19 = vpop.f32.mrf.mxu0  ;;  %v12569_v23 = vld [vmem:[#allocation64_spill] sm:$0xff] }
 0x280   :  { %12560 = vst [vmem:[#allocation148_spill] sm:$0xff] %v10614_v40  ;;  %v3461_v24 = vpop.f32.mrf.mxu1  ;;  %v10621_v57 = vadd.f32 %v3445_v61, %v3207_v52  ;;  %v3210_v46 = vadd.f32 %v7930_v19, %v12565_v31  ;;  %v12572_v31 = vld [vmem:[#allocation152_spill] sm:$0xff]  ;;  %v12578_v52 = vld [vmem:[#allocation66_spill] sm:$0xff] }
 0x281   :  { %v3132_v49 = vpop.f32.mrf.mxu0 }
 0x282   :  { %12564 = vst [vmem:[#allocation149_spill] sm:$0xff] %v10621_v57  ;;  %v7992_v32 = vpop.f32.mrf.mxu1  ;;  %v10626_v53 = vadd.f32 %v7988_v27, %v3210_v46  ;;  %v3208_v0 = vadd.f32 %v3132_v49, %v12568_v16  ;;  %v12574_v46 = vld [vmem:[#allocation63_spill] sm:$0xff]  ;;  %v12577_v57 = vld [vmem:[#allocation153_spill] sm:$0xff]  ;;  %v12582_v16 = vld [vmem:[#allocation154_spill] sm:$0xff] }
 0x283   :  { %v7933_v26 = vpop.f32.mrf.mxu0  ;;  %8148 = vmatmul.mubr.msk.bf16.gmra.mxu0 %vm436_vm1, %v12569_v23  ;;  %v12573_v32 = vld [vmem:[#allocation65_spill] sm:$0xff] }
 0x284   :  { %12567 = vst [vmem:[#allocation150_spill] sm:$0xff] %v10626_v53  ;;  %v3464_v21 = vpop.f32.mrf.mxu1  ;;  %v10633_v61 = vadd.f32 %v3448_v4, %v3208_v0  ;;  %v3213_v19 = vadd.f32 %v7933_v26, %v12572_v31  ;;  %8151 = vmatprep.mubr.msk.bf16.mxu0 %vm436_vm1, %v12573_v32  ;;  %v12586_v31 = vld [vmem:[#allocation67_spill] sm:$0xff] }
 0x285   :  { %v3145_v3 = vpop.f32.mrf.mxu0 }
 0x286   :  { %12571 = vst [vmem:[#allocation151_spill] sm:$0xff] %v10633_v61  ;;  %v8055_v27 = vpop.f32.mrf.mxu1  ;;  %8210 = vmatmul.mubr.msk.bf16.gmra.mxu1 %vm436_vm1, %v12574_v46  ;;  %v10642_v23 = vadd.f32 %v7991_v54, %v3213_v19  ;;  %v3211_v41 = vadd.f32 %v3145_v3, %v12577_v57  ;;  %v12583_v61 = vld [vmem:[#allocation68_spill] sm:$0xff] }
 0x287   :  { %8213 = vmatprep.mubr.msk.bf16.mxu1 %vm436_vm1, %v12578_v52  ;;  %v7934_v4 = vpop.f32.mrf.mxu0  ;;  %v12585_v52 = vld [vmem:[#allocation69_spill] sm:$0xff] }
 0x288   :  { %12576 = vst [vmem:[#allocation152_spill] sm:$0xff] %v10642_v23  ;;  %v3885_v26 = vpop.f32.mrf.mxu1  ;;  %v10649_v32 = vadd.f32 %v3461_v24, %v3211_v41  ;;  %v12589_v23 = vld [vmem:[#allocation71_spill] sm:$0xff] }
 0x289   :  { %v3148_v53 = vpop.f32.mrf.mxu0 }
 0x28a   :  { %12580 = vst [vmem:[#allocation153_spill] sm:$0xff] %v10649_v32  ;;  %v8056_v42 = vpop.f32.mrf.mxu1  ;;  %v3212_v54 = vadd.f32 %v3148_v53, %v12582_v16  ;;  %v12588_v32 = vld [vmem:[#allocation70_spill] sm:$0xff] }
 0x28b   :  { %v7997_v19 = vpop.f32.mrf.mxu0  ;;  %8152 = vmatmul.mubr.msk.bf16.gmra.mxu0 %vm436_vm1, %v12583_v61 }
 0x28c   :  { %v3888_v57 = vpop.f32.mrf.mxu1  ;;  %v10656_v3 = vadd.f32 %v3464_v21, %v3212_v54  ;;  %v10658_v4 = vadd.f32 %v8055_v27, %v7997_v19  ;;  %8155 = vmatprep.mubr.msk.bf16.mxu0 %vm436_vm1, %v12585_v52 }
 0x28d   :  { %v3626_v41 = vpop.f32.mrf.mxu0 }
 0x28e   :  { %12584 = vst [vmem:[#allocation154_spill] sm:$0xff] %v10656_v3  ;;  %v8059_v24 = vpop.f32.mrf.mxu1  ;;  %8214 = vmatmul.mubr.msk.bf16.gmra.mxu1 %vm436_vm1, %v12586_v31  ;;  %v10666_v16 = vadd.f32 %v3885_v26, %v3626_v41  ;;  %v12590_v26 = vld [vmem:[#allocation73_spill] sm:$0xff] }
 0x28f   :  { %8217 = vmatprep.mubr.msk.bf16.mxu1 %vm436_vm1, %v12588_v32  ;;  %v7998_v21 = vpop.f32.mrf.mxu0  ;;  %v12591_v32 = vld [vmem:[#allocation72_spill] sm:$0xff] }
 0x290   :  { %v3901_v54 = vpop.f32.mrf.mxu1  ;;  %v10670_v27 = vadd.f32 %v8056_v42, %v7998_v21  ;;  %v12592_v21 = vld [vmem:[#allocation74_spill] sm:$0xff] }
 0x291   :  { %v3629_v19 = vpop.f32.mrf.mxu0 }
 0x292   :  { %v8060_v61 = vpop.f32.mrf.mxu1  ;;  %v10672_v52 = vadd.f32 %v3888_v57, %v3629_v19 }
 0x293   :  { %v8001_v46 = vpop.f32.mrf.mxu0  ;;  %8156 = vmatmul.mubr.msk.bf16.gmra.mxu0 %vm436_vm1, %v12589_v23 }
 0x294   :  { %v3904_v31 = vpop.f32.mrf.mxu1  ;;  %v10676_v0 = vadd.f32 %v8059_v24, %v8001_v46  ;;  %8159 = vmatprep.mubr.msk.bf16.mxu0 %vm436_vm1, %v12590_v26  ;;  %v12593_v26 = vld [vmem:[#allocation76_spill] sm:$0xff] }
 0x295   :  { %v3642_v41 = vpop.f32.mrf.mxu0 }
 0x296   :  { %v8063_v53 = vpop.f32.mrf.mxu1  ;;  %8218 = vmatmul.mubr.msk.bf16.gmra.mxu1 %vm436_vm1, %v12591_v32  ;;  %v10682_v42 = vadd.f32 %v3901_v54, %v3642_v41  ;;  %v12594_v54 = vld [vmem:[#allocation78_spill] sm:$0xff]  ;;  %v12595_v32 = vld [vmem:[#allocation77_spill] sm:$0xff] }
 0x297   :  { %8221 = vmatprep.mubr.msk.bf16.mxu1 %vm436_vm1, %v12592_v21  ;;  %v8002_v57 = vpop.f32.mrf.mxu0 }
 0x298   :  { %v3917_v19 = vpop.f32.mrf.mxu1  ;;  %v10686_v3 = vadd.f32 %v8060_v61, %v8002_v57 }
 0x299   :  { %v3645_v23 = vpop.f32.mrf.mxu0 }
 0x29a   :  { %v8064_v46 = vpop.f32.mrf.mxu1  ;;  %v10688_v24 = vadd.f32 %v3904_v31, %v3645_v23  ;;  %v8615_v23 = vld [vmem:[%s11918_s0] sm:$0xff]  }
 0x29b   :  { %v8005_v40 = vpop.f32.mrf.mxu0  ;;  %8160 = vmatmul.mubr.msk.bf16.gmra.mxu0 %vm436_vm1, %v12593_v26 }
 0x29c   :  { %v3920_v49 = vpop.f32.mrf.mxu1  ;;  %v10692_v9 = vadd.f32 %v8063_v53, %v8005_v40  ;;  %8163 = vmatprep.mubr.msk.bf16.mxu0 %vm436_vm1, %v12594_v54 }
 0x29d   :  { %v3658_v41 = vpop.f32.mrf.mxu0 }
 0x29e   :  { %v8067_v21 = vpop.f32.mrf.mxu1  ;;  %8222 = vmatmul.mubr.msk.bf16.gmra.mxu1 %vm436_vm1, %v12595_v32  ;;  %v10698_v61 = vadd.f32 %v3917_v19, %v3658_v41  ;;  %v5635_v41 = vsel %vm521_vm0, %v10345_v8, 0  ;;  %v8617_v8 = vld [vmem:[%s11918_s0 + $0x10] sm:$0xff]  }
 0x29f   :  { %8285 = vmatprep.mubr.msk.bf16.mxu1 %vm436_vm1, %v8615_v23  ;;  %v8006_v31 = vpop.f32.mrf.mxu0 }
 0x2a0   :  { %v3933_v57 = vpop.f32.mrf.mxu1  ;;  %v10704_v40 = vadd.f32 %v8064_v46, %v8006_v31 }
 0x2a1   :  { %v3661_v53 = vpop.f32.mrf.mxu0 }
 0x2a2   :  { %v8068_v26 = vpop.f32.mrf.mxu1  ;;  %v10706_v54 = vadd.f32 %v3920_v49, %v3661_v53  ;;  %v8616_v49 = vld [vmem:[%s11918_s0 + $0x8] sm:$0xff]  }
 0x2a3   :  { %v8009_v33 = vpop.f32.mrf.mxu0  ;;  %8164 = vmatmul.mubr.msk.bf16.gmra.mxu0 %vm436_vm1, %v12596_v6 }
 0x2a4   :  { %v3936_v19 = vpop.f32.mrf.mxu1  ;;  %v10712_v32 = vadd.f32 %v8067_v21, %v8009_v33  ;;  %8227 = vmatprep.mubr.msk.bf16.mxu0 %vm436_vm1, %v12597_v25 }
 0x2a5   :  { %v3674_v23 = vpop.f32.mrf.mxu0 }
 0x2a6   :  { %v8071_v46 = vpop.f32.mrf.mxu1  ;;  %8286 = vmatmul.mubr.msk.bf16.vlgmr.msra.gmra.mxu1 %vm436_vm1, %v8616_v49  ;;  %v10720_v31 = vadd.f32 %v3933_v57, %v3674_v23  ;;  %v12600_v23 = vld [vmem:[#allocation3_spill] sm:$0xff] }
 0x2a7   :  { %8400 = vmatpush3.bf16.msra.mxu1 %v5635_v41  ;;  %8289 = vmatprep.mubr.msk.bf16.mxu1 %vm436_vm1, %v8617_v8  ;;  %v8010_v33 = vpop.f32.mrf.mxu0  ;;  %v12602_v8 = vld [vmem:[#allocation4_spill] sm:$0xff] }
 0x2a8   :  { %v3949_v21 = vpop.f32.mrf.mxu1  ;;  %v10726_v25 = vadd.f32 %v8068_v26, %v8010_v33 }
 0x2a9   :  { %v3677_v53 = vpop.f32.mrf.mxu0 }
 0x2aa   :  { %12598 = vst [vmem:[#allocation2_spill] sm:$0xff] %v10726_v25  ;;  %v8072_v6 = vpop.f32.mrf.mxu1  ;;  %v10730_v60 = vadd.f32 %v3936_v19, %v3677_v53  ;;  %v8618_v25 = vld [vmem:[%s11918_s0 + $0x18] sm:$0xff]   ;;  %v8619_v19 = vld [vmem:[%s11918_s0 + $0x20] sm:$0xff]  }
 0x2ab   :  { %v8013_v57 = vpop.f32.mrf.mxu0  ;;  %8228 = vmatmul.mubr.msk.bf16.vlgmr.msra.gmra.mxu0 %vm436_vm1, %v12600_v23 }
 0x2ac   :  { %12599 = vst [vmem:[#allocation163_spill] sm:$0xff] %v10730_v60  ;;  %v3952_v41 = vpop.f32.mrf.mxu1  ;;  %v10734_v49 = vadd.f32 %v8071_v46, %v8013_v57  ;;  %8342 = vmatpush3.bf16.msra.mxu0 %v5319_v1  ;;  %8231 = vmatprep.mubr.msk.bf16.mxu0 %vm436_vm1, %v12602_v8  ;;  %v12606_v60 = vld [vmem:[#allocation5_spill] sm:$0xff] }
 0x2ad   :  { %v3690_v26 = vpop.f32.mrf.mxu0 }
 0x2ae   :  { %12601 = vst [vmem:[#allocation3_spill] sm:$0xff] %v10734_v49  ;;  %v8075_v33 = vpop.f32.mrf.mxu1  ;;  %8290 = vmatmul.mubr.msk.bf16.gmra.mxu1 %vm436_vm1, %v8618_v25  ;;  %v10742_v12 = vadd.f32 %v3949_v21, %v3690_v26  ;;  %v12608_v26 = vld [vmem:[#allocation6_spill] sm:$0xff] }
 0x2af   :  { %8293 = vmatprep.mubr.msk.bf16.mxu1 %vm436_vm1, %v8619_v19  ;;  %v8014_v1 = vpop.f32.mrf.mxu0 }
 0x2b0   :  { %12603 = vst [vmem:[#allocation4_spill] sm:$0xff] %v10742_v12  ;;  %v3965_v46 = vpop.f32.mrf.mxu1  ;;  %v10748_v53 = vadd.f32 %v8072_v6, %v8014_v1  ;;  %v8620_v6 = vld [vmem:[%s11918_s0 + $0x28] sm:$0xff]  }
 0x2b1   :  { %v3693_v57 = vpop.f32.mrf.mxu0 }
 0x2b2   :  { %12604 = vst [vmem:[#allocation164_spill] sm:$0xff] %v10748_v53  ;;  %v8076_v23 = vpop.f32.mrf.mxu1  ;;  %v10750_v8 = vadd.f32 %v3952_v41, %v3693_v57  ;;  %v12612_v53 = vld [vmem:[#allocation7_spill] sm:$0xff] }
 0x2b3   :  { %v8017_v49 = vpop.f32.mrf.mxu0  ;;  %8232 = vmatmul.mubr.msk.bf16.gmra.mxu0 %vm436_vm1, %v12606_v60  ;;  %v8621_v60 = vld [vmem:[%s11918_s0 + $0x30] sm:$0xff]  }
 0x2b4   :  { %12605 = vst [vmem:[#allocation165_spill] sm:$0xff] %v10750_v8  ;;  %v3968_v21 = vpop.f32.mrf.mxu1  ;;  %v10754_v25 = vadd.f32 %v8075_v33, %v8017_v49  ;;  %8235 = vmatprep.mubr.msk.bf16.mxu0 %vm436_vm1, %v12608_v26 }
 0x2b5   :  { %v3706_v12 = vpop.f32.mrf.mxu0 }
 0x2b6   :  { %12607 = vst [vmem:[#allocation5_spill] sm:$0xff] %v10754_v25  ;;  %v8079_v19 = vpop.f32.mrf.mxu1  ;;  %8294 = vmatmul.mubr.msk.bf16.gmra.mxu1 %vm436_vm1, %v8620_v6  ;;  %v10762_v41 = vadd.f32 %v3965_v46, %v3706_v12  ;;  %v12614_v6 = vld [vmem:[#allocation8_spill] sm:$0xff] }
 0x2b7   :  { %8297 = vmatprep.mubr.msk.bf16.mxu1 %vm436_vm1, %v8621_v60  ;;  %v8018_v49 = vpop.f32.mrf.mxu0 }
 0x2b8   :  { %12609 = vst [vmem:[#allocation6_spill] sm:$0xff] %v10762_v41  ;;  %v3981_v33 = vpop.f32.mrf.mxu1  ;;  %v10768_v1 = vadd.f32 %v8076_v23, %v8018_v49  ;;  %v8622_v23 = vld [vmem:[%s11918_s0 + $0x38] sm:$0xff]  }
 0x2b9   :  { %v3709_v57 = vpop.f32.mrf.mxu0 }
 0x2ba   :  { %12610 = vst [vmem:[#allocation166_spill] sm:$0xff] %v10768_v1  ;;  %v8080_v26 = vpop.f32.mrf.mxu1  ;;  %v10770_v25 = vadd.f32 %v3968_v21, %v3709_v57  ;;  %v12618_v1 = vld [vmem:[#allocation9_spill] sm:$0xff] }
 0x2bb   :  { %v8021_v8 = vpop.f32.mrf.mxu0  ;;  %8236 = vmatmul.mubr.msk.bf16.gmra.mxu0 %vm436_vm1, %v12612_v53  ;;  %v8623_v53 = vld [vmem:[%s11918_s0 + $0x40] sm:$0xff]  }
 0x2bc   :  { %12611 = vst [vmem:[#allocation167_spill] sm:$0xff] %v10770_v25  ;;  %v3984_v12 = vpop.f32.mrf.mxu1  ;;  %v10774_v46 = vadd.f32 %v8079_v19, %v8021_v8  ;;  %8239 = vmatprep.mubr.msk.bf16.mxu0 %vm436_vm1, %v12614_v6 }
 0x2bd   :  { %v3722_v41 = vpop.f32.mrf.mxu0 }
 0x2be   :  { %12613 = vst [vmem:[#allocation7_spill] sm:$0xff] %v10774_v46  ;;  %v8083_v60 = vpop.f32.mrf.mxu1  ;;  %8298 = vmatmul.mubr.msk.bf16.gmra.mxu1 %vm436_vm1, %v8622_v23  ;;  %v10782_v21 = vadd.f32 %v3981_v33, %v3722_v41  ;;  %v12620_v23 = vld [vmem:[#allocation10_spill] sm:$0xff] }
 0x2bf   :  { %8301 = vmatprep.mubr.msk.bf16.mxu1 %vm436_vm1, %v8623_v53  ;;  %v8022_v8 = vpop.f32.mrf.mxu0 }
 0x2c0   :  { %12615 = vst [vmem:[#allocation8_spill] sm:$0xff] %v10782_v21  ;;  %v3997_v19 = vpop.f32.mrf.mxu1  ;;  %v10788_v49 = vadd.f32 %v8080_v26, %v8022_v8  ;;  %v8624_v26 = vld [vmem:[%s11918_s0 + $0x48] sm:$0xff]  }
 0x2c1   :  { %v3725_v57 = vpop.f32.mrf.mxu0 }
 0x2c2   :  { %12616 = vst [vmem:[#allocation168_spill] sm:$0xff] %v10788_v49  ;;  %v8084_v6 = vpop.f32.mrf.mxu1  ;;  %v10790_v46 = vadd.f32 %v3984_v12, %v3725_v57  ;;  %v12624_v49 = vld [vmem:[#allocation11_spill] sm:$0xff] }
 0x2c3   :  { %v8025_v25 = vpop.f32.mrf.mxu0  ;;  %8240 = vmatmul.mubr.msk.bf16.gmra.mxu0 %vm436_vm1, %v12618_v1  ;;  %v8625_v1 = vld [vmem:[%s11918_s0 + $0x50] sm:$0xff]  }
 0x2c4   :  { %12617 = vst [vmem:[#allocation169_spill] sm:$0xff] %v10790_v46  ;;  %v4000_v41 = vpop.f32.mrf.mxu1  ;;  %v10794_v33 = vadd.f32 %v8083_v60, %v8025_v25  ;;  %8243 = vmatprep.mubr.msk.bf16.mxu0 %vm436_vm1, %v12620_v23 }
 0x2c5   :  { %v3738_v21 = vpop.f32.mrf.mxu0 }
 0x2c6   :  { %12619 = vst [vmem:[#allocation9_spill] sm:$0xff] %v10794_v33  ;;  %v8087_v53 = vpop.f32.mrf.mxu1  ;;  %8302 = vmatmul.mubr.msk.bf16.gmra.mxu1 %vm436_vm1, %v8624_v26  ;;  %v10802_v12 = vadd.f32 %v3997_v19, %v3738_v21  ;;  %v12626_v26 = vld [vmem:[#allocation12_spill] sm:$0xff] }
 0x2c7   :  { %8305 = vmatprep.mubr.msk.bf16.mxu1 %vm436_vm1, %v8625_v1  ;;  %v8026_v25 = vpop.f32.mrf.mxu0 }
 0x2c8   :  { %12621 = vst [vmem:[#allocation10_spill] sm:$0xff] %v10802_v12  ;;  %v4013_v60 = vpop.f32.mrf.mxu1  ;;  %v10808_v8 = vadd.f32 %v8084_v6, %v8026_v25  ;;  %v8626_v6 = vld [vmem:[%s11918_s0 + $0x58] sm:$0xff]  }
 0x2c9   :  { %v3741_v57 = vpop.f32.mrf.mxu0 }
 0x2ca   :  { %12622 = vst [vmem:[#allocation170_spill] sm:$0xff] %v10808_v8  ;;  %v8088_v23 = vpop.f32.mrf.mxu1  ;;  %v10810_v33 = vadd.f32 %v4000_v41, %v3741_v57  ;;  %v12630_v8 = vld [vmem:[#allocation13_spill] sm:$0xff] }
 0x2cb   :  { %v8029_v46 = vpop.f32.mrf.mxu0  ;;  %8244 = vmatmul.mubr.msk.bf16.gmra.mxu0 %vm436_vm1, %v12624_v49  ;;  %v8627_v49 = vld [vmem:[%s11918_s0 + $0x60] sm:$0xff]  }
 0x2cc   :  { %12623 = vst [vmem:[#allocation171_spill] sm:$0xff] %v10810_v33  ;;  %v4016_v21 = vpop.f32.mrf.mxu1  ;;  %v10814_v19 = vadd.f32 %v8087_v53, %v8029_v46  ;;  %8247 = vmatprep.mubr.msk.bf16.mxu0 %vm436_vm1, %v12626_v26 }
 0x2cd   :  { %v3754_v12 = vpop.f32.mrf.mxu0 }
 0x2ce   :  { %12625 = vst [vmem:[#allocation11_spill] sm:$0xff] %v10814_v19  ;;  %v8091_v1 = vpop.f32.mrf.mxu1  ;;  %8306 = vmatmul.mubr.msk.bf16.gmra.mxu1 %vm436_vm1, %v8626_v6  ;;  %v10822_v41 = vadd.f32 %v4013_v60, %v3754_v12  ;;  %v12632_v6 = vld [vmem:[#allocation14_spill] sm:$0xff] }
 0x2cf   :  { %8309 = vmatprep.mubr.msk.bf16.mxu1 %vm436_vm1, %v8627_v49  ;;  %v8030_v46 = vpop.f32.mrf.mxu0 }
 0x2d0   :  { %12627 = vst [vmem:[#allocation12_spill] sm:$0xff] %v10822_v41  ;;  %v4029_v53 = vpop.f32.mrf.mxu1  ;;  %v10828_v25 = vadd.f32 %v8088_v23, %v8030_v46  ;;  %v8628_v23 = vld [vmem:[%s11918_s0 + $0x68] sm:$0xff]  }
 0x2d1   :  { %v3757_v57 = vpop.f32.mrf.mxu0 }
 0x2d2   :  { %12628 = vst [vmem:[#allocation172_spill] sm:$0xff] %v10828_v25  ;;  %v8092_v26 = vpop.f32.mrf.mxu1  ;;  %v10830_v19 = vadd.f32 %v4016_v21, %v3757_v57  ;;  %v12636_v25 = vld [vmem:[#allocation15_spill] sm:$0xff] }
 0x2d3   :  { %v8033_v33 = vpop.f32.mrf.mxu0  ;;  %8248 = vmatmul.mubr.msk.bf16.gmra.mxu0 %vm436_vm1, %v12630_v8  ;;  %v8629_v8 = vld [vmem:[%s11918_s0 + $0x70] sm:$0xff]  }
 0x2d4   :  { %12629 = vst [vmem:[#allocation173_spill] sm:$0xff] %v10830_v19  ;;  %v4032_v12 = vpop.f32.mrf.mxu1  ;;  %v10834_v60 = vadd.f32 %v8091_v1, %v8033_v33  ;;  %8251 = vmatprep.mubr.msk.bf16.mxu0 %vm436_vm1, %v12632_v6 }
 0x2d5   :  { %v3770_v41 = vpop.f32.mrf.mxu0 }
 0x2d6   :  { %12631 = vst [vmem:[#allocation13_spill] sm:$0xff] %v10834_v60  ;;  %v8095_v49 = vpop.f32.mrf.mxu1  ;;  %8310 = vmatmul.mubr.msk.bf16.gmra.mxu1 %vm436_vm1, %v8628_v23  ;;  %v10842_v21 = vadd.f32 %v4029_v53, %v3770_v41  ;;  %v12638_v23 = vld [vmem:[#allocation16_spill] sm:$0xff] }
 0x2d7   :  { %8313 = vmatprep.mubr.msk.bf16.mxu1 %vm436_vm1, %v8629_v8  ;;  %v8034_v33 = vpop.f32.mrf.mxu0 }
 0x2d8   :  { %12633 = vst [vmem:[#allocation14_spill] sm:$0xff] %v10842_v21  ;;  %v4045_v1 = vpop.f32.mrf.mxu1  ;;  %v10848_v46 = vadd.f32 %v8092_v26, %v8034_v33  ;;  %v8630_v26 = vld [vmem:[%s11918_s0 + $0x78] sm:$0xff]  }
 0x2d9   :  { %v3773_v57 = vpop.f32.mrf.mxu0 }
 0x2da   :  { %12634 = vst [vmem:[#allocation174_spill] sm:$0xff] %v10848_v46  ;;  %v8096_v6 = vpop.f32.mrf.mxu1  ;;  %v10850_v60 = vadd.f32 %v4032_v12, %v3773_v57  ;;  %v12642_v46 = vld [vmem:[#allocation17_spill] sm:$0xff] }
 0x2db   :  { %v8037_v19 = vpop.f32.mrf.mxu0  ;;  %8252 = vmatmul.mubr.msk.bf16.gmra.mxu0 %vm436_vm1, %v12636_v25  ;;  %v8631_v25 = vld [vmem:[%s11918_s0 + $0x80] sm:$0xff]  }
 0x2dc   :  { %12635 = vst [vmem:[#allocation175_spill] sm:$0xff] %v10850_v60  ;;  %v4048_v41 = vpop.f32.mrf.mxu1  ;;  %v10854_v53 = vadd.f32 %v8095_v49, %v8037_v19  ;;  %8255 = vmatprep.mubr.msk.bf16.mxu0 %vm436_vm1, %v12638_v23 }
 0x2dd   :  { %v3786_v21 = vpop.f32.mrf.mxu0 }
 0x2de   :  { %12637 = vst [vmem:[#allocation15_spill] sm:$0xff] %v10854_v53  ;;  %v8099_v8 = vpop.f32.mrf.mxu1  ;;  %8314 = vmatmul.mubr.msk.bf16.gmra.mxu1 %vm436_vm1, %v8630_v26  ;;  %v10862_v12 = vadd.f32 %v4045_v1, %v3786_v21  ;;  %v12644_v26 = vld [vmem:[#allocation18_spill] sm:$0xff] }
 0x2df   :  { %8317 = vmatprep.mubr.msk.bf16.mxu1 %vm436_vm1, %v8631_v25  ;;  %v8038_v19 = vpop.f32.mrf.mxu0 }
 0x2e0   :  { %12639 = vst [vmem:[#allocation16_spill] sm:$0xff] %v10862_v12  ;;  %v4061_v49 = vpop.f32.mrf.mxu1  ;;  %v10868_v33 = vadd.f32 %v8096_v6, %v8038_v19  ;;  %v8632_v6 = vld [vmem:[%s11918_s0 + $0x88] sm:$0xff]  }
 0x2e1   :  { %v3789_v57 = vpop.f32.mrf.mxu0 }
 0x2e2   :  { %12640 = vst [vmem:[#allocation176_spill] sm:$0xff] %v10868_v33  ;;  %v8100_v23 = vpop.f32.mrf.mxu1  ;;  %v10870_v53 = vadd.f32 %v4048_v41, %v3789_v57  ;;  %v12648_v33 = vld [vmem:[#allocation19_spill] sm:$0xff] }
 0x2e3   :  { %v8041_v60 = vpop.f32.mrf.mxu0  ;;  %8256 = vmatmul.mubr.msk.bf16.gmra.mxu0 %vm436_vm1, %v12642_v46  ;;  %v8633_v46 = vld [vmem:[%s11918_s0 + $0x90] sm:$0xff]  }
 0x2e4   :  { %12641 = vst [vmem:[#allocation177_spill] sm:$0xff] %v10870_v53  ;;  %v4064_v21 = vpop.f32.mrf.mxu1  ;;  %v10874_v1 = vadd.f32 %v8099_v8, %v8041_v60  ;;  %8259 = vmatprep.mubr.msk.bf16.mxu0 %vm436_vm1, %v12644_v26 }
 0x2e5   :  { %v3802_v12 = vpop.f32.mrf.mxu0 }
 0x2e6   :  { %12643 = vst [vmem:[#allocation17_spill] sm:$0xff] %v10874_v1  ;;  %v8103_v25 = vpop.f32.mrf.mxu1  ;;  %8318 = vmatmul.mubr.msk.bf16.gmra.mxu1 %vm436_vm1, %v8632_v6  ;;  %v10882_v41 = vadd.f32 %v4061_v49, %v3802_v12  ;;  %v12650_v6 = vld [vmem:[#allocation20_spill] sm:$0xff] }
 0x2e7   :  { %8321 = vmatprep.mubr.msk.bf16.mxu1 %vm436_vm1, %v8633_v46  ;;  %v8042_v60 = vpop.f32.mrf.mxu0 }
 0x2e8   :  { %12645 = vst [vmem:[#allocation18_spill] sm:$0xff] %v10882_v41  ;;  %v4077_v8 = vpop.f32.mrf.mxu1  ;;  %v10888_v19 = vadd.f32 %v8100_v23, %v8042_v60  ;;  %v8634_v23 = vld [vmem:[%s11918_s0 + $0x98] sm:$0xff]  }
 0x2e9   :  { %v3805_v57 = vpop.f32.mrf.mxu0 }
 0x2ea   :  { %12646 = vst [vmem:[#allocation178_spill] sm:$0xff] %v10888_v19  ;;  %v8104_v26 = vpop.f32.mrf.mxu1  ;;  %v10890_v1 = vadd.f32 %v4064_v21, %v3805_v57  ;;  %v12654_v19 = vld [vmem:[#allocation21_spill] sm:$0xff] }
 0x2eb   :  { %v8045_v53 = vpop.f32.mrf.mxu0  ;;  %8260 = vmatmul.mubr.msk.bf16.gmra.mxu0 %vm436_vm1, %v12648_v33  ;;  %v8635_v33 = vld [vmem:[%s11918_s0 + $0xa0] sm:$0xff]  }
 0x2ec   :  { %12647 = vst [vmem:[#allocation179_spill] sm:$0xff] %v10890_v1  ;;  %v4080_v12 = vpop.f32.mrf.mxu1  ;;  %v10894_v49 = vadd.f32 %v8103_v25, %v8045_v53  ;;  %8263 = vmatprep.mubr.msk.bf16.mxu0 %vm436_vm1, %v12650_v6 }
 0x2ed   :  { %v3818_v41 = vpop.f32.mrf.mxu0 }
 0x2ee   :  { %12649 = vst [vmem:[#allocation19_spill] sm:$0xff] %v10894_v49  ;;  %v8107_v46 = vpop.f32.mrf.mxu1  ;;  %8322 = vmatmul.mubr.msk.bf16.gmra.mxu1 %vm436_vm1, %v8634_v23  ;;  %v10902_v21 = vadd.f32 %v4077_v8, %v3818_v41  ;;  %v12656_v23 = vld [vmem:[#allocation22_spill] sm:$0xff] }
 0x2ef   :  { %8325 = vmatprep.mubr.msk.bf16.mxu1 %vm436_vm1, %v8635_v33  ;;  %v8046_v53 = vpop.f32.mrf.mxu0 }
 0x2f0   :  { %12651 = vst [vmem:[#allocation20_spill] sm:$0xff] %v10902_v21  ;;  %v4093_v25 = vpop.f32.mrf.mxu1  ;;  %v10908_v60 = vadd.f32 %v8104_v26, %v8046_v53  ;;  %v8636_v26 = vld [vmem:[%s11918_s0 + $0xa8] sm:$0xff]  }
 0x2f1   :  { %v3821_v57 = vpop.f32.mrf.mxu0 }
 0x2f2   :  { %12652 = vst [vmem:[#allocation180_spill] sm:$0xff] %v10908_v60  ;;  %v8108_v6 = vpop.f32.mrf.mxu1  ;;  %v10910_v49 = vadd.f32 %v4080_v12, %v3821_v57 }
 0x2f3   :  { %v8049_v1 = vpop.f32.mrf.mxu0  ;;  %8264 = vmatmul.mubr.msk.bf16.gmra.mxu0 %vm436_vm1, %v12654_v19  ;;  %v8637_v19 = vld [vmem:[%s11918_s0 + $0xb0] sm:$0xff]  }
 0x2f4   :  { %12653 = vst [vmem:[#allocation181_spill] sm:$0xff] %v10910_v49  ;;  %v4096_v41 = vpop.f32.mrf.mxu1  ;;  %v10914_v8 = vadd.f32 %v8107_v46, %v8049_v1  ;;  %8267 = vmatprep.mubr.msk.bf16.mxu0 %vm436_vm1, %v12656_v23 }
 0x2f5   :  { %v3834_v21 = vpop.f32.mrf.mxu0 }
 0x2f6   :  { %12655 = vst [vmem:[#allocation21_spill] sm:$0xff] %v10914_v8  ;;  %v8171_v33 = vpop.f32.mrf.mxu1  ;;  %8326 = vmatmul.mubr.msk.bf16.gmra.mxu1 %vm436_vm1, %v8636_v26  ;;  %v10922_v12 = vadd.f32 %v4093_v25, %v3834_v21  ;;  %v12659_v8 = vld [vmem:[#allocation23_spill] sm:$0xff]  ;;  %v12660_v25 = vld [vmem:[#allocation24_spill] sm:$0xff] }
 0x2f7   :  { %8329 = vmatprep.mubr.msk.bf16.mxu1 %vm436_vm1, %v8637_v19  ;;  %v8050_v1 = vpop.f32.mrf.mxu0  ;;  %v8638_v19 = vld [vmem:[%s11918_s0 + $0xb8] sm:$0xff]  }
 0x2f8   :  { %12657 = vst [vmem:[#allocation22_spill] sm:$0xff] %v10922_v12  ;;  %v4462_v46 = vpop.f32.mrf.mxu1 }
 0x2f9   :  { %v3837_v53 = vpop.f32.mrf.mxu0 }
 0x2fa   :  { %v8172_v57 = vpop.f32.mrf.mxu1  ;;  %v10928_v6 = vadd.f32 %v4096_v41, %v3837_v53 }
 0x2fb   :  { %v8113_v23 = vpop.f32.mrf.mxu0  ;;  %8268 = vmatmul.mubr.msk.bf16.gmra.mxu0 %vm436_vm1, %v12659_v8  ;;  %v8639_v8 = vld [vmem:[%s11918_s0 + $0xc0] sm:$0xff]  }
 0x2fc   :  { %12658 = vst [vmem:[#allocation182_spill] sm:$0xff] %v10928_v6  ;;  %v4465_v49 = vpop.f32.mrf.mxu1  ;;  %v4370_v21 = vadd.f32 %v8113_v23, %v10658_v4  ;;  %8271 = vmatprep.mubr.msk.bf16.mxu0 %vm436_vm1, %v12660_v25  ;;  %v12661_v23 = vmax.f32 %v9661_v58, %v10252_v56  ;;  %v12663_v56 = vmax.f32 %v9671_v14, %v10266_v63 }
 0x2fd   :  { %v4146_v26 = vpop.f32.mrf.mxu0 }
 0x2fe   :  { %v8175_v12 = vpop.f32.mrf.mxu1  ;;  %8330 = vmatmul.mubr.msk.bf16.gmra.mxu1 %vm436_vm1, %v8638_v19  ;;  %v4686_v41 = vadd.f32 %v8171_v33, %v4370_v21  ;;  %v4368_v1 = vadd.f32 %v4146_v26, %v10666_v16  ;;  %v12662_v16 = vmax.f32 %v9668_v48, %v10261_v36 }
 0x2ff   :  { %8333 = vmatprep.mubr.msk.bf16.mxu1 %vm436_vm1, %v8639_v8  ;;  %v8114_v4 = vpop.f32.mrf.mxu0 }
 0x300   :  { %v4478_v53 = vpop.f32.mrf.mxu1  ;;  %v10947_v25 = vmax.f32 %v12661_v23, %v4686_v41  ;;  %v4684_v6 = vadd.f32 %v4462_v46, %v4368_v1  ;;  %v4371_v60 = vadd.f32 %v8114_v4, %v10670_v27 }
 0x301   :  { %v4149_v19 = vpop.f32.mrf.mxu0 }
 0x302   :  { %v8176_v33 = vpop.f32.mrf.mxu1  ;;  %v10953_v21 = vmax.f32 %v12662_v16, %v4684_v6  ;;  %v4687_v26 = vadd.f32 %v8172_v57, %v4371_v60  ;;  %v4369_v8 = vadd.f32 %v4149_v19, %v10672_v52  ;;  %v8640_v52 = vld [vmem:[%s11918_s0 + $0xc8] sm:$0xff]   ;;  %v12665_v60 = vmax.f32 %v9685_v29, %v10284_v55 }
 0x303   :  { %v8117_v38 = vpop.f32.mrf.mxu0  ;;  %8272 = vmatmul.mubr.msk.bf16.gmra.mxu0 %vm436_vm1, %v8935_v5  ;;  %v12664_v5 = vmax.f32 %v9676_v45, %v10273_v15  ;;  %v12667_v55 = vmax.f32 %v9695_v39, %v10298_v47 }
 0x304   :  { %v4481_v58 = vpop.f32.mrf.mxu1  ;;  %v10961_v46 = vmax.f32 %v12663_v56, %v4687_v26  ;;  %v4685_v27 = vadd.f32 %v4465_v49, %v4369_v8  ;;  %v4374_v41 = vadd.f32 %v8117_v38, %v10676_v0  ;;  %8275 = vmatprep.mubr.msk.bf16.mxu0 %vm436_vm1, %v8938_v10  ;;  %v8641_v10 = vld [vmem:[%s11918_s0 + $0xd0] sm:$0xff]   ;;  %v12669_v26 = vmax.f32 %v9709_v62, %v10316_v13 }
 0x305   :  { %v4162_v48 = vpop.f32.mrf.mxu0  ;;  %v12671_v13 = vmax.f32 %v9717_v59, %v10328_v11 }
 0x306   :  { %v8179_v36 = vpop.f32.mrf.mxu1  ;;  %8334 = vmatmul.mubr.msk.bf16.gmra.mxu1 %vm436_vm1, %v8640_v52  ;;  %v10973_v14 = vmax.f32 %v12664_v5, %v4685_v27  ;;  %v4690_v63 = vadd.f32 %v8175_v12, %v4374_v41  ;;  %v4372_v49 = vadd.f32 %v4162_v48, %v10682_v42  ;;  %v12666_v42 = vmax.f32 %v9692_v2, %v10293_v18 }
 0x307   :  { %8337 = vmatprep.mubr.msk.bf16.mxu1 %vm436_vm1, %v8641_v10  ;;  %v8118_v38 = vpop.f32.mrf.mxu0 }
 0x308   :  { %v4494_v0 = vpop.f32.mrf.mxu1  ;;  %v10983_v57 = vmax.f32 %v12665_v60, %v4690_v63  ;;  %v4688_v6 = vadd.f32 %v4478_v53, %v4372_v49  ;;  %v4375_v45 = vadd.f32 %v8118_v38, %v10686_v3  ;;  %v12673_v63 = vld [vmem:[#allocation25_spill] sm:$0xff] }
 0x309   :  { %v4165_v15 = vpop.f32.mrf.mxu0 }
 0x30a   :  { %v8180_v12 = vpop.f32.mrf.mxu1  ;;  %v10989_v1 = vmax.f32 %v12666_v42, %v4688_v6  ;;  %v4691_v4 = vadd.f32 %v8176_v33, %v4375_v45  ;;  %v4373_v23 = vadd.f32 %v4165_v15, %v10688_v24  ;;  %v8642_v24 = vld [vmem:[%s11918_s0 + $0xd8] ss:$0 sps:$4 sm:$0x11]   ;;  %v12678_v6 = vld [vmem:[#allocation156_spill] sm:$0xff] }
 0x30b   :  { %v8121_v19 = vpop.f32.mrf.mxu0  ;;  %8276 = vmatmul.mubr.msk.bf16.gmra.mxu0 %vm436_vm1, %v8959_v35  ;;  %v12668_v35 = vmax.f32 %v9700_v20, %v10305_v44  ;;  %v12670_v44 = vmax.f32 %v9714_v30, %v10323_v28 }
 0x30c   :  { %v4497_v29 = vpop.f32.mrf.mxu1  ;;  %v10997_v53 = vmax.f32 %v12667_v55, %v4691_v4  ;;  %v4689_v3 = vadd.f32 %v4481_v58, %v4373_v23  ;;  %v4378_v16 = vadd.f32 %v8121_v19, %v10692_v9  ;;  %8279 = vmatprep.mubr.msk.bf16.mxu0 %vm436_vm1, %v8962_v37  ;;  %v12681_v4 = vld [vmem:[#allocation28_spill] sm:$0xff] }
 0x30d   :  { %v4178_v2 = vpop.f32.mrf.mxu0  ;;  %v12682_v19 = vld [vmem:[#allocation96_spill] sm:$0xff] }
 0x30e   :  { %v8183_v18 = vpop.f32.mrf.mxu1  ;;  %8338 = vmatmul.mubr.msk.bf16.gmra.mxu1 %vm436_vm1, %v8642_v24  ;;  %v11009_v39 = vmax.f32 %v12668_v35, %v4689_v3  ;;  %v4694_v47 = vadd.f32 %v8179_v36, %v4378_v16  ;;  %v4376_v33 = vadd.f32 %v4178_v2, %v10698_v61  ;;  %v12685_v2 = vld [vmem:[#allocation3_spill] sm:$0xff]  ;;  %v12686_v24 = vld [vmem:[#allocation29_spill] sm:$0xff] }
 0x30f   :  { %8401 = vmatprep.mubr.msk.bf16.mxu1 %vm436_vm1, %v8967_v51  ;;  %v8122_v37 = vpop.f32.mrf.mxu0 }
 0x310   :  { %v4510_v9 = vpop.f32.mrf.mxu1  ;;  %v11017_v8 = vmax.f32 %v12669_v26, %v4694_v47  ;;  %v4692_v58 = vadd.f32 %v4494_v0, %v4376_v33  ;;  %v4379_v56 = vadd.f32 %v8122_v37, %v10704_v40  ;;  %v12687_v33 = vld [vmem:[#allocation27_spill] sm:$0xff]  ;;  %v12688_v37 = vld [vmem:[#allocation97_spill] sm:$0xff] }
 0x311   :  { %v4181_v27 = vpop.f32.mrf.mxu0 }
 0x312   :  { %v8184_v20 = vpop.f32.mrf.mxu1  ;;  %v11023_v41 = vmax.f32 %v12670_v44, %v4692_v58  ;;  %v4695_v61 = vadd.f32 %v8180_v12, %v4379_v56  ;;  %v4377_v51 = vadd.f32 %v4181_v27, %v10706_v54  ;;  %v12680_v12 = vld [vmem:[#allocation163_spill] sm:$0xff]  ;;  %v12691_v27 = vld [vmem:[#allocation4_spill] sm:$0xff]  ;;  %v12692_v44 = vld [vmem:[#allocation30_spill] sm:$0xff] }
 0x313   :  { %v8125_v48 = vpop.f32.mrf.mxu0  ;;  %8280 = vmatmul.mubr.msk.bf16.gmra.mxu0 %vm436_vm1, %v8988_v7  ;;  %v12672_v7 = vmax.f32 %v9724_v43, %v10337_v34  ;;  %v12677_v34 = vld [vmem:[#allocation26_spill] sm:$0xff] }
 0x314   :  { %v4513_v62 = vpop.f32.mrf.mxu1  ;;  %v11031_v36 = vmax.f32 %v12671_v13, %v4695_v61  ;;  %v4693_v40 = vadd.f32 %v4497_v29, %v4377_v51  ;;  %v4382_v52 = vadd.f32 %v8125_v48, %v10712_v32  ;;  %8343 = vmatprep.mubr.msk.bf16.mxu0 %vm436_vm1, %v8993_v17  ;;  %v12674_v17 = vld [vmem:[#allocation155_spill] sm:$0xff]  ;;  %v12679_v45 = vmax.f32 %v12677_v34, %v12678_v6  ;;  %v12683_v29 = vld [vmem:[#allocation157_spill] sm:$0xff]  ;;  %v12693_v48 = vld [vmem:[#allocation98_spill] sm:$0xff] }
 0x315   :  { %v4194_v30 = vpop.f32.mrf.mxu0  ;;  %v12675_v49 = vmax.f32 %v12673_v63, %v12674_v17  ;;  %v12684_v55 = vmax.f32 %v12682_v19, %v12683_v29  ;;  %v12698_v63 = vld [vmem:[#allocation160_spill] sm:$0xff]  ;;  %v12707_v29 = vld [vmem:[#allocation31_spill] sm:$0xff] }
 0x316   :  { %v8187_v28 = vpop.f32.mrf.mxu1  ;;  %8402 = vmatmul.mubr.msk.bf16.vlgmr.msra.gmra.mxu1 %vm436_vm1, %v12257_v50  ;;  %v11041_v54 = vmax.f32 %v12672_v7, %v4693_v40  ;;  %v4698_v5 = vadd.f32 %v8183_v18, %v4382_v52  ;;  %v4380_v59 = vadd.f32 %v4194_v30, %v10720_v31  ;;  %v12676_v50 = vld [vmem:[#allocation2_spill] sm:$0xff]  ;;  %v12696_v30 = vld [vmem:[#allocation164_spill] sm:$0xff] }
 0x317   :  { %8405 = vmatprep.mubr.msk.bf16.mxu1 %vm436_vm1, %v12259_v22  ;;  %v8126_v11 = vpop.f32.mrf.mxu0  ;;  %v12702_v6 = vld [vmem:[#allocation100_spill] sm:$0xff] }
 0x318   :  { %v4526_v32 = vpop.f32.mrf.mxu1  ;;  %v11049_v10 = vmax.f32 %v12675_v49, %v4698_v5  ;;  %v4696_v38 = vadd.f32 %v4510_v9, %v4380_v59  ;;  %v4383_v0 = vadd.f32 %v8126_v11, %v12676_v50  ;;  %v12689_v9 = vld [vmem:[#allocation158_spill] sm:$0xff]  ;;  %v12697_v11 = vld [vmem:[#allocation99_spill] sm:$0xff] }
 0x319   :  { %v4197_v60 = vpop.f32.mrf.mxu0  ;;  %v12690_v26 = vmax.f32 %v12688_v37, %v12689_v9  ;;  %v12712_v37 = vld [vmem:[#allocation34_spill] sm:$0xff] }
 0x31a   :  { %v8188_v43 = vpop.f32.mrf.mxu1  ;;  %v11055_v15 = vmax.f32 %v12679_v45, %v4696_v38  ;;  %v4699_v31 = vadd.f32 %v8184_v20, %v4383_v0  ;;  %v4381_v22 = vadd.f32 %v4197_v60, %v12680_v12  ;;  %v12700_v38 = vld [vmem:[#allocation165_spill] sm:$0xff]  ;;  %v12701_v60 = vld [vmem:[#allocation32_spill] sm:$0xff] }
 0x31b   :  { %v8129_v42 = vpop.f32.mrf.mxu0  ;;  %8344 = vmatmul.mubr.msk.bf16.vlgmr.msra.gmra.mxu0 %vm436_vm1, %v12681_v4  ;;  %v12703_v45 = vld [vmem:[#allocation161_spill] sm:$0xff] }
 0x31c   :  { %v4529_v23 = vpop.f32.mrf.mxu1  ;;  %v11063_v3 = vmax.f32 %v12684_v55, %v4699_v31  ;;  %v4697_v16 = vadd.f32 %v4513_v62, %v4381_v22  ;;  %v4386_v18 = vadd.f32 %v8129_v42, %v12685_v2  ;;  %8347 = vmatprep.mubr.msk.bf16.mxu0 %vm436_vm1, %v12686_v24  ;;  %v12694_v62 = vld [vmem:[#allocation159_spill] sm:$0xff]  ;;  %v12705_v22 = vld [vmem:[#allocation5_spill] sm:$0xff] }
 0x31d   :  { %v4210_v35 = vpop.f32.mrf.mxu0  ;;  %v12695_v13 = vmax.f32 %v12693_v48, %v12694_v62  ;;  %v12706_v4 = vld [vmem:[#allocation33_spill] sm:$0xff] }
 0x31e   :  { %v8191_v47 = vpop.f32.mrf.mxu1  ;;  %8406 = vmatmul.mubr.msk.bf16.gmra.mxu1 %vm436_vm1, %v12687_v33  ;;  %v11073_v58 = vmax.f32 %v12690_v26, %v4697_v16  ;;  %v4702_v56 = vadd.f32 %v8187_v28, %v4386_v18  ;;  %v4384_v20 = vadd.f32 %v4210_v35, %v12691_v27  ;;  %v12699_v28 = vmax.f32 %v12697_v11, %v12698_v63  ;;  %v12708_v55 = vld [vmem:[#allocation101_spill] sm:$0xff]  ;;  %v12709_v16 = vld [vmem:[#allocation162_spill] sm:$0xff]  ;;  %v12721_v11 = vld [vmem:[#allocation167_spill] sm:$0xff] }
 0x31f   :  { %8409 = vmatprep.mubr.msk.bf16.mxu1 %vm436_vm1, %v12692_v44  ;;  %v8130_v61 = vpop.f32.mrf.mxu0  ;;  %v12710_v2 = vmax.f32 %v12708_v55, %v12709_v16  ;;  %v12711_v35 = vld [vmem:[#allocation6_spill] sm:$0xff] }
 0x320   :  { %v4542_v51 = vpop.f32.mrf.mxu1  ;;  %v11081_v40 = vmax.f32 %v12695_v13, %v4702_v56  ;;  %v4700_v52 = vadd.f32 %v4526_v32, %v4384_v20  ;;  %v4387_v7 = vadd.f32 %v8130_v61, %v12696_v30  ;;  %v12704_v32 = vmax.f32 %v12702_v6, %v12703_v45  ;;  %v12713_v26 = vld [vmem:[#allocation102_spill] sm:$0xff]  ;;  %v12714_v56 = vld [vmem:[#allocation120_spill] sm:$0xff]  ;;  %v12718_v30 = vld [vmem:[#allocation121_spill] sm:$0xff] }
 0x321   :  { %v4213_v5 = vpop.f32.mrf.mxu0  ;;  %v12715_v27 = vmax.f32 %v12713_v26, %v12714_v56  ;;  %v12716_v61 = vld [vmem:[#allocation166_spill] sm:$0xff]  ;;  %v12727_v45 = vld [vmem:[#allocation7_spill] sm:$0xff] }
 0x322   :  { %v8192_v59 = vpop.f32.mrf.mxu1  ;;  %v11087_v17 = vmax.f32 %v12699_v28, %v4700_v52  ;;  %v4703_v49 = vadd.f32 %v8188_v43, %v4387_v7  ;;  %v4385_v50 = vadd.f32 %v4213_v5, %v12700_v38  ;;  %v12717_v52 = vld [vmem:[#allocation103_spill] sm:$0xff] }
 0x323   :  { %v8133_v0 = vpop.f32.mrf.mxu0  ;;  %8348 = vmatmul.mubr.msk.bf16.gmra.mxu0 %vm436_vm1, %v12701_v60 }
 0x324   :  { %v4545_v34 = vpop.f32.mrf.mxu1  ;;  %v11095_v31 = vmax.f32 %v12704_v32, %v4703_v49  ;;  %v4701_v12 = vadd.f32 %v4529_v23, %v4385_v50  ;;  %v4390_v42 = vadd.f32 %v8133_v0, %v12705_v22  ;;  %8351 = vmatprep.mubr.msk.bf16.mxu0 %vm436_vm1, %v12706_v4  ;;  %v12722_v49 = vld [vmem:[#allocation36_spill] sm:$0xff]  ;;  %v12724_v0 = vld [vmem:[#allocation122_spill] sm:$0xff]  ;;  %v12730_v4 = vld [vmem:[#allocation105_spill] sm:$0xff] }
 0x325   :  { %v4226_v19 = vpop.f32.mrf.mxu0  ;;  %v12723_v50 = vld [vmem:[#allocation104_spill] sm:$0xff] }
 0x326   :  { %v8195_v43 = vpop.f32.mrf.mxu1  ;;  %8410 = vmatmul.mubr.msk.bf16.gmra.mxu1 %vm436_vm1, %v12707_v29  ;;  %v11105_v18 = vmax.f32 %v12710_v2, %v4701_v12  ;;  %v4706_v24 = vadd.f32 %v8191_v47, %v4390_v42  ;;  %v4388_v33 = vadd.f32 %v4226_v19, %v12711_v35  ;;  %v12719_v47 = vmax.f32 %v12717_v52, %v12718_v30  ;;  %v12728_v12 = vld [vmem:[#allocation37_spill] sm:$0xff]  ;;  %v12729_v42 = vld [vmem:[#allocation35_spill] sm:$0xff]  ;;  %v12734_v2 = vld [vmem:[#allocation8_spill] sm:$0xff] }
 0x327   :  { %8413 = vmatprep.mubr.msk.bf16.mxu1 %vm436_vm1, %v12712_v37  ;;  %v8134_v23 = vpop.f32.mrf.mxu0  ;;  %v12731_v19 = vld [vmem:[#allocation123_spill] sm:$0xff]  ;;  %v12735_v35 = vld [vmem:[#allocation38_spill] sm:$0xff]  ;;  %v12742_v30 = vld [vmem:[#allocation125_spill] sm:$0xff] }
 0x328   :  { %v4558_v9 = vpop.f32.mrf.mxu1  ;;  %v11113_v20 = vmax.f32 %v12715_v27, %v4706_v24  ;;  %v4704_v44 = vadd.f32 %v4542_v51, %v4388_v33  ;;  %v4391_v48 = vadd.f32 %v8134_v23, %v12716_v61  ;;  %v12725_v51 = vmax.f32 %v12723_v50, %v12724_v0  ;;  %v12736_v37 = vld [vmem:[#allocation79_spill] sm:$0xff]  ;;  %v12737_v23 = vld [vmem:[#allocation124_spill] sm:$0xff]  ;;  %v12741_v52 = vld [vmem:[#allocation106_spill] sm:$0xff] }
 0x329   :  { %v4229_v62 = vpop.f32.mrf.mxu0  ;;  %v12732_v29 = vmax.f32 %v12730_v4, %v12731_v19  ;;  %v12738_v26 = vmax.f32 %v12736_v37, %v12737_v23  ;;  %v12747_v0 = vld [vmem:[#allocation107_spill] sm:$0xff]  ;;  %v12754_v19 = vld [vmem:[#allocation80_spill] sm:$0xff]  ;;  %v12759_v37 = vld [vmem:[#allocation42_spill] sm:$0xff] }
 0x32a   :  { %v8196_v13 = vpop.f32.mrf.mxu1  ;;  %v11119_v7 = vmax.f32 %v12719_v47, %v4704_v44  ;;  %v4707_v5 = vadd.f32 %v8192_v59, %v4391_v48  ;;  %v4389_v63 = vadd.f32 %v4229_v62, %v12721_v11  ;;  %v12740_v44 = vld [vmem:[#allocation168_spill] sm:$0xff]  ;;  %v12745_v11 = vld [vmem:[#allocation169_spill] sm:$0xff]  ;;  %v12753_v4 = vld [vmem:[#allocation39_spill] sm:$0xff] }
 0x32b   :  { %v8137_v28 = vpop.f32.mrf.mxu0  ;;  %8352 = vmatmul.mubr.msk.bf16.gmra.mxu0 %vm436_vm1, %v12722_v49  ;;  %v12746_v49 = vld [vmem:[#allocation40_spill] sm:$0xff] }
 0x32c   :  { %12720 = vst [vmem:[#allocation23_spill] sm:$0xff] %v11119_v7  ;;  %v4561_v38 = vpop.f32.mrf.mxu1  ;;  %v11127_v60 = vmax.f32 %v12725_v51, %v4707_v5  ;;  %v4705_v6 = vadd.f32 %v4545_v34, %v4389_v63  ;;  %v4394_v32 = vadd.f32 %v8137_v28, %v12727_v45  ;;  %8355 = vmatprep.mubr.msk.bf16.mxu0 %vm436_vm1, %v12728_v12  ;;  %v12748_v51 = vld [vmem:[#allocation126_spill] sm:$0xff] }
 0x32d   :  { %v4242_v22 = vpop.f32.mrf.mxu0 }
 0x32e   :  { %12726 = vst [vmem:[#allocation24_spill] sm:$0xff] %v11127_v60  ;;  %v8199_v59 = vpop.f32.mrf.mxu1  ;;  %8414 = vmatmul.mubr.msk.bf16.gmra.mxu1 %vm436_vm1, %v12729_v42  ;;  %v11137_v55 = vmax.f32 %v12732_v29, %v4705_v6  ;;  %v4710_v16 = vadd.f32 %v8195_v43, %v4394_v32  ;;  %v4392_v24 = vadd.f32 %v4242_v22, %v12734_v2  ;;  %v12751_v32 = vld [vmem:[#allocation9_spill] sm:$0xff]  ;;  %v12755_v29 = vld [vmem:[#allocation127_spill] sm:$0xff] }
 0x32f   :  { %8417 = vmatprep.mubr.msk.bf16.mxu1 %vm436_vm1, %v12735_v35  ;;  %v8138_v34 = vpop.f32.mrf.mxu0  ;;  %v12743_v43 = vmax.f32 %v12741_v52, %v12742_v30  ;;  %v12752_v22 = vld [vmem:[#allocation41_spill] sm:$0xff]  ;;  %v12758_v35 = vld [vmem:[#allocation10_spill] sm:$0xff] }
 0x330   :  { %12733 = vst [vmem:[#allocation25_spill] sm:$0xff] %v11137_v55  ;;  %v4574_v33 = vpop.f32.mrf.mxu1  ;;  %v11145_v56 = vmax.f32 %v12738_v26, %v4710_v16  ;;  %v4708_v27 = vadd.f32 %v4558_v9, %v4392_v24  ;;  %v4395_v61 = vadd.f32 %v8138_v34, %v12740_v44  ;;  %v12749_v9 = vmax.f32 %v12747_v0, %v12748_v51  ;;  %v12760_v26 = vld [vmem:[#allocation81_spill] sm:$0xff]  ;;  %v12764_v52 = vld [vmem:[#allocation170_spill] sm:$0xff]  ;;  %v12769_v0 = vld [vmem:[#allocation171_spill] sm:$0xff] }
 0x331   :  { %v4245_v48 = vpop.f32.mrf.mxu0  ;;  %v12756_v16 = vmax.f32 %v12754_v19, %v12755_v29  ;;  %v12775_v19 = vld [vmem:[#allocation11_spill] sm:$0xff] }
 0x332   :  { %12739 = vst [vmem:[#allocation155_spill] sm:$0xff] %v11145_v56  ;;  %v8200_v62 = vpop.f32.mrf.mxu1  ;;  %v11151_v47 = vmax.f32 %v12743_v43, %v4708_v27  ;;  %v4711_v5 = vadd.f32 %v8196_v13, %v4395_v61  ;;  %v4393_v63 = vadd.f32 %v4245_v48, %v12745_v11  ;;  %v12761_v27 = vld [vmem:[#allocation128_spill] sm:$0xff] }
 0x333   :  { %v8141_v28 = vpop.f32.mrf.mxu0  ;;  %8356 = vmatmul.mubr.msk.bf16.gmra.mxu0 %vm436_vm1, %v12746_v49  ;;  %v12762_v44 = vmax.f32 %v12760_v26, %v12761_v27  ;;  %v12765_v11 = vld [vmem:[#allocation108_spill] sm:$0xff] }
 0x334   :  { %12744 = vst [vmem:[#allocation2_spill] sm:$0xff] %v11151_v47  ;;  %v4577_v50 = vpop.f32.mrf.mxu1  ;;  %v11159_v6 = vmax.f32 %v12749_v9, %v4711_v5  ;;  %v4709_v45 = vadd.f32 %v4561_v38, %v4393_v63  ;;  %v4398_v12 = vadd.f32 %v8141_v28, %v12751_v32  ;;  %8359 = vmatprep.mubr.msk.bf16.mxu0 %vm436_vm1, %v12752_v22  ;;  %v12766_v63 = vld [vmem:[#allocation129_spill] sm:$0xff]  ;;  %v12772_v22 = vld [vmem:[#allocation130_spill] sm:$0xff] }
 0x335   :  { %v4258_v42 = vpop.f32.mrf.mxu0 }
 0x336   :  { %12750 = vst [vmem:[#allocation26_spill] sm:$0xff] %v11159_v6  ;;  %v8203_v13 = vpop.f32.mrf.mxu1  ;;  %8418 = vmatmul.mubr.msk.bf16.gmra.mxu1 %vm436_vm1, %v12753_v4  ;;  %v11169_v2 = vmax.f32 %v12756_v16, %v4709_v45  ;;  %v4714_v24 = vadd.f32 %v8199_v59, %v4398_v12  ;;  %v4396_v34 = vadd.f32 %v4258_v42, %v12758_v35  ;;  %v12770_v45 = vld [vmem:[#allocation44_spill] sm:$0xff]  ;;  %v12771_v12 = vld [vmem:[#allocation109_spill] sm:$0xff]  ;;  %v12777_v35 = vld [vmem:[#allocation43_spill] sm:$0xff] }
 0x337   :  { %8421 = vmatprep.mubr.msk.bf16.mxu1 %vm436_vm1, %v12759_v37  ;;  %v8142_v38 = vpop.f32.mrf.mxu0  ;;  %v12767_v59 = vmax.f32 %v12765_v11, %v12766_v63  ;;  %v12776_v16 = vld [vmem:[#allocation45_spill] sm:$0xff]  ;;  %v12779_v37 = vld [vmem:[#allocation131_spill] sm:$0xff]  ;;  %v12785_v11 = vld [vmem:[#allocation132_spill] sm:$0xff] }
 0x338   :  { %12757 = vst [vmem:[#allocation156_spill] sm:$0xff] %v11169_v2  ;;  %v4590_v23 = vpop.f32.mrf.mxu1  ;;  %v11177_v61 = vmax.f32 %v12762_v44, %v4714_v24  ;;  %v4712_v48 = vadd.f32 %v4574_v33, %v4396_v34  ;;  %v4399_v30 = vadd.f32 %v8142_v38, %v12764_v52  ;;  %v12773_v33 = vmax.f32 %v12771_v12, %v12772_v22  ;;  %v12778_v34 = vld [vmem:[#allocation82_spill] sm:$0xff]  ;;  %v12782_v44 = vld [vmem:[#allocation12_spill] sm:$0xff]  ;;  %v12790_v22 = vld [vmem:[#allocation133_spill] sm:$0xff] }
 0x339   :  { %v4261_v43 = vpop.f32.mrf.mxu0  ;;  %v12780_v38 = vmax.f32 %v12778_v34, %v12779_v37  ;;  %v12783_v52 = vld [vmem:[#allocation46_spill] sm:$0xff]  ;;  %v12795_v34 = vld [vmem:[#allocation111_spill] sm:$0xff] }
 0x33a   :  { %12763 = vst [vmem:[#allocation163_spill] sm:$0xff] %v11177_v61  ;;  %v8204_v5 = vpop.f32.mrf.mxu1  ;;  %v11183_v28 = vmax.f32 %v12767_v59, %v4712_v48  ;;  %v4715_v49 = vadd.f32 %v8200_v62, %v4399_v30  ;;  %v4397_v51 = vadd.f32 %v4261_v43, %v12769_v0  ;;  %v12784_v43 = vld [vmem:[#allocation83_spill] sm:$0xff]  ;;  %v12788_v0 = vld [vmem:[#allocation172_spill] sm:$0xff]  ;;  %v12789_v12 = vld [vmem:[#allocation110_spill] sm:$0xff] }
 0x33b   :  { %v8145_v9 = vpop.f32.mrf.mxu0  ;;  %8360 = vmatmul.mubr.msk.bf16.gmra.mxu0 %vm436_vm1, %v12770_v45  ;;  %v12786_v63 = vmax.f32 %v12784_v43, %v12785_v11  ;;  %v12796_v37 = vld [vmem:[#allocation134_spill] sm:$0xff]  ;;  %v12801_v43 = vld [vmem:[#allocation47_spill] sm:$0xff]  ;;  %v12802_v11 = vld [vmem:[#allocation84_spill] sm:$0xff] }
 0x33c   :  { %12768 = vst [vmem:[#allocation28_spill] sm:$0xff] %v11183_v28  ;;  %v4593_v32 = vpop.f32.mrf.mxu1  ;;  %v11191_v42 = vmax.f32 %v12773_v33, %v4715_v49  ;;  %v4713_v4 = vadd.f32 %v4577_v50, %v4397_v51  ;;  %v4402_v29 = vadd.f32 %v8145_v9, %v12775_v19  ;;  %8363 = vmatprep.mubr.msk.bf16.mxu0 %vm436_vm1, %v12776_v16  ;;  %v12793_v19 = vld [vmem:[#allocation173_spill] sm:$0xff] }
 0x33d   :  { %v4274_v24 = vpop.f32.mrf.mxu0 }
 0x33e   :  { %12774 = vst [vmem:[#allocation96_spill] sm:$0xff] %v11191_v42  ;;  %v8207_v62 = vpop.f32.mrf.mxu1  ;;  %8422 = vmatmul.mubr.msk.bf16.gmra.mxu1 %vm436_vm1, %v12777_v35  ;;  %v11201_v26 = vmax.f32 %v12780_v38, %v4713_v4  ;;  %v4718_v27 = vadd.f32 %v8203_v13, %v4402_v29  ;;  %v4400_v48 = vadd.f32 %v4274_v24, %v12782_v44  ;;  %v12794_v24 = vld [vmem:[#allocation48_spill] sm:$0xff]  ;;  %v12799_v44 = vld [vmem:[#allocation13_spill] sm:$0xff] }
 0x33f   :  { %8425 = vmatprep.mubr.msk.bf16.mxu1 %vm436_vm1, %v12783_v52  ;;  %v8146_v50 = vpop.f32.mrf.mxu0  ;;  %v12791_v13 = vmax.f32 %v12789_v12, %v12790_v22  ;;  %v12800_v52 = vld [vmem:[#allocation49_spill] sm:$0xff]  ;;  %v12807_v22 = vld [vmem:[#allocation50_spill] sm:$0xff] }
 0x340   :  { %12781 = vst [vmem:[#allocation157_spill] sm:$0xff] %v11201_v26  ;;  %v4606_v30 = vpop.f32.mrf.mxu1  ;;  %v11209_v59 = vmax.f32 %v12786_v63, %v4718_v27  ;;  %v4716_v49 = vadd.f32 %v4590_v23, %v4400_v48  ;;  %v4403_v51 = vadd.f32 %v8146_v50, %v12788_v0  ;;  %v12797_v23 = vmax.f32 %v12795_v34, %v12796_v37  ;;  %v12803_v63 = vld [vmem:[#allocation135_spill] sm:$0xff]  ;;  %v12812_v34 = vld [vmem:[#allocation174_spill] sm:$0xff] }
 0x341   :  { %v4277_v9 = vpop.f32.mrf.mxu0 }
 0x342   :  { %12787 = vst [vmem:[#allocation3_spill] sm:$0xff] %v11209_v59  ;;  %v8208_v45 = vpop.f32.mrf.mxu1  ;;  %v11215_v33 = vmax.f32 %v12791_v13, %v4716_v49  ;;  %v4719_v4 = vadd.f32 %v8204_v5, %v4403_v51  ;;  %v4401_v29 = vadd.f32 %v4277_v9, %v12793_v19  ;;  %v12804_v49 = vmax.f32 %v12802_v11, %v12803_v63  ;;  %v12806_v9 = vld [vmem:[#allocation14_spill] sm:$0xff]  ;;  %v12809_v19 = vld [vmem:[#allocation136_spill] sm:$0xff] }
 0x343   :  { %v8149_v16 = vpop.f32.mrf.mxu0  ;;  %8364 = vmatmul.mubr.msk.bf16.gmra.mxu0 %vm436_vm1, %v12794_v24 }
 0x344   :  { %12792 = vst [vmem:[#allocation29_spill] sm:$0xff] %v11215_v33  ;;  %v4609_v35 = vpop.f32.mrf.mxu1  ;;  %v11223_v38 = vmax.f32 %v12797_v23, %v4719_v4  ;;  %v4717_v27 = vadd.f32 %v4593_v32, %v4401_v29  ;;  %v4406_v48 = vadd.f32 %v8149_v16, %v12799_v44  ;;  %8367 = vmatprep.mubr.msk.bf16.mxu0 %vm436_vm1, %v12800_v52  ;;  %v12808_v4 = vld [vmem:[#allocation85_spill] sm:$0xff] }
 0x345   :  { %v4290_v50 = vpop.f32.mrf.mxu0  ;;  %v12810_v29 = vmax.f32 %v12808_v4, %v12809_v19  ;;  %v12814_v52 = vld [vmem:[#allocation137_spill] sm:$0xff]  ;;  %v12823_v4 = vld [vmem:[#allocation15_spill] sm:$0xff] }
 0x346   :  { %12798 = vst [vmem:[#allocation27_spill] sm:$0xff] %v11223_v38  ;;  %v8211_v5 = vpop.f32.mrf.mxu1  ;;  %8426 = vmatmul.mubr.msk.bf16.gmra.mxu1 %vm436_vm1, %v12801_v43  ;;  %v11233_v0 = vmax.f32 %v12804_v49, %v4717_v27  ;;  %v4722_v51 = vadd.f32 %v8207_v62, %v4406_v48  ;;  %v4404_v12 = vadd.f32 %v4290_v50, %v12806_v9  ;;  %v12813_v27 = vld [vmem:[#allocation112_spill] sm:$0xff]  ;;  %v12817_v43 = vld [vmem:[#allocation175_spill] sm:$0xff] }
 0x347   :  { %8429 = vmatprep.mubr.msk.bf16.mxu1 %vm436_vm1, %v12807_v22  ;;  %v8150_v32 = vpop.f32.mrf.mxu0  ;;  %v12815_v62 = vmax.f32 %v12813_v27, %v12814_v52  ;;  %v12818_v49 = vld [vmem:[#allocation52_spill] sm:$0xff]  ;;  %v12820_v22 = vld [vmem:[#allocation138_spill] sm:$0xff] }
 0x348   :  { %12805 = vst [vmem:[#allocation97_spill] sm:$0xff] %v11233_v0  ;;  %v4622_v13 = vpop.f32.mrf.mxu1  ;;  %v11241_v16 = vmax.f32 %v12810_v29, %v4722_v51  ;;  %v4720_v24 = vadd.f32 %v4606_v30, %v4404_v12  ;;  %v4407_v37 = vadd.f32 %v8150_v32, %v12812_v34  ;;  %v12819_v51 = vld [vmem:[#allocation113_spill] sm:$0xff]  ;;  %v12825_v34 = vld [vmem:[#allocation51_spill] sm:$0xff] }
 0x349   :  { %v4293_v23 = vpop.f32.mrf.mxu0  ;;  %v12821_v30 = vmax.f32 %v12819_v51, %v12820_v22  ;;  %v12824_v29 = vld [vmem:[#allocation53_spill] sm:$0xff]  ;;  %v12833_v51 = vld [vmem:[#allocation140_spill] sm:$0xff] }
 0x34a   :  { %12811 = vst [vmem:[#allocation158_spill] sm:$0xff] %v11241_v16  ;;  %v8212_v44 = vpop.f32.mrf.mxu1  ;;  %v11247_v48 = vmax.f32 %v12815_v62, %v4720_v24  ;;  %v4723_v50 = vadd.f32 %v8208_v45, %v4407_v37  ;;  %v4405_v11 = vadd.f32 %v4293_v23, %v12817_v43  ;;  %v12826_v37 = vld [vmem:[#allocation86_spill] sm:$0xff]  ;;  %v12827_v23 = vld [vmem:[#allocation139_spill] sm:$0xff]  ;;  %v12830_v43 = vld [vmem:[#allocation16_spill] sm:$0xff] }
 0x34b   :  { %v8153_v63 = vpop.f32.mrf.mxu0  ;;  %8368 = vmatmul.mubr.msk.bf16.gmra.mxu0 %vm436_vm1, %v12818_v49  ;;  %v12828_v27 = vmax.f32 %v12826_v37, %v12827_v23  ;;  %v12831_v49 = vld [vmem:[#allocation54_spill] sm:$0xff]  ;;  %v12838_v23 = vld [vmem:[#allocation141_spill] sm:$0xff] }
 0x34c   :  { %12816 = vst [vmem:[#allocation4_spill] sm:$0xff] %v11247_v48  ;;  %v4625_v9 = vpop.f32.mrf.mxu1  ;;  %v11255_v12 = vmax.f32 %v12821_v30, %v4723_v50  ;;  %v4721_v32 = vadd.f32 %v4609_v35, %v4405_v11  ;;  %v4410_v19 = vadd.f32 %v8153_v63, %v12823_v4  ;;  %8371 = vmatprep.mubr.msk.bf16.mxu0 %vm436_vm1, %v12824_v29  ;;  %v12832_v63 = vld [vmem:[#allocation87_spill] sm:$0xff]  ;;  %v12836_v29 = vld [vmem:[#allocation176_spill] sm:$0xff] }
 0x34d   :  { %v4306_v24 = vpop.f32.mrf.mxu0  ;;  %v12834_v22 = vmax.f32 %v12832_v63, %v12833_v51  ;;  %v12844_v51 = vld [vmem:[#allocation142_spill] sm:$0xff] }
 0x34e   :  { %12822 = vst [vmem:[#allocation30_spill] sm:$0xff] %v11255_v12  ;;  %v8215_v45 = vpop.f32.mrf.mxu1  ;;  %8430 = vmatmul.mubr.msk.bf16.gmra.mxu1 %vm436_vm1, %v12825_v34  ;;  %v11265_v52 = vmax.f32 %v12828_v27, %v4721_v32  ;;  %v4726_v62 = vadd.f32 %v8211_v5, %v4410_v19  ;;  %v4408_v50 = vadd.f32 %v4306_v24, %v12830_v43  ;;  %v12837_v32 = vld [vmem:[#allocation114_spill] sm:$0xff]  ;;  %v12841_v27 = vld [vmem:[#allocation177_spill] sm:$0xff] }
 0x34f   :  { %8433 = vmatprep.mubr.msk.bf16.mxu1 %vm436_vm1, %v12831_v49  ;;  %v8154_v35 = vpop.f32.mrf.mxu0  ;;  %v12839_v5 = vmax.f32 %v12837_v32, %v12838_v23  ;;  %v12851_v32 = vld [vmem:[#allocation143_spill] sm:$0xff] }
 0x350   :  { %12829 = vst [vmem:[#allocation98_spill] sm:$0xff] %v11265_v52  ;;  %v4638_v11 = vpop.f32.mrf.mxu1  ;;  %v11273_v30 = vmax.f32 %v12834_v22, %v4726_v62  ;;  %v4724_v4 = vadd.f32 %v4622_v13, %v4408_v50  ;;  %v4411_v34 = vadd.f32 %v8154_v35, %v12836_v29  ;;  %v12842_v52 = vld [vmem:[#allocation56_spill] sm:$0xff]  ;;  %v12843_v62 = vld [vmem:[#allocation115_spill] sm:$0xff]  ;;  %v12847_v22 = vld [vmem:[#allocation17_spill] sm:$0xff] }
 0x351   :  { %v4309_v12 = vpop.f32.mrf.mxu0  ;;  %v12845_v13 = vmax.f32 %v12843_v62, %v12844_v51  ;;  %v12855_v62 = vld [vmem:[#allocation58_spill] sm:$0xff] }
 0x352   :  { %12835 = vst [vmem:[#allocation159_spill] sm:$0xff] %v11273_v30  ;;  %v8216_v37 = vpop.f32.mrf.mxu1  ;;  %v11279_v19 = vmax.f32 %v12839_v5, %v4724_v4  ;;  %v4727_v24 = vadd.f32 %v8212_v44, %v4411_v34  ;;  %v4409_v43 = vadd.f32 %v4309_v12, %v12841_v27  ;;  %v12848_v30 = vld [vmem:[#allocation57_spill] sm:$0xff]  ;;  %v12849_v34 = vld [vmem:[#allocation55_spill] sm:$0xff]  ;;  %v12850_v12 = vld [vmem:[#allocation88_spill] sm:$0xff] }
 0x353   :  { %v8157_v49 = vpop.f32.mrf.mxu0  ;;  %8372 = vmatmul.mubr.msk.bf16.gmra.mxu0 %vm436_vm1, %v12842_v52  ;;  %v12852_v52 = vmax.f32 %v12850_v12, %v12851_v32  ;;  %v12854_v27 = vld [vmem:[#allocation18_spill] sm:$0xff]  ;;  %v12862_v32 = vld [vmem:[#allocation145_spill] sm:$0xff] }
 0x354   :  { %12840 = vst [vmem:[#allocation164_spill] sm:$0xff] %v11279_v19  ;;  %v4641_v63 = vpop.f32.mrf.mxu1  ;;  %v11287_v50 = vmax.f32 %v12845_v13, %v4727_v24  ;;  %v4725_v35 = vadd.f32 %v4625_v9, %v4409_v43  ;;  %v4414_v29 = vadd.f32 %v8157_v49, %v12847_v22  ;;  %8375 = vmatprep.mubr.msk.bf16.mxu0 %vm436_vm1, %v12848_v30  ;;  %v12856_v49 = vld [vmem:[#allocation89_spill] sm:$0xff]  ;;  %v12857_v30 = vld [vmem:[#allocation144_spill] sm:$0xff] }
 0x355   :  { %v4322_v4 = vpop.f32.mrf.mxu0  ;;  %v12858_v51 = vmax.f32 %v12856_v49, %v12857_v30  ;;  %v12868_v30 = vld [vmem:[#allocation146_spill] sm:$0xff] }
 0x356   :  { %12846 = vst [vmem:[#allocation99_spill] sm:$0xff] %v11287_v50  ;;  %v8219_v44 = vpop.f32.mrf.mxu1  ;;  %8434 = vmatmul.mubr.msk.bf16.gmra.mxu1 %vm436_vm1, %v12849_v34  ;;  %v11297_v23 = vmax.f32 %v12852_v52, %v4725_v35  ;;  %v4730_v5 = vadd.f32 %v8215_v45, %v4414_v29  ;;  %v4412_v24 = vadd.f32 %v4322_v4, %v12854_v27  ;;  %v12860_v34 = vld [vmem:[#allocation178_spill] sm:$0xff]  ;;  %v12861_v35 = vld [vmem:[#allocation116_spill] sm:$0xff]  ;;  %v12865_v52 = vld [vmem:[#allocation179_spill] sm:$0xff] }
 0x357   :  { %8437 = vmatprep.mubr.msk.bf16.mxu1 %vm436_vm1, %v12855_v62  ;;  %v8158_v9 = vpop.f32.mrf.mxu0  ;;  %v12863_v45 = vmax.f32 %v12861_v35, %v12862_v32  ;;  %v12875_v35 = vld [vmem:[#allocation147_spill] sm:$0xff] }
 0x358   :  { %12853 = vst [vmem:[#allocation160_spill] sm:$0xff] %v11297_v23  ;;  %v4654_v43 = vpop.f32.mrf.mxu1  ;;  %v11305_v13 = vmax.f32 %v12858_v51, %v4730_v5  ;;  %v4728_v22 = vadd.f32 %v4638_v11, %v4412_v24  ;;  %v4415_v50 = vadd.f32 %v8158_v9, %v12860_v34  ;;  %v12866_v23 = vld [vmem:[#allocation60_spill] sm:$0xff]  ;;  %v12867_v5 = vld [vmem:[#allocation117_spill] sm:$0xff]  ;;  %v12871_v51 = vld [vmem:[#allocation19_spill] sm:$0xff] }
 0x359   :  { %v4325_v19 = vpop.f32.mrf.mxu0  ;;  %v12869_v11 = vmax.f32 %v12867_v5, %v12868_v30  ;;  %v12879_v5 = vld [vmem:[#allocation62_spill] sm:$0xff] }
 0x35a   :  { %12859 = vst [vmem:[#allocation165_spill] sm:$0xff] %v11305_v13  ;;  %v8220_v12 = vpop.f32.mrf.mxu1  ;;  %v11311_v29 = vmax.f32 %v12863_v45, %v4728_v22  ;;  %v4731_v4 = vadd.f32 %v8216_v37, %v4415_v50  ;;  %v4413_v27 = vadd.f32 %v4325_v19, %v12865_v52  ;;  %v12872_v13 = vld [vmem:[#allocation61_spill] sm:$0xff]  ;;  %v12873_v50 = vld [vmem:[#allocation59_spill] sm:$0xff]  ;;  %v12874_v19 = vld [vmem:[#allocation90_spill] sm:$0xff] }
 0x35b   :  { %v8161_v62 = vpop.f32.mrf.mxu0  ;;  %8376 = vmatmul.mubr.msk.bf16.gmra.mxu0 %vm436_vm1, %v12866_v23  ;;  %v12876_v23 = vmax.f32 %v12874_v19, %v12875_v35  ;;  %v12878_v52 = vld [vmem:[#allocation20_spill] sm:$0xff]  ;;  %v12886_v35 = vld [vmem:[#allocation149_spill] sm:$0xff] }
 0x35c   :  { %12864 = vst [vmem:[#allocation32_spill] sm:$0xff] %v11311_v29  ;;  %v4657_v49 = vpop.f32.mrf.mxu1  ;;  %v11319_v24 = vmax.f32 %v12869_v11, %v4731_v4  ;;  %v4729_v9 = vadd.f32 %v4641_v63, %v4413_v27  ;;  %v4418_v34 = vadd.f32 %v8161_v62, %v12871_v51  ;;  %8379 = vmatprep.mubr.msk.bf16.mxu0 %vm436_vm1, %v12872_v13  ;;  %v12880_v62 = vld [vmem:[#allocation91_spill] sm:$0xff]  ;;  %v12881_v13 = vld [vmem:[#allocation148_spill] sm:$0xff] }
 0x35d   :  { %v4338_v22 = vpop.f32.mrf.mxu0  ;;  %v12882_v30 = vmax.f32 %v12880_v62, %v12881_v13  ;;  %v12892_v13 = vld [vmem:[#allocation150_spill] sm:$0xff] }
 0x35e   :  { %12870 = vst [vmem:[#allocation100_spill] sm:$0xff] %v11319_v24  ;;  %v8223_v37 = vpop.f32.mrf.mxu1  ;;  %8438 = vmatmul.mubr.msk.bf16.gmra.mxu1 %vm436_vm1, %v12873_v50  ;;  %v11329_v32 = vmax.f32 %v12876_v23, %v4729_v9  ;;  %v4734_v45 = vadd.f32 %v8219_v44, %v4418_v34  ;;  %v4416_v4 = vadd.f32 %v4338_v22, %v12878_v52  ;;  %v12884_v50 = vld [vmem:[#allocation180_spill] sm:$0xff]  ;;  %v12885_v9 = vld [vmem:[#allocation118_spill] sm:$0xff]  ;;  %v12889_v23 = vld [vmem:[#allocation181_spill] sm:$0xff] }
 0x35f   :  { %8441 = vmatprep.mubr.msk.bf16.mxu1 %vm436_vm1, %v12879_v5  ;;  %v8162_v63 = vpop.f32.mrf.mxu0  ;;  %v12887_v44 = vmax.f32 %v12885_v9, %v12886_v35  ;;  %v12899_v9 = vld [vmem:[#allocation151_spill] sm:$0xff] }
 0x360   :  { %12877 = vst [vmem:[#allocation161_spill] sm:$0xff] %v11329_v32  ;;  %v4670_v27 = vpop.f32.mrf.mxu1  ;;  %v11337_v11 = vmax.f32 %v12882_v30, %v4734_v45  ;;  %v4732_v51 = vadd.f32 %v4654_v43, %v4416_v4  ;;  %v4419_v24 = vadd.f32 %v8162_v63, %v12884_v50  ;;  %v12890_v32 = vld [vmem:[#allocation64_spill] sm:$0xff]  ;;  %v12891_v45 = vld [vmem:[#allocation119_spill] sm:$0xff]  ;;  %v12895_v30 = vld [vmem:[#allocation21_spill] sm:$0xff] }
 0x361   :  { %v4341_v29 = vpop.f32.mrf.mxu0  ;;  %v12893_v43 = vmax.f32 %v12891_v45, %v12892_v13  ;;  %v12903_v45 = vld [vmem:[#allocation66_spill] sm:$0xff]  ;;  %v12905_v13 = vld [vmem:[#allocation152_spill] sm:$0xff] }
 0x362   :  { %12883 = vst [vmem:[#allocation5_spill] sm:$0xff] %v11337_v11  ;;  %v8224_v19 = vpop.f32.mrf.mxu1  ;;  %v11343_v34 = vmax.f32 %v12887_v44, %v4732_v51  ;;  %v4735_v22 = vadd.f32 %v8220_v12, %v4419_v24  ;;  %v4417_v52 = vadd.f32 %v4341_v29, %v12889_v23  ;;  %v12897_v24 = vld [vmem:[#allocation63_spill] sm:$0xff]  ;;  %v12898_v29 = vld [vmem:[#allocation92_spill] sm:$0xff]  ;;  %v12902_v23 = vld [vmem:[#allocation22_spill] sm:$0xff] }
 0x363   :  { %v8165_v5 = vpop.f32.mrf.mxu0  ;;  %8380 = vmatmul.mubr.msk.bf16.gmra.mxu0 %vm436_vm1, %v12890_v32  ;;  %v12896_v19 = vld [vmem:[#allocation65_spill] sm:$0xff]  ;;  %v12900_v32 = vmax.f32 %v12898_v29, %v12899_v9 }
 0x364   :  { %12888 = vst [vmem:[#allocation33_spill] sm:$0xff] %v11343_v34  ;;  %v4673_v62 = vpop.f32.mrf.mxu1  ;;  %v11351_v4 = vmax.f32 %v12893_v43, %v4735_v22  ;;  %v4733_v63 = vadd.f32 %v4657_v49, %v4417_v52  ;;  %v4422_v50 = vadd.f32 %v8165_v5, %v12895_v30  ;;  %8383 = vmatprep.mubr.msk.bf16.mxu0 %vm436_vm1, %v12896_v19  ;;  %v12904_v5 = vld [vmem:[#allocation93_spill] sm:$0xff]  ;;  %v12908_v34 = vld [vmem:[#allocation94_spill] sm:$0xff] }
 0x365   :  { %v4354_v51 = vpop.f32.mrf.mxu0  ;;  %v12906_v43 = vmax.f32 %v12904_v5, %v12905_v13  ;;  %v12909_v29 = vld [vmem:[#allocation153_spill] sm:$0xff]  ;;  %v12915_v5 = vld [vmem:[#allocation67_spill] sm:$0xff]  ;;  %v12917_v13 = vld [vmem:[#allocation154_spill] sm:$0xff] }
 0x366   :  { %12894 = vst [vmem:[#allocation31_spill] sm:$0xff] %v11351_v4  ;;  %v8287_v12 = vpop.f32.mrf.mxu1  ;;  %8442 = vmatmul.mubr.msk.bf16.gmra.mxu1 %vm436_vm1, %v12897_v24  ;;  %v11361_v35 = vmax.f32 %v12900_v32, %v4733_v63  ;;  %v4738_v44 = vadd.f32 %v8223_v37, %v4422_v50  ;;  %v4420_v22 = vadd.f32 %v4354_v51, %v12902_v23  ;;  %v12912_v37 = vld [vmem:[#allocation182_spill] sm:$0xff]  ;;  %v12913_v32 = vld [vmem:[#allocation68_spill] sm:$0xff] }
 0x367   :  { %8445 = vmatprep.mubr.msk.bf16.mxu1 %vm436_vm1, %v12903_v45  ;;  %v8166_v49 = vpop.f32.mrf.mxu0  ;;  %v12910_v63 = vmax.f32 %v12908_v34, %v12909_v29  ;;  %v12916_v34 = vld [vmem:[#allocation95_spill] sm:$0xff]  ;;  %v12920_v29 = vld [vmem:[#allocation70_spill] sm:$0xff] }
 0x368   :  { %12901 = vst [vmem:[#allocation101_spill] sm:$0xff] %v11361_v35  ;;  %v5094_v52 = vpop.f32.mrf.mxu1  ;;  %v11369_v30 = vmax.f32 %v12906_v43, %v4738_v44  ;;  %v4736_v19 = vadd.f32 %v4670_v27, %v4420_v22  ;;  %v12914_v44 = vld [vmem:[#allocation69_spill] sm:$0xff]  ;;  %v12918_v43 = vmax.f32 %v12916_v34, %v12917_v13  ;;  %v12923_v13 = vld [vmem:[#allocation72_spill] sm:$0xff] }
 0x369   :  { %v4357_v24 = vpop.f32.mrf.mxu0 }
 0x36a   :  { %12907 = vst [vmem:[#allocation162_spill] sm:$0xff] %v11369_v30  ;;  %v8288_v4 = vpop.f32.mrf.mxu1  ;;  %v11374_v9 = vmax.f32 %v12910_v63, %v4736_v19  ;;  %v4421_v50 = vadd.f32 %v4357_v24, %v12912_v37 }
 0x36b   :  { %v8229_v51 = vpop.f32.mrf.mxu0  ;;  %8384 = vmatmul.mubr.msk.bf16.gmra.mxu0 %vm436_vm1, %v12913_v32 }
 0x36c   :  { %12911 = vst [vmem:[#allocation6_spill] sm:$0xff] %v11374_v9  ;;  %v5097_v23 = vpop.f32.mrf.mxu1  ;;  %v4737_v45 = vadd.f32 %v4673_v62, %v4421_v50  ;;  %v11379_v49 = vadd.f32 %v8287_v12, %v8229_v51  ;;  %8387 = vmatprep.mubr.msk.bf16.mxu0 %vm436_vm1, %v12914_v44  ;;  %v12921_v44 = vld [vmem:[#allocation71_spill] sm:$0xff] }
 0x36d   :  { %v4835_v27 = vpop.f32.mrf.mxu0 }
 0x36e   :  { %v8291_v22 = vpop.f32.mrf.mxu1  ;;  %8446 = vmatmul.mubr.msk.bf16.gmra.mxu1 %vm436_vm1, %v12915_v5  ;;  %v11388_v19 = vmax.f32 %v12918_v43, %v4737_v45  ;;  %v11390_v24 = vadd.f32 %v5094_v52, %v4835_v27  ;;  %v12922_v52 = vld [vmem:[#allocation73_spill] sm:$0xff]  ;;  %v12924_v43 = vld [vmem:[#allocation74_spill] sm:$0xff] }
 0x36f   :  { %8449 = vmatprep.mubr.msk.bf16.mxu1 %vm436_vm1, %v12920_v29  ;;  %v8230_v62 = vpop.f32.mrf.mxu0 }
 0x370   :  { %12919 = vst [vmem:[#allocation34_spill] sm:$0xff] %v11388_v19  ;;  %v5110_v12 = vpop.f32.mrf.mxu1  ;;  %v11394_v63 = vadd.f32 %v8288_v4, %v8230_v62 }
 0x371   :  { %v4838_v37 = vpop.f32.mrf.mxu0 }
 0x372   :  { %v8292_v50 = vpop.f32.mrf.mxu1  ;;  %v11396_v51 = vadd.f32 %v5097_v23, %v4838_v37 }
 0x373   :  { %v8233_v32 = vpop.f32.mrf.mxu0  ;;  %8388 = vmatmul.mubr.msk.bf16.gmra.mxu0 %vm436_vm1, %v12921_v44 }
 0x374   :  { %v5113_v5 = vpop.f32.mrf.mxu1  ;;  %v11400_v45 = vadd.f32 %v8291_v22, %v8233_v32  ;;  %8391 = vmatprep.mubr.msk.bf16.mxu0 %vm436_vm1, %v12922_v52  ;;  %v12925_v52 = vld [vmem:[#allocation76_spill] sm:$0xff] }
 0x375   :  { %v4851_v27 = vpop.f32.mrf.mxu0 }
 0x376   :  { %v8295_v34 = vpop.f32.mrf.mxu1  ;;  %8450 = vmatmul.mubr.msk.bf16.gmra.mxu1 %vm436_vm1, %v12923_v13  ;;  %v11406_v4 = vadd.f32 %v5110_v12, %v4851_v27  ;;  %v12926_v12 = vld [vmem:[#allocation78_spill] sm:$0xff] }
 0x377   :  { %8453 = vmatprep.mubr.msk.bf16.mxu1 %vm436_vm1, %v12924_v43  ;;  %v8234_v23 = vpop.f32.mrf.mxu0  ;;  %v12927_v43 = vld [vmem:[#allocation77_spill] sm:$0xff] }
 0x378   :  { %v5126_v29 = vpop.f32.mrf.mxu1  ;;  %v11410_v62 = vadd.f32 %v8292_v50, %v8234_v23 }
 0x379   :  { %v4854_v37 = vpop.f32.mrf.mxu0 }
 0x37a   :  { %v8296_v22 = vpop.f32.mrf.mxu1  ;;  %v11412_v32 = vadd.f32 %v5113_v5, %v4854_v37 }
 0x37b   :  { %v8237_v44 = vpop.f32.mrf.mxu0  ;;  %8392 = vmatmul.mubr.msk.bf16.gmra.mxu0 %vm436_vm1, %v12925_v52 }
 0x37c   :  { %v5129_v19 = vpop.f32.mrf.mxu1  ;;  %v11416_v9 = vadd.f32 %v8295_v34, %v8237_v44  ;;  %8395 = vmatprep.mubr.msk.bf16.mxu0 %vm436_vm1, %v12926_v12  ;;  %v12928_v44 = vld [vmem:[#allocation75_spill] sm:$0xff] }
 0x37d   :  { %v4867_v27 = vpop.f32.mrf.mxu0 }
 0x37e   :  { %v8299_v13 = vpop.f32.mrf.mxu1  ;;  %8454 = vmatmul.mubr.msk.bf16.gmra.mxu1 %vm436_vm1, %v12927_v43  ;;  %v11422_v50 = vadd.f32 %v5126_v29, %v4867_v27 }
 0x37f   :  { %v8238_v23 = vpop.f32.mrf.mxu0 }
 0x380   :  { %v5142_v5 = vpop.f32.mrf.mxu1  ;;  %v11424_v37 = vadd.f32 %v8296_v22, %v8238_v23 }
 0x381   :  { %v4870_v30 = vpop.f32.mrf.mxu0 }
 0x382   :  { %v8300_v35 = vpop.f32.mrf.mxu1  ;;  %v11426_v52 = vadd.f32 %v5129_v19, %v4870_v30 }
 0x383   :  { %v8241_v34 = vpop.f32.mrf.mxu0  ;;  %8396 = vmatmul.mubr.msk.bf16.gmra.mxu0 %vm436_vm1, %v12928_v44 }
 0x384   :  { %v5145_v12 = vpop.f32.mrf.mxu1  ;;  %v11430_v11 = vadd.f32 %v8299_v13, %v8241_v34 }
 0x385   :  { %v4883_v48 = vpop.f32.mrf.mxu0 }
 0x386   :  { %v8303_v16 = vpop.f32.mrf.mxu1  ;;  %v11432_v43 = vadd.f32 %v5142_v5, %v4883_v48 }
 0x387   :  { %v8242_v29 = vpop.f32.mrf.mxu0 }
 0x388   :  { %v5158_v27 = vpop.f32.mrf.mxu1  ;;  %v11434_v0 = vadd.f32 %v8300_v35, %v8242_v29 }
 0x389   :  { %v4886_v22 = vpop.f32.mrf.mxu0 }
 0x38a   :  { %v8304_v23 = vpop.f32.mrf.mxu1  ;;  %v11436_v38 = vadd.f32 %v5145_v12, %v4886_v22 }
 0x38b   :  { %v8245_v30 = vpop.f32.mrf.mxu0 }
 0x38c   :  { %v5161_v19 = vpop.f32.mrf.mxu1  ;;  %v11438_v33 = vadd.f32 %v8303_v16, %v8245_v30 }
 0x38d   :  { %v4899_v44 = vpop.f32.mrf.mxu0 }
 0x38e   :  { %v8307_v59 = vpop.f32.mrf.mxu1  ;;  %v11440_v13 = vadd.f32 %v5158_v27, %v4899_v44 }
 0x38f   :  { %v8246_v34 = vpop.f32.mrf.mxu0 }
 0x390   :  { %v5174_v26 = vpop.f32.mrf.mxu1  ;;  %v11442_v48 = vadd.f32 %v8304_v23, %v8246_v34 }
 0x391   :  { %v4902_v5 = vpop.f32.mrf.mxu0 }
 0x392   :  { %v8308_v42 = vpop.f32.mrf.mxu1  ;;  %v11444_v35 = vadd.f32 %v5161_v19, %v4902_v5 }
 0x393   :  { %v8249_v29 = vpop.f32.mrf.mxu0 }
 0x394   :  { %v5177_v28 = vpop.f32.mrf.mxu1  ;;  %v11446_v12 = vadd.f32 %v8307_v59, %v8249_v29 }
 0x395   :  { %v4915_v22 = vpop.f32.mrf.mxu0 }
 0x396   :  { %v8311_v61 = vpop.f32.mrf.mxu1  ;;  %v11448_v16 = vadd.f32 %v5174_v26, %v4915_v22 }
 0x397   :  { %v8250_v30 = vpop.f32.mrf.mxu0 }
 0x398   :  { %v5190_v2 = vpop.f32.mrf.mxu1  ;;  %v11450_v27 = vadd.f32 %v8308_v42, %v8250_v30 }
 0x399   :  { %v4918_v44 = vpop.f32.mrf.mxu0 }
 0x39a   :  { %12929 = vst [vmem:[#allocation102_spill] sm:$0xff] %v11450_v27  ;;  %v8312_v6 = vpop.f32.mrf.mxu1  ;;  %v11452_v23 = vadd.f32 %v5177_v28, %v4918_v44 }
 0x39b   :  { %v8253_v34 = vpop.f32.mrf.mxu0 }
 0x39c   :  { %12930 = vst [vmem:[#allocation120_spill] sm:$0xff] %v11452_v23  ;;  %v5193_v47 = vpop.f32.mrf.mxu1  ;;  %v11454_v19 = vadd.f32 %v8311_v61, %v8253_v34 }
 0x39d   :  { %v4931_v5 = vpop.f32.mrf.mxu0 }
 0x39e   :  { %12931 = vst [vmem:[#allocation166_spill] sm:$0xff] %v11454_v19  ;;  %v8315_v56 = vpop.f32.mrf.mxu1  ;;  %v11456_v59 = vadd.f32 %v5190_v2, %v4931_v5 }
 0x39f   :  { %v8254_v29 = vpop.f32.mrf.mxu0 }
 0x3a0   :  { %12932 = vst [vmem:[#allocation103_spill] sm:$0xff] %v11456_v59  ;;  %v5206_v55 = vpop.f32.mrf.mxu1  ;;  %v11458_v26 = vadd.f32 %v8312_v6, %v8254_v29 }
 0x3a1   :  { %v4934_v22 = vpop.f32.mrf.mxu0 }
 0x3a2   :  { %12933 = vst [vmem:[#allocation121_spill] sm:$0xff] %v11458_v26  ;;  %v8316_v60 = vpop.f32.mrf.mxu1  ;;  %v11460_v42 = vadd.f32 %v5193_v47, %v4934_v22 }
 0x3a3   :  { %v8257_v30 = vpop.f32.mrf.mxu0 }
 0x3a4   :  { %12934 = vst [vmem:[#allocation167_spill] sm:$0xff] %v11460_v42  ;;  %v5209_v7 = vpop.f32.mrf.mxu1  ;;  %v11462_v28 = vadd.f32 %v8315_v56, %v8257_v30 }
 0x3a5   :  { %v4947_v44 = vpop.f32.mrf.mxu0 }
 0x3a6   :  { %12935 = vst [vmem:[#allocation36_spill] sm:$0xff] %v11462_v28  ;;  %v8319_v23 = vpop.f32.mrf.mxu1  ;;  %v11464_v61 = vadd.f32 %v5206_v55, %v4947_v44 }
 0x3a7   :  { %v8258_v34 = vpop.f32.mrf.mxu0 }
 0x3a8   :  { %12936 = vst [vmem:[#allocation104_spill] sm:$0xff] %v11464_v61  ;;  %v5222_v19 = vpop.f32.mrf.mxu1  ;;  %v11466_v2 = vadd.f32 %v8316_v60, %v8258_v34 }
 0x3a9   :  { %v4950_v5 = vpop.f32.mrf.mxu0 }
 0x3aa   :  { %12937 = vst [vmem:[#allocation122_spill] sm:$0xff] %v11466_v2  ;;  %v8320_v59 = vpop.f32.mrf.mxu1  ;;  %v11468_v6 = vadd.f32 %v5209_v7, %v4950_v5 }
 0x3ab   :  { %v8261_v29 = vpop.f32.mrf.mxu0 }
 0x3ac   :  { %12938 = vst [vmem:[#allocation7_spill] sm:$0xff] %v11468_v6  ;;  %v5225_v26 = vpop.f32.mrf.mxu1  ;;  %v11470_v47 = vadd.f32 %v8319_v23, %v8261_v29 }
 0x3ad   :  { %v4963_v22 = vpop.f32.mrf.mxu0 }
 0x3ae   :  { %12939 = vst [vmem:[#allocation37_spill] sm:$0xff] %v11470_v47  ;;  %v8323_v42 = vpop.f32.mrf.mxu1  ;;  %v11472_v56 = vadd.f32 %v5222_v19, %v4963_v22 }
 0x3af   :  { %v8262_v30 = vpop.f32.mrf.mxu0 }
 0x3b0   :  { %12940 = vst [vmem:[#allocation35_spill] sm:$0xff] %v11472_v56  ;;  %v5238_v28 = vpop.f32.mrf.mxu1  ;;  %v11474_v55 = vadd.f32 %v8320_v59, %v8262_v30 }
 0x3b1   :  { %v4966_v44 = vpop.f32.mrf.mxu0 }
 0x3b2   :  { %12941 = vst [vmem:[#allocation105_spill] sm:$0xff] %v11474_v55  ;;  %v8324_v61 = vpop.f32.mrf.mxu1  ;;  %v11476_v60 = vadd.f32 %v5225_v26, %v4966_v44 }
 0x3b3   :  { %v8265_v34 = vpop.f32.mrf.mxu0 }
 0x3b4   :  { %12942 = vst [vmem:[#allocation123_spill] sm:$0xff] %v11476_v60  ;;  %v5241_v2 = vpop.f32.mrf.mxu1  ;;  %v11478_v7 = vadd.f32 %v8323_v42, %v8265_v34 }
 0x3b5   :  { %v4979_v5 = vpop.f32.mrf.mxu0 }
 0x3b6   :  { %12943 = vst [vmem:[#allocation8_spill] sm:$0xff] %v11478_v7  ;;  %v8327_v6 = vpop.f32.mrf.mxu1  ;;  %v11480_v23 = vadd.f32 %v5238_v28, %v4979_v5 }
 0x3b7   :  { %v8266_v29 = vpop.f32.mrf.mxu0 }
 0x3b8   :  { %12944 = vst [vmem:[#allocation38_spill] sm:$0xff] %v11480_v23  ;;  %v5254_v47 = vpop.f32.mrf.mxu1  ;;  %v11482_v19 = vadd.f32 %v8324_v61, %v8266_v29 }
 0x3b9   :  { %v4982_v22 = vpop.f32.mrf.mxu0 }
 0x3ba   :  { %12945 = vst [vmem:[#allocation79_spill] sm:$0xff] %v11482_v19  ;;  %v8328_v56 = vpop.f32.mrf.mxu1  ;;  %v11484_v59 = vadd.f32 %v5241_v2, %v4982_v22 }
 0x3bb   :  { %v8269_v30 = vpop.f32.mrf.mxu0 }
 0x3bc   :  { %12946 = vst [vmem:[#allocation124_spill] sm:$0xff] %v11484_v59  ;;  %v5257_v55 = vpop.f32.mrf.mxu1  ;;  %v11486_v26 = vadd.f32 %v8327_v6, %v8269_v30 }
 0x3bd   :  { %v4995_v44 = vpop.f32.mrf.mxu0 }
 0x3be   :  { %12947 = vst [vmem:[#allocation168_spill] sm:$0xff] %v11486_v26  ;;  %v8331_v60 = vpop.f32.mrf.mxu1  ;;  %v11488_v42 = vadd.f32 %v5254_v47, %v4995_v44 }
 0x3bf   :  { %v8270_v34 = vpop.f32.mrf.mxu0 }
 0x3c0   :  { %12948 = vst [vmem:[#allocation106_spill] sm:$0xff] %v11488_v42  ;;  %v5270_v7 = vpop.f32.mrf.mxu1  ;;  %v11490_v28 = vadd.f32 %v8328_v56, %v8270_v34 }
 0x3c1   :  { %v4998_v5 = vpop.f32.mrf.mxu0 }
 0x3c2   :  { %12949 = vst [vmem:[#allocation125_spill] sm:$0xff] %v11490_v28  ;;  %v8332_v23 = vpop.f32.mrf.mxu1  ;;  %v11492_v61 = vadd.f32 %v5257_v55, %v4998_v5 }
 0x3c3   :  { %v8273_v29 = vpop.f32.mrf.mxu0 }
 0x3c4   :  { %12950 = vst [vmem:[#allocation169_spill] sm:$0xff] %v11492_v61  ;;  %v5273_v19 = vpop.f32.mrf.mxu1  ;;  %v11494_v2 = vadd.f32 %v8331_v60, %v8273_v29 }
 0x3c5   :  { %v5011_v22 = vpop.f32.mrf.mxu0 }
 0x3c6   :  { %12951 = vst [vmem:[#allocation40_spill] sm:$0xff] %v11494_v2  ;;  %v8335_v59 = vpop.f32.mrf.mxu1  ;;  %v11496_v6 = vadd.f32 %v5270_v7, %v5011_v22 }
 0x3c7   :  { %v8274_v30 = vpop.f32.mrf.mxu0 }
 0x3c8   :  { %12952 = vst [vmem:[#allocation107_spill] sm:$0xff] %v11496_v6  ;;  %v5286_v26 = vpop.f32.mrf.mxu1  ;;  %v11498_v47 = vadd.f32 %v8332_v23, %v8274_v30 }
 0x3c9   :  { %v5014_v44 = vpop.f32.mrf.mxu0 }
 0x3ca   :  { %12953 = vst [vmem:[#allocation126_spill] sm:$0xff] %v11498_v47  ;;  %v8336_v42 = vpop.f32.mrf.mxu1  ;;  %v11500_v56 = vadd.f32 %v5273_v19, %v5014_v44  ;;  %v8643_v19 = vmov 0  }
 0x3cb   :  { %v8277_v34 = vpop.f32.mrf.mxu0  ;;  %6399 = vst.msk [vmem:[%s11919_s3 + $0xd8] sm:$0xe] %vm6398_vm6, %v8643_v19 }
 0x3cc   :  { %12954 = vst [vmem:[#allocation9_spill] sm:$0xff] %v11500_v56  ;;  %v5289_v28 = vpop.f32.mrf.mxu1  ;;  %v11502_v55 = vadd.f32 %v8335_v59, %v8277_v34  ;;  %6400 = vst.msk [vmem:[%s11919_s3 + $0xdc] sm:$0xf] %vm6341_vm4, %v8643_v19 }
 0x3cd   :  { %v5027_v5 = vpop.f32.mrf.mxu0  ;;  %6401 = vst.msk [vmem:[%s11919_s3 + $0xe0] sm:$0x1] %vm6396_vm5, %v8643_v19 }
 0x3ce   :  { %12955 = vst [vmem:[#allocation41_spill] sm:$0xff] %v11502_v55  ;;  %v8339_v61 = vpop.f32.mrf.mxu1  ;;  %v11504_v60 = vadd.f32 %v5286_v26, %v5027_v5 }
 0x3cf   :  { %v8278_v29 = vpop.f32.mrf.mxu0 }
 0x3d0   :  { %12956 = vst [vmem:[#allocation39_spill] sm:$0xff] %v11504_v60  ;;  %v5302_v2 = vpop.f32.mrf.mxu1  ;;  %v11506_v7 = vadd.f32 %v8336_v42, %v8278_v29 }
 0x3d1   :  { %v5030_v22 = vpop.f32.mrf.mxu0 }
 0x3d2   :  { %12957 = vst [vmem:[#allocation80_spill] sm:$0xff] %v11506_v7  ;;  %v8340_v6 = vpop.f32.mrf.mxu1  ;;  %v11508_v23 = vadd.f32 %v5289_v28, %v5030_v22 }
 0x3d3   :  { %v8281_v59 = vpop.f32.mrf.mxu0 }
 0x3d4   :  { %12958 = vst [vmem:[#allocation127_spill] sm:$0xff] %v11508_v23  ;;  %v5305_v26 = vpop.f32.mrf.mxu1  ;;  %v11521_v42 = vadd.f32 %v8339_v61, %v8281_v59 }
 0x3d5   :  { %v5043_v28 = vpop.f32.mrf.mxu0 }
 0x3d6   :  { %12959 = vst [vmem:[#allocation10_spill] sm:$0xff] %v11521_v42  ;;  %v8403_v6 = vpop.f32.mrf.mxu1  ;;  %v11523_v30 = vadd.f32 %v5302_v2, %v5043_v28  ;;  %v11532_v2 = vld [vmem:[%s11920_s2] ss:$0 sm:$0xff] }
 0x3d7   :  { %v8282_v44 = vpop.f32.mrf.mxu0 }
 0x3d8   :  { %12960 = vst [vmem:[#allocation42_spill] sm:$0xff] %v11523_v30  ;;  %v5671_v34 = vpop.f32.mrf.mxu1 }
 0x3d9   :  { %v5046_v5 = vpop.f32.mrf.mxu0 }
 0x3da   :  { %v8404_v29 = vpop.f32.mrf.mxu1  ;;  %v11525_v22 = vadd.f32 %v5305_v26, %v5046_v5 }
 0x3db   :  { %v8345_v23 = vpop.f32.mrf.mxu0 }
 0x3dc   :  { %12961 = vst [vmem:[#allocation81_spill] sm:$0xff] %v11525_v22  ;;  %v5674_v7 = vpop.f32.mrf.mxu1  ;;  %v5579_v60 = vadd.f32 %v8345_v23, %v11379_v49 }
 0x3dd   :  { %v5355_v55 = vpop.f32.mrf.mxu0 }
 0x3de   :  { %v8407_v19 = vpop.f32.mrf.mxu1  ;;  %v5895_v56 = vadd.f32 %v8403_v6, %v5579_v60  ;;  %v5577_v61 = vadd.f32 %v5355_v55, %v11390_v24 }
 0x3df   :  { %v8346_v59 = vpop.f32.mrf.mxu0 }
 0x3e0   :  { %v5687_v28 = vpop.f32.mrf.mxu1  ;;  %v5950_v44 = vmax.f32 %v10947_v25, %v5895_v56  ;;  %v5893_v26 = vadd.f32 %v5671_v34, %v5577_v61  ;;  %v5580_v5 = vadd.f32 %v8346_v59, %v11394_v63 }
 0x3e1   :  { %v5358_v22 = vpop.f32.mrf.mxu0 }
 0x3e2   :  { %v8408_v30 = vpop.f32.mrf.mxu1  ;;  %v6012_v49 = vadd.f32 %v11532_v2, %v5950_v44  ;;  %v5948_v60 = vmax.f32 %v10953_v21, %v5893_v26  ;;  %v5896_v23 = vadd.f32 %v8404_v29, %v5580_v5  ;;  %v5578_v24 = vadd.f32 %v5358_v22, %v11396_v51 }
 0x3e3   :  { %v8349_v55 = vpop.f32.mrf.mxu0 }
 0x3e4   :  { %v5690_v6 = vpop.f32.mrf.mxu1  ;;  %v6067_v42 = vmax.f32 %v6012_v49, 0.0  ;;  %v6010_v47 = vadd.f32 %v11532_v2, %v5948_v60  ;;  %v5951_v27 = vmax.f32 %v10961_v46, %v5896_v23  ;;  %v5894_v25 = vadd.f32 %v5674_v7, %v5578_v24 }
 0x3e5   :  { %v5583_v56 = vadd.f32 %v8349_v55, %v11400_v45  ;;  %v5371_v63 = vpop.f32.mrf.mxu0 }
 0x3e6   :  { %v8411_v34 = vpop.f32.mrf.mxu1  ;;  %v7012_v61 = vpack.c.bf16 %v6067_v42, %v6067_v42  ;;  %v6065_v59 = vmax.f32 %v6010_v47, 0.0  ;;  %v6013_v44 = vadd.f32 %v11532_v2, %v5951_v27  ;;  %v5949_v21 = vmax.f32 %v10973_v14, %v5894_v25 }
 0x3e7   :  { %v5899_v29 = vadd.f32 %v8407_v19, %v5583_v56  ;;  %v5581_v51 = vadd.f32 %v5371_v63, %v11406_v4  ;;  %v8350_v22 = vpop.f32.mrf.mxu0 }
 0x3e8   :  { %v5703_v26 = vpop.f32.mrf.mxu1  ;;  %6344 = vst.msk [vmem:[%s11919_s3 + $0x8] sm:$0xf] %vm6341_vm4, %v7012_v61  ;;  %v7010_v46 = vpack.c.bf16 %v6065_v59, %v6065_v59  ;;  %v6068_v45 = vmax.f32 %v6013_v44, 0.0  ;;  %v6011_v7 = vadd.f32 %v11532_v2, %v5949_v21  ;;  %v5584_v47 = vadd.f32 %v8350_v22, %v11410_v62 }
 0x3e9   :  { %v5954_v27 = vmax.f32 %v10983_v57, %v5899_v29  ;;  %v5897_v42 = vadd.f32 %v5687_v28, %v5581_v51  ;;  %v5374_v14 = vpop.f32.mrf.mxu0 }
 0x3ea   :  { %v8412_v19 = vpop.f32.mrf.mxu1  ;;  %6342 = vst.msk [vmem:[%s11919_s3] sm:$0xf] %vm6341_vm4, %v7010_v46  ;;  %v7013_v4 = vpack.c.bf16 %v6068_v45, %v6068_v45  ;;  %v6066_v5 = vmax.f32 %v6011_v7, 0.0  ;;  %v5900_v49 = vadd.f32 %v8408_v30, %v5584_v47  ;;  %v5582_v60 = vadd.f32 %v5374_v14, %v11412_v32 }
 0x3eb   :  { %v6016_v23 = vadd.f32 %v11532_v2, %v5954_v27  ;;  %v5952_v24 = vmax.f32 %v10989_v1, %v5897_v42  ;;  %v8353_v62 = vpop.f32.mrf.mxu0 }
 0x3ec   :  { %v5706_v55 = vpop.f32.mrf.mxu1  ;;  %6345 = vst.msk [vmem:[%s11919_s3 + $0xc] sm:$0xf] %vm6341_vm4, %v7013_v4  ;;  %v7011_v57 = vpack.c.bf16 %v6066_v5, %v6066_v5  ;;  %v5955_v28 = vmax.f32 %v10997_v53, %v5900_v49  ;;  %v5898_v25 = vadd.f32 %v5690_v6, %v5582_v60  ;;  %v5587_v56 = vadd.f32 %v8353_v62, %v11416_v9 }
 0x3ed   :  { %v6071_v30 = vmax.f32 %v6016_v23, 0.0  ;;  %v6014_v32 = vadd.f32 %v11532_v2, %v5952_v24  ;;  %v5387_v63 = vpop.f32.mrf.mxu0 }
 0x3ee   :  { %v8415_v61 = vpop.f32.mrf.mxu1  ;;  %6343 = vst.msk [vmem:[%s11919_s3 + $0x4] sm:$0xf] %vm6341_vm4, %v7011_v57  ;;  %v6017_v1 = vadd.f32 %v11532_v2, %v5955_v28  ;;  %v5953_v59 = vmax.f32 %v11009_v39, %v5898_v25  ;;  %v5903_v44 = vadd.f32 %v8411_v34, %v5587_v56  ;;  %v5585_v53 = vadd.f32 %v5387_v63, %v11422_v50 }
 0x3ef   :  { %v7016_v6 = vpack.c.bf16 %v6071_v30, %v6071_v30  ;;  %v6069_v21 = vmax.f32 %v6014_v32, 0.0  ;;  %v8354_v9 = vpop.f32.mrf.mxu0 }
 0x3f0   :  { %v5719_v29 = vpop.f32.mrf.mxu1  ;;  %v6072_v51 = vmax.f32 %v6017_v1, 0.0  ;;  %v6015_v22 = vadd.f32 %v11532_v2, %v5953_v59  ;;  %v5958_v46 = vmax.f32 %v11017_v8, %v5903_v44  ;;  %v5901_v45 = vadd.f32 %v5703_v26, %v5585_v53 }
 0x3f1   :  { %6348 = vst.msk [vmem:[%s11919_s3 + $0x18] sm:$0xf] %vm6341_vm4, %v7016_v6  ;;  %v7014_v7 = vpack.c.bf16 %v6069_v21, %v6069_v21  ;;  %v5588_v39 = vadd.f32 %v8354_v9, %v11424_v37  ;;  %v5390_v34 = vpop.f32.mrf.mxu0 }
 0x3f2   :  { %v8416_v50 = vpop.f32.mrf.mxu1  ;;  %v7017_v47 = vpack.c.bf16 %v6072_v51, %v6072_v51  ;;  %v6070_v27 = vmax.f32 %v6015_v22, 0.0  ;;  %v6020_v42 = vadd.f32 %v11532_v2, %v5958_v46  ;;  %v5956_v14 = vmax.f32 %v11023_v41, %v5901_v45 }
 0x3f3   :  { %6346 = vst.msk [vmem:[%s11919_s3 + $0x10] sm:$0xf] %vm6341_vm4, %v7014_v7  ;;  %v5904_v8 = vadd.f32 %v8412_v19, %v5588_v39  ;;  %v5586_v26 = vadd.f32 %v5390_v34, %v11426_v52  ;;  %v8357_v4 = vpop.f32.mrf.mxu0 }
 0x3f4   :  { %v5722_v5 = vpop.f32.mrf.mxu1  ;;  %6349 = vst.msk [vmem:[%s11919_s3 + $0x1c] sm:$0xf] %vm6341_vm4, %v7017_v47  ;;  %v7015_v37 = vpack.c.bf16 %v6070_v27, %v6070_v27  ;;  %v6075_v49 = vmax.f32 %v6020_v42, 0.0  ;;  %v6018_v60 = vadd.f32 %v11532_v2, %v5956_v14  ;;  %v5591_v41 = vadd.f32 %v8357_v4, %v11430_v11 }
 0x3f5   :  { %v5959_v23 = vmax.f32 %v11031_v36, %v5904_v8  ;;  %v5902_v24 = vadd.f32 %v5706_v55, %v5586_v26  ;;  %v5403_v62 = vpop.f32.mrf.mxu0 }
 0x3f6   :  { %v8419_v19 = vpop.f32.mrf.mxu1  ;;  %6347 = vst.msk [vmem:[%s11919_s3 + $0x14] sm:$0xf] %vm6341_vm4, %v7015_v37  ;;  %v7020_v52 = vpack.c.bf16 %v6075_v49, %v6075_v49  ;;  %v6073_v57 = vmax.f32 %v6018_v60, 0.0  ;;  %v5907_v28 = vadd.f32 %v8415_v61, %v5591_v41  ;;  %v5589_v25 = vadd.f32 %v5403_v62, %v11432_v43 }
 0x3f7   :  { %v6021_v56 = vadd.f32 %v11532_v2, %v5959_v23  ;;  %v5957_v30 = vmax.f32 %v11041_v54, %v5902_v24  ;;  %v8358_v11 = vpop.f32.mrf.mxu0 }
 0x3f8   :  { %v5735_v32 = vpop.f32.mrf.mxu1  ;;  %6352 = vst.msk [vmem:[%s11919_s3 + $0x28] sm:$0xf] %vm6341_vm4, %v7020_v52  ;;  %v7018_v36 = vpack.c.bf16 %v6073_v57, %v6073_v57  ;;  %v5962_v55 = vmax.f32 %v11049_v10, %v5907_v28  ;;  %v5905_v63 = vadd.f32 %v5719_v29, %v5589_v25  ;;  %v5592_v1 = vadd.f32 %v8358_v11, %v11434_v0 }
 0x3f9   :  { %v6076_v61 = vmax.f32 %v6021_v56, 0.0  ;;  %v6019_v43 = vadd.f32 %v11532_v2, %v5957_v30  ;;  %v5406_v59 = vpop.f32.mrf.mxu0 }
 0x3fa   :  { %v8420_v44 = vpop.f32.mrf.mxu1  ;;  %6350 = vst.msk [vmem:[%s11919_s3 + $0x20] sm:$0xf] %vm6341_vm4, %v7018_v36  ;;  %v6024_v54 = vadd.f32 %v11532_v2, %v5962_v55  ;;  %v5960_v53 = vmax.f32 %v11055_v15, %v5905_v63  ;;  %v5908_v6 = vadd.f32 %v8416_v50, %v5592_v1  ;;  %v5590_v10 = vadd.f32 %v5406_v59, %v11436_v38 }
 0x3fb   :  { %v7021_v21 = vpack.c.bf16 %v6076_v61, %v6076_v61  ;;  %v6074_v9 = vmax.f32 %v6019_v43, 0.0  ;;  %v8361_v0 = vpop.f32.mrf.mxu0 }
 0x3fc   :  { %v5738_v29 = vpop.f32.mrf.mxu1  ;;  %v6079_v51 = vmax.f32 %v6024_v54, 0.0  ;;  %v6022_v22 = vadd.f32 %v11532_v2, %v5960_v53  ;;  %v5963_v46 = vmax.f32 %v11063_v3, %v5908_v6  ;;  %v5906_v45 = vadd.f32 %v5722_v5, %v5590_v10 }
 0x3fd   :  { %6353 = vst.msk [vmem:[%s11919_s3 + $0x2c] sm:$0xf] %vm6341_vm4, %v7021_v21  ;;  %v7019_v7 = vpack.c.bf16 %v6074_v9, %v6074_v9  ;;  %v5595_v15 = vadd.f32 %v8361_v0, %v11438_v33  ;;  %v5419_v39 = vpop.f32.mrf.mxu0  ;;  %v12963_v0 = vld [vmem:[#allocation23_spill] sm:$0xff] }
 0x3fe   :  { %v8423_v38 = vpop.f32.mrf.mxu1  ;;  %v7024_v34 = vpack.c.bf16 %v6079_v51, %v6079_v51  ;;  %v6077_v50 = vmax.f32 %v6022_v22, 0.0  ;;  %v6025_v47 = vadd.f32 %v11532_v2, %v5963_v46  ;;  %v5961_v27 = vmax.f32 %v11073_v58, %v5906_v45  ;;  %v12964_v51 = vld [vmem:[#allocation120_spill] sm:$0xff] }
 0x3ff   :  { %6351 = vst.msk [vmem:[%s11919_s3 + $0x24] sm:$0xf] %vm6341_vm4, %v7019_v7  ;;  %v5911_v3 = vadd.f32 %v8419_v19, %v5595_v15  ;;  %v5593_v42 = vadd.f32 %v5419_v39, %v11440_v13  ;;  %v8362_v14 = vpop.f32.mrf.mxu0 }
 0x400   :  { %v5751_v8 = vpop.f32.mrf.mxu1  ;;  %6356 = vst.msk [vmem:[%s11919_s3 + $0x38] sm:$0xf] %vm6341_vm4, %v7024_v34  ;;  %v7022_v33 = vpack.c.bf16 %v6077_v50, %v6077_v50  ;;  %v6080_v26 = vmax.f32 %v6025_v47, 0.0  ;;  %v6023_v4 = vadd.f32 %v11532_v2, %v5961_v27  ;;  %v5596_v58 = vadd.f32 %v8362_v14, %v11442_v48  ;;  %v12966_v50 = vld [vmem:[#allocation24_spill] sm:$0xff] }
 0x401   :  { %v5966_v5 = vmax.f32 %v11081_v40, %v5911_v3  ;;  %v5909_v37 = vadd.f32 %v5735_v32, %v5593_v42  ;;  %v5422_v49 = vpop.f32.mrf.mxu0 }
 0x402   :  { %v8424_v60 = vpop.f32.mrf.mxu1  ;;  %6354 = vst.msk [vmem:[%s11919_s3 + $0x30] sm:$0xf] %vm6341_vm4, %v7022_v33  ;;  %v7025_v13 = vpack.c.bf16 %v6080_v26, %v6080_v26  ;;  %v6078_v41 = vmax.f32 %v6023_v4, 0.0  ;;  %v5912_v23 = vadd.f32 %v8420_v44, %v5596_v58  ;;  %v5594_v24 = vadd.f32 %v5422_v49, %v11444_v35  ;;  %v12967_v26 = vld [vmem:[#allocation103_spill] sm:$0xff] }
 0x403   :  { %v6028_v62 = vadd.f32 %v11532_v2, %v5966_v5  ;;  %v5964_v19 = vmax.f32 %v11087_v17, %v5909_v37  ;;  %v8365_v48 = vpop.f32.mrf.mxu0  ;;  %v12968_v5 = vld [vmem:[#allocation25_spill] sm:$0xff] }
 0x404   :  { %v5754_v52 = vpop.f32.mrf.mxu1  ;;  %6357 = vst.msk [vmem:[%s11919_s3 + $0x3c] sm:$0xf] %vm6341_vm4, %v7025_v13  ;;  %v7023_v40 = vpack.c.bf16 %v6078_v41, %v6078_v41  ;;  %v5967_v57 = vmax.f32 %v11095_v31, %v5912_v23  ;;  %v5910_v28 = vadd.f32 %v5738_v29, %v5594_v24  ;;  %v5599_v25 = vadd.f32 %v8365_v48, %v11446_v12  ;;  %v12969_v41 = vld [vmem:[#allocation155_spill] sm:$0xff] }
 0x405   :  { %v6083_v56 = vmax.f32 %v6028_v62, 0.0  ;;  %v6026_v35 = vadd.f32 %v11532_v2, %v5964_v19  ;;  %v5435_v30 = vpop.f32.mrf.mxu0  ;;  %v12970_v62 = vld [vmem:[#allocation121_spill] sm:$0xff] }
 0x406   :  { %v8427_v11 = vpop.f32.mrf.mxu1  ;;  %6355 = vst.msk [vmem:[%s11919_s3 + $0x34] sm:$0xf] %vm6341_vm4, %v7023_v40  ;;  %v6029_v17 = vadd.f32 %v11532_v2, %v5967_v57  ;;  %v5965_v32 = vmax.f32 %v11105_v18, %v5910_v28  ;;  %v5915_v36 = vadd.f32 %v8423_v38, %v5599_v25  ;;  %v5597_v31 = vadd.f32 %v5435_v30, %v11448_v16  ;;  %v12962_v18 = vld [vmem:[#allocation102_spill] sm:$0xff]  ;;  %v12972_v30 = vld [vmem:[#allocation167_spill] sm:$0xff] }
 0x407   :  { %v7028_v55 = vpack.c.bf16 %v6083_v56, %v6083_v56  ;;  %v6081_v63 = vmax.f32 %v6026_v35, 0.0  ;;  %v8366_v12 = vpop.f32.mrf.mxu0  ;;  %v12965_v38 = vld [vmem:[#allocation166_spill] sm:$0xff] }
 0x408   :  { %v5767_v1 = vpop.f32.mrf.mxu1  ;;  %v6084_v61 = vmax.f32 %v6029_v17, 0.0  ;;  %v6027_v43 = vadd.f32 %v11532_v2, %v5965_v32  ;;  %v5970_v59 = vmax.f32 %v11113_v20, %v5915_v36  ;;  %v5913_v44 = vadd.f32 %v5751_v8, %v5597_v31  ;;  %v12971_v25 = vld [vmem:[#allocation2_spill] sm:$0xff] }
 0x409   :  { %6360 = vst.msk [vmem:[%s11919_s3 + $0x48] sm:$0xf] %vm6341_vm4, %v7028_v55  ;;  %v7026_v54 = vpack.c.bf16 %v6081_v63, %v6081_v63  ;;  %v5600_v53 = vadd.f32 %v8366_v12, %v12962_v18  ;;  %v5438_v6 = vpop.f32.mrf.mxu0  ;;  %v12973_v12 = vld [vmem:[#allocation26_spill] sm:$0xff] }
 0x40a   :  { %v8428_v16 = vpop.f32.mrf.mxu1  ;;  %v7029_v10 = vpack.c.bf16 %v6084_v61, %v6084_v61  ;;  %v6082_v21 = vmax.f32 %v6027_v43, 0.0  ;;  %v6032_v9 = vadd.f32 %v11532_v2, %v5970_v59  ;;  %v5968_v29 = vmax.f32 %v12963_v0, %v5913_v44  ;;  %v12974_v59 = vld [vmem:[#allocation36_spill] sm:$0xff] }
 0x40b   :  { %6358 = vst.msk [vmem:[%s11919_s3 + $0x40] sm:$0xf] %vm6341_vm4, %v7026_v54  ;;  %v5916_v20 = vadd.f32 %v8424_v60, %v5600_v53  ;;  %v5598_v22 = vadd.f32 %v5438_v6, %v12964_v51  ;;  %v8369_v46 = vpop.f32.mrf.mxu0  ;;  %v12976_v0 = vld [vmem:[#allocation104_spill] sm:$0xff] }
 0x40c   :  { %v5770_v45 = vpop.f32.mrf.mxu1  ;;  %6361 = vst.msk [vmem:[%s11919_s3 + $0x4c] sm:$0xf] %vm6341_vm4, %v7029_v10  ;;  %v7027_v7 = vpack.c.bf16 %v6082_v21, %v6082_v21  ;;  %v6087_v15 = vmax.f32 %v6032_v9, 0.0  ;;  %v6030_v39 = vadd.f32 %v11532_v2, %v5968_v29  ;;  %v5603_v34 = vadd.f32 %v8369_v46, %v12965_v38  ;;  %v12975_v10 = vld [vmem:[#allocation156_spill] sm:$0xff] }
 0x40d   :  { %v5971_v47 = vmax.f32 %v12966_v50, %v5916_v20  ;;  %v5914_v27 = vadd.f32 %v5754_v52, %v5598_v22  ;;  %v5451_v3 = vpop.f32.mrf.mxu0 }
 0x40e   :  { %v8431_v42 = vpop.f32.mrf.mxu1  ;;  %6359 = vst.msk [vmem:[%s11919_s3 + $0x44] sm:$0xf] %vm6341_vm4, %v7027_v7  ;;  %v7032_v14 = vpack.c.bf16 %v6087_v15, %v6087_v15  ;;  %v6085_v8 = vmax.f32 %v6030_v39, 0.0  ;;  %v5919_v33 = vadd.f32 %v8427_v11, %v5603_v34  ;;  %v5601_v4 = vadd.f32 %v5451_v3, %v12967_v26  ;;  %v12977_v7 = vld [vmem:[#allocation122_spill] sm:$0xff]  ;;  %v12978_v39 = vld [vmem:[#allocation163_spill] sm:$0xff]  ;;  %v12980_v26 = vld [vmem:[#allocation28_spill] sm:$0xff] }
 0x40f   :  { %v6033_v58 = vadd.f32 %v11532_v2, %v5971_v47  ;;  %v5969_v37 = vmax.f32 %v12968_v5, %v5914_v27  ;;  %v8370_v49 = vpop.f32.mrf.mxu0 }
 0x410   :  { %v5783_v60 = vpop.f32.mrf.mxu1  ;;  %6364 = vst.msk [vmem:[%s11919_s3 + $0x58] sm:$0xf] %vm6341_vm4, %v7032_v14  ;;  %v7030_v13 = vpack.c.bf16 %v6085_v8, %v6085_v8  ;;  %v5974_v23 = vmax.f32 %v12969_v41, %v5919_v33  ;;  %v5917_v24 = vadd.f32 %v5767_v1, %v5601_v4  ;;  %v5604_v19 = vadd.f32 %v8370_v49, %v12970_v62  ;;  %v12979_v14 = vld [vmem:[#allocation7_spill] sm:$0xff]  ;;  %v12981_v49 = vld [vmem:[#allocation96_spill] sm:$0xff]  ;;  %v12982_v41 = vld [vmem:[#allocation37_spill] sm:$0xff] }
 0x411   :  { %v6088_v48 = vmax.f32 %v6033_v58, 0.0  ;;  %v6031_v52 = vadd.f32 %v11532_v2, %v5969_v37  ;;  %v5454_v40 = vpop.f32.mrf.mxu0 }
 0x412   :  { %v8432_v57 = vpop.f32.mrf.mxu1  ;;  %6362 = vst.msk [vmem:[%s11919_s3 + $0x50] sm:$0xf] %vm6341_vm4, %v7030_v13  ;;  %v6036_v28 = vadd.f32 %v11532_v2, %v5974_v23  ;;  %v5972_v56 = vmax.f32 %v12971_v25, %v5917_v24  ;;  %v5920_v35 = vadd.f32 %v8428_v16, %v5604_v19  ;;  %v5602_v11 = vadd.f32 %v5454_v40, %v12972_v30  ;;  %v12983_v40 = vld [vmem:[#allocation157_spill] sm:$0xff]  ;;  %v12984_v25 = vld [vmem:[#allocation35_spill] sm:$0xff] }
 0x413   :  { %v7033_v17 = vpack.c.bf16 %v6088_v48, %v6088_v48  ;;  %v6086_v32 = vmax.f32 %v6031_v52, 0.0  ;;  %v8373_v36 = vpop.f32.mrf.mxu0 }
 0x414   :  { %v5786_v31 = vpop.f32.mrf.mxu1  ;;  %v6091_v55 = vmax.f32 %v6036_v28, 0.0  ;;  %v6034_v63 = vadd.f32 %v11532_v2, %v5972_v56  ;;  %v5975_v1 = vmax.f32 %v12973_v12, %v5920_v35  ;;  %v5918_v61 = vadd.f32 %v5770_v45, %v5602_v11 }
 0x415   :  { %6365 = vst.msk [vmem:[%s11919_s3 + $0x5c] sm:$0xf] %vm6341_vm4, %v7033_v17  ;;  %v7031_v43 = vpack.c.bf16 %v6086_v32, %v6086_v32  ;;  %v5607_v44 = vadd.f32 %v8373_v36, %v12974_v59  ;;  %v5467_v54 = vpop.f32.mrf.mxu0 }
 0x416   :  { %v8435_v18 = vpop.f32.mrf.mxu1  ;;  %v7036_v53 = vpack.c.bf16 %v6091_v55, %v6091_v55  ;;  %v6089_v6 = vmax.f32 %v6034_v63, 0.0  ;;  %v6037_v16 = vadd.f32 %v11532_v2, %v5975_v1  ;;  %v5973_v21 = vmax.f32 %v12975_v10, %v5918_v61  ;;  %v12986_v1 = vld [vmem:[#allocation105_spill] sm:$0xff]  ;;  %v12988_v10 = vld [vmem:[#allocation123_spill] sm:$0xff] }
 0x417   :  { %6363 = vst.msk [vmem:[%s11919_s3 + $0x54] sm:$0xf] %vm6341_vm4, %v7031_v43  ;;  %v5923_v9 = vadd.f32 %v8431_v42, %v5607_v44  ;;  %v5605_v29 = vadd.f32 %v5467_v54, %v12976_v0  ;;  %v8374_v20 = vpop.f32.mrf.mxu0 }
 0x418   :  { %v5799_v51 = vpop.f32.mrf.mxu1  ;;  %6368 = vst.msk [vmem:[%s11919_s3 + $0x68] sm:$0xf] %vm6341_vm4, %v7036_v53  ;;  %v7034_v22 = vpack.c.bf16 %v6089_v6, %v6089_v6  ;;  %v6092_v46 = vmax.f32 %v6037_v16, 0.0  ;;  %v6035_v45 = vadd.f32 %v11532_v2, %v5973_v21  ;;  %v5608_v15 = vadd.f32 %v8374_v20, %v12977_v7  ;;  %v12987_v53 = vld [vmem:[#allocation29_spill] sm:$0xff] }
 0x419   :  { %v5978_v38 = vmax.f32 %v12978_v39, %v5923_v9  ;;  %v5921_v34 = vadd.f32 %v5783_v60, %v5605_v29  ;;  %v5470_v50 = vpop.f32.mrf.mxu0 }
 0x41a   :  { %v8436_v47 = vpop.f32.mrf.mxu1  ;;  %6366 = vst.msk [vmem:[%s11919_s3 + $0x60] sm:$0xf] %vm6341_vm4, %v7034_v22  ;;  %v7037_v27 = vpack.c.bf16 %v6092_v46, %v6092_v46  ;;  %v6090_v3 = vmax.f32 %v6035_v45, 0.0  ;;  %v5924_v42 = vadd.f32 %v8432_v57, %v5608_v15  ;;  %v5606_v8 = vadd.f32 %v5470_v50, %v12979_v14  ;;  %v12989_v22 = vld [vmem:[#allocation8_spill] sm:$0xff]  ;;  %v12990_v45 = vld [vmem:[#allocation27_spill] sm:$0xff]  ;;  %v12992_v14 = vld [vmem:[#allocation97_spill] sm:$0xff] }
 0x41b   :  { %v6040_v33 = vadd.f32 %v11532_v2, %v5978_v38  ;;  %v5976_v4 = vmax.f32 %v12980_v26, %v5921_v34  ;;  %v8377_v58 = vpop.f32.mrf.mxu0 }
 0x41c   :  { %v5802_v5 = vpop.f32.mrf.mxu1  ;;  %6369 = vst.msk [vmem:[%s11919_s3 + $0x6c] sm:$0xf] %vm6341_vm4, %v7037_v27  ;;  %v7035_v37 = vpack.c.bf16 %v6090_v3, %v6090_v3  ;;  %v5979_v60 = vmax.f32 %v12981_v49, %v5924_v42  ;;  %v5922_v13 = vadd.f32 %v5786_v31, %v5606_v8  ;;  %v5611_v23 = vadd.f32 %v8377_v58, %v12982_v41  ;;  %v12985_v31 = vld [vmem:[#allocation3_spill] sm:$0xff]  ;;  %v12991_v27 = vld [vmem:[#allocation38_spill] sm:$0xff] }
 0x41d   :  { %v6095_v24 = vmax.f32 %v6040_v33, 0.0  ;;  %v6038_v62 = vadd.f32 %v11532_v2, %v5976_v4  ;;  %v5483_v19 = vpop.f32.mrf.mxu0  ;;  %v12993_v58 = vld [vmem:[#allocation158_spill] sm:$0xff]  ;;  %v12994_v49 = vld [vmem:[#allocation79_spill] sm:$0xff] }
 0x41e   :  { %v8439_v48 = vpop.f32.mrf.mxu1  ;;  %6367 = vst.msk [vmem:[%s11919_s3 + $0x64] sm:$0xf] %vm6341_vm4, %v7035_v37  ;;  %v6041_v52 = vadd.f32 %v11532_v2, %v5979_v60  ;;  %v5977_v57 = vmax.f32 %v12983_v40, %v5922_v13  ;;  %v5927_v28 = vadd.f32 %v8435_v18, %v5611_v23  ;;  %v5609_v56 = vadd.f32 %v5483_v19, %v12984_v25  ;;  %v12995_v19 = vld [vmem:[#allocation4_spill] sm:$0xff] }
 0x41f   :  { %v7040_v35 = vpack.c.bf16 %v6095_v24, %v6095_v24  ;;  %v6093_v30 = vmax.f32 %v6038_v62, 0.0  ;;  %v8378_v11 = vpop.f32.mrf.mxu0  ;;  %v12996_v40 = vld [vmem:[#allocation124_spill] sm:$0xff] }
 0x420   :  { %v5815_v17 = vpop.f32.mrf.mxu1  ;;  %v6096_v32 = vmax.f32 %v6041_v52, 0.0  ;;  %v6039_v36 = vadd.f32 %v11532_v2, %v5977_v57  ;;  %v5982_v55 = vmax.f32 %v12985_v31, %v5927_v28  ;;  %v5925_v63 = vadd.f32 %v5799_v51, %v5609_v56 }
 0x421   :  { %6372 = vst.msk [vmem:[%s11919_s3 + $0x78] sm:$0xf] %vm6341_vm4, %v7040_v35  ;;  %v7038_v12 = vpack.c.bf16 %v6093_v30, %v6093_v30  ;;  %v5612_v61 = vadd.f32 %v8378_v11, %v12986_v1  ;;  %v5486_v43 = vpop.f32.mrf.mxu0 }
 0x422   :  { %v8440_v59 = vpop.f32.mrf.mxu1  ;;  %v7041_v44 = vpack.c.bf16 %v6096_v32, %v6096_v32  ;;  %v6094_v54 = vmax.f32 %v6039_v36, 0.0  ;;  %v6044_v18 = vadd.f32 %v11532_v2, %v5982_v55  ;;  %v5980_v6 = vmax.f32 %v12987_v53, %v5925_v63  ;;  %v12998_v55 = vld [vmem:[#allocation168_spill] sm:$0xff]  ;;  %v13000_v53 = vld [vmem:[#allocation106_spill] sm:$0xff] }
 0x423   :  { %6370 = vst.msk [vmem:[%s11919_s3 + $0x70] sm:$0xf] %vm6341_vm4, %v7038_v12  ;;  %v5928_v16 = vadd.f32 %v8436_v47, %v5612_v61  ;;  %v5610_v21 = vadd.f32 %v5486_v43, %v12988_v10  ;;  %v8381_v9 = vpop.f32.mrf.mxu0 }
 0x424   :  { %v5818_v0 = vpop.f32.mrf.mxu1  ;;  %6373 = vst.msk [vmem:[%s11919_s3 + $0x7c] sm:$0xf] %vm6341_vm4, %v7041_v44  ;;  %v7039_v29 = vpack.c.bf16 %v6094_v54, %v6094_v54  ;;  %v6099_v20 = vmax.f32 %v6044_v18, 0.0  ;;  %v6042_v51 = vadd.f32 %v11532_v2, %v5980_v6  ;;  %v5615_v46 = vadd.f32 %v8381_v9, %v12989_v22  ;;  %v12999_v44 = vld [vmem:[#allocation98_spill] sm:$0xff] }
 0x425   :  { %v5983_v7 = vmax.f32 %v12990_v45, %v5928_v16  ;;  %v5926_v15 = vadd.f32 %v5802_v5, %v5610_v21  ;;  %v5499_v39 = vpop.f32.mrf.mxu0 }
 0x426   :  { %v8443_v38 = vpop.f32.mrf.mxu1  ;;  %6371 = vst.msk [vmem:[%s11919_s3 + $0x74] sm:$0xf] %vm6341_vm4, %v7039_v29  ;;  %v7044_v34 = vpack.c.bf16 %v6099_v20, %v6099_v20  ;;  %v6097_v50 = vmax.f32 %v6042_v51, 0.0  ;;  %v5931_v47 = vadd.f32 %v8439_v48, %v5615_v46  ;;  %v5613_v3 = vadd.f32 %v5499_v39, %v12991_v27  ;;  %v13001_v29 = vld [vmem:[#allocation125_spill] sm:$0xff]  ;;  %v13002_v51 = vld [vmem:[#allocation159_spill] sm:$0xff]  ;;  %v13004_v27 = vld [vmem:[#allocation164_spill] sm:$0xff] }
 0x427   :  { %v6045_v42 = vadd.f32 %v11532_v2, %v5983_v7  ;;  %v5981_v8 = vmax.f32 %v12992_v14, %v5926_v15  ;;  %v8382_v33 = vpop.f32.mrf.mxu0 }
 0x428   :  { %v5831_v26 = vpop.f32.mrf.mxu1  ;;  %6376 = vst.msk [vmem:[%s11919_s3 + $0x88] sm:$0xf] %vm6341_vm4, %v7044_v34  ;;  %v7042_v4 = vpack.c.bf16 %v6097_v50, %v6097_v50  ;;  %v5986_v5 = vmax.f32 %v12993_v58, %v5931_v47  ;;  %v5929_v37 = vadd.f32 %v5815_v17, %v5613_v3  ;;  %v5616_v60 = vadd.f32 %v8382_v33, %v12994_v49  ;;  %v12997_v17 = vld [vmem:[#allocation30_spill] sm:$0xff]  ;;  %v13003_v34 = vld [vmem:[#allocation169_spill] sm:$0xff]  ;;  %v13005_v33 = vld [vmem:[#allocation99_spill] sm:$0xff] }
 0x429   :  { %v6100_v13 = vmax.f32 %v6045_v42, 0.0  ;;  %v6043_v41 = vadd.f32 %v11532_v2, %v5981_v8  ;;  %v5502_v23 = vpop.f32.mrf.mxu0  ;;  %v13006_v58 = vld [vmem:[#allocation40_spill] sm:$0xff] }
 0x42a   :  { %v8444_v24 = vpop.f32.mrf.mxu1  ;;  %6374 = vst.msk [vmem:[%s11919_s3 + $0x80] sm:$0xf] %vm6341_vm4, %v7042_v4  ;;  %v6048_v62 = vadd.f32 %v11532_v2, %v5986_v5  ;;  %v5984_v48 = vmax.f32 %v12995_v19, %v5929_v37  ;;  %v5932_v52 = vadd.f32 %v8440_v59, %v5616_v60  ;;  %v5614_v57 = vadd.f32 %v5502_v23, %v12996_v40  ;;  %v13007_v23 = vld [vmem:[#allocation160_spill] sm:$0xff]  ;;  %v13008_v19 = vld [vmem:[#allocation107_spill] sm:$0xff] }
 0x42b   :  { %v7045_v28 = vpack.c.bf16 %v6100_v13, %v6100_v13  ;;  %v6098_v25 = vmax.f32 %v6043_v41, 0.0  ;;  %v8385_v56 = vpop.f32.mrf.mxu0 }
 0x42c   :  { %v5834_v35 = vpop.f32.mrf.mxu1  ;;  %v6103_v30 = vmax.f32 %v6048_v62, 0.0  ;;  %v6046_v11 = vadd.f32 %v11532_v2, %v5984_v48  ;;  %v5987_v32 = vmax.f32 %v12997_v17, %v5932_v52  ;;  %v5930_v36 = vadd.f32 %v5818_v0, %v5614_v57 }
 0x42d   :  { %6377 = vst.msk [vmem:[%s11919_s3 + $0x8c] sm:$0xf] %vm6341_vm4, %v7045_v28  ;;  %v7043_v31 = vpack.c.bf16 %v6098_v25, %v6098_v25  ;;  %v5619_v63 = vadd.f32 %v8385_v56, %v12998_v55  ;;  %v5515_v12 = vpop.f32.mrf.mxu0 }
 0x42e   :  { %v8447_v1 = vpop.f32.mrf.mxu1  ;;  %v7048_v61 = vpack.c.bf16 %v6103_v30, %v6103_v30  ;;  %v6101_v43 = vmax.f32 %v6046_v11, 0.0  ;;  %v6049_v59 = vadd.f32 %v11532_v2, %v5987_v32  ;;  %v5985_v54 = vmax.f32 %v12999_v44, %v5930_v36  ;;  %v13010_v32 = vld [vmem:[#allocation126_spill] sm:$0xff]  ;;  %v13012_v44 = vld [vmem:[#allocation9_spill] sm:$0xff] }
 0x42f   :  { %6375 = vst.msk [vmem:[%s11919_s3 + $0x84] sm:$0xf] %vm6341_vm4, %v7043_v31  ;;  %v5935_v18 = vadd.f32 %v8443_v38, %v5619_v63  ;;  %v5617_v6 = vadd.f32 %v5515_v12, %v13000_v53  ;;  %v8386_v16 = vpop.f32.mrf.mxu0 }
 0x430   :  { %v5847_v10 = vpop.f32.mrf.mxu1  ;;  %6380 = vst.msk [vmem:[%s11919_s3 + $0x98] sm:$0xf] %vm6341_vm4, %v7048_v61  ;;  %v7046_v21 = vpack.c.bf16 %v6101_v43, %v6101_v43  ;;  %v6104_v9 = vmax.f32 %v6049_v59, 0.0  ;;  %v6047_v0 = vadd.f32 %v11532_v2, %v5985_v54  ;;  %v5620_v20 = vadd.f32 %v8386_v16, %v13001_v29  ;;  %v13011_v61 = vld [vmem:[#allocation32_spill] sm:$0xff] }
 0x431   :  { %v5990_v22 = vmax.f32 %v13002_v51, %v5935_v18  ;;  %v5933_v46 = vadd.f32 %v5831_v26, %v5617_v6  ;;  %v5518_v45 = vpop.f32.mrf.mxu0 }
 0x432   :  { %v8448_v7 = vpop.f32.mrf.mxu1  ;;  %6378 = vst.msk [vmem:[%s11919_s3 + $0x90] sm:$0xf] %vm6341_vm4, %v7046_v21  ;;  %v7049_v15 = vpack.c.bf16 %v6104_v9, %v6104_v9  ;;  %v6102_v39 = vmax.f32 %v6047_v0, 0.0  ;;  %v5936_v38 = vadd.f32 %v8444_v24, %v5620_v20  ;;  %v5618_v50 = vadd.f32 %v5518_v45, %v13003_v34  ;;  %v13013_v21 = vld [vmem:[#allocation41_spill] sm:$0xff]  ;;  %v13014_v0 = vld [vmem:[#allocation100_spill] sm:$0xff] }
 0x433   :  { %v6052_v47 = vadd.f32 %v11532_v2, %v5990_v22  ;;  %v5988_v3 = vmax.f32 %v13004_v27, %v5933_v46  ;;  %v8389_v42 = vpop.f32.mrf.mxu0  ;;  %v13016_v34 = vld [vmem:[#allocation161_spill] sm:$0xff] }
 0x434   :  { %v5850_v14 = vpop.f32.mrf.mxu1  ;;  %6381 = vst.msk [vmem:[%s11919_s3 + $0x9c] sm:$0xf] %vm6341_vm4, %v7049_v15  ;;  %v7047_v8 = vpack.c.bf16 %v6102_v39, %v6102_v39  ;;  %v5991_v26 = vmax.f32 %v13005_v33, %v5936_v38  ;;  %v5934_v4 = vadd.f32 %v5834_v35, %v5618_v50  ;;  %v5623_v5 = vadd.f32 %v8389_v42, %v13006_v58  ;;  %v13009_v35 = vld [vmem:[#allocation165_spill] sm:$0xff]  ;;  %v13015_v15 = vld [vmem:[#allocation39_spill] sm:$0xff]  ;;  %v13018_v33 = vld [vmem:[#allocation80_spill] sm:$0xff] }
 0x435   :  { %v6107_v37 = vmax.f32 %v6052_v47, 0.0  ;;  %v6050_v49 = vadd.f32 %v11532_v2, %v5988_v3  ;;  %v5531_v60 = vpop.f32.mrf.mxu0  ;;  %v13017_v42 = vld [vmem:[#allocation5_spill] sm:$0xff] }
 0x436   :  { %v8451_v13 = vpop.f32.mrf.mxu1  ;;  %6379 = vst.msk [vmem:[%s11919_s3 + $0x94] sm:$0xf] %vm6341_vm4, %v7047_v8  ;;  %v6053_v41 = vadd.f32 %v11532_v2, %v5991_v26  ;;  %v5989_v24 = vmax.f32 %v13007_v23, %v5934_v4  ;;  %v5939_v62 = vadd.f32 %v8447_v1, %v5623_v5  ;;  %v5621_v48 = vadd.f32 %v5531_v60, %v13008_v19  ;;  %v13019_v60 = vld [vmem:[#allocation33_spill] sm:$0xff]  ;;  %v13020_v23 = vld [vmem:[#allocation127_spill] sm:$0xff] }
 0x437   :  { %v7052_v52 = vpack.c.bf16 %v6107_v37, %v6107_v37  ;;  %v6105_v40 = vmax.f32 %v6050_v49, 0.0  ;;  %v8390_v57 = vpop.f32.mrf.mxu0 }
 0x438   :  { %v5863_v28 = vpop.f32.mrf.mxu1  ;;  %v6108_v25 = vmax.f32 %v6053_v41, 0.0  ;;  %v6051_v56 = vadd.f32 %v11532_v2, %v5989_v24  ;;  %v5994_v30 = vmax.f32 %v13009_v35, %v5939_v62  ;;  %v5937_v11 = vadd.f32 %v5847_v10, %v5621_v48  ;;  %v13022_v35 = vld [vmem:[#allocation10_spill] sm:$0xff] }
 0x439   :  { %6384 = vst.msk [vmem:[%s11919_s3 + $0xa8] sm:$0xf] %vm6341_vm4, %v7052_v52  ;;  %v7050_v17 = vpack.c.bf16 %v6105_v40, %v6105_v40  ;;  %v5624_v36 = vadd.f32 %v8390_v57, %v13010_v32  ;;  %v5534_v31 = vpop.f32.mrf.mxu0  ;;  %v13021_v57 = vld [vmem:[#allocation31_spill] sm:$0xff] }
 0x43a   :  { %v8452_v55 = vpop.f32.mrf.mxu1  ;;  %v7053_v63 = vpack.c.bf16 %v6108_v25, %v6108_v25  ;;  %v6106_v12 = vmax.f32 %v6051_v56, 0.0  ;;  %v6056_v1 = vadd.f32 %v11532_v2, %v5994_v30  ;;  %v5992_v43 = vmax.f32 %v13011_v61, %v5937_v11 }
 0x43b   :  { %6382 = vst.msk [vmem:[%s11919_s3 + $0xa0] sm:$0xf] %vm6341_vm4, %v7050_v17  ;;  %v5940_v59 = vadd.f32 %v8448_v7, %v5624_v36  ;;  %v5622_v54 = vadd.f32 %v5534_v31, %v13012_v44  ;;  %v8393_v18 = vpop.f32.mrf.mxu0  ;;  %v13023_v31 = vld [vmem:[#allocation101_spill] sm:$0xff] }
 0x43c   :  { %v5866_v53 = vpop.f32.mrf.mxu1  ;;  %6385 = vst.msk [vmem:[%s11919_s3 + $0xac] sm:$0xf] %vm6341_vm4, %v7053_v63  ;;  %v7051_v6 = vpack.c.bf16 %v6106_v12, %v6106_v12  ;;  %v6111_v16 = vmax.f32 %v6056_v1, 0.0  ;;  %v6054_v10 = vadd.f32 %v11532_v2, %v5992_v43  ;;  %v5627_v9 = vadd.f32 %v8393_v18, %v13013_v21  ;;  %v13024_v12 = vld [vmem:[#allocation42_spill] sm:$0xff]  ;;  %v13026_v21 = vld [vmem:[#allocation81_spill] sm:$0xff] }
 0x43d   :  { %v5995_v29 = vmax.f32 %v13014_v0, %v5940_v59  ;;  %v5938_v20 = vadd.f32 %v5850_v14, %v5622_v54  ;;  %v5547_v51 = vpop.f32.mrf.mxu0  ;;  %v13025_v54 = vld [vmem:[#allocation162_spill] sm:$0xff] }
 0x43e   :  { %v8455_v22 = vpop.f32.mrf.mxu1  ;;  %6383 = vst.msk [vmem:[%s11919_s3 + $0xa4] sm:$0xf] %vm6341_vm4, %v7051_v6  ;;  %v7056_v46 = vpack.c.bf16 %v6111_v16, %v6111_v16  ;;  %v6109_v45 = vmax.f32 %v6054_v10, 0.0  ;;  %v5943_v7 = vadd.f32 %v8451_v13, %v5627_v9  ;;  %v5625_v39 = vadd.f32 %v5547_v51, %v13015_v15  ;;  %v13028_v15 = vld [vmem:[#allocation34_spill] sm:$0xff] }
 0x43f   :  { %v6057_v38 = vadd.f32 %v11532_v2, %v5995_v29  ;;  %v5993_v50 = vmax.f32 %v13016_v34, %v5938_v20  ;;  %v8394_v47 = vpop.f32.mrf.mxu0  ;;  %v13027_v29 = vld [vmem:[#allocation6_spill] sm:$0xff] }
 0x440   :  { %v5879_v27 = vpop.f32.mrf.mxu1  ;;  %6388 = vst.msk [vmem:[%s11919_s3 + $0xb8] sm:$0xf] %vm6341_vm4, %v7056_v46  ;;  %v7054_v3 = vpack.c.bf16 %v6109_v45, %v6109_v45  ;;  %v5998_v14 = vmax.f32 %v13017_v42, %v5943_v7  ;;  %v5941_v8 = vadd.f32 %v5863_v28, %v5625_v39  ;;  %v5628_v26 = vadd.f32 %v8394_v47, %v13018_v33 }
 0x441   :  { %v6112_v4 = vmax.f32 %v6057_v38, 0.0  ;;  %v6055_v58 = vadd.f32 %v11532_v2, %v5993_v50  ;;  %v5550_v5 = vpop.f32.mrf.mxu0 }
 0x442   :  { %v8456_v37 = vpop.f32.mrf.mxu1  ;;  %6386 = vst.msk [vmem:[%s11919_s3 + $0xb0] sm:$0xf] %vm6341_vm4, %v7054_v3  ;;  %v6060_v49 = vadd.f32 %v11532_v2, %v5998_v14  ;;  %v5996_v13 = vmax.f32 %v13019_v60, %v5941_v8  ;;  %v5944_v41 = vadd.f32 %v8452_v55, %v5628_v26  ;;  %v5626_v24 = vadd.f32 %v5550_v5, %v13020_v23 }
 0x443   :  { %v7057_v62 = vpack.c.bf16 %v6112_v4, %v6112_v4  ;;  %v6110_v19 = vmax.f32 %v6055_v58, 0.0  ;;  %v8397_v48 = vpop.f32.mrf.mxu0 }
 0x444   :  { %v6115_v52 = vmax.f32 %v6060_v49, 0.0  ;;  %v6058_v40 = vadd.f32 %v11532_v2, %v5996_v13  ;;  %v5999_v28 = vmax.f32 %v13021_v57, %v5944_v41  ;;  %v5942_v25 = vadd.f32 %v5866_v53, %v5626_v24  ;;  %v5882_v51 = vpop.f32.mrf.mxu1 }
 0x445   :  { %6389 = vst.msk [vmem:[%s11919_s3 + $0xbc] sm:$0xf] %vm6341_vm4, %v7057_v62  ;;  %v7055_v56 = vpack.c.bf16 %v6110_v19, %v6110_v19  ;;  %v5631_v30 = vadd.f32 %v8397_v48, %v13022_v35  ;;  %v5563_v11 = vpop.f32.mrf.mxu0 }
 0x446   :  { %v7060_v17 = vpack.c.bf16 %v6115_v52, %v6115_v52  ;;  %v6113_v32 = vmax.f32 %v6058_v40, 0.0  ;;  %v6061_v36 = vadd.f32 %v11532_v2, %v5999_v28  ;;  %v5997_v55 = vmax.f32 %v13023_v31, %v5942_v25 }
 0x447   :  { %6387 = vst.msk [vmem:[%s11919_s3 + $0xb4] sm:$0xf] %vm6341_vm4, %v7055_v56  ;;  %v5947_v63 = vadd.f32 %v8455_v22, %v5631_v30  ;;  %v5629_v1 = vadd.f32 %v5563_v11, %v13024_v12  ;;  %v8398_v61 = vpop.f32.mrf.mxu0 }
 0x448   :  { %6392 = vst.msk [vmem:[%s11919_s3 + $0xc8] sm:$0xf] %vm6341_vm4, %v7060_v17  ;;  %v7058_v43 = vpack.c.bf16 %v6113_v32, %v6113_v32  ;;  %v6116_v59 = vmax.f32 %v6061_v36, 0.0  ;;  %v6059_v44 = vadd.f32 %v11532_v2, %v5997_v55 }
 0x449   :  { %v6002_v18 = vmax.f32 %v13025_v54, %v5947_v63  ;;  %v5945_v53 = vadd.f32 %v5879_v27, %v5629_v1  ;;  %v5566_v6 = vpop.f32.mrf.mxu0 }
 0x44a   :  { %6390 = vst.msk [vmem:[%s11919_s3 + $0xc0] sm:$0xf] %vm6341_vm4, %v7058_v43  ;;  %v7061_v16 = vpack.c.bf16 %v6116_v59, %v6116_v59  ;;  %v6114_v10 = vmax.f32 %v6059_v44, 0.0  ;;  %v5630_v9 = vadd.f32 %v5566_v6, %v13026_v21 }
 0x44b   :  { %v6064_v0 = vadd.f32 %v11532_v2, %v6002_v18  ;;  %v6000_v20 = vmax.f32 %v13027_v29, %v5945_v53 }
 0x44c   :  { %6393 = vst.msk [vmem:[%s11919_s3 + $0xcc] sm:$0xf] %vm6341_vm4, %v7061_v16  ;;  %v7059_v22 = vpack.c.bf16 %v6114_v10, %v6114_v10  ;;  %v5946_v46 = vadd.f32 %v5882_v51, %v5630_v9 }
 0x44d   :  { %v6119_v45 = vmax.f32 %v6064_v0, 0.0  ;;  %v6062_v7 = vadd.f32 %v11532_v2, %v6000_v20 }
 0x44e   :  { %6391 = vst.msk [vmem:[%s11919_s3 + $0xc4] sm:$0xf] %vm6341_vm4, %v7059_v22  ;;  %v6001_v39 = vmax.f32 %v13028_v15, %v5946_v46 }
 0x44f   :  { %v7064_v38 = vpack.c.bf16 %v6119_v45, %v6119_v45  ;;  %v6117_v34 = vmax.f32 %v6062_v7, 0.0 }
 0x450   :  { %v6063_v50 = vadd.f32 %v11532_v2, %v6001_v39 }
 0x451   :  { %6397 = vst.msk [vmem:[%s11919_s3 + $0xd8] sm:$0x1] %vm6396_vm5, %v7064_v38  ;;  %v7062_v47 = vpack.c.bf16 %v6117_v34, %v6117_v34 }
 0x452   :  { %v6118_v27 = vmax.f32 %v6063_v50, 0.0 }
 0x453   :  { %6394 = vst.msk [vmem:[%s11919_s3 + $0xd0] sm:$0xf] %vm6341_vm4, %v7062_v47 }
 0x454   :  { %v7063_v3 = vpack.c.bf16 %v6118_v27, %v6118_v27 }
 0x456   :  { %6395 = vst.msk [vmem:[%s11919_s3 + $0xd4] sm:$0xf] %vm6341_vm4, %v7063_v3 }

// kernel: attacker_forward.6
= control target key start
LH: loop header
LB: loop body
LE: loop exit
PB: predicated region body
PF: predicated region fallthrough
CT: control target
= control target key end

     0   :  { %v3377_v0 = vmov 0.0   ;;  %vm3378_vm0 = vmmov 0   ;;  %vm70_vm1 = vsmask.f32 7424  ;;  %vm355_vm2 = vsmask.f32 5376  ;;  %s4261_s1 = inlined_call_operand.vmem [shape: bf16[4,4,128,16], index: 1, kind: input, shape index: {}]   ;;  %s4262_s0 = inlined_call_operand.vmem [shape: bf16[50,128], index: 0, kind: input, shape index: {}]   ;;  %s4263_s3 = inlined_call_operand.vmem [shape: bf16[50,16], index: 3, kind: output, shape index: {}]   ;;  %s4264_s2 = inlined_call_operand.vmem [shape: f32[1,16], index: 2, kind: input, shape index: {}]  }
   0x1   :  { %2787 = vmatprep.subr.bf16.mxu0 %v3377_v0  ;;  %2815 = vmatprep.subr.bf16.mxu1 %v3377_v0  ;;  %v3238_v1 = vld [vmem:[%s4261_s1 + $0x78] sm:$0xff]   ;;  %v3240_v3 = vld [vmem:[%s4261_s1 + $0x70] sm:$0xff]   ;;  %v3242_v5 = vld [vmem:[%s4261_s1 + $0x68] sm:$0xff]   ;;  %vm522_vm3 = vcmask 1044480   ;;  %vm2213_vm4 = vcmask 125954   ;;  %vm2215_vm5 = vcmask 122880  }
   0x2   :  { %v3239_v2 = vld [vmem:[%s4261_s1 + $0x38] sm:$0xff]   ;;  %2803 = vmatprep.mubr.msk.bf16.mxu0 %vm3378_vm0, %v3377_v0  ;;  %2831 = vmatprep.mubr.msk.bf16.mxu1 %vm3378_vm0, %v3377_v0  ;;  %v3241_v4 = vld [vmem:[%s4261_s1 + $0x30] sm:$0xff]   ;;  %v3243_v6 = vld [vmem:[%s4261_s1 + $0x28] sm:$0xff]   ;;  %vm2205_vm6 = vcmask 125952   ;;  %vm2211_vm7 = vcmask 123904  }
   0x3   :  { %2788 = vmatpush3.bf16.msra.mxu0 %v3238_v1  ;;  %2816 = vmatpush3.bf16.msra.mxu1 %v3239_v2  ;;  %v3244_v7 = vld [vmem:[%s4261_s1 + $0x60] sm:$0xff]   ;;  %v3246_v9 = vld [vmem:[%s4261_s1 + $0x58] sm:$0xff]   ;;  %v3452_v12 = vld [vmem:[%s4262_s0 + $0x8] sm:$0xff]  }
   0x4   :  { %2789 = vmatprep.subr.bf16.mxu0 %v3377_v0  ;;  %2817 = vmatprep.subr.bf16.mxu1 %v3377_v0  ;;  %v3245_v8 = vld [vmem:[%s4261_s1 + $0x20] sm:$0xff]   ;;  %v3247_v10 = vld [vmem:[%s4261_s1 + $0x18] sm:$0xff]   ;;  %v3248_v13 = vld [vmem:[%s4261_s1 + $0x50] sm:$0xff]   ;;  %v79_v19 = vshll.u32 %v3452_v12, 16  ;;  %v83_v29 = vshrl.u32 %v3452_v12, 16 }
   0x5   :  { %v3447_v11 = vld [vmem:[%s4262_s0] sm:$0xff]   ;;  %v3249_v14 = vld [vmem:[%s4261_s1 + $0x10] sm:$0xff]   ;;  %v3250_v16 = vld [vmem:[%s4261_s1 + $0x48] sm:$0xff]  }
   0x6   :  { %v74_v15 = vshll.u32 %v3447_v11, 16  ;;  %v72_v17 = vshrl.u32 %v3447_v11, 16  ;;  %v3251_v20 = vld [vmem:[%s4261_s1 + $0x8] sm:$0xff]   ;;  %v19_v21 = vld [vmem:[%s4262_s0 + $0x10] sm:$0xf]  ;;  %v3252_v24 = vld [vmem:[%s4261_s1 + $0x40] sm:$0xff]  }
   0x7   :  { %2790 = vmatpush3.bf16.msra.mxu0 %v3240_v3  ;;  %2818 = vmatpush3.bf16.msra.mxu1 %v3241_v4  ;;  %v37_v22 = vld [vmem:[%s4262_s0 + $0x14] sm:$0x7]  ;;  %v81_v26 = vrot.slane %v79_v19, 1  ;;  %v3253_v27 = vld [vmem:[%s4261_s1] sm:$0xff]   ;;  %v3256_v28 = vld [vmem:[%s4261_s1 + $0xb8] sm:$0xff]  }
   0x8   :  { %2791 = vmatprep.subr.bf16.mxu0 %v3377_v0  ;;  %2819 = vmatprep.subr.bf16.mxu1 %v3377_v0  ;;  %v76_v18 = vrot.slane %v74_v15, 1  ;;  %v2239_v23 = vcombine.low %v19_v21, %v37_v22  ;;  %v3257_v32 = vld [vmem:[%s4261_s1 + $0xf8] sm:$0xff]   ;;  %v3258_v33 = vld [vmem:[%s4261_s1 + $0xb0] sm:$0xff]   ;;  %v3260_v37 = vld [vmem:[%s4261_s1 + $0xa8] sm:$0xff]  }
   0x9   :  { %v85_v34 = vor.u32 %v83_v29, %v81_v26  ;;  %v3259_v36 = vld [vmem:[%s4261_s1 + $0xf0] sm:$0xff]   ;;  %v3261_v39 = vld [vmem:[%s4261_s1 + $0xe8] sm:$0xff]   ;;  %v3263_v40 = vld [vmem:[%s4261_s1 + $0xa0] sm:$0xff]  }
   0xa   :  { %v77_v25 = vor.u32 %v76_v18, %v72_v17  ;;  %v87_v30 = vshll.u32 %v2239_v23, 16  ;;  %v91_v41 = vshrl.u32 %v2239_v23, 16  ;;  %v313_v42 = vld [vmem:[%s4262_s0] sm:$0xc]  ;;  %v314_v44 = vld [vmem:[%s4262_s0 + $0x4] sm:$0xf] }
   0xb   :  { %2792 = vmatpush3.bf16.msra.mxu0 %v3242_v5  ;;  %2820 = vmatpush3.bf16.msra.mxu1 %v3243_v6  ;;  %v3264_v43 = vld [vmem:[%s4261_s1 + $0xe0] sm:$0xff]   ;;  %v20_v45 = vld [vmem:[%s4262_s0 + $0x14] sm:$0x3]  ;;  %v2273_v46 = vcombine.low %v313_v42, %v314_v44  ;;  %v3548_v47 = vld [vmem:[%s4262_s0 + $0x8] sm:$0xff]  }
   0xc   :  { %2793 = vmatprep.subr.bf16.mxu0 %v3377_v0  ;;  %2821 = vmatprep.subr.bf16.mxu1 %v3377_v0  ;;  %v3492_v31 = vsel %vm70_vm1, %v77_v25, %v81_v26  ;;  %v89_v35 = vrot.slane %v87_v30, 1  ;;  %v3265_v49 = vld [vmem:[%s4261_s1 + $0x98] sm:$0xff]   ;;  %v3557_v50 = vcombine.low %v19_v21, %v20_v45  ;;  %v3268_v52 = vld [vmem:[%s4261_s1 + $0x90] sm:$0xff]   ;;  %v365_v55 = vshrl.u32 %v3548_v47, 16  ;;  %v501_v58 = vld [vmem:[%s4262_s0] sm:$0x8] }
   0xd   :  { %v3266_v51 = vld [vmem:[%s4261_s1 + $0xd8] sm:$0xff]   ;;  %v357_v53 = vshrl.u32 %v2273_v46, 16  ;;  %v360_v54 = vshll.u32 %v2273_v46, 16  ;;  %v3269_v56 = vld [vmem:[%s4261_s1 + $0xd0] sm:$0xff]   ;;  %v368_v57 = vshll.u32 %v3548_v47, 16  ;;  %v3270_v59 = vld [vmem:[%s4261_s1 + $0x88] sm:$0xff]   ;;  %v2301_v3 = vcombine.low %v501_v58, %v314_v44 }
   0xe   :  { %v3517_v38 = vsel %vm70_vm1, %v85_v34, %v89_v35  ;;  %v3550_v48 = vor.u32 %v91_v41, %v89_v35  ;;  %v367_v62 = vrot.slane %v365_v55, 2  ;;  %v3589_v1 = vld [vmem:[%s4262_s0 + $0x10] sm:$0xff]   ;;  %v3271_v2 = vld [vmem:[%s4261_s1 + $0xc8] sm:$0xff]   ;;  %v3272_v4 = vld [vmem:[%s4261_s1 + $0x80] sm:$0xff]  }
   0xf   :  { %2794 = vmatpush3.bf16.msra.mxu0 %v3244_v7  ;;  %2822 = vmatpush3.bf16.msra.mxu1 %v3245_v8  ;;  %v359_v60 = vrot.slane %v357_v53, 2  ;;  %v362_v61 = vrot.slane %v360_v54, 3  ;;  %v370_v63 = vrot.slane %v368_v57, 3  ;;  %v3273_v5 = vld [vmem:[%s4261_s1 + $0xc0] sm:$0xff]   ;;  %v374_v8 = vshrl.u32 %v3589_v1, 16  ;;  %v3278_v19 = vld [vmem:[%s4261_s1 + $0x138] sm:$0xff]  }
  0x10   :  { %2795 = vmatprep.subr.bf16.mxu0 %v3377_v0  ;;  %2823 = vmatprep.subr.bf16.mxu1 %v3377_v0  ;;  %v3279_v21 = vld [vmem:[%s4261_s1 + $0x170] sm:$0xff]   ;;  %v3282_v26 = vld [vmem:[%s4261_s1 + $0x168] sm:$0xff]   ;;  %v3284_v30 = vld [vmem:[%s4261_s1 + $0x160] sm:$0xff]  }
  0x11   :  { %v363_v6 = vor.u32 %v362_v61, %v359_v60  ;;  %v371_v7 = vor.u32 %v370_v63, %v367_v62  ;;  %v3280_v23 = vld [vmem:[%s4261_s1 + $0x130] sm:$0xff]   ;;  %v3291_v42 = vld [vmem:[%s4261_s1 + $0x148] sm:$0xff]   ;;  %v3293_v44 = vld [vmem:[%s4261_s1 + $0x140] sm:$0xff]  }
  0x12   :  { %v3290_v41 = vld [vmem:[%s4261_s1 + $0x110] sm:$0xff]   ;;  %v3294_v45 = vld [vmem:[%s4261_s1 + $0x100] sm:$0xff]   ;;  %v3295_v46 = vld [vmem:[%s4261_s1 + $0x1b8] sm:$0xff]  }
  0x13   :  { %2796 = vmatpush3.bf16.msra.mxu0 %v3246_v9  ;;  %2824 = vmatpush3.bf16.msra.mxu1 %v3247_v10  ;;  %v377_v9 = vshll.u32 %v3589_v1, 16  ;;  %v523_v10 = vrot.slane %v2301_v3, 3  ;;  %v3611_v15 = vsel %vm355_vm2, %v363_v6, %v371_v7  ;;  %v3301_v53 = vld [vmem:[%s4261_s1 + $0x1a0] sm:$0xff]   ;;  %v3304_v55 = vld [vmem:[%s4261_s1 + $0x1d8] sm:$0xff]   ;;  %v3306_v57 = vld [vmem:[%s4261_s1 + $0x1d0] sm:$0xff]  }
  0x14   :  { %2797 = vmatprep.subr.bf16.mxu0 %v3377_v0  ;;  %2825 = vmatprep.subr.bf16.mxu1 %v3377_v0  ;;  %v3302_v54 = vld [vmem:[%s4261_s1 + $0x1e0] sm:$0xff]   ;;  %v3307_v58 = vld [vmem:[%s4261_s1 + $0x188] sm:$0xff]   ;;  %v3311_v62 = vld [vmem:[%s4261_s1 + $0x278] sm:$0xff]  }
  0x15   :  { %v379_v17 = vrot.slane %v377_v9, 3  ;;  %v3309_v60 = vld [vmem:[%s4261_s1 + $0x180] sm:$0xff]   ;;  %v3312_v63 = vld [vmem:[%s4261_s1 + $0x238] sm:$0xff]   ;;  %v3315_v3 = vld [vmem:[%s4261_s1 + $0x268] sm:$0xff]  }
  0x16   :  { %v3310_v61 = vld [vmem:[%s4261_s1 + $0x1c0] sm:$0xff]   ;;  %v3321_v9 = vld [vmem:[%s4261_s1 + $0x250] sm:$0xff]  }
  0x17   :  { %2798 = vmatpush3.bf16.msra.mxu0 %v3248_v13  ;;  %2826 = vmatpush3.bf16.msra.mxu1 %v3249_v14  ;;  %v524_v13 = vrot.slane %v3548_v47, 3  ;;  %v3277_v14 = vld [vmem:[%s4261_s1 + $0x178] sm:$0xff]   ;;  %v3318_v6 = vld [vmem:[%s4261_s1 + $0x220] sm:$0xff]  }
  0x18   :  { %2799 = vmatprep.subr.bf16.mxu0 %v3377_v0  ;;  %2827 = vmatprep.subr.bf16.mxu1 %v3377_v0  ;;  %v3296_v47 = vld [vmem:[%s4261_s1 + $0x1f8] sm:$0xff]  }
  0x19   :  { %v3614_v18 = vsel %vm522_vm3, %v523_v10, %v524_v13  ;;  %v3322_v10 = vld [vmem:[%s4261_s1 + $0x210] sm:$0xff]  }
  0x1b   :  { %2800 = vmatpush3.bf16.msra.mxu0 %v3250_v16  ;;  %2828 = vmatpush3.bf16.msra.mxu1 %v3251_v20  ;;  %v376_v16 = vrot.slane %v374_v8, 2  ;;  %v3286_v20 = vld [vmem:[%s4262_s0 + $0x18] ss:$0 sps:$4 sm:$0x11]  }
  0x1c   :  { %2801 = vmatprep.subr.bf16.mxu0 %v3377_v0  ;;  %2829 = vmatprep.subr.bf16.mxu1 %v3377_v0  ;;  %v528_v34 = vrot.slane %v3286_v20, 3  ;;  %v3320_v8 = vld [vmem:[%s4261_s1 + $0x218] sm:$0xff]  }
  0x1d   :  { %v380_v22 = vor.u32 %v379_v17, %v376_v16  ;;  %v3325_v16 = vld [vmem:[%s4261_s1 + $0x240] sm:$0xff]  }
  0x1e   :  { %v3326_v17 = vld [vmem:[%s4261_s1 + $0x200] sm:$0xff]  }
  0x1f   :  { %2802 = vmatpush3.bf16.msra.mxu0 %v3252_v24  ;;  %2830 = vmatpush3.bf16.msra.mxu1 %v3253_v27  ;;  %v526_v24 = vrot.slane %v3589_v1, 3  ;;  %v3640_v25 = vsel %vm355_vm2, %v371_v7, %v380_v22  ;;  %v383_v27 = vshll.u32 %v3286_v20, 16  ;;  %v3313_v1 = vld [vmem:[%s4261_s1 + $0x270] sm:$0xff]   ;;  %v3319_v7 = vld [vmem:[%s4261_s1 + $0x258] sm:$0xff]  }
  0x20   :  { %2843 = vmatprep.subr.bf16.mxu0 %v3377_v0  ;;  %2871 = vmatprep.subr.bf16.mxu1 %v3377_v0  ;;  %v3328_v20 = vld [vmem:[%s4261_s1 + $0x2f8] sm:$0xff]  }
  0x21   :  { %v3650_v29 = vsel %vm522_vm3, %v524_v13, %v526_v24  ;;  %v3323_v13 = vld [vmem:[%s4261_s1 + $0x248] sm:$0xff]  }
  0x22   :  { %2804 = vmatmul.mubr.bf16.vlgmr.msra.gmra.mxu0 %v3492_v31  ;;  %2832 = vmatmul.mubr.bf16.vlgmr.msra.gmra.mxu1 %v3447_v11 }
  0x23   :  { %2844 = vmatpush3.bf16.msra.mxu0 %v3256_v28  ;;  %2872 = vmatpush3.bf16.msra.mxu1 %v3257_v32  ;;  %v3283_v28 = vld [vmem:[%s4261_s1 + $0x128] sm:$0xff]   ;;  %v385_v32 = vrot.slane %v383_v27, 3 }
  0x24   :  { %2845 = vmatprep.subr.bf16.mxu0 %v3377_v0  ;;  %2873 = vmatprep.subr.bf16.mxu1 %v3377_v0  ;;  %v3914_v27 = vld [vmem:[%s4262_s0 + $0x8] sm:$0xff]  }
  0x25   :  { %2807 = vmatprep.mubr.msk.bf16.mxu0 %vm3378_vm0, %v3377_v0  ;;  %2835 = vmatprep.mubr.msk.bf16.mxu1 %vm3378_vm0, %v3377_v0  ;;  %v3668_v35 = vsel %vm355_vm2, %v380_v22, %v385_v32  ;;  %v3329_v22 = vld [vmem:[%s4261_s1 + $0x2b0] sm:$0xff]   ;;  %v3335_v32 = vld [vmem:[%s4261_s1 + $0x298] sm:$0xff]  }
  0x27   :  { %2846 = vmatpush3.bf16.msra.mxu0 %v3258_v33  ;;  %2874 = vmatpush3.bf16.msra.mxu1 %v3259_v36  ;;  %v3285_v33 = vld [vmem:[%s4261_s1 + $0x120] sm:$0xff]   ;;  %v3287_v36 = vld [vmem:[%s4261_s1 + $0x158] sm:$0xff]  }
  0x28   :  { %2847 = vmatprep.subr.bf16.mxu0 %v3377_v0  ;;  %2875 = vmatprep.subr.bf16.mxu1 %v3377_v0 }
  0x2a   :  { %2808 = vmatmul.mubr.bf16.gmra.mxu0 %v3517_v38  ;;  %2836 = vmatmul.mubr.bf16.gmra.mxu1 %v3452_v12 }
  0x2b   :  { %2848 = vmatpush3.bf16.msra.mxu0 %v3260_v37  ;;  %2876 = vmatpush3.bf16.msra.mxu1 %v3261_v39  ;;  %v3288_v37 = vld [vmem:[%s4261_s1 + $0x118] sm:$0xff]   ;;  %v3678_v39 = vsel %vm522_vm3, %v526_v24, %v528_v34  ;;  %v3331_v24 = vld [vmem:[%s4261_s1 + $0x2a8] sm:$0xff]   ;;  %v3337_v34 = vld [vmem:[%s4261_s1 + $0x290] sm:$0xff]  }
  0x2c   :  { %2849 = vmatprep.subr.bf16.mxu0 %v3377_v0  ;;  %2877 = vmatprep.subr.bf16.mxu1 %v3377_v0 }
  0x2d   :  { %2811 = vmatprep.mubr.msk.bf16.mxu0 %vm3378_vm0, %v3377_v0  ;;  %2839 = vmatprep.mubr.msk.bf16.mxu1 %vm3378_vm0, %v3377_v0 }
  0x2f   :  { %2850 = vmatpush3.bf16.msra.mxu0 %v3263_v40  ;;  %2878 = vmatpush3.bf16.msra.mxu1 %v3264_v43  ;;  %v3289_v40 = vld [vmem:[%s4261_s1 + $0x150] sm:$0xff]   ;;  %v3292_v43 = vld [vmem:[%s4261_s1 + $0x108] sm:$0xff]  }
  0x30   :  { %2851 = vmatprep.subr.bf16.mxu0 %v3377_v0  ;;  %2879 = vmatprep.subr.bf16.mxu1 %v3377_v0 }
  0x32   :  { %2812 = vmatmul.mubr.bf16.gmra.mxu0 %v3550_v48  ;;  %2840 = vmatmul.mubr.bf16.gmra.mxu1 %v3557_v50 }
  0x33   :  { %2852 = vmatpush3.bf16.msra.mxu0 %v3265_v49  ;;  %2880 = vmatpush3.bf16.msra.mxu1 %v3266_v51  ;;  %v3297_v49 = vld [vmem:[%s4261_s1 + $0x1b0] sm:$0xff]  }
  0x34   :  { %2853 = vmatprep.subr.bf16.mxu0 %v3377_v0  ;;  %2881 = vmatprep.subr.bf16.mxu1 %v3377_v0  ;;  %v3298_v51 = vld [vmem:[%s4261_s1 + $0x1f0] sm:$0xff]  }
  0x35   :  { %2859 = vmatprep.mubr.msk.bf16.mxu0 %vm3378_vm0, %v3377_v0  ;;  %2887 = vmatprep.mubr.msk.bf16.mxu1 %vm3378_vm0, %v3377_v0 }
  0x37   :  { %2854 = vmatpush3.bf16.msra.mxu0 %v3268_v52  ;;  %2882 = vmatpush3.bf16.msra.mxu1 %v3269_v56  ;;  %v3300_v52 = vld [vmem:[%s4261_s1 + $0x1e8] sm:$0xff]   ;;  %v3305_v56 = vld [vmem:[%s4261_s1 + $0x190] sm:$0xff]  }
  0x38   :  { %2855 = vmatprep.subr.bf16.mxu0 %v3377_v0  ;;  %2883 = vmatprep.subr.bf16.mxu1 %v3377_v0 }
  0x3b   :  { %2856 = vmatpush3.bf16.msra.mxu0 %v3270_v59  ;;  %2884 = vmatpush3.bf16.msra.mxu1 %v3271_v2  ;;  %v3308_v59 = vld [vmem:[%s4261_s1 + $0x1c8] sm:$0xff]   ;;  %v3314_v2 = vld [vmem:[%s4261_s1 + $0x230] sm:$0xff]  }
  0x3c   :  { %2857 = vmatprep.subr.bf16.mxu0 %v3377_v0  ;;  %2885 = vmatprep.subr.bf16.mxu1 %v3377_v0 }
  0x3f   :  { %2858 = vmatpush3.bf16.msra.mxu0 %v3272_v4  ;;  %2886 = vmatpush3.bf16.msra.mxu1 %v3273_v5  ;;  %v3316_v4 = vld [vmem:[%s4261_s1 + $0x228] sm:$0xff]   ;;  %v3317_v5 = vld [vmem:[%s4261_s1 + $0x260] sm:$0xff]  }
  0x40   :  { %2899 = vmatprep.subr.bf16.mxu0 %v3377_v0  ;;  %2927 = vmatprep.subr.bf16.mxu1 %v3377_v0 }
  0x42   :  { %2860 = vmatmul.mubr.bf16.vlgmr.msra.gmra.mxu0 %v3611_v15  ;;  %2888 = vmatmul.mubr.bf16.vlgmr.msra.gmra.mxu1 %v3614_v18 }
  0x43   :  { %2900 = vmatpush3.bf16.msra.mxu0 %v3277_v14  ;;  %2928 = vmatpush3.bf16.msra.mxu1 %v3278_v19  ;;  %v3324_v14 = vld [vmem:[%s4261_s1 + $0x208] sm:$0xff]   ;;  %v3327_v19 = vld [vmem:[%s4261_s1 + $0x2b8] sm:$0xff]  }
  0x44   :  { %2901 = vmatprep.subr.bf16.mxu0 %v3377_v0  ;;  %2929 = vmatprep.subr.bf16.mxu1 %v3377_v0 }
  0x45   :  { %2863 = vmatprep.mubr.msk.bf16.mxu0 %vm3378_vm0, %v3377_v0  ;;  %2891 = vmatprep.mubr.msk.bf16.mxu1 %vm3378_vm0, %v3377_v0 }
  0x47   :  { %2902 = vmatpush3.bf16.msra.mxu0 %v3279_v21  ;;  %2930 = vmatpush3.bf16.msra.mxu1 %v3280_v23  ;;  %v3887_v21 = vld [vmem:[%s4262_s0] sm:$0xff]   ;;  %v3330_v23 = vld [vmem:[%s4261_s1 + $0x2f0] sm:$0xff]  }
  0x48   :  { %2903 = vmatprep.subr.bf16.mxu0 %v3377_v0  ;;  %2931 = vmatprep.subr.bf16.mxu1 %v3377_v0 }
  0x4a   :  { %2864 = vmatmul.mubr.bf16.gmra.mxu0 %v3640_v25  ;;  %2892 = vmatmul.mubr.bf16.gmra.mxu1 %v3650_v29 }
  0x4b   :  { %2904 = vmatpush3.bf16.msra.mxu0 %v3282_v26  ;;  %2932 = vmatpush3.bf16.msra.mxu1 %v3283_v28  ;;  %v3332_v26 = vld [vmem:[%s4261_s1 + $0x2e8] sm:$0xff]   ;;  %v3333_v28 = vld [vmem:[%s4261_s1 + $0x2a0] sm:$0xff]  }
  0x4c   :  { %2905 = vmatprep.subr.bf16.mxu0 %v3377_v0  ;;  %2933 = vmatprep.subr.bf16.mxu1 %v3377_v0 }
  0x4d   :  { %2867 = vmatprep.mubr.msk.bf16.mxu0 %vm3378_vm0, %v3377_v0  ;;  %2895 = vmatprep.mubr.msk.bf16.mxu1 %vm3378_vm0, %v3377_v0 }
  0x4f   :  { %2906 = vmatpush3.bf16.msra.mxu0 %v3284_v30  ;;  %2934 = vmatpush3.bf16.msra.mxu1 %v3285_v33  ;;  %v3334_v30 = vld [vmem:[%s4261_s1 + $0x2e0] sm:$0xff]   ;;  %v3336_v33 = vld [vmem:[%s4261_s1 + $0x2d8] sm:$0xff]  }
  0x50   :  { %2907 = vmatprep.subr.bf16.mxu0 %v3377_v0  ;;  %2935 = vmatprep.subr.bf16.mxu1 %v3377_v0 }
  0x52   :  { %2868 = vmatmul.mubr.bf16.gmra.mxu0 %v3668_v35  ;;  %2896 = vmatmul.mubr.bf16.gmra.mxu1 %v3678_v39 }
  0x53   :  { %2908 = vmatpush3.bf16.msra.mxu0 %v3287_v36  ;;  %2936 = vmatpush3.bf16.msra.mxu1 %v3288_v37  ;;  %v3338_v36 = vld [vmem:[%s4261_s1 + $0x2d0] sm:$0xff]   ;;  %v3339_v37 = vld [vmem:[%s4261_s1 + $0x288] sm:$0xff]  }
  0x54   :  { %2909 = vmatprep.subr.bf16.mxu0 %v3377_v0  ;;  %2937 = vmatprep.subr.bf16.mxu1 %v3377_v0 }
  0x55   :  { %2915 = vmatprep.mubr.msk.bf16.mxu0 %vm3378_vm0, %v3377_v0  ;;  %2943 = vmatprep.mubr.msk.bf16.mxu1 %vm3378_vm0, %v3377_v0 }
  0x57   :  { %2910 = vmatpush3.bf16.msra.mxu0 %v3289_v40  ;;  %2938 = vmatpush3.bf16.msra.mxu1 %v3290_v41  ;;  %v3340_v40 = vld [vmem:[%s4261_s1 + $0x2c8] sm:$0xff]   ;;  %v3341_v41 = vld [vmem:[%s4261_s1 + $0x280] sm:$0xff]  }
  0x58   :  { %2911 = vmatprep.subr.bf16.mxu0 %v3377_v0  ;;  %2939 = vmatprep.subr.bf16.mxu1 %v3377_v0 }
  0x5b   :  { %2912 = vmatpush3.bf16.msra.mxu0 %v3291_v42  ;;  %2940 = vmatpush3.bf16.msra.mxu1 %v3292_v43  ;;  %v3342_v42 = vld [vmem:[%s4261_s1 + $0x2c0] sm:$0xff]   ;;  %v3343_v43 = vld [vmem:[%s4261_s1 + $0x378] sm:$0xff]  }
  0x5c   :  { %2913 = vmatprep.subr.bf16.mxu0 %v3377_v0  ;;  %2941 = vmatprep.subr.bf16.mxu1 %v3377_v0 }
  0x5f   :  { %2914 = vmatpush3.bf16.msra.mxu0 %v3293_v44  ;;  %2942 = vmatpush3.bf16.msra.mxu1 %v3294_v45  ;;  %v3344_v44 = vld [vmem:[%s4261_s1 + $0x338] sm:$0xff]   ;;  %v3345_v45 = vld [vmem:[%s4261_s1 + $0x370] sm:$0xff]  }
  0x60   :  { %2955 = vmatprep.subr.bf16.mxu0 %v3377_v0  ;;  %2983 = vmatprep.subr.bf16.mxu1 %v3377_v0 }
  0x62   :  { %2916 = vmatmul.mubr.bf16.vlgmr.msra.gmra.mxu0 %v3492_v31  ;;  %2944 = vmatmul.mubr.bf16.vlgmr.msra.gmra.mxu1 %v3447_v11  ;;  %v3299_v11 = vld [vmem:[%s4261_s1 + $0x1a8] sm:$0xff]  }
  0x63   :  { %2956 = vmatpush3.bf16.msra.mxu0 %v3295_v46  ;;  %2984 = vmatpush3.bf16.msra.mxu1 %v3296_v47  ;;  %v3346_v46 = vld [vmem:[%s4261_s1 + $0x330] sm:$0xff]   ;;  %v3347_v47 = vld [vmem:[%s4261_s1 + $0x368] sm:$0xff]  }
  0x64   :  { %2957 = vmatprep.subr.bf16.mxu0 %v3377_v0  ;;  %2985 = vmatprep.subr.bf16.mxu1 %v3377_v0 }
  0x65   :  { %2919 = vmatprep.mubr.msk.bf16.mxu0 %vm3378_vm0, %v3377_v0  ;;  %2947 = vmatprep.mubr.msk.bf16.mxu1 %vm3378_vm0, %v3377_v0 }
  0x67   :  { %2958 = vmatpush3.bf16.msra.mxu0 %v3297_v49  ;;  %2986 = vmatpush3.bf16.msra.mxu1 %v3298_v51  ;;  %v3348_v49 = vld [vmem:[%s4261_s1 + $0x328] sm:$0xff]   ;;  %v3349_v51 = vld [vmem:[%s4261_s1 + $0x360] sm:$0xff]  }
  0x68   :  { %2959 = vmatprep.subr.bf16.mxu0 %v3377_v0  ;;  %2987 = vmatprep.subr.bf16.mxu1 %v3377_v0 }
  0x6a   :  { %2920 = vmatmul.mubr.bf16.gmra.mxu0 %v3517_v38  ;;  %2948 = vmatmul.mubr.bf16.gmra.mxu1 %v3452_v12  ;;  %v3303_v12 = vld [vmem:[%s4261_s1 + $0x198] sm:$0xff]  }
  0x6b   :  { %2960 = vmatpush3.bf16.msra.mxu0 %v3299_v11  ;;  %2988 = vmatpush3.bf16.msra.mxu1 %v3300_v52  ;;  %v3350_v11 = vld [vmem:[%s4261_s1 + $0x320] sm:$0xff]   ;;  %v3351_v52 = vld [vmem:[%s4261_s1 + $0x358] sm:$0xff]  }
  0x6c   :  { %2961 = vmatprep.subr.bf16.mxu0 %v3377_v0  ;;  %2989 = vmatprep.subr.bf16.mxu1 %v3377_v0 }
  0x6d   :  { %2923 = vmatprep.mubr.msk.bf16.mxu0 %vm3378_vm0, %v3377_v0  ;;  %2951 = vmatprep.mubr.msk.bf16.mxu1 %vm3378_vm0, %v3377_v0 }
  0x6f   :  { %2962 = vmatpush3.bf16.msra.mxu0 %v3301_v53  ;;  %2990 = vmatpush3.bf16.msra.mxu1 %v3302_v54  ;;  %v3352_v53 = vld [vmem:[%s4261_s1 + $0x318] sm:$0xff]   ;;  %v3353_v54 = vld [vmem:[%s4261_s1 + $0x350] sm:$0xff]  }
  0x70   :  { %2963 = vmatprep.subr.bf16.mxu0 %v3377_v0  ;;  %2991 = vmatprep.subr.bf16.mxu1 %v3377_v0 }
  0x72   :  { %2924 = vmatmul.mubr.bf16.gmra.mxu0 %v3550_v48  ;;  %2952 = vmatmul.mubr.bf16.gmra.mxu1 %v3557_v50 }
  0x73   :  { %2964 = vmatpush3.bf16.msra.mxu0 %v3303_v12  ;;  %2992 = vmatpush3.bf16.msra.mxu1 %v3304_v55  ;;  %v3354_v12 = vld [vmem:[%s4261_s1 + $0x310] sm:$0xff]   ;;  %v3355_v55 = vld [vmem:[%s4261_s1 + $0x348] sm:$0xff]  }
  0x74   :  { %2965 = vmatprep.subr.bf16.mxu0 %v3377_v0  ;;  %2993 = vmatprep.subr.bf16.mxu1 %v3377_v0 }
  0x75   :  { %2971 = vmatprep.mubr.msk.bf16.mxu0 %vm3378_vm0, %v3377_v0  ;;  %2999 = vmatprep.mubr.msk.bf16.mxu1 %vm3378_vm0, %v3377_v0 }
  0x77   :  { %2966 = vmatpush3.bf16.msra.mxu0 %v3305_v56  ;;  %2994 = vmatpush3.bf16.msra.mxu1 %v3306_v57  ;;  %v3356_v56 = vld [vmem:[%s4261_s1 + $0x308] sm:$0xff]   ;;  %v3357_v57 = vld [vmem:[%s4261_s1 + $0x340] sm:$0xff]  }
  0x78   :  { %2967 = vmatprep.subr.bf16.mxu0 %v3377_v0  ;;  %2995 = vmatprep.subr.bf16.mxu1 %v3377_v0 }
  0x7b   :  { %2968 = vmatpush3.bf16.msra.mxu0 %v3307_v58  ;;  %2996 = vmatpush3.bf16.msra.mxu1 %v3308_v59  ;;  %v3358_v58 = vld [vmem:[%s4261_s1 + $0x300] sm:$0xff]   ;;  %v3359_v59 = vld [vmem:[%s4261_s1 + $0x3b8] sm:$0xff]  }
  0x7c   :  { %2969 = vmatprep.subr.bf16.mxu0 %v3377_v0  ;;  %2997 = vmatprep.subr.bf16.mxu1 %v3377_v0 }
  0x7f   :  { %2970 = vmatpush3.bf16.msra.mxu0 %v3309_v60  ;;  %2998 = vmatpush3.bf16.msra.mxu1 %v3310_v61  ;;  %v3360_v60 = vld [vmem:[%s4261_s1 + $0x3f8] sm:$0xff]  }
  0x80   :  { %3011 = vmatprep.subr.bf16.mxu0 %v3377_v0  ;;  %3039 = vmatprep.subr.bf16.mxu1 %v3377_v0 }
  0x82   :  { %2972 = vmatmul.mubr.bf16.vlgmr.msra.gmra.mxu0 %v3611_v15  ;;  %3000 = vmatmul.mubr.bf16.vlgmr.msra.gmra.mxu1 %v3614_v18 }
  0x83   :  { %3012 = vmatpush3.bf16.msra.mxu0 %v3311_v62  ;;  %3040 = vmatpush3.bf16.msra.mxu1 %v3312_v63  ;;  %v3361_v63 = vld [vmem:[%s4261_s1 + $0x3b0] sm:$0xff]  }
  0x84   :  { %3013 = vmatprep.subr.bf16.mxu0 %v3377_v0  ;;  %3041 = vmatprep.subr.bf16.mxu1 %v3377_v0 }
  0x85   :  { %2975 = vmatprep.mubr.msk.bf16.mxu0 %vm3378_vm0, %v3377_v0  ;;  %3003 = vmatprep.mubr.msk.bf16.mxu1 %vm3378_vm0, %v3377_v0 }
  0x87   :  { %3014 = vmatpush3.bf16.msra.mxu0 %v3313_v1  ;;  %3042 = vmatpush3.bf16.msra.mxu1 %v3314_v2 }
  0x88   :  { %3015 = vmatprep.subr.bf16.mxu0 %v3377_v0  ;;  %3043 = vmatprep.subr.bf16.mxu1 %v3377_v0 }
  0x8a   :  { %2976 = vmatmul.mubr.bf16.gmra.mxu0 %v3640_v25  ;;  %3004 = vmatmul.mubr.bf16.gmra.mxu1 %v3650_v29 }
  0x8b   :  { %3016 = vmatpush3.bf16.msra.mxu0 %v3315_v3  ;;  %3044 = vmatpush3.bf16.msra.mxu1 %v3316_v4  ;;  %v3362_v3 = vld [vmem:[%s4261_s1 + $0x3f0] sm:$0xff]  }
  0x8c   :  { %3017 = vmatprep.subr.bf16.mxu0 %v3377_v0  ;;  %3045 = vmatprep.subr.bf16.mxu1 %v3377_v0 }
  0x8d   :  { %2979 = vmatprep.mubr.msk.bf16.mxu0 %vm3378_vm0, %v3377_v0  ;;  %3007 = vmatprep.mubr.msk.bf16.mxu1 %vm3378_vm0, %v3377_v0 }
  0x8f   :  { %3018 = vmatpush3.bf16.msra.mxu0 %v3317_v5  ;;  %3046 = vmatpush3.bf16.msra.mxu1 %v3318_v6  ;;  %v3363_v6 = vld [vmem:[%s4261_s1 + $0x3a8] sm:$0xff]  }
  0x90   :  { %3019 = vmatprep.subr.bf16.mxu0 %v3377_v0  ;;  %3047 = vmatprep.subr.bf16.mxu1 %v3377_v0 }
  0x92   :  { %2980 = vmatmul.mubr.bf16.gmra.mxu0 %v3668_v35  ;;  %3008 = vmatmul.mubr.bf16.gmra.mxu1 %v3678_v39 }
  0x93   :  { %3020 = vmatpush3.bf16.msra.mxu0 %v3319_v7  ;;  %3048 = vmatpush3.bf16.msra.mxu1 %v3320_v8 }
  0x94   :  { %3021 = vmatprep.subr.bf16.mxu0 %v3377_v0  ;;  %3049 = vmatprep.subr.bf16.mxu1 %v3377_v0 }
  0x95   :  { %3027 = vmatprep.mubr.msk.bf16.mxu0 %vm3378_vm0, %v3377_v0  ;;  %3055 = vmatprep.mubr.msk.bf16.mxu1 %vm3378_vm0, %v3377_v0 }
  0x97   :  { %3022 = vmatpush3.bf16.msra.mxu0 %v3321_v9  ;;  %3050 = vmatpush3.bf16.msra.mxu1 %v3322_v10  ;;  %v3364_v9 = vld [vmem:[%s4261_s1 + $0x3e8] sm:$0xff]  }
  0x98   :  { %3023 = vmatprep.subr.bf16.mxu0 %v3377_v0  ;;  %3051 = vmatprep.subr.bf16.mxu1 %v3377_v0 }
  0x9b   :  { %3024 = vmatpush3.bf16.msra.mxu0 %v3323_v13  ;;  %3052 = vmatpush3.bf16.msra.mxu1 %v3324_v14 }
  0x9c   :  { %3025 = vmatprep.subr.bf16.mxu0 %v3377_v0  ;;  %3053 = vmatprep.subr.bf16.mxu1 %v3377_v0 }
  0x9f   :  { %3026 = vmatpush3.bf16.msra.mxu0 %v3325_v16  ;;  %3054 = vmatpush3.bf16.msra.mxu1 %v3326_v17  ;;  %v3365_v16 = vld [vmem:[%s4261_s1 + $0x3a0] sm:$0xff]  }
  0xa0   :  { %3067 = vmatprep.subr.bf16.mxu0 %v3377_v0  ;;  %3095 = vmatprep.subr.bf16.mxu1 %v3377_v0 }
  0xa2   :  { %3028 = vmatmul.mubr.bf16.vlgmr.msra.gmra.mxu0 %v3492_v31  ;;  %3056 = vmatmul.mubr.bf16.vlgmr.msra.gmra.mxu1 %v3887_v21 }
  0xa3   :  { %3068 = vmatpush3.bf16.msra.mxu0 %v3327_v19  ;;  %3096 = vmatpush3.bf16.msra.mxu1 %v3328_v20  ;;  %v3366_v20 = vld [vmem:[%s4261_s1 + $0x3e0] sm:$0xff]  }
  0xa4   :  { %3069 = vmatprep.subr.bf16.mxu0 %v3377_v0  ;;  %3097 = vmatprep.subr.bf16.mxu1 %v3377_v0 }
  0xa5   :  { %3031 = vmatprep.mubr.msk.bf16.mxu0 %vm3378_vm0, %v3377_v0  ;;  %3059 = vmatprep.mubr.msk.bf16.mxu1 %vm3378_vm0, %v3377_v0 }
  0xa7   :  { %3070 = vmatpush3.bf16.msra.mxu0 %v3329_v22  ;;  %3098 = vmatpush3.bf16.msra.mxu1 %v3330_v23  ;;  %v3367_v23 = vld [vmem:[%s4261_s1 + $0x398] sm:$0xff]  }
  0xa8   :  { %3071 = vmatprep.subr.bf16.mxu0 %v3377_v0  ;;  %3099 = vmatprep.subr.bf16.mxu1 %v3377_v0 }
  0xaa   :  { %3032 = vmatmul.mubr.bf16.gmra.mxu0 %v3517_v38  ;;  %3060 = vmatmul.mubr.bf16.gmra.mxu1 %v3914_v27 }
  0xab   :  { %3072 = vmatpush3.bf16.msra.mxu0 %v3331_v24  ;;  %3100 = vmatpush3.bf16.msra.mxu1 %v3332_v26 }
  0xac   :  { %3073 = vmatprep.subr.bf16.mxu0 %v3377_v0  ;;  %3101 = vmatprep.subr.bf16.mxu1 %v3377_v0 }
  0xad   :  { %3035 = vmatprep.mubr.msk.bf16.mxu0 %vm3378_vm0, %v3377_v0  ;;  %3063 = vmatprep.mubr.msk.bf16.mxu1 %vm3378_vm0, %v3377_v0 }
  0xaf   :  { %3074 = vmatpush3.bf16.msra.mxu0 %v3333_v28  ;;  %3102 = vmatpush3.bf16.msra.mxu1 %v3334_v30 }
  0xb0   :  { %3075 = vmatprep.subr.bf16.mxu0 %v3377_v0  ;;  %3103 = vmatprep.subr.bf16.mxu1 %v3377_v0 }
  0xb2   :  { %3036 = vmatmul.mubr.bf16.gmra.mxu0 %v3550_v48  ;;  %3064 = vmatmul.mubr.bf16.gmra.mxu1 %v3557_v50 }
  0xb3   :  { %3076 = vmatpush3.bf16.msra.mxu0 %v3335_v32  ;;  %3104 = vmatpush3.bf16.msra.mxu1 %v3336_v33  ;;  %v3369_v33 = vld [vmem:[%s4261_s1 + $0x390] sm:$0xff]  }
  0xb4   :  { %3077 = vmatprep.subr.bf16.mxu0 %v3377_v0  ;;  %3105 = vmatprep.subr.bf16.mxu1 %v3377_v0 }
  0xb5   :  { %3083 = vmatprep.mubr.msk.bf16.mxu0 %vm3378_vm0, %v3377_v0  ;;  %3111 = vmatprep.mubr.msk.bf16.mxu1 %vm3378_vm0, %v3377_v0 }
  0xb7   :  { %3078 = vmatpush3.bf16.msra.mxu0 %v3337_v34  ;;  %3106 = vmatpush3.bf16.msra.mxu1 %v3338_v36 }
  0xb8   :  { %3079 = vmatprep.subr.bf16.mxu0 %v3377_v0  ;;  %3107 = vmatprep.subr.bf16.mxu1 %v3377_v0 }
  0xbb   :  { %3080 = vmatpush3.bf16.msra.mxu0 %v3339_v37  ;;  %3108 = vmatpush3.bf16.msra.mxu1 %v3340_v40  ;;  %v3370_v37 = vld [vmem:[%s4261_s1 + $0x3d0] sm:$0xff]  }
  0xbc   :  { %3081 = vmatprep.subr.bf16.mxu0 %v3377_v0  ;;  %3109 = vmatprep.subr.bf16.mxu1 %v3377_v0 }
  0xbf   :  { %3082 = vmatpush3.bf16.msra.mxu0 %v3341_v41  ;;  %3110 = vmatpush3.bf16.msra.mxu1 %v3342_v42  ;;  %v3371_v41 = vld [vmem:[%s4261_s1 + $0x388] sm:$0xff]  }
  0xc0   :  { %3123 = vmatprep.subr.bf16.mxu0 %v3377_v0  ;;  %3151 = vmatprep.subr.bf16.mxu1 %v3377_v0 }
  0xc2   :  { %3084 = vmatmul.mubr.bf16.vlgmr.msra.gmra.mxu0 %v3611_v15  ;;  %3112 = vmatmul.mubr.bf16.vlgmr.msra.gmra.mxu1 %v3614_v18 }
  0xc3   :  { %3124 = vmatpush3.bf16.msra.mxu0 %v3343_v43  ;;  %3152 = vmatpush3.bf16.msra.mxu1 %v3344_v44  ;;  %v3372_v44 = vld [vmem:[%s4261_s1 + $0x3c8] sm:$0xff]  }
  0xc4   :  { %3125 = vmatprep.subr.bf16.mxu0 %v3377_v0  ;;  %3153 = vmatprep.subr.bf16.mxu1 %v3377_v0 }
  0xc5   :  { %3087 = vmatprep.mubr.msk.bf16.mxu0 %vm3378_vm0, %v3377_v0  ;;  %3115 = vmatprep.mubr.msk.bf16.mxu1 %vm3378_vm0, %v3377_v0 }
  0xc7   :  { %3126 = vmatpush3.bf16.msra.mxu0 %v3345_v45  ;;  %3154 = vmatpush3.bf16.msra.mxu1 %v3346_v46  ;;  %v3373_v46 = vld [vmem:[%s4261_s1 + $0x380] sm:$0xff]  }
  0xc8   :  { %3127 = vmatprep.subr.bf16.mxu0 %v3377_v0  ;;  %3155 = vmatprep.subr.bf16.mxu1 %v3377_v0 }
  0xca   :  { %3088 = vmatmul.mubr.bf16.gmra.mxu0 %v3640_v25  ;;  %3116 = vmatmul.mubr.bf16.gmra.mxu1 %v3650_v29 }
  0xcb   :  { %3128 = vmatpush3.bf16.msra.mxu0 %v3347_v47  ;;  %3156 = vmatpush3.bf16.msra.mxu1 %v3348_v49  ;;  %v3374_v47 = vld [vmem:[%s4261_s1 + $0x3c0] sm:$0xff]  }
  0xcc   :  { %3129 = vmatprep.subr.bf16.mxu0 %v3377_v0  ;;  %3157 = vmatprep.subr.bf16.mxu1 %v3377_v0 }
  0xcd   :  { %3091 = vmatprep.mubr.msk.bf16.mxu0 %vm3378_vm0, %v3377_v0  ;;  %3119 = vmatprep.mubr.msk.bf16.mxu1 %vm3378_vm0, %v3377_v0 }
  0xcf   :  { %3130 = vmatpush3.bf16.msra.mxu0 %v3349_v51  ;;  %3158 = vmatpush3.bf16.msra.mxu1 %v3350_v11 }
  0xd0   :  { %3131 = vmatprep.subr.bf16.mxu0 %v3377_v0  ;;  %3159 = vmatprep.subr.bf16.mxu1 %v3377_v0 }
  0xd2   :  { %3092 = vmatmul.mubr.bf16.gmra.mxu0 %v3668_v35  ;;  %3120 = vmatmul.mubr.bf16.gmra.mxu1 %v3678_v39 }
  0xd3   :  { %3132 = vmatpush3.bf16.msra.mxu0 %v3351_v52  ;;  %3160 = vmatpush3.bf16.msra.mxu1 %v3352_v53 }
  0xd4   :  { %3133 = vmatprep.subr.bf16.mxu0 %v3377_v0  ;;  %3161 = vmatprep.subr.bf16.mxu1 %v3377_v0 }
  0xd5   :  { %3139 = vmatprep.mubr.msk.bf16.mxu0 %vm3378_vm0, %v3377_v0  ;;  %3167 = vmatprep.mubr.msk.bf16.mxu1 %vm3378_vm0, %v3377_v0 }
  0xd7   :  { %3134 = vmatpush3.bf16.msra.mxu0 %v3353_v54  ;;  %3162 = vmatpush3.bf16.msra.mxu1 %v3354_v12 }
  0xd8   :  { %3135 = vmatprep.subr.bf16.mxu0 %v3377_v0  ;;  %3163 = vmatprep.subr.bf16.mxu1 %v3377_v0 }
  0xdb   :  { %3136 = vmatpush3.bf16.msra.mxu0 %v3355_v55  ;;  %3164 = vmatpush3.bf16.msra.mxu1 %v3356_v56 }
  0xdc   :  { %3137 = vmatprep.subr.bf16.mxu0 %v3377_v0  ;;  %3165 = vmatprep.subr.bf16.mxu1 %v3377_v0 }
  0xdf   :  { %3138 = vmatpush3.bf16.msra.mxu0 %v3357_v57  ;;  %3166 = vmatpush3.bf16.msra.mxu1 %v3358_v58 }
  0xe0   :  { %3179 = vmatprep.subr.bf16.mxu0 %v3377_v0  ;;  %3207 = vmatprep.subr.bf16.mxu1 %v3377_v0 }
  0xe2   :  { %v179_v61 = vpop.f32.mrf.mxu0  ;;  %3140 = vmatmul.mubr.bf16.vlgmr.msra.gmra.mxu0 %v3492_v31  ;;  %v290_v62 = vpop.f32.mrf.mxu1  ;;  %3168 = vmatmul.mubr.bf16.vlgmr.msra.gmra.mxu1 %v3887_v21 }
  0xe3   :  { %3180 = vmatpush3.bf16.msra.mxu0 %v3359_v59  ;;  %v4062_v1 = vadd.f32 %v290_v62, %v179_v61  ;;  %3208 = vmatpush3.bf16.msra.mxu1 %v3360_v60 }
  0xe4   :  { %v2805_v2 = vpop.f32.mrf.mxu0  ;;  %3181 = vmatprep.subr.bf16.mxu0 %v3377_v0  ;;  %v2833_v4 = vpop.f32.mrf.mxu1  ;;  %3209 = vmatprep.subr.bf16.mxu1 %v3377_v0 }
  0xe5   :  { %3143 = vmatprep.mubr.msk.bf16.mxu0 %vm3378_vm0, %v3377_v0  ;;  %3171 = vmatprep.mubr.msk.bf16.mxu1 %vm3378_vm0, %v3377_v0 }
  0xe6   :  { %v182_v31 = vpop.f32.mrf.mxu0  ;;  %v293_v5 = vpop.f32.mrf.mxu1 }
  0xe7   :  { %3182 = vmatpush3.bf16.msra.mxu0 %v3361_v63  ;;  %v4076_v7 = vadd.f32 %v293_v5, %v182_v31  ;;  %3210 = vmatpush3.bf16.msra.mxu1 %v3362_v3 }
  0xe8   :  { %v2806_v8 = vpop.f32.mrf.mxu0  ;;  %3183 = vmatprep.subr.bf16.mxu0 %v3377_v0  ;;  %v2834_v10 = vpop.f32.mrf.mxu1  ;;  %3211 = vmatprep.subr.bf16.mxu1 %v3377_v0 }
  0xea   :  { %3144 = vmatmul.mubr.bf16.gmra.mxu0 %v3517_v38  ;;  %v187_v13 = vpop.f32.mrf.mxu0  ;;  %3172 = vmatmul.mubr.bf16.gmra.mxu1 %v3914_v27  ;;  %v298_v14 = vpop.f32.mrf.mxu1  ;;  %v3368_v27 = vld [vmem:[%s4261_s1 + $0x3d8] sm:$0xff]  }
  0xeb   :  { %3184 = vmatpush3.bf16.msra.mxu0 %v3363_v6  ;;  %3212 = vmatpush3.bf16.msra.mxu1 %v3364_v9  ;;  %v4089_v19 = vadd.f32 %v298_v14, %v187_v13 }
  0xec   :  { %3185 = vmatprep.subr.bf16.mxu0 %v3377_v0  ;;  %v2809_v17 = vpop.f32.mrf.mxu0  ;;  %3213 = vmatprep.subr.bf16.mxu1 %v3377_v0  ;;  %v2837_v38 = vpop.f32.mrf.mxu1 }
  0xed   :  { %3147 = vmatprep.mubr.msk.bf16.mxu0 %vm3378_vm0, %v3377_v0  ;;  %3175 = vmatprep.mubr.msk.bf16.mxu1 %vm3378_vm0, %v3377_v0 }
  0xee   :  { %v190_v21 = vpop.f32.mrf.mxu0  ;;  %v301_v22 = vpop.f32.mrf.mxu1 }
  0xef   :  { %3186 = vmatpush3.bf16.msra.mxu0 %v3365_v16  ;;  %3214 = vmatpush3.bf16.msra.mxu1 %v3366_v20  ;;  %v4103_v26 = vadd.f32 %v301_v22, %v190_v21 }
  0xf0   :  { %3187 = vmatprep.subr.bf16.mxu0 %v3377_v0  ;;  %v2810_v24 = vpop.f32.mrf.mxu0  ;;  %3215 = vmatprep.subr.bf16.mxu1 %v3377_v0  ;;  %v2838_v28 = vpop.f32.mrf.mxu1 }
  0xf2   :  { %3148 = vmatmul.mubr.bf16.gmra.mxu0 %v3550_v48  ;;  %v195_v30 = vpop.f32.mrf.mxu0  ;;  %3176 = vmatmul.mubr.bf16.gmra.mxu1 %v3557_v50  ;;  %v306_v32 = vpop.f32.mrf.mxu1 }
  0xf3   :  { %3188 = vmatpush3.bf16.msra.mxu0 %v3367_v23  ;;  %3216 = vmatpush3.bf16.msra.mxu1 %v3368_v27  ;;  %v307_v36 = vadd.f32 %v306_v32, %v195_v30 }
  0xf4   :  { %3189 = vmatprep.subr.bf16.mxu0 %v3377_v0  ;;  %v2813_v34 = vpop.f32.mrf.mxu0  ;;  %3217 = vmatprep.subr.bf16.mxu1 %v3377_v0  ;;  %v2841_v48 = vpop.f32.mrf.mxu1 }
  0xf5   :  { %3195 = vmatprep.mubr.msk.bf16.mxu0 %vm3378_vm0, %v3377_v0  ;;  %3223 = vmatprep.mubr.msk.bf16.mxu1 %vm3378_vm0, %v3377_v0 }
  0xf6   :  { %v198_v50 = vpop.f32.mrf.mxu0  ;;  %v309_v40 = vpop.f32.mrf.mxu1 }
  0xf7   :  { %3190 = vmatpush3.bf16.msra.mxu0 %v3369_v33  ;;  %3218 = vmatpush3.bf16.msra.mxu1 %v3370_v37  ;;  %v310_v43 = vadd.f32 %v309_v40, %v198_v50 }
  0xf8   :  { %3191 = vmatprep.subr.bf16.mxu0 %v3377_v0  ;;  %v2814_v42 = vpop.f32.mrf.mxu0  ;;  %3219 = vmatprep.subr.bf16.mxu1 %v3377_v0  ;;  %v2842_v45 = vpop.f32.mrf.mxu1 }
  0xfb   :  { %3192 = vmatpush3.bf16.msra.mxu0 %v3371_v41  ;;  %3220 = vmatpush3.bf16.msra.mxu1 %v3372_v44 }
  0xfc   :  { %3193 = vmatprep.subr.bf16.mxu0 %v3377_v0  ;;  %3221 = vmatprep.subr.bf16.mxu1 %v3377_v0 }
  0xff   :  { %3194 = vmatpush3.bf16.msra.mxu0 %v3373_v46  ;;  %3222 = vmatpush3.bf16.msra.mxu1 %v3374_v47 }
 0x102   :  { %v472_v49 = vpop.f32.mrf.mxu0  ;;  %3196 = vmatmul.mubr.bf16.vlgmr.msra.gmra.mxu0 %v3611_v15  ;;  %v615_v11 = vpop.f32.mrf.mxu1  ;;  %3224 = vmatmul.mubr.bf16.vlgmr.msra.gmra.mxu1 %v3614_v18 }
 0x103   :  { %v495_v51 = vadd.f32 %v472_v49, %v4062_v1  ;;  %3199 = vmatprep.mubr.msk.bf16.mxu0 %vm3378_vm0, %v3377_v0  ;;  %3227 = vmatprep.mubr.msk.bf16.mxu1 %vm3378_vm0, %v3377_v0 }
 0x104   :  { %v2861_v52 = vpop.f32.mrf.mxu0  ;;  %v2889_v54 = vpop.f32.mrf.mxu1 }
 0x105   :  { %v4146_v53 = vadd.f32 %v615_v11, %v495_v51 }
 0x106   :  { %v475_v12 = vpop.f32.mrf.mxu0  ;;  %v618_v56 = vpop.f32.mrf.mxu1 }
 0x107   :  { %v496_v55 = vadd.f32 %v475_v12, %v4076_v7 }
 0x108   :  { %v2862_v15 = vpop.f32.mrf.mxu0  ;;  %v2890_v58 = vpop.f32.mrf.mxu1 }
 0x109   :  { %v4149_v57 = vadd.f32 %v618_v56, %v496_v55 }
 0x10a   :  { %v480_v59 = vpop.f32.mrf.mxu0  ;;  %3200 = vmatmul.mubr.bf16.gmra.mxu0 %v3640_v25  ;;  %3228 = vmatmul.mubr.bf16.gmra.mxu1 %v3650_v29  ;;  %v623_v60 = vpop.f32.mrf.mxu1 }
 0x10b   :  { %v497_v18 = vadd.f32 %v480_v59, %v4089_v19  ;;  %3203 = vmatprep.mubr.msk.bf16.mxu0 %vm3378_vm0, %v3377_v0  ;;  %3231 = vmatprep.mubr.msk.bf16.mxu1 %vm3378_vm0, %v3377_v0 }
 0x10c   :  { %v2865_v61 = vpop.f32.mrf.mxu0  ;;  %v2893_v63 = vpop.f32.mrf.mxu1 }
 0x10d   :  { %v4158_v62 = vadd.f32 %v623_v60, %v497_v18 }
 0x10e   :  { %v483_v1 = vpop.f32.mrf.mxu0  ;;  %v626_v3 = vpop.f32.mrf.mxu1 }
 0x10f   :  { %v498_v2 = vadd.f32 %v483_v1, %v4103_v26 }
 0x110   :  { %v2866_v25 = vpop.f32.mrf.mxu0  ;;  %v2894_v31 = vpop.f32.mrf.mxu1 }
 0x111   :  { %v4161_v4 = vadd.f32 %v626_v3, %v498_v2 }
 0x112   :  { %v488_v29 = vpop.f32.mrf.mxu0  ;;  %3204 = vmatmul.mubr.bf16.gmra.mxu0 %v3668_v35  ;;  %3232 = vmatmul.mubr.bf16.gmra.mxu1 %v3678_v39  ;;  %v631_v6 = vpop.f32.mrf.mxu1 }
 0x113   :  { %v499_v5 = vadd.f32 %v488_v29, %v307_v36 }
 0x114   :  { %v2869_v7 = vpop.f32.mrf.mxu0  ;;  %v2897_v8 = vpop.f32.mrf.mxu1 }
 0x115   :  { %v4165_v0 = vadd.f32 %v631_v6, %v499_v5 }
 0x116   :  { %v491_v9 = vpop.f32.mrf.mxu0  ;;  %v634_v13 = vpop.f32.mrf.mxu1 }
 0x117   :  { %v500_v10 = vadd.f32 %v491_v9, %v310_v43 }
 0x118   :  { %v2870_v14 = vpop.f32.mrf.mxu0  ;;  %v2898_v17 = vpop.f32.mrf.mxu1 }
 0x119   :  { %v4167_v16 = vadd.f32 %v634_v13, %v500_v10  ;;  %v3379_v13 = vmov 0  }
 0x11a   :  { %2214 = vst.msk [vmem:[%s4263_s3 + $0x14] sm:$0xc] %vm2213_vm4, %v3379_v13 }
 0x11b   :  { %2216 = vst.msk [vmem:[%s4263_s3 + $0x18] sm:$0x1] %vm2215_vm5, %v3379_v13 }
 0x122   :  { %v760_v19 = vpop.f32.mrf.mxu0  ;;  %v865_v20 = vpop.f32.mrf.mxu1 }
 0x123   :  { %v866_v38 = vadd.f32 %v865_v20, %v760_v19 }
 0x124   :  { %v2917_v21 = vpop.f32.mrf.mxu0  ;;  %v2945_v35 = vpop.f32.mrf.mxu1 }
 0x126   :  { %v763_v22 = vpop.f32.mrf.mxu0  ;;  %v868_v23 = vpop.f32.mrf.mxu1 }
 0x127   :  { %v869_v39 = vadd.f32 %v868_v23, %v763_v22 }
 0x128   :  { %v2918_v24 = vpop.f32.mrf.mxu0  ;;  %v2946_v26 = vpop.f32.mrf.mxu1 }
 0x12a   :  { %v768_v27 = vpop.f32.mrf.mxu0  ;;  %v873_v28 = vpop.f32.mrf.mxu1 }
 0x12b   :  { %v874_v32 = vadd.f32 %v873_v28, %v768_v27 }
 0x12c   :  { %v2921_v30 = vpop.f32.mrf.mxu0  ;;  %v2949_v33 = vpop.f32.mrf.mxu1 }
 0x12e   :  { %v771_v34 = vpop.f32.mrf.mxu0  ;;  %v876_v36 = vpop.f32.mrf.mxu1 }
 0x12f   :  { %v877_v48 = vadd.f32 %v876_v36, %v771_v34 }
 0x130   :  { %v2922_v37 = vpop.f32.mrf.mxu0  ;;  %v2950_v50 = vpop.f32.mrf.mxu1 }
 0x132   :  { %v776_v40 = vpop.f32.mrf.mxu0  ;;  %v881_v41 = vpop.f32.mrf.mxu1 }
 0x133   :  { %v882_v43 = vadd.f32 %v881_v41, %v776_v40 }
 0x134   :  { %v2925_v42 = vpop.f32.mrf.mxu0  ;;  %v2953_v44 = vpop.f32.mrf.mxu1 }
 0x136   :  { %v779_v45 = vpop.f32.mrf.mxu0  ;;  %v884_v46 = vpop.f32.mrf.mxu1 }
 0x137   :  { %v885_v49 = vadd.f32 %v884_v46, %v779_v45 }
 0x138   :  { %v2926_v47 = vpop.f32.mrf.mxu0  ;;  %v2954_v51 = vpop.f32.mrf.mxu1 }
 0x142   :  { %v987_v11 = vpop.f32.mrf.mxu0  ;;  %v1115_v54 = vpop.f32.mrf.mxu1 }
 0x143   :  { %v1010_v52 = vadd.f32 %v987_v11, %v866_v38 }
 0x144   :  { %v2973_v12 = vpop.f32.mrf.mxu0  ;;  %v3001_v56 = vpop.f32.mrf.mxu1 }
 0x145   :  { %v4169_v55 = vadd.f32 %v1115_v54, %v1010_v52 }
 0x146   :  { %v990_v15 = vpop.f32.mrf.mxu0  ;;  %v1118_v18 = vpop.f32.mrf.mxu1 }
 0x147   :  { %v1144_v58 = vmax.f32 %v4146_v53, %v4169_v55  ;;  %v1011_v59 = vadd.f32 %v990_v15, %v869_v39 }
 0x148   :  { %v2974_v60 = vpop.f32.mrf.mxu0  ;;  %v3002_v63 = vpop.f32.mrf.mxu1 }
 0x149   :  { %v4173_v61 = vadd.f32 %v1118_v18, %v1011_v59 }
 0x14a   :  { %v995_v1 = vpop.f32.mrf.mxu0  ;;  %v1123_v25 = vpop.f32.mrf.mxu1 }
 0x14b   :  { %v1145_v2 = vmax.f32 %v4149_v57, %v4173_v61  ;;  %v1012_v3 = vadd.f32 %v995_v1, %v874_v32 }
 0x14c   :  { %v2977_v31 = vpop.f32.mrf.mxu0  ;;  %v3005_v5 = vpop.f32.mrf.mxu1 }
 0x14d   :  { %v4177_v29 = vadd.f32 %v1123_v25, %v1012_v3 }
 0x14e   :  { %v998_v6 = vpop.f32.mrf.mxu0  ;;  %v1126_v9 = vpop.f32.mrf.mxu1 }
 0x14f   :  { %v1146_v7 = vmax.f32 %v4158_v62, %v4177_v29  ;;  %v1013_v8 = vadd.f32 %v998_v6, %v877_v48 }
 0x150   :  { %v2978_v10 = vpop.f32.mrf.mxu0  ;;  %v3006_v17 = vpop.f32.mrf.mxu1 }
 0x151   :  { %v4184_v14 = vadd.f32 %v1126_v9, %v1013_v8 }
 0x152   :  { %v1003_v19 = vpop.f32.mrf.mxu0  ;;  %v1131_v21 = vpop.f32.mrf.mxu1 }
 0x153   :  { %v1147_v20 = vmax.f32 %v4161_v4, %v4184_v14  ;;  %v1014_v38 = vadd.f32 %v1003_v19, %v882_v43 }
 0x154   :  { %v2981_v35 = vpop.f32.mrf.mxu0  ;;  %v3009_v23 = vpop.f32.mrf.mxu1 }
 0x155   :  { %v4191_v22 = vadd.f32 %v1131_v21, %v1014_v38 }
 0x156   :  { %v1006_v39 = vpop.f32.mrf.mxu0  ;;  %v1134_v27 = vpop.f32.mrf.mxu1 }
 0x157   :  { %v1148_v24 = vmax.f32 %v4165_v0, %v4191_v22  ;;  %v1015_v26 = vadd.f32 %v1006_v39, %v885_v49 }
 0x158   :  { %v2982_v28 = vpop.f32.mrf.mxu0  ;;  %v3010_v32 = vpop.f32.mrf.mxu1 }
 0x159   :  { %v4195_v30 = vadd.f32 %v1134_v27, %v1015_v26 }
 0x15b   :  { %v1149_v33 = vmax.f32 %v4167_v16, %v4195_v30 }
 0x162   :  { %v1266_v34 = vpop.f32.mrf.mxu0  ;;  %v1371_v36 = vpop.f32.mrf.mxu1 }
 0x163   :  { %v1372_v37 = vadd.f32 %v1371_v36, %v1266_v34 }
 0x164   :  { %v3029_v48 = vpop.f32.mrf.mxu0  ;;  %v3057_v50 = vpop.f32.mrf.mxu1 }
 0x166   :  { %v1269_v40 = vpop.f32.mrf.mxu0  ;;  %v1374_v41 = vpop.f32.mrf.mxu1 }
 0x167   :  { %v1375_v42 = vadd.f32 %v1374_v41, %v1269_v40 }
 0x168   :  { %v3030_v43 = vpop.f32.mrf.mxu0  ;;  %v3058_v44 = vpop.f32.mrf.mxu1 }
 0x16a   :  { %v1274_v45 = vpop.f32.mrf.mxu0  ;;  %v1379_v46 = vpop.f32.mrf.mxu1 }
 0x16b   :  { %v1380_v49 = vadd.f32 %v1379_v46, %v1274_v45 }
 0x16c   :  { %v3033_v47 = vpop.f32.mrf.mxu0  ;;  %v3061_v51 = vpop.f32.mrf.mxu1 }
 0x16e   :  { %v1277_v11 = vpop.f32.mrf.mxu0  ;;  %v1382_v52 = vpop.f32.mrf.mxu1 }
 0x16f   :  { %v1383_v12 = vadd.f32 %v1382_v52, %v1277_v11 }
 0x170   :  { %v3034_v54 = vpop.f32.mrf.mxu0  ;;  %v3062_v56 = vpop.f32.mrf.mxu1 }
 0x172   :  { %v1282_v15 = vpop.f32.mrf.mxu0  ;;  %v1387_v59 = vpop.f32.mrf.mxu1 }
 0x173   :  { %v1388_v60 = vadd.f32 %v1387_v59, %v1282_v15 }
 0x174   :  { %v3037_v18 = vpop.f32.mrf.mxu0  ;;  %v3065_v63 = vpop.f32.mrf.mxu1 }
 0x176   :  { %v1285_v1 = vpop.f32.mrf.mxu0  ;;  %v1390_v3 = vpop.f32.mrf.mxu1 }
 0x177   :  { %v1391_v31 = vadd.f32 %v1390_v3, %v1285_v1 }
 0x178   :  { %v3038_v25 = vpop.f32.mrf.mxu0  ;;  %v3066_v5 = vpop.f32.mrf.mxu1 }
 0x182   :  { %v1493_v6 = vpop.f32.mrf.mxu0  ;;  %v1621_v9 = vpop.f32.mrf.mxu1 }
 0x183   :  { %v1516_v8 = vadd.f32 %v1493_v6, %v1372_v37 }
 0x184   :  { %v3085_v10 = vpop.f32.mrf.mxu0  ;;  %v3113_v17 = vpop.f32.mrf.mxu1 }
 0x185   :  { %v1644_v13 = vadd.f32 %v1621_v9, %v1516_v8 }
 0x186   :  { %v1496_v19 = vpop.f32.mrf.mxu0  ;;  %v1624_v35 = vpop.f32.mrf.mxu1 }
 0x187   :  { %v4202_v38 = vmax.f32 %v1144_v58, %v1644_v13  ;;  %v1517_v21 = vadd.f32 %v1496_v19, %v1375_v42 }
 0x188   :  { %v3086_v23 = vpop.f32.mrf.mxu0  ;;  %v3114_v26 = vpop.f32.mrf.mxu1 }
 0x189   :  { %v1645_v39 = vadd.f32 %v1624_v35, %v1517_v21 }
 0x18a   :  { %v1501_v27 = vpop.f32.mrf.mxu0  ;;  %v1629_v34 = vpop.f32.mrf.mxu1 }
 0x18b   :  { %v4207_v28 = vmax.f32 %v1145_v2, %v1645_v39  ;;  %v1518_v32 = vadd.f32 %v1501_v27, %v1380_v49  ;;  %v2598_v39 = vld [vmem:[%s4264_s2] ss:$0 sm:$0xff] }
 0x18c   :  { %v3089_v36 = vpop.f32.mrf.mxu0  ;;  %v3117_v48 = vpop.f32.mrf.mxu1 }
 0x18d   :  { %v1646_v37 = vadd.f32 %v1629_v34, %v1518_v32 }
 0x18e   :  { %v1504_v50 = vpop.f32.mrf.mxu0  ;;  %v1632_v58 = vpop.f32.mrf.mxu1 }
 0x18f   :  { %v4212_v53 = vmax.f32 %v1146_v7, %v1646_v37  ;;  %v1519_v55 = vadd.f32 %v1504_v50, %v1383_v12 }
 0x190   :  { %v3090_v40 = vpop.f32.mrf.mxu0  ;;  %v3118_v42 = vpop.f32.mrf.mxu1 }
 0x191   :  { %v1647_v41 = vadd.f32 %v1632_v58, %v1519_v55 }
 0x192   :  { %v1509_v43 = vpop.f32.mrf.mxu0  ;;  %v1637_v2 = vpop.f32.mrf.mxu1 }
 0x193   :  { %v4217_v57 = vmax.f32 %v1147_v20, %v1647_v41  ;;  %v1520_v61 = vadd.f32 %v1509_v43, %v1388_v60 }
 0x194   :  { %v3093_v44 = vpop.f32.mrf.mxu0  ;;  %v3121_v46 = vpop.f32.mrf.mxu1 }
 0x195   :  { %v1648_v45 = vadd.f32 %v1637_v2, %v1520_v61 }
 0x196   :  { %v1512_v47 = vpop.f32.mrf.mxu0  ;;  %v1640_v7 = vpop.f32.mrf.mxu1 }
 0x197   :  { %v4222_v62 = vmax.f32 %v1148_v24, %v1648_v45  ;;  %v1521_v29 = vadd.f32 %v1512_v47, %v1391_v31 }
 0x198   :  { %v3094_v49 = vpop.f32.mrf.mxu0  ;;  %v3122_v11 = vpop.f32.mrf.mxu1 }
 0x199   :  { %v1649_v51 = vadd.f32 %v1640_v7, %v1521_v29 }
 0x19b   :  { %v4227_v4 = vmax.f32 %v1149_v33, %v1649_v51 }
 0x1a2   :  { %v1772_v14 = vpop.f32.mrf.mxu0  ;;  %v1877_v20 = vpop.f32.mrf.mxu1 }
 0x1a3   :  { %v1878_v9 = vadd.f32 %v1877_v20, %v1772_v14 }
 0x1a4   :  { %v3141_v52 = vpop.f32.mrf.mxu0  ;;  %v3169_v54 = vpop.f32.mrf.mxu1 }
 0x1a6   :  { %v1775_v12 = vpop.f32.mrf.mxu0  ;;  %v1880_v56 = vpop.f32.mrf.mxu1 }
 0x1a7   :  { %v1881_v21 = vadd.f32 %v1880_v56, %v1775_v12 }
 0x1a8   :  { %v3142_v15 = vpop.f32.mrf.mxu0  ;;  %v3170_v0 = vpop.f32.mrf.mxu1 }
 0x1aa   :  { %v1780_v22 = vpop.f32.mrf.mxu0  ;;  %v1885_v24 = vpop.f32.mrf.mxu1 }
 0x1ab   :  { %v1886_v37 = vadd.f32 %v1885_v24, %v1780_v22 }
 0x1ac   :  { %v3145_v59 = vpop.f32.mrf.mxu0  ;;  %v3173_v18 = vpop.f32.mrf.mxu1 }
 0x1ae   :  { %v1783_v60 = vpop.f32.mrf.mxu0  ;;  %v1888_v63 = vpop.f32.mrf.mxu1 }
 0x1af   :  { %v1889_v2 = vadd.f32 %v1888_v63, %v1783_v60 }
 0x1b0   :  { %v3146_v1 = vpop.f32.mrf.mxu0  ;;  %v3174_v3 = vpop.f32.mrf.mxu1 }
 0x1b2   :  { %v1788_v25 = vpop.f32.mrf.mxu0  ;;  %v1893_v16 = vpop.f32.mrf.mxu1 }
 0x1b3   :  { %v1894_v11 = vadd.f32 %v1893_v16, %v1788_v25 }
 0x1b4   :  { %v3149_v30 = vpop.f32.mrf.mxu0  ;;  %v3177_v33 = vpop.f32.mrf.mxu1 }
 0x1b6   :  { %v1791_v31 = vpop.f32.mrf.mxu0  ;;  %v1896_v5 = vpop.f32.mrf.mxu1 }
 0x1b7   :  { %v1897_v24 = vadd.f32 %v1896_v5, %v1791_v31 }
 0x1b8   :  { %v3150_v6 = vpop.f32.mrf.mxu0  ;;  %v3178_v8 = vpop.f32.mrf.mxu1 }
 0x1c2   :  { %v1999_v10 = vpop.f32.mrf.mxu0  ;;  %v2127_v17 = vpop.f32.mrf.mxu1 }
 0x1c3   :  { %v2022_v13 = vadd.f32 %v1999_v10, %v1878_v9 }
 0x1c4   :  { %v3197_v19 = vpop.f32.mrf.mxu0  ;;  %v3225_v23 = vpop.f32.mrf.mxu1 }
 0x1c5   :  { %v2150_v35 = vadd.f32 %v2127_v17, %v2022_v13 }
 0x1c6   :  { %v2002_v26 = vpop.f32.mrf.mxu0  ;;  %v2130_v34 = vpop.f32.mrf.mxu1 }
 0x1c7   :  { %v2156_v27 = vmax.f32 %v4202_v38, %v2150_v35  ;;  %v2023_v32 = vadd.f32 %v2002_v26, %v1881_v21 }
 0x1c8   :  { %v3198_v36 = vpop.f32.mrf.mxu0  ;;  %v3226_v55 = vpop.f32.mrf.mxu1 }
 0x1c9   :  { %v2169_v48 = vadd.f32 %v2598_v39, %v2156_v27  ;;  %v2151_v50 = vadd.f32 %v2130_v34, %v2023_v32 }
 0x1ca   :  { %v2007_v58 = vpop.f32.mrf.mxu0  ;;  %v2135_v43 = vpop.f32.mrf.mxu1 }
 0x1cb   :  { %v2175_v40 = vmax.f32 %v2169_v48, 0.0  ;;  %v2157_v41 = vmax.f32 %v4207_v28, %v2151_v50  ;;  %v2024_v42 = vadd.f32 %v2007_v58, %v1886_v37 }
 0x1cc   :  { %v3201_v61 = vpop.f32.mrf.mxu0  ;;  %v3229_v38 = vpop.f32.mrf.mxu1 }
 0x1cd   :  { %v2605_v44 = vpack.c.bf16 %v2175_v40, %v2175_v40  ;;  %v2170_v45 = vadd.f32 %v2598_v39, %v2157_v41  ;;  %v2152_v46 = vadd.f32 %v2135_v43, %v2024_v42 }
 0x1ce   :  { %v2010_v47 = vpop.f32.mrf.mxu0  ;;  %v2138_v28 = vpop.f32.mrf.mxu1 }
 0x1cf   :  { %2206 = vst.msk [vmem:[%s4263_s3] sm:$0xf] %vm2205_vm6, %v2605_v44  ;;  %v2176_v29 = vmax.f32 %v2170_v45, 0.0  ;;  %v2158_v7 = vmax.f32 %v4212_v53, %v2152_v46  ;;  %v2025_v49 = vadd.f32 %v2010_v47, %v1889_v2 }
 0x1d0   :  { %v3202_v51 = vpop.f32.mrf.mxu0  ;;  %v3230_v54 = vpop.f32.mrf.mxu1 }
 0x1d1   :  { %v2606_v14 = vpack.c.bf16 %v2176_v29, %v2176_v29  ;;  %v2171_v20 = vadd.f32 %v2598_v39, %v2158_v7  ;;  %v2153_v52 = vadd.f32 %v2138_v28, %v2025_v49 }
 0x1d2   :  { %v2015_v12 = vpop.f32.mrf.mxu0  ;;  %v2143_v22 = vpop.f32.mrf.mxu1 }
 0x1d3   :  { %2207 = vst.msk [vmem:[%s4263_s3 + $0x4] sm:$0xf] %vm2205_vm6, %v2606_v14  ;;  %v2177_v56 = vmax.f32 %v2171_v20, 0.0  ;;  %v2159_v15 = vmax.f32 %v4217_v57, %v2153_v52  ;;  %v2026_v0 = vadd.f32 %v2015_v12, %v1894_v11 }
 0x1d4   :  { %v3205_v53 = vpop.f32.mrf.mxu0  ;;  %v3233_v63 = vpop.f32.mrf.mxu1 }
 0x1d5   :  { %v2607_v59 = vpack.c.bf16 %v2177_v56, %v2177_v56  ;;  %v2172_v18 = vadd.f32 %v2598_v39, %v2159_v15  ;;  %v2154_v60 = vadd.f32 %v2143_v22, %v2026_v0 }
 0x1d6   :  { %v2018_v1 = vpop.f32.mrf.mxu0  ;;  %v2146_v30 = vpop.f32.mrf.mxu1 }
 0x1d7   :  { %2208 = vst.msk [vmem:[%s4263_s3 + $0x8] sm:$0xf] %vm2205_vm6, %v2607_v59  ;;  %v2178_v3 = vmax.f32 %v2172_v18, 0.0  ;;  %v2160_v25 = vmax.f32 %v4222_v62, %v2154_v60  ;;  %v2027_v16 = vadd.f32 %v2018_v1, %v1897_v24 }
 0x1d8   :  { %v3206_v57 = vpop.f32.mrf.mxu0  ;;  %v3234_v31 = vpop.f32.mrf.mxu1 }
 0x1d9   :  { %v2608_v33 = vpack.c.bf16 %v2178_v3, %v2178_v3  ;;  %v2173_v6 = vadd.f32 %v2598_v39, %v2160_v25  ;;  %v2155_v8 = vadd.f32 %v2146_v30, %v2027_v16 }
 0x1db   :  { %2209 = vst.msk [vmem:[%s4263_s3 + $0xc] sm:$0xf] %vm2205_vm6, %v2608_v33  ;;  %v2179_v5 = vmax.f32 %v2173_v6, 0.0  ;;  %v2161_v9 = vmax.f32 %v4227_v4, %v2155_v8 }
 0x1dd   :  { %v2609_v10 = vpack.c.bf16 %v2179_v5, %v2179_v5  ;;  %v2174_v13 = vadd.f32 %v2598_v39, %v2161_v9 }
 0x1df   :  { %2210 = vst.msk [vmem:[%s4263_s3 + $0x10] sm:$0xf] %vm2205_vm6, %v2609_v10  ;;  %v2180_v62 = vmax.f32 %v2174_v13, 0.0 }
 0x1e1   :  { %v2610_v17 = vpack.c.bf16 %v2180_v62, %v2180_v62 }
 0x1e3   :  { %2212 = vst.msk [vmem:[%s4263_s3 + $0x14] sm:$0x3] %vm2211_vm7, %v2610_v17 }

// kernel: attacker_forward.7
= control target key start
LH: loop header
LB: loop body
LE: loop exit
PB: predicated region body
PF: predicated region fallthrough
CT: control target
= control target key end

     0   :  { %vm266_vm0 = vcmask 130048   ;;  %s1159_s1 = inlined_call_operand.vmem [shape: bf16[144,512], index: 1, kind: input, shape index: {}]   ;;  %s1160_s0 = inlined_call_operand.vmem [shape: bf16[8,144], index: 0, kind: input, shape index: {}]   ;;  %s1161_s3 = inlined_call_operand.vmem [shape: bf16[512,128], index: 3, kind: input, shape index: {}]   ;;  %s1162_s2 = inlined_call_operand.vmem [shape: f32[1,512], index: 2, kind: input, shape index: {}]   ;;  %s1163_s4 = inlined_call_operand.vmem [shape: f32[1,128], index: 4, kind: input, shape index: {}]   ;;  %s1164_s5 = inlined_call_operand.vmem [shape: f32[8,128], index: 5, kind: output, shape index: {}]  }
   0x1   :  { %v825_v0 = vld [vmem:[%s1159_s1 + $0xe4] ss:$16 sps:$4 sm:$0xff]   ;;  %v827_v1 = vld [vmem:[%s1159_s1 + $0xec] ss:$16 sps:$4 sm:$0xff]   ;;  %v829_v2 = vld [vmem:[%s1159_s1 + $0xe0] ss:$16 sps:$4 sm:$0xff]  }
   0x2   :  { %270 = vmatprep.subr.bf16.mxu0 %v825_v0  ;;  %v830_v3 = vld [vmem:[%s1159_s1 + $0xe8] ss:$16 sps:$4 sm:$0xff]   ;;  %311 = vmatprep.subr.bf16.mxu1 %v827_v1  ;;  %v831_v4 = vld [vmem:[%s1159_s1 + $0xc4] ss:$16 sps:$4 sm:$0xff]   ;;  %v833_v5 = vld [vmem:[%s1159_s1 + $0xcc] ss:$16 sps:$4 sm:$0xff]  }
   0x3   :  { %271 = vmatpush1.bf16.msra.mxu0 %v829_v2  ;;  %312 = vmatpush1.bf16.msra.mxu1 %v830_v3  ;;  %v835_v6 = vld [vmem:[%s1159_s1 + $0xc0] ss:$16 sps:$4 sm:$0xff]   ;;  %v836_v7 = vld [vmem:[%s1159_s1 + $0xc8] ss:$16 sps:$4 sm:$0xff]   ;;  %v837_v8 = vld [vmem:[%s1159_s1 + $0xa4] ss:$16 sps:$4 sm:$0xff]  }
   0x4   :  { %272 = vmatprep.subr.bf16.mxu0 %v831_v4  ;;  %313 = vmatprep.subr.bf16.mxu1 %v833_v5  ;;  %v839_v9 = vld [vmem:[%s1159_s1 + $0xac] ss:$16 sps:$4 sm:$0xff]   ;;  %v841_v10 = vld [vmem:[%s1159_s1 + $0xa0] ss:$16 sps:$4 sm:$0xff]   ;;  %v842_v11 = vld [vmem:[%s1159_s1 + $0xa8] ss:$16 sps:$4 sm:$0xff]  }
   0x5   :  { %v843_v12 = vld [vmem:[%s1159_s1 + $0x84] ss:$16 sps:$4 sm:$0xff]   ;;  %v845_v13 = vld [vmem:[%s1159_s1 + $0x8c] ss:$16 sps:$4 sm:$0xff]   ;;  %v847_v14 = vld [vmem:[%s1159_s1 + $0x80] ss:$16 sps:$4 sm:$0xff]  }
   0x6   :  { %v848_v15 = vld [vmem:[%s1159_s1 + $0x88] ss:$16 sps:$4 sm:$0xff]   ;;  %v849_v16 = vld [vmem:[%s1159_s1 + $0x64] ss:$16 sps:$4 sm:$0xff]   ;;  %v851_v17 = vld [vmem:[%s1159_s1 + $0x6c] ss:$16 sps:$4 sm:$0xff]  }
   0x7   :  { %273 = vmatpush1.bf16.msra.mxu0 %v835_v6  ;;  %314 = vmatpush1.bf16.msra.mxu1 %v836_v7  ;;  %v853_v18 = vld [vmem:[%s1159_s1 + $0x60] ss:$16 sps:$4 sm:$0xff]   ;;  %v854_v19 = vld [vmem:[%s1159_s1 + $0x68] ss:$16 sps:$4 sm:$0xff]   ;;  %v855_v20 = vld [vmem:[%s1159_s1 + $0x44] ss:$16 sps:$4 sm:$0xff]   ;;  %v60_v7 = vlaneseq }
   0x8   :  { %274 = vmatprep.subr.bf16.mxu0 %v837_v8  ;;  %315 = vmatprep.subr.bf16.mxu1 %v839_v9  ;;  %v857_v21 = vld [vmem:[%s1159_s1 + $0x4c] ss:$16 sps:$4 sm:$0xff]   ;;  %v859_v22 = vld [vmem:[%s1159_s1 + $0x40] ss:$16 sps:$4 sm:$0xff]   ;;  %v860_v23 = vld [vmem:[%s1159_s1 + $0x48] ss:$16 sps:$4 sm:$0xff]  }
   0x9   :  { %v861_v24 = vld [vmem:[%s1159_s1 + $0x24] ss:$16 sps:$4 sm:$0xff]   ;;  %v863_v25 = vld [vmem:[%s1159_s1 + $0x2c] ss:$16 sps:$4 sm:$0xff]   ;;  %v865_v26 = vld [vmem:[%s1159_s1 + $0x20] ss:$16 sps:$4 sm:$0xff]  }
   0xa   :  { %v866_v27 = vld [vmem:[%s1159_s1 + $0x28] ss:$16 sps:$4 sm:$0xff]   ;;  %v867_v28 = vld [vmem:[%s1159_s1 + $0x4] ss:$16 sps:$4 sm:$0xff]   ;;  %v869_v30 = vld [vmem:[%s1159_s1 + $0xc] ss:$16 sps:$4 sm:$0xff]  }
   0xb   :  { %275 = vmatpush1.bf16.msra.mxu0 %v841_v10  ;;  %316 = vmatpush1.bf16.msra.mxu1 %v842_v11  ;;  %v21_v29 = vld [vmem:[%s1160_s0] sm:$0xff]  ;;  %v872_v33 = vld [vmem:[%s1159_s1 + $0x8] ss:$16 sps:$4 sm:$0xff]   ;;  %v875_v35 = vld [vmem:[%s1159_s1 + $0x10c] ss:$16 sps:$4 sm:$0xff]   ;;  %v61_v8 = vshrl.u32 %v60_v7, 7 }
   0xc   :  { %276 = vmatprep.subr.bf16.mxu0 %v843_v12  ;;  %317 = vmatprep.subr.bf16.mxu1 %v845_v13  ;;  %v709_v31 = vcombine.high %v21_v29, %v21_v29  ;;  %v871_v32 = vld [vmem:[%s1159_s1] ss:$16 sps:$4 sm:$0xff]   ;;  %v873_v34 = vld [vmem:[%s1159_s1 + $0x104] ss:$16 sps:$4 sm:$0xff]   ;;  %v878_v37 = vld [vmem:[%s1159_s1 + $0x108] ss:$16 sps:$4 sm:$0xff]   ;;  %v708_v41 = vcombine.low %v21_v29, %v21_v29 }
   0xd   :  { %v877_v36 = vld [vmem:[%s1159_s1 + $0x100] ss:$16 sps:$4 sm:$0xff]   ;;  %v881_v38 = vld [vmem:[%s1161_s3 + $0x78] sm:$0xff]   ;;  %v889_v47 = vld [vmem:[%s1161_s3 + $0x68] sm:$0xff]   ;;  %v62_v9 = vsub.s32 0, %v61_v8  ;;  %v70_v10 = vsub.s32 2, %v61_v8 }
   0xe   :  { %746 = vmatprep.mubr.msk.bf16.mxu0 %vm266_vm0, %v709_v31  ;;  %747 = vmatprep.mubr.msk.bf16.mxu1 %vm266_vm0, %v709_v31  ;;  %v882_v39 = vld [vmem:[%s1161_s3 + $0xf8] sm:$0xff]   ;;  %v885_v43 = vld [vmem:[%s1161_s3 + $0x70] sm:$0xff]   ;;  %v890_v48 = vld [vmem:[%s1161_s3 + $0xe8] sm:$0xff]   ;;  %v66_v12 = vsub.s32 1, %v61_v8  ;;  %v74_v13 = vsub.s32 3, %v61_v8 }
   0xf   :  { %277 = vmatpush1.bf16.msra.mxu0 %v847_v14  ;;  %318 = vmatpush1.bf16.msra.mxu1 %v848_v15  ;;  %v883_v40 = vld [vmem:[%s1161_s3 + $0x38] sm:$0xff]   ;;  %v886_v44 = vld [vmem:[%s1161_s3 + $0xf0] sm:$0xff]   ;;  %v891_v49 = vld [vmem:[%s1161_s3 + $0x28] sm:$0xff]  }
  0x10   :  { %278 = vmatprep.subr.bf16.mxu0 %v849_v16  ;;  %319 = vmatprep.subr.bf16.mxu1 %v851_v17  ;;  %v884_v42 = vld [vmem:[%s1161_s3 + $0xb8] sm:$0xff]   ;;  %v887_v45 = vld [vmem:[%s1161_s3 + $0x30] sm:$0xff]   ;;  %v892_v50 = vld [vmem:[%s1161_s3 + $0xa8] sm:$0xff]  }
  0x11   :  { %v888_v46 = vld [vmem:[%s1161_s3 + $0xb0] sm:$0xff]   ;;  %v893_v51 = vld [vmem:[%s1161_s3 + $0x60] sm:$0xff]   ;;  %v897_v55 = vld [vmem:[%s1161_s3 + $0x58] sm:$0xff]  }
  0x12   :  { %v894_v52 = vld [vmem:[%s1161_s3 + $0xe0] sm:$0xff]   ;;  %v898_v56 = vld [vmem:[%s1161_s3 + $0xd8] sm:$0xff]   ;;  %v901_v59 = vld [vmem:[%s1161_s3 + $0x50] sm:$0xff]  }
  0x13   :  { %279 = vmatpush1.bf16.msra.mxu0 %v853_v18  ;;  %320 = vmatpush1.bf16.msra.mxu1 %v854_v19  ;;  %v895_v53 = vld [vmem:[%s1161_s3 + $0x20] sm:$0xff]   ;;  %v899_v57 = vld [vmem:[%s1161_s3 + $0x18] sm:$0xff]   ;;  %v902_v60 = vld [vmem:[%s1161_s3 + $0xd0] sm:$0xff]  }
  0x14   :  { %280 = vmatprep.subr.bf16.mxu0 %v855_v20  ;;  %321 = vmatprep.subr.bf16.mxu1 %v857_v21  ;;  %v896_v54 = vld [vmem:[%s1161_s3 + $0xa0] sm:$0xff]   ;;  %v900_v58 = vld [vmem:[%s1161_s3 + $0x98] sm:$0xff]   ;;  %v903_v61 = vld [vmem:[%s1161_s3 + $0x10] sm:$0xff]  }
  0x15   :  { %v904_v62 = vld [vmem:[%s1161_s3 + $0x90] sm:$0xff]   ;;  %v905_v63 = vld [vmem:[%s1161_s3 + $0x48] sm:$0xff]   ;;  %v909_v3 = vld [vmem:[%s1161_s3 + $0x40] sm:$0xff]  }
  0x16   :  { %v906_v0 = vld [vmem:[%s1161_s3 + $0xc8] sm:$0xff]   ;;  %v910_v4 = vld [vmem:[%s1161_s3 + $0xc0] sm:$0xff]  }
  0x17   :  { %281 = vmatpush1.bf16.msra.mxu0 %v859_v22  ;;  %322 = vmatpush1.bf16.msra.mxu1 %v860_v23  ;;  %v907_v1 = vld [vmem:[%s1161_s3 + $0x8] sm:$0xff]   ;;  %v911_v5 = vld [vmem:[%s1161_s3] sm:$0xff]  }
  0x18   :  { %282 = vmatprep.subr.bf16.mxu0 %v861_v24  ;;  %323 = vmatprep.subr.bf16.mxu1 %v863_v25  ;;  %v908_v2 = vld [vmem:[%s1161_s3 + $0x88] sm:$0xff]   ;;  %v912_v6 = vld [vmem:[%s1161_s3 + $0x80] sm:$0xff]  }
  0x19   :  { %v58_v11 = vld [vmem:[%s1162_s2] sm:$0xf] }
  0x1a   :  { %v63_v14 = vrot.slane %v58_v11, %v62_v9  ;;  %v71_v15 = vrot.slane %v58_v11, %v70_v10  ;;  %v67_v16 = vrot.slane %v58_v11, %v66_v12  ;;  %v75_v17 = vrot.slane %v58_v11, %v74_v13 }
  0x1b   :  { %283 = vmatpush1.bf16.msra.mxu0 %v865_v26  ;;  %324 = vmatpush1.bf16.msra.mxu1 %v866_v27 }
  0x1c   :  { %284 = vmatprep.subr.bf16.mxu0 %v867_v28  ;;  %325 = vmatprep.subr.bf16.mxu1 %v869_v30 }
  0x1f   :  { %285 = vmatpush1.bf16.msra.mxu0 %v871_v32  ;;  %326 = vmatpush1.bf16.msra.mxu1 %v872_v33 }
  0x20   :  { %300 = vmatprep.subr.bf16.mxu0 %v873_v34  ;;  %341 = vmatprep.subr.bf16.mxu1 %v875_v35 }
  0x23   :  { %301 = vmatpush2.bf16.msra.mxu0 %v877_v36  ;;  %342 = vmatpush2.bf16.msra.mxu1 %v878_v37 }
  0x24   :  { %781 = vmatprep.subr.bf16.mxu0 %v881_v38  ;;  %803 = vmatprep.subr.bf16.mxu1 %v882_v39 }
  0x26   :  { %303 = vmatmul.mubr.bf16.vlgmr.msra.gmra.mxu0 %v708_v41  ;;  %344 = vmatmul.mubr.bf16.vlgmr.msra.gmra.mxu1 %v708_v41 }
  0x27   :  { %782 = vmatpush3.bf16.msra.mxu0 %v883_v40  ;;  %804 = vmatpush3.bf16.msra.mxu1 %v884_v42  ;;  %v748_v40 = vld [vmem:[%s1163_s4] ss:$0 sm:$0xff] }
  0x28   :  { %783 = vmatprep.subr.bf16.mxu0 %v885_v43  ;;  %805 = vmatprep.subr.bf16.mxu1 %v886_v44 }
  0x2b   :  { %784 = vmatpush3.bf16.msra.mxu0 %v887_v45  ;;  %806 = vmatpush3.bf16.msra.mxu1 %v888_v46 }
  0x2c   :  { %785 = vmatprep.subr.bf16.mxu0 %v889_v47  ;;  %807 = vmatprep.subr.bf16.mxu1 %v890_v48 }
  0x2f   :  { %786 = vmatpush3.bf16.msra.mxu0 %v891_v49  ;;  %808 = vmatpush3.bf16.msra.mxu1 %v892_v50 }
  0x30   :  { %787 = vmatprep.subr.bf16.mxu0 %v893_v51  ;;  %809 = vmatprep.subr.bf16.mxu1 %v894_v52 }
  0x33   :  { %788 = vmatpush3.bf16.msra.mxu0 %v895_v53  ;;  %810 = vmatpush3.bf16.msra.mxu1 %v896_v54 }
  0x34   :  { %789 = vmatprep.subr.bf16.mxu0 %v897_v55  ;;  %811 = vmatprep.subr.bf16.mxu1 %v898_v56 }
  0x37   :  { %790 = vmatpush3.bf16.msra.mxu0 %v899_v57  ;;  %812 = vmatpush3.bf16.msra.mxu1 %v900_v58 }
  0x38   :  { %791 = vmatprep.subr.bf16.mxu0 %v901_v59  ;;  %813 = vmatprep.subr.bf16.mxu1 %v902_v60 }
  0x3b   :  { %792 = vmatpush3.bf16.msra.mxu0 %v903_v61  ;;  %814 = vmatpush3.bf16.msra.mxu1 %v904_v62 }
  0x3c   :  { %793 = vmatprep.subr.bf16.mxu0 %v905_v63  ;;  %815 = vmatprep.subr.bf16.mxu1 %v906_v0 }
  0x3f   :  { %794 = vmatpush3.bf16.msra.mxu0 %v907_v1  ;;  %816 = vmatpush3.bf16.msra.mxu1 %v908_v2 }
  0x40   :  { %795 = vmatprep.subr.bf16.mxu0 %v909_v3  ;;  %817 = vmatprep.subr.bf16.mxu1 %v910_v4 }
  0x43   :  { %796 = vmatpush3.bf16.msra.mxu0 %v911_v5  ;;  %818 = vmatpush3.bf16.msra.mxu1 %v912_v6 }
  0xe6   :  { %v304_v18 = vpop.f32.mrf.mxu0  ;;  %v345_v19 = vpop.f32.mrf.mxu1 }
  0xe7   :  { %v305_v20 = vadd.f32 %v304_v18, %v63_v14  ;;  %v346_v21 = vadd.f32 %v345_v19, %v71_v15 }
  0xe8   :  { %v306_v22 = vpop.f32.mrf.mxu0  ;;  %v347_v23 = vpop.f32.mrf.mxu1 }
  0xe9   :  { %v354_v24 = vmax.f32 %v346_v21, 0.0  ;;  %v307_v25 = vadd.f32 %v306_v22, %v67_v16  ;;  %v348_v26 = vadd.f32 %v347_v23, %v75_v17  ;;  %v352_v27 = vmax.f32 %v305_v20, 0.0 }
  0xea   :  { %v308_v28 = vpop.f32.mrf.mxu0  ;;  %v349_v29 = vpop.f32.mrf.mxu1 }
  0xeb   :  { %v353_v30 = vmax.f32 %v307_v25, 0.0  ;;  %v355_v31 = vmax.f32 %v348_v26, 0.0  ;;  %v358_v32 = vpack.c.bf16 %v354_v24, %v354_v24  ;;  %v356_v37 = vpack.c.bf16 %v352_v27, %v352_v27 }
  0xec   :  { %v309_v33 = vpop.f32.mrf.mxu0  ;;  %v350_v34 = vpop.f32.mrf.mxu1 }
  0xed   :  { %v357_v35 = vpack.c.bf16 %v353_v30, %v353_v30  ;;  %v359_v36 = vpack.c.bf16 %v355_v31, %v355_v31 }
  0xef   :  { %655 = vmatprep.mubr.bf16.mxu0 %v357_v35  ;;  %695 = vmatprep.mubr.bf16.mxu1 %v359_v36 }
  0xf0   :  { %656 = vmatmul.mubr.bf16.vlgmr.msra.gmra.mxu0 %v356_v37  ;;  %696 = vmatmul.mubr.bf16.vlgmr.msra.gmra.mxu1 %v358_v32 }
 0x1b0   :  { %v797_v38 = vpop.f32.mrf.mxu0  ;;  %v819_v39 = vpop.f32.mrf.mxu1 }
 0x1b2   :  { %v798_v41 = vpop.f32.mrf.mxu0  ;;  %v820_v42 = vpop.f32.mrf.mxu1 }
 0x1b3   :  { %v799_v43 = vadd.f32 %v798_v41, %v797_v38  ;;  %v821_v47 = vadd.f32 %v820_v42, %v819_v39 }
 0x1b4   :  { %v800_v44 = vpop.f32.mrf.mxu0  ;;  %v822_v45 = vpop.f32.mrf.mxu1 }
 0x1b5   :  { %v658_v46 = vadd.f32 %v799_v43, %v748_v40 }
 0x1b6   :  { %v801_v48 = vpop.f32.mrf.mxu0  ;;  %v823_v49 = vpop.f32.mrf.mxu1 }
 0x1b7   :  { %v698_v50 = vadd.f32 %v821_v47, %v658_v46 }
 0x1b9   :  { %703 = vst [vmem:[%s1164_s5] sm:$0xff] %v698_v50 }

</bundles_post_ra>
